<compile_context>
chip_gen: v6e
topology: v6e:2x2x1
jax: 0.10.0
libtpu: 0.0.40
codegen_flags: <defaults>
</compile_context>

<pallas_src>
import jax
import jax.numpy as jnp
from jax.experimental import pallas as pl
from jax.experimental.pallas import tpu as pltpu

# torchvision vgg16_bn "features" config; trailing MaxPool replaced by AdaptiveMaxPool2d(1)
VGG_CFG = [64, 64, 'M', 128, 128, 'M', 256, 256, 256, 'M',
           512, 512, 512, 'M', 512, 512, 512]
DESCRIPTOR_SIZE = 512           # num_features of children()[-3] (last BatchNorm2d)
BN_EPS = 1e-5
VMEM_LIMIT_BYTES = 48 * 1024 * 1024   # <= v7x's 64 MiB physical VMEM; fine on v5e/v6e


# --------------------------------------------------------------------------------------
# Fused conv3x3 + BN(eval) + ReLU (+ optional 2x2 maxpool / global maxpool) kernel
# --------------------------------------------------------------------------------------
def _make_conv_kernel(nb, H, W, Cin, Cout, mode):
    """mode in {'none', 'pool', 'global'}; processes nb whole images per grid step."""
    M = nb * H * W
    K = 3 * Cin
    bf16 = jnp.bfloat16

    def kernel(x_ref, w_ref, s_ref, b_ref, o_ref, xw_ref):
        # Packed operand: xw[n, yp, x, dx*Cin + c] = input[n, yp-1, x+dx-1, c]
        # (zero where out of range), so patch(dy) = xw[:, dy:dy+H] gives the dy tap row.

        # 1) zero only the halo perimeter (two rows + two edge columns); O(perimeter),
        #    executed every step so the scratch never carries garbage regardless of which
        #    core / grid slice runs first.
        xw_ref[:, 0:1, :, :] = jnp.zeros((nb, 1, W, K), bf16)
        xw_ref[:, H + 1:H + 2, :, :] = jnp.zeros((nb, 1, W, K), bf16)
        xw_ref[:, :, 0:1, 0:Cin] = jnp.zeros((nb, H + 2, 1, Cin), bf16)
        xw_ref[:, :, W - 1:W, 2 * Cin:3 * Cin] = jnp.zeros((nb, H + 2, 1, Cin), bf16)

        # 2) pack the three dx-shifted taps straight from the input block
        #    (no zero-padded intermediate, no second full materialization).
        x = x_ref[...]
        xw_ref[:, 1:H + 1, 1:W, 0:Cin] = x[:, :, 0:W - 1, :]             # dx = -1
        xw_ref[:, 1:H + 1, :, Cin:2 * Cin] = x                           # dx =  0
        xw_ref[:, 1:H + 1, 0:W - 1, 2 * Cin:3 * Cin] = x[:, :, 1:W, :]   # dx = +1

        # 3) three bf16 MXU matmuls (one per dy), K = 3*Cin, value-accumulated in f32
        #    (no VMEM accumulator scratch; stays in vregs / MXU result buffer).
        acc = jnp.dot(xw_ref[:, 0:H, :, :].reshape(M, K), w_ref[0],
                      preferred_element_type=jnp.float32)
        acc = acc + jnp.dot(xw_ref[:, 1:H + 1, :, :].reshape(M, K), w_ref[1],
                            preferred_element_type=jnp.float32)
        acc = acc + jnp.dot(xw_ref[:, 2:H + 2, :, :].reshape(M, K), w_ref[2],
                            preferred_element_type=jnp.float32)

        # 4) f32 epilogue: folded BN scale/bias + ReLU, fused pooling, cast on store
        y = jnp.maximum(acc * s_ref[...] + b_ref[...], 0.0)              # (M, Cout) f32
        if mode == "pool":          # fused MaxPool2d(2, 2)
            y = y.reshape(nb, H // 2, 2, W // 2, 2, Cout)
            y = jnp.max(jnp.max(y, axis=4), axis=2)                       # (nb,H/2,W/2,Cout)
            o_ref[...] = y.astype(o_ref.dtype)
        elif mode == "global":      # fused AdaptiveMaxPool2d(1)
            y = y.reshape(nb, H * W, Cout)
            o_ref[...] = jnp.max(y, axis=1, keepdims=True).astype(o_ref.dtype)
        else:
            o_ref[...] = y.reshape(nb, H, W, Cout).astype(o_ref.dtype)

    return kernel


def _images_per_step(N, H, W, target_rows):
    # smallest divisor of N whose batched matmul M = nb*H*W reaches ~target_rows
    for d in range(1, N + 1):
        if N % d == 0 and d * H * W >= target_rows:
            return d
    return N


def conv_bn_relu_fused(x, w3, scale, bias, mode):
    """x: (N, H, W, Cin) bf16; w3: (3, 3*Cin, Cout) bf16; scale/bias: (1, Cout) f32."""
    N, H, W, Cin = x.shape
    Cout = w3.shape[-1]
    K = w3.shape[1]
    assert K == 3 * Cin, (K, Cin)
    if mode == "pool":
        assert H % 2 == 0 and W % 2 == 0, "MaxPool2d(2,2) requires even H, W"

    # deeper (small-spatial, wide-channel) layers want more matmul rows per step
    target_rows = 512 if Cin >= 256 else 256
    nb = _images_per_step(N, H, W, target_rows)
    grid = (N // nb,)
    M = nb * H * W
    del M  # (documented via kernel closure)

    in_specs = [
        pl.BlockSpec((nb, H, W, Cin), lambda i: (i, 0, 0, 0)),
        pl.BlockSpec((3, K, Cout), lambda i: (0, 0, 0)),
        pl.BlockSpec((1, Cout), lambda i: (0, 0)),
        pl.BlockSpec((1, Cout), lambda i: (0, 0)),
    ]
    if mode == "pool":
        out_shape = jax.ShapeDtypeStruct((N, H // 2, W // 2, Cout), jnp.bfloat16)
        out_specs = pl.BlockSpec((nb, H // 2, W // 2, Cout), lambda i: (i, 0, 0, 0))
    elif mode == "global":
        out_shape = jax.ShapeDtypeStruct((N, 1, Cout), jnp.float32)
        out_specs = pl.BlockSpec((nb, 1, Cout), lambda i: (i, 0, 0))
    else:
        out_shape = jax.ShapeDtypeStruct((N, H, W, Cout), jnp.bfloat16)
        out_specs = pl.BlockSpec((nb, H, W, Cout), lambda i: (i, 0, 0, 0))

    # single scratch: the dx-packed conv operand with a 1-row halo top/bottom (bf16)
    scratch_shapes = [pltpu.VMEM((nb, H + 2, W, K), jnp.bfloat16)]

    out = pl.pallas_call(
        _make_conv_kernel(nb, H, W, Cin, Cout, mode),
        out_shape=out_shape,
        grid=grid,
        in_specs=in_specs,
        out_specs=out_specs,
        scratch_shapes=scratch_shapes,
        compiler_params=pltpu.CompilerParams(
            dimension_semantics=("parallel",),
            vmem_limit_bytes=VMEM_LIMIT_BYTES),
    )(x, w3, scale, bias)

    if mode == "global":
        out = out[:, 0, :]          # (N, Cout) f32 descriptors
    return out


# --------------------------------------------------------------------------------------
# Parameters (synthetic, deterministic) — shapes follow torchvision vgg16_bn.features
# --------------------------------------------------------------------------------------
def init_vgg_params(key):
    # derive (cin, cout, mode) per conv layer from the config
    convs = []
    cin = 3
    for idx, v in enumerate(VGG_CFG):
        if v == 'M':
            continue
        if idx + 1 >= len(VGG_CFG):
            mode = 'global'            # last conv feeds AdaptiveMaxPool2d(1)
        elif VGG_CFG[idx + 1] == 'M':
            mode = 'pool'              # fused MaxPool2d(2,2)
        else:
            mode = 'none'
        convs.append((cin, v, mode))
        cin = v

    params = []
    for (cin, cout, mode) in convs:
        key, kw, kb, kg, kbt = jax.random.split(key, 5)
        std = (2.0 / (9.0 * cin)) ** 0.5  # He init for 3x3 conv
        w = jax.random.normal(kw, (3, 3, cin, cout), jnp.float32) * std
        conv_b = jax.random.normal(kb, (cout,), jnp.float32) * 0.01
        gamma = 1.0 + 0.1 * jax.random.normal(kg, (cout,), jnp.float32)
        beta = 0.1 * jax.random.normal(kbt, (cout,), jnp.float32)
        run_mean = jnp.zeros((cout,), jnp.float32)
        run_var = jnp.ones((cout,), jnp.float32)
        # fold BN(eval) + conv bias into per-channel scale/bias (kept in f32)
        scale = gamma / jnp.sqrt(run_var + BN_EPS)
        bias = beta + (conv_b - run_mean) * scale

        cin_eff = 4 if cin == 3 else cin         # pad first-layer Cin 3->4
        if cin == 3:
            w = jnp.pad(w, ((0, 0), (0, 0), (0, 1), (0, 0)))
        w3 = w.reshape(3, 3 * cin_eff, cout).astype(jnp.bfloat16)   # (dy, dx*Cin + c, Cout)

        params.append(dict(w=w3,
                           scale=scale.reshape(1, -1),
                           bias=bias.reshape(1, -1),
                           mode=mode,
                           cin=cin_eff))
    return params


def vgg16_features(x, params):
    # x: (N, H, W, 3) float -> (N, 512) f32 descriptors
    x = x.astype(jnp.bfloat16)
    for layer in params:
        cin = layer["cin"]
        if x.shape[-1] != cin:     # only the first layer: zero-pad channels 3 -> 4
            x = jnp.pad(x, ((0, 0), (0, 0), (0, 0), (0, cin - x.shape[-1])))
        x = conv_bn_relu_fused(x, layer["w"], layer["scale"], layer["bias"], layer["mode"])
    return x   # last layer (mode='global') already did AdaptiveMaxPool2d(1) + squeeze


# --------------------------------------------------------------------------------------
# ObjectDescriptor.forward
# --------------------------------------------------------------------------------------
def object_descriptor_forward(images, num_objects, params):
    """
    images:      (B, N_obj, 3, H, W) float32  (per-object NCHW, as in the PyTorch module)
    num_objects: (B, 1) int32
    returns (object_descriptor (B, N_obj, 512), num_objects_sorted (B, 1), sort_ind (B,))
    """
    B, Nmax, C, H, W = images.shape
    no = num_objects[:, 0]
    # jnp.argsort is stable; torch.sort(descending=True) does not guarantee tie order.
    sort_ind = jnp.argsort(-no)
    no_sorted = no[sort_ind]
    images = images[sort_ind]

    # glue: NCHW -> NHWC, objects flattened into the batch dim
    x = images.reshape(B * Nmax, C, H, W).transpose(0, 2, 3, 1)

    # TODO(synk): optionally scalar-prefetch num_objects to skip grid steps whose object
    #             slots are all padding; all Nmax slots currently run the full VGG.
    desc = vgg16_features(x, params).reshape(B, Nmax, DESCRIPTOR_SIZE)

    # Positions t >= num_objects[b] stay zero (matches torch.zeros init + partial fill).
    mask = (jnp.arange(Nmax)[None, :] < no_sorted[:, None]).astype(desc.dtype)
    object_descriptor = desc * mask[:, :, None]

    return object_descriptor, no_sorted[:, None], sort_ind


# --------------------------------------------------------------------------------------
if __name__ == "__main__":
    key = jax.random.PRNGKey(0)
    kparams, kimg = jax.random.split(key)

    params = init_vgg_params(kparams)

    B, Nmax, H, W = 2, 2, 32, 32
    images = jax.random.normal(kimg, (B, Nmax, 3, H, W), jnp.float32)
    num_objects = jnp.array([[1], [2]], dtype=jnp.int32)

    out = object_descriptor_forward(images, num_objects, params)
    out = jax.block_until_ready(out)

    od, no_sorted, sort_ind = out
    assert od.shape == (B, Nmax, DESCRIPTOR_SIZE)
    assert no_sorted.shape == (B, 1)
    assert sort_ind.shape == (B,)
    assert bool(jnp.all(jnp.isfinite(od)))
    # sorted order is [2, 1] objects; the second row's unused slot must be zero
    assert bool(jnp.all(od[1, 1] == 0.0))
    print("KERNEL_OK")
</pallas_src>

<mosaic_0001>
module attributes {stable_mosaic.version = 11 : i64} {
  func.func @kernel(%arg0: i32, %arg1: memref<1x32x32x4xbf16, #tpu.memory_space<vmem>>, %arg2: memref<3x12x64xbf16, #tpu.memory_space<vmem>>, %arg3: memref<1x64xf32, #tpu.memory_space<vmem>>, %arg4: memref<1x64xf32, #tpu.memory_space<vmem>>, %arg5: memref<1x32x32x64xbf16, #tpu.memory_space<vmem>>, %arg6: memref<1x34x32x12xbf16, #tpu.memory_space<vmem>>) attributes {dimension_semantics = [#tpu.dimension_semantics<parallel>], iteration_bounds = array<i64: 4>, scalar_prefetch = 0 : i64, scratch_operands = 1 : i64, tpu.core_type = #tpu.core_type<tc>, window_params = [{transform_indices = @transform_0, window_bounds = array<i64: 1, 32, 32, 4>}, {pipeline_mode = #tpu.pipeline_mode<synchronous>, transform_indices = @transform_1, window_bounds = array<i64: 3, 12, 64>}, {pipeline_mode = #tpu.pipeline_mode<synchronous>, transform_indices = @transform_2, window_bounds = array<i64: 1, 64>}, {pipeline_mode = #tpu.pipeline_mode<synchronous>, transform_indices = @transform_3, window_bounds = array<i64: 1, 64>}, {transform_indices = @transform_4, window_bounds = array<i64: 1, 32, 32, 64>}]} {
    %cst = arith.constant 0.000000e+00 : bf16
    %0 = vector.broadcast %cst : bf16 to vector<1x1x32x12xbf16>
    %c0 = arith.constant 0 : index
    %c0_0 = arith.constant 0 : index
    %c0_1 = arith.constant 0 : index
    %c0_2 = arith.constant 0 : index
    %1 = vector.load %arg6[%c0, %c0_0, %c0_1, %c0_2] : memref<1x34x32x12xbf16, #tpu.memory_space<vmem>>, vector<1x1x32x12xbf16>
    tpu.vector_store %arg6[%c0, %c0_0, %c0_1, %c0_2], %0 {strides = array<i32>} : memref<1x34x32x12xbf16, #tpu.memory_space<vmem>>, vector<1x1x32x12xbf16>,
    %cst_3 = arith.constant 0.000000e+00 : bf16
    %2 = vector.broadcast %cst_3 : bf16 to vector<1x1x32x12xbf16>
    %c0_4 = arith.constant 0 : index
    %c33 = arith.constant 33 : index
    %c0_5 = arith.constant 0 : index
    %c0_6 = arith.constant 0 : index
    %3 = vector.load %arg6[%c0_4, %c33, %c0_5, %c0_6] : memref<1x34x32x12xbf16, #tpu.memory_space<vmem>>, vector<1x1x32x12xbf16>
    tpu.vector_store %arg6[%c0_4, %c33, %c0_5, %c0_6], %2 {strides = array<i32>} : memref<1x34x32x12xbf16, #tpu.memory_space<vmem>>, vector<1x1x32x12xbf16>,
    %cst_7 = arith.constant 0.000000e+00 : bf16
    %4 = vector.broadcast %cst_7 : bf16 to vector<1x34x1x4xbf16>
    %c0_8 = arith.constant 0 : index
    %c0_9 = arith.constant 0 : index
    %c0_10 = arith.constant 0 : index
    %c0_11 = arith.constant 0 : index
    %5 = vector.load %arg6[%c0_8, %c0_9, %c0_10, %c0_11] : memref<1x34x32x12xbf16, #tpu.memory_space<vmem>>, vector<1x34x1x4xbf16>
    tpu.vector_store %arg6[%c0_8, %c0_9, %c0_10, %c0_11], %4 {strides = array<i32>} : memref<1x34x32x12xbf16, #tpu.memory_space<vmem>>, vector<1x34x1x4xbf16>,
    %cst_12 = arith.constant 0.000000e+00 : bf16
    %6 = vector.broadcast %cst_12 : bf16 to vector<1x34x1x4xbf16>
    %c0_13 = arith.constant 0 : index
    %c0_14 = arith.constant 0 : index
    %c31 = arith.constant 31 : index
    %c8 = arith.constant 8 : index
    %7 = vector.load %arg6[%c0_13, %c0_14, %c31, %c8] : memref<1x34x32x12xbf16, #tpu.memory_space<vmem>>, vector<1x34x1x4xbf16>
    tpu.vector_store %arg6[%c0_13, %c0_14, %c31, %c8], %6 {strides = array<i32>} : memref<1x34x32x12xbf16, #tpu.memory_space<vmem>>, vector<1x34x1x4xbf16>,
    %c0_15 = arith.constant 0 : index
    %c0_16 = arith.constant 0 : index
    %c0_17 = arith.constant 0 : index
    %c0_18 = arith.constant 0 : index
    %8 = vector.load %arg1[%c0_15, %c0_16, %c0_17, %c0_18] : memref<1x32x32x4xbf16, #tpu.memory_space<vmem>>, vector<1x32x32x4xbf16>
    %9 = vector.extract_strided_slice %8 {offsets = [0, 0, 0, 0], sizes = [1, 32, 31, 4], strides = [1, 1, 1, 1]} : vector<1x32x32x4xbf16> to vector<1x32x31x4xbf16>
    %c0_19 = arith.constant 0 : index
    %c1 = arith.constant 1 : index
    %c1_20 = arith.constant 1 : index
    %c0_21 = arith.constant 0 : index
    %10 = vector.load %arg6[%c0_19, %c1, %c1_20, %c0_21] : memref<1x34x32x12xbf16, #tpu.memory_space<vmem>>, vector<1x32x31x4xbf16>
    tpu.vector_store %arg6[%c0_19, %c1, %c1_20, %c0_21], %9 {strides = array<i32>} : memref<1x34x32x12xbf16, #tpu.memory_space<vmem>>, vector<1x32x31x4xbf16>,
    %c0_22 = arith.constant 0 : index
    %c1_23 = arith.constant 1 : index
    %c0_24 = arith.constant 0 : index
    %c4 = arith.constant 4 : index
    %11 = vector.load %arg6[%c0_22, %c1_23, %c0_24, %c4] : memref<1x34x32x12xbf16, #tpu.memory_space<vmem>>, vector<1x32x32x4xbf16>
    tpu.vector_store %arg6[%c0_22, %c1_23, %c0_24, %c4], %8 {strides = array<i32>} : memref<1x34x32x12xbf16, #tpu.memory_space<vmem>>, vector<1x32x32x4xbf16>,
    %12 = vector.extract_strided_slice %8 {offsets = [0, 0, 1, 0], sizes = [1, 32, 31, 4], strides = [1, 1, 1, 1]} : vector<1x32x32x4xbf16> to vector<1x32x31x4xbf16>
    %c0_25 = arith.constant 0 : index
    %c1_26 = arith.constant 1 : index
    %c0_27 = arith.constant 0 : index
    %c8_28 = arith.constant 8 : index
    %13 = vector.load %arg6[%c0_25, %c1_26, %c0_27, %c8_28] : memref<1x34x32x12xbf16, #tpu.memory_space<vmem>>, vector<1x32x31x4xbf16>
    tpu.vector_store %arg6[%c0_25, %c1_26, %c0_27, %c8_28], %12 {strides = array<i32>} : memref<1x34x32x12xbf16, #tpu.memory_space<vmem>>, vector<1x32x31x4xbf16>,
    %c0_29 = arith.constant 0 : index
    %c0_30 = arith.constant 0 : index
    %c0_31 = arith.constant 0 : index
    %c0_32 = arith.constant 0 : index
    %14 = vector.load %arg6[%c0_29, %c0_30, %c0_31, %c0_32] : memref<1x34x32x12xbf16, #tpu.memory_space<vmem>>, vector<1x32x32x12xbf16>
    %15 = vector.shape_cast %14 : vector<1x32x32x12xbf16> to vector<1024x12xbf16>
    %c0_33 = arith.constant 0 : index
    %c0_34 = arith.constant 0 : index
    %c0_35 = arith.constant 0 : index
    %16 = vector.load %arg2[%c0_33, %c0_34, %c0_35] : memref<3x12x64xbf16, #tpu.memory_space<vmem>>, vector<1x12x64xbf16>
    %17 = vector.shape_cast %16 : vector<1x12x64xbf16> to vector<12x64xbf16>
    %cst_36 = arith.constant dense<0.000000e+00> : vector<1024x64xf32>
    %18 = tpu.matmul %15, %17, %cst_36 {dimension_numbers = #tpu.dot_dimension_numbers<[1], [0], [0], [1], [0, 0, 1, 1], [], []>} : vector<1024x12xbf16>, vector<12x64xbf16>, vector<1024x64xf32> -> vector<1024x64xf32>
    %c0_37 = arith.constant 0 : index
    %c1_38 = arith.constant 1 : index
    %c0_39 = arith.constant 0 : index
    %c0_40 = arith.constant 0 : index
    %19 = vector.load %arg6[%c0_37, %c1_38, %c0_39, %c0_40] : memref<1x34x32x12xbf16, #tpu.memory_space<vmem>>, vector<1x32x32x12xbf16>
    %20 = vector.shape_cast %19 : vector<1x32x32x12xbf16> to vector<1024x12xbf16>
    %c1_41 = arith.constant 1 : index
    %c0_42 = arith.constant 0 : index
    %c0_43 = arith.constant 0 : index
    %21 = vector.load %arg2[%c1_41, %c0_42, %c0_43] : memref<3x12x64xbf16, #tpu.memory_space<vmem>>, vector<1x12x64xbf16>
    %22 = vector.shape_cast %21 : vector<1x12x64xbf16> to vector<12x64xbf16>
    %cst_44 = arith.constant dense<0.000000e+00> : vector<1024x64xf32>
    %23 = tpu.matmul %20, %22, %cst_44 {dimension_numbers = #tpu.dot_dimension_numbers<[1], [0], [0], [1], [0, 0, 1, 1], [], []>} : vector<1024x12xbf16>, vector<12x64xbf16>, vector<1024x64xf32> -> vector<1024x64xf32>
    %24 = arith.addf %18, %23 : vector<1024x64xf32>
    %c0_45 = arith.constant 0 : index
    %c2 = arith.constant 2 : index
    %c0_46 = arith.constant 0 : index
    %c0_47 = arith.constant 0 : index
    %25 = vector.load %arg6[%c0_45, %c2, %c0_46, %c0_47] : memref<1x34x32x12xbf16, #tpu.memory_space<vmem>>, vector<1x32x32x12xbf16>
    %26 = vector.shape_cast %25 : vector<1x32x32x12xbf16> to vector<1024x12xbf16>
    %c2_48 = arith.constant 2 : index
    %c0_49 = arith.constant 0 : index
    %c0_50 = arith.constant 0 : index
    %27 = vector.load %arg2[%c2_48, %c0_49, %c0_50] : memref<3x12x64xbf16, #tpu.memory_space<vmem>>, vector<1x12x64xbf16>
    %28 = vector.shape_cast %27 : vector<1x12x64xbf16> to vector<12x64xbf16>
    %cst_51 = arith.constant dense<0.000000e+00> : vector<1024x64xf32>
    %29 = tpu.matmul %26, %28, %cst_51 {dimension_numbers = #tpu.dot_dimension_numbers<[1], [0], [0], [1], [0, 0, 1, 1], [], []>} : vector<1024x12xbf16>, vector<12x64xbf16>, vector<1024x64xf32> -> vector<1024x64xf32>
    %30 = arith.addf %24, %29 : vector<1024x64xf32>
    %c0_52 = arith.constant 0 : index
    %c0_53 = arith.constant 0 : index
    %31 = vector.load %arg3[%c0_52, %c0_53] : memref<1x64xf32, #tpu.memory_space<vmem>>, vector<1x64xf32>
    %32 = vector.broadcast %31 : vector<1x64xf32> to vector<1024x64xf32>
    %33 = arith.mulf %30, %32 : vector<1024x64xf32>
    %c0_54 = arith.constant 0 : index
    %c0_55 = arith.constant 0 : index
    %34 = vector.load %arg4[%c0_54, %c0_55] : memref<1x64xf32, #tpu.memory_space<vmem>>, vector<1x64xf32>
    %35 = vector.broadcast %34 : vector<1x64xf32> to vector<1024x64xf32>
    %36 = arith.addf %33, %35 : vector<1024x64xf32>
    %cst_56 = arith.constant 0.000000e+00 : f32
    %37 = vector.broadcast %cst_56 : f32 to vector<1024x64xf32>
    %38 = arith.maximumf %36, %37 : vector<1024x64xf32>
    %39 = vector.shape_cast %38 : vector<1024x64xf32> to vector<1x32x32x64xf32>
    %40 = arith.truncf %39 : vector<1x32x32x64xf32> to vector<1x32x32x64xbf16>
    %c0_57 = arith.constant 0 : index
    %c0_58 = arith.constant 0 : index
    %c0_59 = arith.constant 0 : index
    %c0_60 = arith.constant 0 : index
    %41 = vector.load %arg5[%c0_57, %c0_58, %c0_59, %c0_60] : memref<1x32x32x64xbf16, #tpu.memory_space<vmem>>, vector<1x32x32x64xbf16>
    tpu.vector_store %arg5[%c0_57, %c0_58, %c0_59, %c0_60], %40 {strides = array<i32>} : memref<1x32x32x64xbf16, #tpu.memory_space<vmem>>, vector<1x32x32x64xbf16>,
    return
  }
  func.func @transform_0(%arg0: i32) -> (i32, i32, i32, i32) {
    %c0_i32 = arith.constant 0 : i32
    %c0_i32_0 = arith.constant 0 : i32
    %c0_i32_1 = arith.constant 0 : i32
    %c0_i32_2 = arith.constant 0 : i32
    return %arg0, %c0_i32, %c0_i32_0, %c0_i32_1 : i32, i32, i32, i32
  }
  func.func @transform_1(%arg0: i32) -> (i32, i32, i32) {
    %c0_i32 = arith.constant 0 : i32
    %c0_i32_0 = arith.constant 0 : i32
    %c0_i32_1 = arith.constant 0 : i32
    %c0_i32_2 = arith.constant 0 : i32
    return %c0_i32, %c0_i32_0, %c0_i32_1 : i32, i32, i32
  }
  func.func @transform_2(%arg0: i32) -> (i32, i32) {
    %c0_i32 = arith.constant 0 : i32
    %c0_i32_0 = arith.constant 0 : i32
    %c0_i32_1 = arith.constant 0 : i32
    return %c0_i32, %c0_i32_0 : i32, i32
  }
  func.func @transform_3(%arg0: i32) -> (i32, i32) {
    %c0_i32 = arith.constant 0 : i32
    %c0_i32_0 = arith.constant 0 : i32
    %c0_i32_1 = arith.constant 0 : i32
    return %c0_i32, %c0_i32_0 : i32, i32
  }
  func.func @transform_4(%arg0: i32) -> (i32, i32, i32, i32) {
    %c0_i32 = arith.constant 0 : i32
    %c0_i32_0 = arith.constant 0 : i32
    %c0_i32_1 = arith.constant 0 : i32
    %c0_i32_2 = arith.constant 0 : i32
    return %arg0, %c0_i32, %c0_i32_0, %c0_i32_1 : i32, i32, i32, i32
  }
}

</mosaic_0001>

<bundles_post_ra>
// kernel: tpu_custom_call.1
= control target key start
LH: loop header
LB: loop body
LE: loop exit
PB: predicated region body
PF: predicated region fallthrough
CT: control target
= control target key end

     0   :  { %9 = vsyncpa [#allocation4], 0  ;;  %s14823_s0 = inlined_call_operand.vmem [shape: bf16[4,32,32,4], index: 0, kind: input, shape index: {}]   ;;  %s14824_s1 = inlined_call_operand.vmem [shape: bf16[3,12,64], index: 1, kind: input, shape index: {}]   ;;  %s14825_s2 = inlined_call_operand.vmem [shape: f32[1,64], index: 2, kind: input, shape index: {}]   ;;  %s14826_s3 = inlined_call_operand.vmem [shape: f32[1,64], index: 3, kind: input, shape index: {}]   ;;  %s14827_s4 = inlined_call_operand.hbm [shape: bf16[4,32,32,64], index: 4, kind: output, shape index: {}]  }
   0x1   :  { %11 = vsyncpa [#allocation4 + $0x1], 0  ;;  %s10212_s15 = smov 0   ;;  %s10214_s16 = smov 0  }
   0x2   :  { %s10216_s17 = smov 0   ;;  %s10218_s18 = smov 0  }
   0x3 LB: > { %s10233_s19 = sadd.s32 4294967295, %s10180_s18   ;;  %s8624_s20 = sadd.s32 4294967294, %s10180_s18   ;;  %s10180_s18 = sphi %s10218_s18, %s15073_s18   ;;  %s10176_s17 = sphi %s10216_s17, %s15072_s17   ;;  %s10172_s16 = sphi %s10214_s16, %s15071_s16   ;;  %s10168_s15 = sphi %s10212_s15, %s15070_s15  }
   0x4   : > { %s10237_s21 = sadd.s32 1, %s10180_s18   ;;  %s113_s22 = sadd.s32 1, %s10176_s17 }
   0x5   : > { %s110_s23 = ssub.s32 %s10180_s18, %s10237_s21  ;;  %p123_p0 = scmp.ne.s32.totalorder %s10176_s17, %s10172_s16 }
   0x6   : > { %p111_p1 = scmp.eq.s32.totalorder %s110_s23, 0  ;;  %p124_p2 = scmp.eq.s32.totalorder %s10233_s19, 3 }
   0x7   : > { %p129_p3 = scmp.ne.s32.totalorder %s10172_s16, %s10168_s15  ;;  %p130_p4 = scmp.eq.s32.totalorder %s8624_s20, 3 }
   0x8   : > { %s10248_s24 = scalar_select %p111_p1, %s10176_s17, %s113_s22  }
   0x9   : > { %p10250_p5 = por %p124_p2, %p123_p0  ;;  %p10254_p6 = por %p130_p4, %p129_p3 }
   0xa   : > { %p8627_p7 = scmp.ge.s32.totalorder %s10180_s18, 1  ;;  %p165_p8 = scmp.lt.s32.totalorder %s10180_s18, 5 }
   0xc   : > { %p166_p9 = pnand %p8627_p7, %p165_p8 }
   0xe   : > { %169 = sbr.rel (%p166_p9) target bundleno = 1137 (0x471), region = 36 }
  0x13   : > { %p191_p10 = scmp.lt.s32.totalorder %s10233_s19, 3  ;;  %vm207_vm0 = vcmask 24576   ;;  %vm208_vm1 = vsmask.f32 256  ;;  %v261_v1 = vld [vmem:[#allocation2 + $0x110] sm:$0x1] }
  0x14   : > { %vm10262_vm2 = vmand %vm207_vm0, %vm208_vm1  ;;  %v213_v3 = vld [vmem:[#allocation2 + $0x10] sm:$0x1]  ;;  %v264_v5 = vld [vmem:[#allocation2 + $0x120] sm:$0x1]  ;;  %vm1764_vm3 = vcmask 27648   ;;  %s10182_s6 = smov 4  }
  0x15   : > { %s192_s27 = scalar_select %p191_p10, %s10233_s19, 3  ;;  %v262_v2 = vsel %vm10262_vm2, 0, %v261_v1  ;;  %v214_v4 = vsel %vm10262_vm2, 0, %v213_v3  ;;  %v265_v6 = vsel %vm10262_vm2, 0, %v264_v5  ;;  %v216_v7 = vld [vmem:[#allocation2 + $0x20] sm:$0x1] }
  0x16   : > { %263 = vst [vmem:[#allocation2 + $0x110] sm:$0x1] %v262_v2  ;;  %215 = vst [vmem:[#allocation2 + $0x10] sm:$0x1] %v214_v4  ;;  %v267_v8 = vld [vmem:[#allocation2 + $0x130] sm:$0x1] }
  0x17   : > { %s9157_s28 = sshll.u32 %s192_s27, 9  ;;  %266 = vst [vmem:[#allocation2 + $0x120] sm:$0x1] %v265_v6  ;;  %v217_v9 = vsel %vm10262_vm2, 0, %v216_v7  ;;  %v268_v10 = vsel %vm10262_vm2, 0, %v267_v8  ;;  %s10183_s7 = smov 8  }
  0x18   : > { %s10276_s5 = scalar_lea.vmem %s14823_s0, %s9157_s28  ;;  %218 = vst [vmem:[#allocation2 + $0x20] sm:$0x1] %v217_v9  ;;  %269 = vst [vmem:[#allocation2 + $0x130] sm:$0x1] %v268_v10  ;;  %vm1765_vm4 = vsmask.f32 7938 }
  0x19   : > { %v484_v11 = vld [vmem:[%s10276_s5 + $0x10c] sm:$0xf]  ;;  %v481_v12 = vld [vmem:[%s10276_s5 + $0x100] sm:$0xf]  ;;  %v10287_v16 = vld [vmem:[%s10276_s5 + $0x104] sm:$0xf] }
  0x1a   : > { %2222 = vrot.lane.b32.xlu0 %v484_v11, %s10182_s6  ;;  %v1118_v13 = vshrl.u32 %v484_v11, 16  ;;  %v1121_v14 = vshll.u32 %v484_v11, 16  ;;  %2216 = vrot.lane.b32.xlu1 %v481_v12, %s10182_s6  ;;  %v1092_v15 = vshrl.u32 %v481_v12, 16  ;;  %v10290_v17 = vld [vmem:[%s10276_s5 + $0xc] sm:$0xf]  ;;  %v1095_v20 = vshll.u32 %v481_v12, 16  ;;  %vm10298_vm5 = vmand %vm1764_vm3, %vm1765_vm4 }
  0x1b   : > { %v1103_v21 = vshll.u32 %v10287_v16, 16  ;;  %v1100_v26 = vshrl.u32 %v10287_v16, 16  ;;  %v10311_v29 = vld [vmem:[%s10276_s5 + $0x11c] sm:$0xf]  ;;  %v10314_v30 = vld [vmem:[%s10276_s5 + $0x108] sm:$0xf] }
  0x1c   : > { %v1120_v18 = vrot.slane %v1118_v13, 7  ;;  %v10292_v19 = vrot.slane %v1092_v15, 7  ;;  %v10295_v22 = vrot.slane %v1121_v14, 5  ;;  %v2924_v23 = vrot.slane %v1118_v13, 4  ;;  %v417_v39 = vld [vmem:[%s10276_s5] sm:$0xf] }
  0x1d   : > { %v1864_v25 = vld [vmem:[#allocation2 + $0x110] sm:$0xf]  ;;  %v2908_v32 = vrot.slane %v1092_v15, 4  ;;  %v2909_v33 = vrot.slane %v1095_v20, 5  ;;  %v2912_v34 = vrot.slane %v1103_v21, 5  ;;  %v2914_v35 = vrot.slane %v1100_v26, 4 }
  0x1e   : > { %v10303_v27 = vor.u32 %v1121_v14, %v1120_v18  ;;  %v1097_v28 = vor.u32 %v1095_v20, %v10292_v19  ;;  %2218 = vrot.lane.b32.xlu1 %v10287_v16, %s10182_s6  ;;  %2094 = vrot.lane.b32.xlu0 %v10290_v17, %s10182_s6  ;;  %v1109_v36 = vshrl.u32 %v10314_v30, 16  ;;  %v1112_v37 = vshll.u32 %v10314_v30, 16  ;;  %v10335_v44 = vld [vmem:[%s10276_s5 + $0x4] sm:$0xf]  ;;  %v1767_v47 = vld [vmem:[#allocation2 + $0x10] sm:$0xf] }
  0x1f   : > { %v2925_v38 = vor.u32 %v2924_v23, %v10295_v22  ;;  %v548_v40 = vshrl.u32 %v417_v39, 16  ;;  %vm2601_vm6 = vsmask.f32 3328  ;;  %vm2602_vm7 = vsmask.f32 7440  ;;  %s188_s22 = sand.u32 1, %s10172_s16  }
  0x20   : > { %v1865_v31 = vsel %vm10298_vm5, %v1097_v28, %v1864_v25  ;;  %v2917_v41 = vrot.slane %v1112_v37, 5  ;;  %v2919_v42 = vrot.slane %v1109_v36, 4  ;;  %v551_v46 = vshll.u32 %v417_v39, 16  ;;  %v10340_v50 = vld [vmem:[%s10276_s5 + $0x8] sm:$0xf]  ;;  %vm10347_vm8 = vmor %vm2601_vm6, %vm2602_vm7  ;;  %s14087_s28 = sshll.u32 %s188_s22, 9 }
  0x21   : > { %1866 = vst [vmem:[#allocation2 + $0x110] sm:$0xf] %v1865_v31  ;;  %v2926_v43 = vrot.slane %v2925_v38, 4  ;;  %v10337_v45 = vrot.slane %v548_v40, 7  ;;  %v2910_v48 = vor.u32 %v2909_v33, %v2908_v32  ;;  %v2915_v49 = vor.u32 %v2914_v35, %v2912_v34  ;;  %v485_v11 = vld [vmem:[%s10276_s5 + $0x110] sm:$0xf] }
  0x22   : > { %2230 = vrot.lane.b32.xlu1 %v10311_v29, %s10182_s6  ;;  %2220 = vrot.lane.b32.xlu0 %v10314_v30, %s10182_s6  ;;  %v2604_v52 = vrot.slane %v548_v40, 4  ;;  %v556_v54 = vshrl.u32 %v10335_v44, 16  ;;  %v14848_v57 = vshll.u32 %v10335_v44, 16  ;;  %v2920_v58 = vor.u32 %v2919_v42, %v2917_v41  ;;  %v10385_v15 = vld [vmem:[%s10276_s5 + $0x1c] sm:$0xf]  ;;  %s14103_s29 = scalar_lea.vmem [#allocation3], %s14087_s28 }
  0x23   : > { %v553_v51 = vor.u32 %v551_v46, %v10337_v45  ;;  %v2911_v55 = vrot.slane %v2910_v48, 4  ;;  %v2916_v56 = vrot.slane %v2915_v49, 4  ;;  %v2605_v60 = vrot.slane %v551_v46, 5  ;;  %v10388_v23 = vld [vmem:[%s10276_s5 + $0x114] sm:$0xf]  ;;  %s9286_s13 = sshll.u32 %s10233_s19, 13 }
  0x24   : > { %v2610_v61 = vrot.slane %v556_v54, 4  ;;  %v565_v62 = vshrl.u32 %v10340_v50, 16  ;;  %v2608_v2 = vrot.slane %v14848_v57, 5  ;;  %v2921_v3 = vrot.slane %v2920_v58, 4  ;;  %v1870_v40 = vld [vmem:[#allocation2 + $0x120] sm:$0xf]  ;;  %s14772_s27 = scalar_lea.hbm %s14827_s4, %s9286_s13 }
  0x25   : > { %v1768_v59 = vsel %vm10298_vm5, %v553_v51, %v1767_v47  ;;  %v2913_v63 = vsel %vm10347_vm8, %v2911_v55, %v2912_v34  ;;  %v2918_v1 = vsel %vm10347_vm8, %v2916_v56, %v2917_v41  ;;  %v574_v4 = vshrl.u32 %v10290_v17, 16  ;;  %v421_v48 = vld [vmem:[%s10276_s5 + $0x10] sm:$0xf]  ;;  %v10415_v56 = vld [vmem:[%s10276_s5 + $0x118] sm:$0xf]  ;;  %s8562_s14 = sshll.u32 %s14103_s29, 4  ;;  %s14776_s14 = int_to_ptr.vmem [resolvable:$true] %s8562_s14 }
  0x26   : > { %3346 = vrot.lane.b32.xlu0 %v2926_v43, %s10183_s7  ;;  %2088 = vrot.lane.b32.xlu1 %v417_v39, %s10182_s6  ;;  %1769 = vst [vmem:[#allocation2 + $0x10] sm:$0xf] %v1768_v59  ;;  %v577_v5 = vshll.u32 %v10290_v17, 16  ;;  %v14842_v6 = vshll.u32 %v10340_v50, 16  ;;  %v2923_v7 = vsel %vm10347_vm8, %v2921_v3, %v10295_v22  ;;  %v2615_v8 = vrot.slane %v565_v62, 4  ;;  %s14782_s19 = scalar_lea.sflag [#allocation4], %s188_s22 }
  0x27   : > { %v2611_v10 = vor.u32 %v2610_v61, %v2608_v2  ;;  %v2606_v12 = vor.u32 %v2605_v60, %v2604_v52  ;;  %v2620_v14 = vrot.slane %v574_v4, 4  ;;  %v1126_v25 = vshrl.u32 %v485_v11, 16  ;;  %s10120_s28 = scalar_lea.vmem %s14776_s14, 8192  ;;  %s10185_s30 = smov [#allocation3]  }
  0x28   : > { %v2613_v9 = vrot.slane %v14842_v6, 5  ;;  %v2618_v13 = vrot.slane %v577_v5, 5  ;;  %v14833_v32 = vshrl.u32 %v10388_v23, 16  ;;  %v14832_v33 = vshll.u32 %v10388_v23, 16  ;;  %p10121_p11 = scmp.ne.s32.totalorder %s14776_s14, %s10120_s28 }
  0x29   : > { %v2612_v18 = vrot.slane %v2611_v10, 4  ;;  %v2607_v20 = vrot.slane %v2606_v12, 4  ;;  %v10390_v28 = vrot.slane %v1126_v25, 7  ;;  %v1129_v34 = vshll.u32 %v485_v11, 16  ;;  %v10431_v12 = vld [vmem:[%s10276_s5 + $0x12c] sm:$0xf] }
  0x2a   : > { %3340 = vrot.lane.b32.xlu0 %v2913_v63, %s10183_s7  ;;  %3342 = vrot.lane.b32.xlu1 %v2918_v1, %s10183_s7  ;;  %v2616_v22 = vor.u32 %v2615_v8, %v2613_v9  ;;  %v2621_v31 = vor.u32 %v2620_v14, %v2618_v13  ;;  %v2931_v43 = vrot.slane %v14832_v33, 5  ;;  %v2933_v46 = vrot.slane %v14833_v32, 4  ;;  %v1774_v1 = vld [vmem:[#allocation2 + $0x20] sm:$0xf]  ;;  %v10526_v32 = vld [vmem:[%s10276_s5 + $0x130] sm:$0xf]  ;;  %p10122_p12 = pnand %p10121_p11, %p10250_p5 }
  0x2b   : > { %v2614_v35 = vsel %vm10347_vm8, %v2612_v18, %v2613_v9  ;;  %v2609_v38 = vsel %vm10347_vm8, %v2607_v20, %v2608_v2  ;;  %v1131_v41 = vor.u32 %v1129_v34, %v10390_v28  ;;  %v2927_v51 = vrot.slane %v1126_v25, 4  ;;  %v10443_v25 = vld [vmem:[%s10276_s5 + $0x14] sm:$0xf] }
  0x2c   : > { %v2617_v39 = vrot.slane %v2616_v22, 4  ;;  %v2622_v42 = vrot.slane %v2621_v31, 4  ;;  %v2928_v52 = vrot.slane %v1129_v34, 5  ;;  %v582_v55 = vshrl.u32 %v421_v48, 16  ;;  %v10446_v31 = vld [vmem:[%s10276_s5 + $0x120] sm:$0xf]  ;;  %p10123_p13 = pneg %p10122_p12 }
  0x2d   : > { %v1871_v47 = vsel %vm10298_vm5, %v1131_v41, %v1870_v40  ;;  %v1152_v58 = vshrl.u32 %v10311_v29, 16  ;;  %v1155_v59 = vshll.u32 %v10311_v29, 16  ;;  %v585_v61 = vshll.u32 %v421_v48, 16  ;;  %v10459_v41 = vld [vmem:[%s10276_s5 + $0x18] sm:$0xf] }
  0x2e   : > { %2090 = vrot.lane.b32.xlu0 %v10335_v44, %s10182_s6  ;;  %3344 = vrot.lane.b32.xlu1 %v2923_v7, %s10183_s7  ;;  %v2619_v49 = vsel %vm10347_vm8, %v2617_v39, %v2618_v13  ;;  %1872 = vst [vmem:[#allocation2 + $0x120] sm:$0xf] %v1871_v47  ;;  %v10419_v60 = vrot.slane %v582_v55, 7  ;;  %v1143_v63 = vshrl.u32 %v10415_v56, 16  ;;  %v14831_v2 = vshll.u32 %v10415_v56, 16 }
  0x2f   : > { %v2934_v3 = vor.u32 %v2933_v46, %v2931_v43  ;;  %v2929_v7 = vor.u32 %v2928_v52, %v2927_v51  ;;  %v2941_v9 = vrot.slane %v1155_v59, 5  ;;  %v2943_v10 = vrot.slane %v1152_v58, 4 }
  0x30   : > { %v587_v8 = vor.u32 %v585_v61, %v10419_v60  ;;  %v2938_v14 = vrot.slane %v1143_v63, 4  ;;  %v2936_v18 = vrot.slane %v14831_v2, 5  ;;  %v270_v2 = vld [vmem:[#allocation2 + $0x140] sm:$0x1]  ;;  %vm312_vm9 = vcmask 93251  }
  0x31   : > { %v2935_v20 = vrot.slane %v2934_v3, 4  ;;  %v2930_v22 = vrot.slane %v2929_v7, 4  ;;  %v2944_v34 = vor.u32 %v2943_v10, %v2941_v9  ;;  %v1876_v3 = vld [vmem:[#allocation2 + $0x130] sm:$0xf]  ;;  %v2623_v7 = vrot.slane %v582_v55, 4 }
  0x32   : > { %2092 = vrot.lane.b32.xlu0 %v10340_v50, %s10182_s6  ;;  %2102 = vrot.lane.b32.xlu1 %v10385_v15, %s10182_s6  ;;  %v1775_v13 = vsel %vm10298_vm5, %v587_v8, %v1774_v1  ;;  %v14845_v1 = vshrl.u32 %v10459_v41, 16  ;;  %v2624_v8 = vrot.slane %v585_v61, 5  ;;  %v14828_v10 = vshll.u32 %v10459_v41, 16 }
  0x33   : > { %1776 = vst [vmem:[#allocation2 + $0x20] sm:$0xf] %v1775_v13  ;;  %v2937_v39 = vsel %vm10347_vm8, %v2935_v20, %v2936_v18  ;;  %v2932_v40 = vsel %vm10347_vm8, %v2930_v22, %v2931_v43  ;;  %v2945_v46 = vrot.slane %v2944_v34, 4  ;;  %v14841_v20 = vshll.u32 %v10385_v15, 16 }
  0x34   : > { %v2634_v61 = vrot.slane %v14845_v1, 4  ;;  %vm313_vm10 = vsmask.f32 7950  ;;  %vm545_vm12 = vsmask.f32 4368  ;;  %vm4570_vm14 = vcmask 1045504  }
  0x35   : > { %vm10629_vm11 = vmand %vm312_vm9, %vm313_vm10  ;;  %v10636_v1 = vld [vmem:[%s10276_s5 + $0x28] sm:$0xf]  ;;  %vm2472_vm15 = vcmask 60448   ;;  %vm3596_vm0 = vcmask 93248   ;;  %vm4377_vm4 = vcmask 97280  }
  0x36   : > { %3214 = vrot.lane.b32.xlu1 %v2614_v35, %s10183_s7  ;;  %3212 = vrot.lane.b32.xlu0 %v2609_v38, %s10183_s7  ;;  %v14830_v35 = vshrl.u32 %v10443_v25, 16  ;;  %v14829_v38 = vshll.u32 %v10443_v25, 16  ;;  %vm10644_vm13 = vmor %vm208_vm1, %vm545_vm12 }
  0x37   : > { %vm11049_vm1 = vmand %vm3596_vm0, %vm2601_vm6 }
  0x38   : > { %v2627_v52 = vrot.slane %v14829_v38, 5  ;;  %v2629_v43 = vrot.slane %v14830_v35, 4 }
  0x3a   : > { %3216 = vrot.lane.b32.xlu1 %v2619_v49, %s10183_s7  ;;  %3218 = vrot.lane.b32.xlu0 %v2622_v42, %s10183_s7  ;;  %v1160_v42 = vshrl.u32 %v10446_v31, 16  ;;  %v1163_v49 = vshll.u32 %v10446_v31, 16  ;;  %v2630_v34 = vor.u32 %v2629_v43, %v2627_v52 }
  0x3c   : > { %v10462_v47 = vrot.slane %v1160_v42, 7 }
  0x3e   : > { %2226 = vrot.lane.b32.xlu1 %v10388_v23, %s10182_s6  ;;  %2224 = vrot.lane.b32.xlu0 %v485_v11, %s10182_s6  ;;  %v2939_v11 = vor.u32 %v2938_v14, %v2936_v18  ;;  %v1165_v13 = vor.u32 %v1163_v49, %v10462_v47  ;;  %v219_v14 = vld [vmem:[#allocation2 + $0x30] sm:$0x1]  ;;  %v14846_v18 = vshrl.u32 %v10385_v15, 16 }
  0x40   : > { %v2940_v51 = vrot.slane %v2939_v11, 4  ;;  %v1877_v22 = vsel %vm10298_vm5, %v1165_v13, %v1876_v3  ;;  %v10485_v11 = vld [vmem:[%s10276_s5 + $0x20] sm:$0xf] }
  0x41   : > { %1878 = vst [vmem:[#allocation2 + $0x130] sm:$0xf] %v1877_v22  ;;  %v619_v3 = vshll.u32 %v10485_v11, 16  ;;  %v10508_v22 = vld [vmem:[%s10276_s5 + $0x124] sm:$0xf] }
  0x42   : > { %2238 = vrot.lane.b32.xlu1 %v10431_v12, %s10182_s6  ;;  %2228 = vrot.lane.b32.xlu0 %v10415_v56, %s10182_s6  ;;  %v2942_v55 = vsel %vm10347_vm8, %v2940_v51, %v2941_v9  ;;  %v2637_v9 = vrot.slane %v14841_v20, 5  ;;  %v2639_v51 = vrot.slane %v14846_v18, 4  ;;  %v10598_v20 = vld [vmem:[%s10276_s5 + $0x13c] sm:$0xf] }
  0x46   : > { %3350 = vrot.lane.b32.xlu1 %v2937_v39, %s10183_s7  ;;  %3348 = vrot.lane.b32.xlu0 %v2932_v40, %s10183_s7  ;;  %v2632_v39 = vrot.slane %v14828_v10, 5  ;;  %v2625_v40 = vor.u32 %v2624_v8, %v2623_v7  ;;  %v10505_v7 = vld [vmem:[%s10276_s5 + $0x2c] sm:$0xf]  ;;  %v2631_v8 = vrot.slane %v2630_v34, 4  ;;  %v2640_v10 = vor.u32 %v2639_v51, %v2637_v9 }
  0x47   : > { %v14834_v34 = vshll.u32 %v10508_v22, 16 }
  0x48   : > { %v2626_v13 = vrot.slane %v2625_v40, 4  ;;  %v2641_v33 = vrot.slane %v2640_v10, 4  ;;  %v271_v10 = vsel %vm10262_vm2, 0, %v270_v2 }
  0x49   : > { %272 = vst [vmem:[#allocation2 + $0x140] sm:$0x1] %v271_v10  ;;  %v1098_v10 = vrot.slane %v10292_v19, 4 }
  0x4a   : > { %2096 = vrot.lane.b32.xlu1 %v421_v48, %s10182_s6  ;;  %3354 = vrot.lane.b32.xlu0 %v2945_v46, %s10183_s7  ;;  %v220_v48 = vsel %vm10262_vm2, 0, %v219_v14  ;;  %v616_v46 = vshrl.u32 %v10485_v11, 16  ;;  %v2635_v14 = vor.u32 %v2634_v61, %v2632_v39  ;;  %v2633_v61 = vsel %vm10347_vm8, %v2631_v8, %v2632_v39 }
  0x4b   : > { %221 = vst [vmem:[#allocation2 + $0x30] sm:$0x1] %v220_v48  ;;  %v2628_v40 = vsel %vm10347_vm8, %v2626_v13, %v2627_v52  ;;  %v10532_v39 = vrot.slane %v14834_v34, 5  ;;  %v2946_v8 = vrot.slane %v1160_v42, 4  ;;  %v2947_v13 = vrot.slane %v1163_v49, 5 }
  0x4c   : > { %v10498_v43 = vrot.slane %v616_v46, 7  ;;  %v2636_v38 = vrot.slane %v2635_v14, 4  ;;  %v10537_v14 = vld [vmem:[%s10276_s5 + $0x128] sm:$0xf]  ;;  %v14837_v42 = vshll.u32 %v10431_v12, 16  ;;  %v1111_v34 = vrot.slane %v1109_v36, 7 }
  0x4d   : > { %v14843_v49 = vshrl.u32 %v10537_v14, 16  ;;  %v1154_v36 = vrot.slane %v1152_v58, 7  ;;  %v2642_v57 = vrot.slane %v616_v46, 4  ;;  %v633_v46 = vshrl.u32 %v10636_v1, 16 }
  0x4e   : > { %3352 = vrot.lane.b32.xlu1 %v2942_v55, %s10183_s7  ;;  %2098 = vrot.lane.b32.xlu0 %v10443_v25, %s10182_s6  ;;  %v621_v48 = vor.u32 %v619_v3, %v10498_v43  ;;  %v14835_v55 = vshrl.u32 %v10508_v22, 16 }
  0x50   : > { %v2952_v52 = vrot.slane %v14835_v55, 4  ;;  %v222_v55 = vld [vmem:[#allocation2 + $0x40] sm:$0x1] }
  0x51   : > { %v1882_v6 = vld [vmem:[#allocation2 + $0x140] sm:$0xf] }
  0x52   : > { %2110 = vrot.lane.b32.xlu1 %v10505_v7, %s10182_s6  ;;  %2100 = vrot.lane.b32.xlu0 %v10459_v41, %s10182_s6  ;;  %v1780_v35 = vld [vmem:[#allocation2 + $0x30] sm:$0xf]  ;;  %v2953_v2 = vor.u32 %v2952_v52, %v10532_v39  ;;  %v10568_v52 = vrot.slane %v565_v62, 7  ;;  %v2957_v62 = vrot.slane %v14843_v49, 4  ;;  %v10609_v49 = vld [vmem:[%s10276_s5 + $0x24] sm:$0xf] }
  0x53   : > { %v1781_v51 = vsel %vm10298_vm5, %v621_v48, %v1780_v35  ;;  %v2638_v35 = vsel %vm10347_vm8, %v2636_v38, %v2637_v9  ;;  %v10545_v48 = vrot.slane %v1100_v26, 7  ;;  %v2948_v38 = vor.u32 %v2947_v13, %v2946_v8 }
  0x54   : > { %1782 = vst [vmem:[#allocation2 + $0x30] sm:$0xf] %v1781_v51  ;;  %v14839_v51 = vshll.u32 %v10537_v14, 16  ;;  %v14836_v9 = vshll.u32 %v10526_v32, 16  ;;  %v10577_v8 = vrot.slane %v14837_v42, 5  ;;  %v2954_v58 = vrot.slane %v2953_v2, 4 }
  0x55   : > { %v223_v42 = vsel %vm10262_vm2, 0, %v222_v55  ;;  %v10606_v55 = vrot.slane %v1143_v63, 7 }
  0x56   : > { %3222 = vrot.lane.b32.xlu1 %v2633_v61, %s10183_s7  ;;  %3220 = vrot.lane.b32.xlu0 %v2628_v40, %s10183_s7  ;;  %v14838_v61 = vshrl.u32 %v10526_v32, 16  ;;  %v14840_v40 = vshrl.u32 %v10431_v12, 16  ;;  %224 = vst [vmem:[#allocation2 + $0x40] sm:$0x1] %v223_v42 }
  0x58   : > { %v10557_v26 = vrot.slane %v14838_v61, 7  ;;  %v2962_v13 = vrot.slane %v14840_v40, 4  ;;  %v10592_v61 = vld [vmem:[%s10276_s5 + $0x30] sm:$0xf]  ;;  %v1116_v40 = vrot.slane %v1111_v34, 4 }
  0x5a   : > { %3224 = vrot.lane.b32.xlu1 %v2638_v35, %s10183_s7  ;;  %3226 = vrot.lane.b32.xlu0 %v2641_v33, %s10183_s7  ;;  %v1107_v35 = vrot.slane %v10545_v48, 4  ;;  %v576_v33 = vrot.slane %v574_v4, 7  ;;  %v1199_v19 = vor.u32 %v14836_v9, %v10557_v26  ;;  %v2955_v4 = vrot.slane %v14839_v51, 5 }
  0x5b   : > { %v2949_v9 = vrot.slane %v2948_v38, 4  ;;  %v1105_v51 = vor.u32 %v1103_v21, %v10545_v48  ;;  %v572_v38 = vrot.slane %v10568_v52, 4  ;;  %v366_v21 = vld [vmem:[#allocation2 + $0x11c] sm:$0x8]  ;;  %v2963_v42 = vor.u32 %v2962_v13, %v10577_v8 }
  0x5c   : > { %v579_v2 = vor.u32 %v577_v5, %v576_v33  ;;  %v1883_v16 = vsel %vm10298_vm5, %v1199_v19, %v1882_v6  ;;  %v14847_v5 = vshll.u32 %v10592_v61, 16  ;;  %v2956_v6 = vsel %vm10347_vm8, %v2954_v58, %v2955_v4  ;;  %v318_v13 = vld [vmem:[#allocation2 + $0x1c] sm:$0x8] }
  0x5d   : > { %1884 = vst [vmem:[#allocation2 + $0x140] sm:$0xf] %v1883_v16  ;;  %v2951_v63 = vsel %vm10347_vm8, %v2949_v9, %v10532_v39  ;;  %v2958_v33 = vor.u32 %v2957_v62, %v2955_v4  ;;  %v624_v16 = vshrl.u32 %v10609_v49, 16  ;;  %v367_v39 = vsel %vm10629_vm11, 0, %v366_v21 }
  0x5e   : > { %2234 = vrot.lane.b32.xlu1 %v10508_v22, %s10182_s6  ;;  %2232 = vrot.lane.b32.xlu0 %v10446_v31, %s10182_s6  ;;  %v14844_v31 = vshrl.u32 %v10592_v61, 16  ;;  %v1157_v4 = vor.u32 %v1155_v59, %v1154_v36  ;;  %v1114_v62 = vor.u32 %v1112_v37, %v1111_v34  ;;  %368 = vst [vmem:[#allocation2 + $0x11c] sm:$0x8] %v367_v39  ;;  %v1150_v21 = vrot.slane %v10606_v55, 4  ;;  %v369_v37 = vld [vmem:[#allocation2 + $0x12c] sm:$0x8] }
  0x5f   : > { %v1124_v18 = vsel %vm10644_vm13, %v1116_v40, %v10303_v27  ;;  %v319_v29 = vsel %vm10629_vm11, 0, %v318_v13  ;;  %v580_v30 = vsel %vm10644_vm13, %v572_v38, %v579_v2  ;;  %v2643_v27 = vrot.slane %v619_v3, 5  ;;  %v1786_v34 = vld [vmem:[#allocation2 + $0x40] sm:$0xf] }
  0x60   : > { %v10616_v17 = vrot.slane %v14844_v31, 7  ;;  %v627_v31 = vshll.u32 %v10609_v49, 16  ;;  %1869 = vst.msk [vmem:[#allocation2 + $0x11c] sm:$0xf] %vm1764_vm3, %v1124_v18  ;;  %v2964_v59 = vrot.slane %v2963_v42, 4  ;;  %v636_v18 = vshll.u32 %v10636_v1, 16 }
  0x61   : > { %320 = vst [vmem:[#allocation2 + $0x1c] sm:$0x8] %v319_v29  ;;  %v2959_v40 = vrot.slane %v2958_v33, 4  ;;  %v558_v3 = vrot.slane %v556_v54, 7  ;;  %v642_v2 = vshrl.u32 %v10505_v7, 16  ;;  %v645_v38 = vshll.u32 %v10505_v7, 16 }
  0x62   : > { %2246 = vrot.lane.b32.xlu1 %v10598_v20, %s10182_s6  ;;  %2236 = vrot.lane.b32.xlu0 %v10537_v14, %s10182_s6  ;;  %v655_v58 = vor.u32 %v14847_v5, %v10616_v17  ;;  %v1106_v5 = vsel %vm10644_vm13, %v1098_v10, %v1105_v51  ;;  %v10674_v51 = vrot.slane %v627_v31, 5  ;;  %v2648_v10 = vrot.slane %v624_v16, 4  ;;  %1773 = vst.msk [vmem:[#allocation2 + $0x1c] sm:$0xf] %vm1764_vm3, %v580_v30 }
  0x63   : > { %1867 = vst.msk [vmem:[#allocation2 + $0x114] sm:$0xf] %vm1764_vm3, %v1106_v5  ;;  %v370_v42 = vsel %vm10629_vm11, 0, %v369_v37  ;;  %v1158_v5 = vsel %vm10644_vm13, %v1150_v21, %v1157_v4  ;;  %v2651_v54 = vrot.slane %v636_v18, 5  ;;  %v2961_v33 = vsel %vm10347_vm8, %v2959_v40, %v10577_v8  ;;  %v10712_v21 = vld [vmem:[%s10276_s5 + $0x140] sm:$0xf] }
  0x64   : > { %v1787_v36 = vsel %vm10298_vm5, %v655_v58, %v1786_v34  ;;  %371 = vst [vmem:[#allocation2 + $0x12c] sm:$0x8] %v370_v42  ;;  %v2644_v13 = vor.u32 %v2643_v27, %v2642_v57  ;;  %v273_v58 = vld [vmem:[#allocation2 + $0x150] sm:$0x1]  ;;  %v554_v39 = vrot.slane %v10337_v45, 4  ;;  %v14870_v48 = vshll.u32 %v10335_v44, 16 }
  0x65   : > { %1788 = vst [vmem:[#allocation2 + $0x40] sm:$0xf] %v1787_v36  ;;  %1875 = vst.msk [vmem:[#allocation2 + $0x12c] sm:$0xf] %vm1764_vm3, %v1158_v5  ;;  %v10716_v8 = vrot.slane %v645_v38, 5  ;;  %v2658_v57 = vrot.slane %v642_v2, 4 }
  0x66   : > { %3358 = vrot.lane.b32.xlu1 %v2956_v6, %s10183_s7  ;;  %3356 = vrot.lane.b32.xlu0 %v2951_v63, %s10183_s7  ;;  %v2653_v6 = vrot.slane %v633_v46, 4  ;;  %v1115_v63 = vsel %vm10644_vm13, %v1107_v35, %v1114_v62  ;;  %v561_v4 = vor.u32 %v14870_v48, %v558_v3  ;;  %v14871_v35 = vshrl.u32 %v10385_v15, 16  ;;  %v10728_v44 = vld [vmem:[%s10276_s5 + $0x3c] sm:$0xf]  ;;  %v10733_v34 = vld [vmem:[%s10276_s5 + $0x134] sm:$0xf] }
  0x67   : > { %1868 = vst.msk [vmem:[#allocation2 + $0x118] sm:$0xf] %vm1764_vm3, %v1115_v63  ;;  %v14872_v29 = vshrl.u32 %v10459_v41, 16  ;;  %v274_v37 = vsel %vm10262_vm2, 0, %v273_v58  ;;  %v1228_v40 = vshrl.u32 %v10712_v21, 16  ;;  %v14873_v36 = vshll.u32 %v10340_v50, 16 }
  0x68   : > { %v610_v62 = vrot.slane %v14871_v35, 7  ;;  %v2654_v45 = vor.u32 %v2653_v6, %v2651_v54  ;;  %275 = vst [vmem:[#allocation2 + $0x150] sm:$0x1] %v274_v37  ;;  %v14874_v5 = vshll.u32 %v10385_v15, 16  ;;  %v562_v6 = vsel %vm10644_vm13, %v554_v39, %v561_v4  ;;  %v321_v58 = vld [vmem:[#allocation2 + $0x2c] sm:$0x8] }
  0x69   : > { %v10722_v30 = vrot.slane %v14872_v29, 7  ;;  %v570_v42 = vor.u32 %v14873_v36, %v10568_v52  ;;  %1771 = vst.msk [vmem:[#allocation2 + $0x14] sm:$0xf] %vm1764_vm3, %v562_v6  ;;  %v1202_v15 = vshrl.u32 %v10733_v34, 16  ;;  %v14852_v52 = vshll.u32 %v10733_v34, 16 }
  0x6a   : > { %2104 = vrot.lane.b32.xlu1 %v10485_v11, %s10182_s6  ;;  %3362 = vrot.lane.b32.xlu0 %v2964_v59, %s10183_s7  ;;  %v2649_v11 = vor.u32 %v2648_v10, %v10674_v51  ;;  %v2645_v59 = vrot.slane %v2644_v13, 4  ;;  %v563_v10 = vrot.slane %v558_v3, 4  ;;  %v613_v63 = vor.u32 %v14874_v5, %v610_v62  ;;  %v225_v29 = vld [vmem:[#allocation2 + $0x50] sm:$0x1]  ;;  %v10773_v37 = vld [vmem:[%s10276_s5 + $0x138] sm:$0xf] }
  0x6b   : > { %v10747_v13 = vrot.slane %v1228_v40, 7  ;;  %v1231_v3 = vshll.u32 %v10712_v21, 16  ;;  %v2655_v50 = vrot.slane %v2654_v45, 4  ;;  %v14875_v35 = vshrl.u32 %v10388_v23, 16 }
  0x6c   : > { %v2650_v27 = vrot.slane %v2649_v11, 4  ;;  %v2659_v11 = vor.u32 %v2658_v57, %v10716_v8  ;;  %v2647_v48 = vsel %vm10347_vm8, %v2645_v59, %v10674_v51  ;;  %v9921_v57 = vld [vmem:[%s14824_s1 + $0x8] sm:$0x3f]   ;;  %v322_v51 = vsel %vm10629_vm11, 0, %v321_v58 }
  0x6d   : > { %v1233_v4 = vor.u32 %v1231_v3, %v10747_v13  ;;  %v10767_v62 = vrot.slane %v14875_v35, 7  ;;  %v2657_v59 = vsel %vm10347_vm8, %v2655_v50, %v10716_v8  ;;  %v10788_v36 = vrot.slane %v14852_v52, 5  ;;  %323 = vst [vmem:[#allocation2 + $0x2c] sm:$0x8] %v322_v51  ;;  %v10803_v50 = vld [vmem:[%s10276_s5 + $0x40] sm:$0xf]  ;;  %9875 = vmatprep.subr.msk.bf16.mxu1 %vm4570_vm14, %v9921_v57  ;;  %9874 = vmatprep.subr.msk.bf16.mxu0 %vm4570_vm14, %v9921_v57 }
  0x6e   : > { %3360 = vrot.lane.b32.xlu1 %v2961_v33, %s10183_s7  ;;  %2106 = vrot.lane.b32.xlu0 %v10609_v49, %s10182_s6  ;;  %v606_v33 = vrot.slane %v10722_v30, 4  ;;  %v2652_v39 = vsel %vm10347_vm8, %v2650_v27, %v2651_v54  ;;  %v2660_v45 = vrot.slane %v2659_v11, 4  ;;  %v571_v54 = vsel %vm10644_vm13, %v563_v10, %v570_v42  ;;  %v10883_v52 = vld [vmem:[%s10276_s5 + $0x150] sm:$0xf] }
  0x6f   : > { %v2971_v10 = vrot.slane %v1202_v15, 4  ;;  %v14876_v42 = vshrl.u32 %v10526_v32, 16  ;;  %v1888_v6 = vld [vmem:[#allocation2 + $0x150] sm:$0xf]  ;;  %1772 = vst.msk [vmem:[#allocation2 + $0x18] sm:$0xf] %vm1764_vm3, %v571_v54 }
  0x70   : > { %v614_v27 = vsel %vm10644_vm13, %v606_v33, %v613_v63  ;;  %v14877_v63 = vshll.u32 %v10526_v32, 16  ;;  %v1889_v8 = vsel %vm10298_vm5, %v1233_v4, %v1888_v6  ;;  %v226_v11 = vsel %vm10262_vm2, 0, %v225_v29 }
  0x71   : > { %v2965_v5 = vrot.slane %v14876_v42, 4  ;;  %1779 = vst.msk [vmem:[#allocation2 + $0x2c] sm:$0xf] %vm1764_vm3, %v614_v27  ;;  %v14878_v58 = vshll.u32 %v10388_v23, 16  ;;  %1890 = vst [vmem:[#allocation2 + $0x150] sm:$0xf] %v1889_v8 }
  0x72   : > { %2118 = vrot.lane.b32.xlu1 %v10728_v44, %s10182_s6  ;;  %2108 = vrot.lane.b32.xlu0 %v10636_v1, %s10182_s6  ;;  %v2966_v33 = vrot.slane %v14877_v63, 5  ;;  %v4572_v35 = vsel %vm4570_vm14, %v9921_v57, 0  ;;  %227 = vst [vmem:[#allocation2 + $0x50] sm:$0x1] %v226_v11  ;;  %v14849_v4 = vshrl.u32 %v10803_v50, 16  ;;  %v14879_v29 = vshrl.u32 %v10431_v12, 16 }
  0x73   : > { %v1220_v51 = vshrl.u32 %v10598_v20, 16  ;;  %v1223_v23 = vshll.u32 %v10598_v20, 16  ;;  %v14880_v27 = vshrl.u32 %v10537_v14, 16  ;;  %9873 = vmatpush3.bf16.msra.mxu1 %v4572_v35  ;;  %9483 = vmatpush3.bf16.msra.mxu0 %v4572_v35  ;;  %v14851_v42 = vshll.u32 %v10773_v37, 16 }
  0x74   : > { %v1188_v54 = vrot.slane %v14879_v29, 7  ;;  %v2972_v57 = vor.u32 %v2971_v10, %v10788_v36  ;;  %v10827_v6 = vrot.slane %v14849_v4, 7  ;;  %v14850_v63 = vshll.u32 %v10803_v50, 16 }
  0x75   : > { %v1211_v8 = vshrl.u32 %v10773_v37, 16  ;;  %v2967_v11 = vor.u32 %v2966_v33, %v2965_v5  ;;  %v14881_v35 = vshll.u32 %v10431_v12, 16  ;;  %v14882_v29 = vshll.u32 %v10415_v56, 16  ;;  %v10854_v56 = vld [vmem:[%s10276_s5 + $0x14c] sm:$0xf] }
  0x76   : > { %3230 = vrot.lane.b32.xlu1 %v2652_v39, %s10183_s7  ;;  %3228 = vrot.lane.b32.xlu0 %v2647_v48, %s10183_s7  ;;  %v1139_v39 = vor.u32 %v14878_v58, %v10767_v62  ;;  %v1132_v48 = vrot.slane %v10390_v28, 4  ;;  %v10819_v28 = vrot.slane %v14880_v27, 7  ;;  %v1141_v58 = vrot.slane %v10767_v62, 4 }
  0x77   : > { %v1191_v10 = vor.u32 %v14881_v35, %v1188_v54  ;;  %v1148_v27 = vor.u32 %v14882_v29, %v10606_v55  ;;  %v10845_v62 = vrot.slane %v1223_v23, 5  ;;  %v2981_v33 = vrot.slane %v1220_v51, 4 }
  0x78   : > { %v1184_v4 = vrot.slane %v10819_v28, 4  ;;  %v1140_v5 = vsel %vm10644_vm13, %v1132_v48, %v1139_v39  ;;  %v2974_v12 = vrot.slane %v14851_v42, 5  ;;  %v2973_v55 = vrot.slane %v2972_v57, 4  ;;  %v276_v42 = vld [vmem:[#allocation2 + $0x160] sm:$0x1] }
  0x79   : > { %1873 = vst.msk [vmem:[#allocation2 + $0x124] sm:$0xf] %vm1764_vm3, %v1140_v5  ;;  %v2976_v39 = vrot.slane %v1211_v8, 4  ;;  %v2968_v48 = vrot.slane %v2967_v11, 4  ;;  %v1792_v54 = vld [vmem:[#allocation2 + $0x50] sm:$0xf] }
  0x7a   : > { %3232 = vrot.lane.b32.xlu1 %v2657_v59, %s10183_s7  ;;  %3234 = vrot.lane.b32.xlu0 %v2660_v45, %s10183_s7  ;;  %v689_v45 = vor.u32 %v14850_v63, %v10827_v6  ;;  %v372_v59 = vld [vmem:[#allocation2 + $0x13c] sm:$0x8]  ;;  %v14883_v29 = vshrl.u32 %v10443_v25, 16  ;;  %v10868_v63 = vld [vmem:[%s10276_s5 + $0x34] sm:$0xf]  ;;  %v644_v5 = vrot.slane %v642_v2, 7  ;;  %v2982_v2 = vor.u32 %v2981_v33, %v10845_v62 }
  0x7b   : > { %v373_v35 = vsel %vm10629_vm11, 0, %v372_v59  ;;  %v10876_v11 = vrot.slane %v633_v46, 7  ;;  %v1192_v59 = vsel %vm10644_vm13, %v1184_v4, %v1191_v10  ;;  %v2975_v46 = vsel %vm10347_vm8, %v2973_v55, %v2974_v12 }
  0x7c   : > { %v1793_v57 = vsel %vm10298_vm5, %v689_v45, %v1792_v54  ;;  %374 = vst [vmem:[#allocation2 + $0x13c] sm:$0x8] %v373_v35  ;;  %v2970_v4 = vsel %vm10347_vm8, %v2968_v48, %v10788_v36  ;;  %v14855_v45 = vshrl.u32 %v10868_v63, 16  ;;  %v14854_v10 = vshll.u32 %v10868_v63, 16 }
  0x7d   : > { %1794 = vst [vmem:[#allocation2 + $0x50] sm:$0xf] %v1793_v57  ;;  %1881 = vst.msk [vmem:[#allocation2 + $0x13c] sm:$0xf] %vm1764_vm3, %v1192_v59  ;;  %v588_v54 = vrot.slane %v10419_v60, 4  ;;  %v14884_v33 = vshll.u32 %v10443_v25, 16  ;;  %v647_v36 = vor.u32 %v645_v38, %v644_v5 }
  0x7e   : > { %2242 = vrot.lane.b32.xlu1 %v10733_v34, %s10182_s6  ;;  %2240 = vrot.lane.b32.xlu0 %v10526_v32, %s10182_s6  ;;  %v10865_v32 = vrot.slane %v14883_v29, 7  ;;  %v1149_v29 = vsel %vm10644_vm13, %v1141_v58, %v1148_v27  ;;  %v2977_v58 = vor.u32 %v2976_v39, %v2974_v12  ;;  %v10900_v27 = vld [vmem:[%s10276_s5 + $0x38] sm:$0xf]  ;;  %v277_v35 = vsel %vm10262_vm2, 0, %v276_v42 }
  0x7f   : > { %1874 = vst.msk [vmem:[#allocation2 + $0x128] sm:$0xf] %vm1764_vm3, %v1149_v29  ;;  %v14853_v57 = vshrl.u32 %v10883_v52, 16  ;;  %v640_v12 = vrot.slane %v10876_v11, 4  ;;  %v14885_v39 = vshrl.u32 %v10592_v61, 16  ;;  %v14886_v59 = vshll.u32 %v10592_v61, 16 }
  0x80   : > { %v595_v55 = vor.u32 %v14884_v33, %v10865_v32  ;;  %278 = vst [vmem:[#allocation2 + $0x160] sm:$0x1] %v277_v35  ;;  %v2983_v25 = vrot.slane %v2982_v2, 4  ;;  %v667_v42 = vshrl.u32 %v10900_v27, 16  ;;  %v14857_v29 = vshll.u32 %v10900_v27, 16 }
  0x81   : > { %v2661_v48 = vrot.slane %v14885_v39, 4  ;;  %v2662_v60 = vrot.slane %v14886_v59, 5  ;;  %v10922_v7 = vrot.slane %v14853_v57, 7  ;;  %v2978_v38 = vrot.slane %v2977_v58, 4 }
  0x82   : > { %2254 = vrot.lane.b32.xlu1 %v10854_v56, %s10182_s6  ;;  %2244 = vrot.lane.b32.xlu0 %v10773_v37, %s10182_s6  ;;  %v10926_v5 = vrot.slane %v14854_v10, 5  ;;  %v2667_v33 = vrot.slane %v14855_v45, 4  ;;  %v597_v2 = vrot.slane %v10865_v32, 4  ;;  %v14887_v35 = vshll.u32 %v10459_v41, 16 }
  0x83   : > { %v596_v59 = vsel %vm10644_vm13, %v588_v54, %v595_v55  ;;  %v676_v58 = vshrl.u32 %v10728_v44, 16  ;;  %v679_v57 = vshll.u32 %v10728_v44, 16  ;;  %v14888_v32 = vshrl.u32 %v10508_v22, 16  ;;  %v11117_v44 = vld [vmem:[%s10276_s5 + $0x15c] sm:$0xf] }
  0x84   : > { %v604_v39 = vor.u32 %v14887_v35, %v10722_v30  ;;  %1777 = vst.msk [vmem:[#allocation2 + $0x24] sm:$0xf] %vm1764_vm3, %v596_v59  ;;  %v10952_v41 = vrot.slane %v14857_v29, 5  ;;  %v2672_v30 = vrot.slane %v667_v42, 4  ;;  %v2980_v55 = vsel %vm10347_vm8, %v2978_v38, %v10845_v62  ;;  %v10991_v38 = vld [vmem:[%s10276_s5 + $0x4c] sm:$0xf] }
  0x85   : > { %v10945_v45 = vrot.slane %v14888_v32, 7  ;;  %v2668_v35 = vor.u32 %v2667_v33, %v10926_v5  ;;  %v2663_v59 = vor.u32 %v2662_v60, %v2661_v48  ;;  %v1222_v32 = vrot.slane %v1220_v51, 7  ;;  %v10985_v60 = vld [vmem:[%s10276_s5 + $0x50] sm:$0xf] }
  0x86   : > { %3366 = vrot.lane.b32.xlu1 %v2975_v46, %s10183_s7  ;;  %3364 = vrot.lane.b32.xlu0 %v2970_v4, %s10183_s7  ;;  %v14856_v46 = vshll.u32 %v10883_v52, 16  ;;  %v324_v4 = vld [vmem:[#allocation2 + $0x3c] sm:$0x8]  ;;  %v605_v62 = vsel %vm10644_vm13, %v597_v2, %v604_v39  ;;  %v10971_v48 = vrot.slane %v679_v57, 5  ;;  %v718_v33 = vshrl.u32 %v10985_v60, 16 }
  0x87   : > { %v325_v54 = vsel %vm10629_vm11, 0, %v324_v4  ;;  %v1894_v4 = vld [vmem:[#allocation2 + $0x160] sm:$0xf]  ;;  %1778 = vst.msk [vmem:[#allocation2 + $0x28] sm:$0xf] %vm1764_vm3, %v605_v62  ;;  %v1166_v2 = vrot.slane %v10462_v47, 4 }
  0x88   : > { %v1267_v10 = vor.u32 %v14856_v46, %v10922_v7  ;;  %326 = vst [vmem:[#allocation2 + $0x3c] sm:$0x8] %v325_v54  ;;  %v2669_v39 = vrot.slane %v2668_v35, 4  ;;  %v2664_v54 = vrot.slane %v2663_v59, 4  ;;  %v11009_v62 = vrot.slane %v718_v33, 7 }
  0x89   : > { %v721_v20 = vshll.u32 %v10985_v60, 16  ;;  %v375_v59 = vld [vmem:[#allocation2 + $0x14c] sm:$0x8]  ;;  %v11099_v49 = vrot.slane %v1202_v15, 7 }
  0x8a   : > { %2112 = vrot.lane.b32.xlu1 %v10592_v61, %s10182_s6  ;;  %3370 = vrot.lane.b32.xlu0 %v2983_v25, %s10183_s7  ;;  %v648_v61 = vsel %vm10644_vm13, %v640_v12, %v647_v36  ;;  %v228_v25 = vld [vmem:[#allocation2 + $0x60] sm:$0x1]  ;;  %v2677_v36 = vrot.slane %v676_v58, 4  ;;  %v10977_v12 = vrot.slane %v1211_v8, 7  ;;  %v1895_v51 = vsel %vm10298_vm5, %v1267_v10, %v1894_v4 }
  0x8b   : > { %1785 = vst.msk [vmem:[#allocation2 + $0x3c] sm:$0xf] %vm1764_vm3, %v648_v61  ;;  %v2673_v8 = vor.u32 %v2672_v30, %v10952_v41  ;;  %1896 = vst [vmem:[#allocation2 + $0x160] sm:$0xf] %v1895_v51  ;;  %v14889_v10 = vshll.u32 %v10508_v22, 16  ;;  %v1175_v61 = vrot.slane %v10945_v45, 4  ;;  %v1225_v30 = vor.u32 %v1223_v23, %v1222_v32 }
  0x8c   : > { %v2223_v46 = vpop.permute.xlu0 %2222  ;;  %v2217_v29 = vpop.permute.xlu1 %2216  ;;  %v14890_v22 = vshll.u32 %v10537_v14, 16  ;;  %v1218_v35 = vrot.slane %v10977_v12, 4  ;;  %v2671_v32 = vsel %vm10347_vm8, %v2669_v39, %v10952_v41  ;;  %v723_v51 = vor.u32 %v721_v20, %v11009_v62 }
  0x8d   : > { %2540 = vst.msk [vmem:[#allocation2 + $0x11c] sm:$0xf] %vm2472_vm15, %v2223_v46  ;;  %2537 = vst.msk [vmem:[#allocation2 + $0x110] sm:$0xf] %vm2472_vm15, %v2217_v29  ;;  %v229_v29 = vsel %vm10262_vm2, 0, %v228_v25  ;;  %v1173_v46 = vor.u32 %v14889_v10, %v10945_v45  ;;  %v2678_v45 = vor.u32 %v2677_v36, %v10971_v48  ;;  %v2674_v23 = vrot.slane %v2673_v8, 4 }
  0x8e   : > { %3368 = vrot.lane.b32.xlu1 %v2980_v55, %s10183_s7  ;;  %2114 = vrot.lane.b32.xlu0 %v10868_v63, %s10182_s6  ;;  %v11002_v55 = vld [vmem:[%s10276_s5 + $0x144] sm:$0xf]  ;;  %230 = vst [vmem:[#allocation2 + $0x60] sm:$0x1] %v229_v29  ;;  %v1182_v47 = vor.u32 %v14890_v22, %v10819_v28  ;;  %v2666_v36 = vsel %vm10347_vm8, %v2664_v54, %v10926_v5  ;;  %v376_v41 = vsel %vm10629_vm11, 0, %v375_v59  ;;  %v2984_v22 = vrot.slane %v1228_v40, 4 }
  0x8f   : > { %v1236_v14 = vshrl.u32 %v11002_v55, 16  ;;  %v1239_v28 = vshll.u32 %v11002_v55, 16  ;;  %v1174_v8 = vsel %vm10644_vm13, %v1166_v2, %v1173_v46  ;;  %v2679_v5 = vrot.slane %v2678_v45, 4  ;;  %377 = vst [vmem:[#allocation2 + $0x14c] sm:$0x8] %v376_v41 }
  0x90   : > { %v2219_v4 = vpop.permute.xlu1 %2218  ;;  %v2095_v25 = vpop.permute.xlu0 %2094  ;;  %1879 = vst.msk [vmem:[#allocation2 + $0x134] sm:$0xf] %vm1764_vm3, %v1174_v8  ;;  %v2985_v45 = vrot.slane %v1231_v3, 5  ;;  %v11074_v8 = vld [vmem:[%s10276_s5 + $0x148] sm:$0xf]  ;;  %v622_v40 = vrot.slane %v10498_v43, 4 }
  0x91   : > { %2538 = vst.msk [vmem:[#allocation2 + $0x114] sm:$0xf] %vm2472_vm15, %v2219_v4  ;;  %2476 = vst.msk [vmem:[#allocation2 + $0x1c] sm:$0xf] %vm2472_vm15, %v2095_v25  ;;  %v11039_v4 = vrot.slane %v624_v16, 7  ;;  %v2676_v16 = vsel %vm10347_vm8, %v2674_v23, %v10971_v48  ;;  %v11058_v2 = vrot.slane %v1239_v28, 5  ;;  %v1226_v25 = vsel %vm10644_vm13, %v1218_v35, %v1225_v30 }
  0x92   : > { %2126 = vrot.lane.b32.xlu1 %v10991_v38, %s10182_s6  ;;  %2116 = vrot.lane.b32.xlu0 %v10900_v27, %s10182_s6  ;;  %v2990_v39 = vrot.slane %v1236_v14, 4  ;;  %1887 = vst.msk [vmem:[#allocation2 + $0x14c] sm:$0xf] %vm1764_vm3, %v1226_v25  ;;  %v1183_v23 = vsel %vm10644_vm13, %v1175_v61, %v1182_v47  ;;  %v678_v3 = vrot.slane %v676_v58, 7  ;;  %v11082_v30 = vrot.slane %v667_v42, 7 }
  0x93   : > { %1880 = vst.msk [vmem:[#allocation2 + $0x138] sm:$0xf] %vm1764_vm3, %v1183_v23  ;;  %v629_v47 = vor.u32 %v627_v31, %v11039_v4  ;;  %v1254_v35 = vshrl.u32 %v10854_v56, 16  ;;  %v1257_v43 = vshll.u32 %v10854_v56, 16  ;;  %v1245_v42 = vshrl.u32 %v11074_v8, 16 }
  0x94   : > { %v2231_v29 = vpop.permute.xlu1 %2230  ;;  %v2221_v10 = vpop.permute.xlu0 %2220  ;;  %v3698_v59 = vld [vmem:[#allocation2 + $0x11c] sm:$0xf]  ;;  %v1248_v58 = vshll.u32 %v11074_v8, 16  ;;  %v327_v56 = vld [vmem:[#allocation2 + $0x4c] sm:$0x8]  ;;  %v631_v41 = vrot.slane %v11039_v4, 4 }
  0x95   : > { %2544 = vst.msk [vmem:[#allocation2 + $0x12c] sm:$0xf] %vm2472_vm15, %v2231_v29  ;;  %2539 = vst.msk [vmem:[#allocation2 + $0x118] sm:$0xf] %vm2472_vm15, %v2221_v10  ;;  %v1798_v54 = vld [vmem:[#allocation2 + $0x60] sm:$0xf]  ;;  %v2986_v29 = vor.u32 %v2985_v45, %v2984_v22  ;;  %v630_v1 = vsel %vm10644_vm13, %v622_v40, %v629_v47 }
  0x96   : > { %3238 = vrot.lane.b32.xlu1 %v2671_v32, %s10183_s7  ;;  %3236 = vrot.lane.b32.xlu0 %v2666_v36, %s10183_s7  ;;  %v1799_v48 = vsel %vm10298_vm5, %v723_v51, %v1798_v54  ;;  %v2991_v51 = vor.u32 %v2990_v39, %v11058_v2  ;;  %v674_v39 = vrot.slane %v11082_v30, 4  ;;  %v11110_v15 = vrot.slane %v1257_v43, 5  ;;  %v11124_v25 = vld [vmem:[%s10276_s5 + $0x44] sm:$0xf]  ;;  %1783 = vst.msk [vmem:[#allocation2 + $0x34] sm:$0xf] %vm1764_vm3, %v630_v1 }
  0x97   : > { %1800 = vst [vmem:[#allocation2 + $0x60] sm:$0xf] %v1799_v48  ;;  %v3000_v54 = vrot.slane %v1254_v35, 4  ;;  %v2987_v4 = vrot.slane %v2986_v29, 4  ;;  %v328_v22 = vsel %vm10629_vm11, 0, %v327_v56  ;;  %v1200_v48 = vrot.slane %v10557_v26, 4 }
  0x98   : > { %v3347_v32 = vpop.permute.xlu0 %3346  ;;  %v2089_v36 = vpop.permute.xlu1 %2088  ;;  %329 = vst [vmem:[#allocation2 + $0x4c] sm:$0x8] %v328_v22  ;;  %v1209_v47 = vrot.slane %v11099_v49, 4  ;;  %v11157_v29 = vld [vmem:[%s10276_s5 + $0x48] sm:$0xf] }
  0x99   : > { %v3699_v61 = vsel %vm11049_vm1, %v3347_v32, %v3698_v59  ;;  %2473 = vst.msk [vmem:[#allocation2 + $0x10] sm:$0xf] %vm2472_vm15, %v2089_v36  ;;  %v1256_v32 = vrot.slane %v1254_v35, 7  ;;  %v11135_v36 = vrot.slane %v1245_v42, 7  ;;  %v3001_v26 = vor.u32 %v3000_v54, %v11110_v15 }
  0x9a   : > { %3700 = vst [vmem:[#allocation2 + $0x11c] sm:$0xf] %v3699_v61  ;;  %3240 = vrot.lane.b32.xlu1 %v2676_v16, %s10183_s7  ;;  %3242 = vrot.lane.b32.xlu0 %v2679_v5, %s10183_s7  ;;  %v681_v5 = vor.u32 %v679_v57, %v678_v3  ;;  %v638_v16 = vor.u32 %v636_v18, %v10876_v11  ;;  %v2995_v57 = vrot.slane %v1245_v42, 4  ;;  %v2993_v18 = vrot.slane %v1248_v58, 5 }
  0x9b   : > { %v2992_v11 = vrot.slane %v2991_v51, 4  ;;  %v692_v61 = vshrl.u32 %v11124_v25, 16  ;;  %v2989_v42 = vsel %vm10347_vm8, %v2987_v4, %v11058_v2  ;;  %v695_v51 = vshll.u32 %v11124_v25, 16 }
  0x9c   : > { %v3341_v31 = vpop.permute.xlu0 %3340  ;;  %v3343_v10 = vpop.permute.xlu1 %3342  ;;  %v682_v40 = vsel %vm10644_vm13, %v674_v39, %v681_v5  ;;  %v2996_v3 = vor.u32 %v2995_v57, %v2993_v18  ;;  %v1259_v5 = vor.u32 %v1257_v43, %v1256_v32  ;;  %v14894_v2 = vshrl.u32 %v10803_v50, 16  ;;  %v378_v57 = vld [vmem:[#allocation2 + $0x15c] sm:$0x8] }
  0x9d   : > { %3695 = vst.msk [vmem:[#allocation2 + $0x110] sm:$0xf] %vm3596_vm0, %v3341_v31  ;;  %3696 = vst.msk [vmem:[#allocation2 + $0x114] sm:$0xf] %vm3596_vm0, %v3343_v10  ;;  %v2994_v35 = vsel %vm10347_vm8, %v2992_v11, %v2993_v18  ;;  %v14895_v39 = vshll.u32 %v10803_v50, 16  ;;  %v3002_v43 = vrot.slane %v3001_v26, 4 }
  0x9e   : > { %2250 = vrot.lane.b32.xlu1 %v11002_v55, %s10182_s6  ;;  %2248 = vrot.lane.b32.xlu0 %v10712_v21, %s10182_s6  ;;  %v14893_v21 = vshll.u32 %v10733_v34, 16  ;;  %v639_v34 = vsel %vm10644_vm13, %v631_v41, %v638_v16  ;;  %1791 = vst.msk [vmem:[#allocation2 + $0x4c] sm:$0xf] %vm1764_vm3, %v682_v40  ;;  %v2680_v16 = vrot.slane %v14894_v2, 4  ;;  %v2997_v1 = vrot.slane %v2996_v3, 4 }
  0x9f   : > { %1784 = vst.msk [vmem:[#allocation2 + $0x38] sm:$0xf] %vm1764_vm3, %v639_v34  ;;  %v2681_v54 = vrot.slane %v14895_v39, 5  ;;  %v2686_v18 = vrot.slane %v692_v61, 4  ;;  %v701_v11 = vshrl.u32 %v11157_v29, 16  ;;  %v14896_v4 = vshll.u32 %v10773_v37, 16 }
  0xa0   : > { %v1207_v45 = vor.u32 %v14893_v21, %v11099_v49  ;;  %v2091_v23 = vpop.permute.xlu0 %2090  ;;  %v3345_v59 = vpop.permute.xlu1 %3344  ;;  %v1252_v49 = vrot.slane %v11135_v36, 4  ;;  %v11180_v21 = vrot.slane %v695_v51, 5  ;;  %v710_v34 = vshrl.u32 %v10991_v38, 16 }
  0xa1   : > { %2474 = vst.msk [vmem:[#allocation2 + $0x14] sm:$0xf] %vm2472_vm15, %v2091_v23  ;;  %v1216_v22 = vor.u32 %v14896_v4, %v10977_v12  ;;  %v713_v37 = vshll.u32 %v10991_v38, 16  ;;  %v2999_v26 = vsel %vm10347_vm8, %v2997_v1, %v11110_v15  ;;  %v2691_v3 = vrot.slane %v701_v11, 4 }
  0xa2   : > { %3697 = vst.msk [vmem:[#allocation2 + $0x118] sm:$0xf] %vm3596_vm0, %v3345_v59  ;;  %2262 = vrot.lane.b32.xlu1 %v11117_v44, %s10182_s6  ;;  %2252 = vrot.lane.b32.xlu0 %v11074_v8, %s10182_s6  ;;  %v1208_v41 = vsel %vm10644_vm13, %v1200_v48, %v1207_v45  ;;  %v704_v45 = vshll.u32 %v11157_v29, 16  ;;  %v14897_v48 = vshrl.u32 %v10868_v63, 16  ;;  %v1260_v12 = vsel %vm10644_vm13, %v1252_v49, %v1259_v5  ;;  %v3602_v49 = vld [vmem:[#allocation2 + $0x1c] sm:$0xf] }
  0xa3   : > { %1885 = vst.msk [vmem:[#allocation2 + $0x144] sm:$0xf] %vm1764_vm3, %v1208_v41  ;;  %v379_v38 = vsel %vm10629_vm11, 0, %v378_v57  ;;  %v14898_v15 = vshll.u32 %v10868_v63, 16  ;;  %v712_v41 = vrot.slane %v710_v34, 7  ;;  %v2696_v39 = vrot.slane %v710_v34, 4 }
  0xa4   : > { %v2093_v31 = vpop.permute.xlu0 %2092  ;;  %v2103_v10 = vpop.permute.xlu1 %2102  ;;  %v9922_v56 = vld [vmem:[#allocation2 + $0x110] sm:$0xff]   ;;  %v11185_v23 = vrot.slane %v14897_v48, 7  ;;  %380 = vst [vmem:[#allocation2 + $0x15c] sm:$0x8] %v379_v38  ;;  %v11220_v63 = vrot.slane %v701_v11, 7 }
  0xa5   : > { %2475 = vst.msk [vmem:[#allocation2 + $0x18] sm:$0xf] %vm2472_vm15, %v2093_v31  ;;  %2480 = vst.msk [vmem:[#allocation2 + $0x2c] sm:$0xf] %vm2472_vm15, %v2103_v10  ;;  %9548 = vmatprep.mubr.msk.bf16.mxu1 %vm4377_vm4, %v9922_v56  ;;  %v2682_v31 = vor.u32 %v2681_v54, %v2680_v16  ;;  %v656_v10 = vrot.slane %v10616_v17, 4  ;;  %v11215_v16 = vrot.slane %v713_v37, 5  ;;  %v715_v48 = vor.u32 %v713_v37, %v712_v41 }
  0xa6   : > { %3374 = vrot.lane.b32.xlu1 %v2994_v35, %s10183_s7  ;;  %3372 = vrot.lane.b32.xlu0 %v2989_v42, %s10183_s7  ;;  %v11204_v35 = vrot.slane %v704_v45, 5  ;;  %v2687_v42 = vor.u32 %v2686_v18, %v11180_v21  ;;  %v663_v56 = vor.u32 %v14898_v15, %v11185_v23  ;;  %1893 = vst.msk [vmem:[#allocation2 + $0x15c] sm:$0xf] %vm1764_vm3, %v1260_v12  ;;  %v11229_v54 = vld [vmem:[%s10276_s5 + $0x5c] sm:$0xf]  ;;  %v665_v12 = vrot.slane %v11185_v23, 4 }
  0xa7   : > { %v330_v34 = vld [vmem:[#allocation2 + $0x5c] sm:$0x8] }
  0xa8   : > { %v3215_v59 = vpop.permute.xlu1 %3214  ;;  %v3213_v32 = vpop.permute.xlu0 %3212  ;;  %v2688_v57 = vrot.slane %v2687_v42, 4  ;;  %v2692_v1 = vor.u32 %v2691_v3, %v11204_v35  ;;  %v664_v11 = vsel %vm10644_vm13, %v656_v10, %v663_v56  ;;  %v1288_v3 = vshrl.u32 %v11117_v44, 16  ;;  %v11258_v42 = vld [vmem:[%s10276_s5 + $0x158] sm:$0xf] }
  0xa9   : > { %v9923_v40 = vld [vmem:[#allocation2 + $0x118] sm:$0xff]   ;;  %3598 = vst.msk [vmem:[#allocation2 + $0x14] sm:$0xf] %vm3596_vm0, %v3215_v59  ;;  %3597 = vst.msk [vmem:[#allocation2 + $0x10] sm:$0xf] %vm3596_vm0, %v3213_v32  ;;  %v708_v59 = vrot.slane %v11220_v63, 4  ;;  %v2697_v32 = vor.u32 %v2696_v39, %v11215_v16 }
  0xaa   : > { %2120 = vrot.lane.b32.xlu1 %v10803_v50, %s10182_s6  ;;  %3378 = vrot.lane.b32.xlu0 %v3002_v43, %s10183_s7  ;;  %v1217_v50 = vsel %vm10644_vm13, %v1209_v47, %v1216_v22  ;;  %v11226_v47 = vld [vmem:[%s10276_s5 + $0x154] sm:$0xf]  ;;  %v2683_v43 = vrot.slane %v2682_v31, 4  ;;  %1789 = vst.msk [vmem:[#allocation2 + $0x44] sm:$0xf] %vm1764_vm3, %v664_v11  ;;  %v2690_v23 = vsel %vm10347_vm8, %v2688_v57, %v11204_v35  ;;  %v11262_v31 = vrot.slane %v1236_v14, 7 }
  0xab   : > { %9549 = vmatmul.mubr.msk.bf16.vlgmr.msra.gmra.mxu1 %vm4377_vm4, %v9923_v40  ;;  %1886 = vst.msk [vmem:[#allocation2 + $0x148] sm:$0xf] %vm1764_vm3, %v1217_v50  ;;  %v1273_v40 = vshll.u32 %v11226_v47, 16  ;;  %v1270_v38 = vshrl.u32 %v11226_v47, 16  ;;  %v1290_v50 = vrot.slane %v1288_v3, 7  ;;  %v331_v56 = vsel %vm10629_vm11, 0, %v330_v34 }
  0xac   : > { %v3217_v5 = vpop.permute.xlu1 %3216  ;;  %v3219_v2 = vpop.permute.xlu0 %3218  ;;  %v2698_v41 = vrot.slane %v2697_v32, 4  ;;  %332 = vst [vmem:[#allocation2 + $0x5c] sm:$0x8] %v331_v56  ;;  %v716_v14 = vsel %vm10644_vm13, %v708_v59, %v715_v48  ;;  %v1291_v59 = vshll.u32 %v11117_v44, 16  ;;  %v11306_v34 = vld [vmem:[%s10276_s5 + $0x58] sm:$0xf] }
  0xad   : > { %3599 = vst.msk [vmem:[#allocation2 + $0x18] sm:$0xf] %vm3596_vm0, %v3217_v5  ;;  %v3603_v17 = vsel %vm11049_vm1, %v3219_v2, %v3602_v49  ;;  %v1279_v5 = vshrl.u32 %v11258_v42, 16  ;;  %v3009_v49 = vrot.slane %v1270_v38, 4  ;;  %v14900_v2 = vshrl.u32 %v10883_v52, 16 }
  0xae   : > { %3604 = vst [vmem:[#allocation2 + $0x1c] sm:$0xf] %v3603_v17  ;;  %3376 = vrot.lane.b32.xlu1 %v2999_v26, %s10183_s7  ;;  %2122 = vrot.lane.b32.xlu0 %v11124_v25, %s10182_s6  ;;  %v14899_v26 = vshll.u32 %v10900_v27, 16  ;;  %v2685_v27 = vsel %vm10347_vm8, %v2683_v43, %v11180_v21  ;;  %v11270_v21 = vrot.slane %v1273_v40, 5  ;;  %1797 = vst.msk [vmem:[#allocation2 + $0x5c] sm:$0xf] %vm1764_vm3, %v716_v14 }
  0xaf   : > { %v3003_v39 = vrot.slane %v14900_v2, 4  ;;  %v14901_v43 = vshll.u32 %v10883_v52, 16  ;;  %v1293_v32 = vor.u32 %v1291_v59, %v1290_v50  ;;  %v1243_v44 = vrot.slane %v11262_v31, 4  ;;  %v381_v50 = vld [vmem:[#allocation2 + $0x16c] sm:$0x8] }
  0xb0   : > { %v2227_v18 = vpop.permute.xlu1 %2226  ;;  %v2225_v4 = vpop.permute.xlu0 %2224  ;;  %v9924_v22 = vld [vmem:[#allocation2 + $0x10] sm:$0xff]   ;;  %v672_v37 = vor.u32 %v14899_v26, %v11082_v30  ;;  %v2693_v30 = vrot.slane %v2692_v1, 4  ;;  %v744_v26 = vshrl.u32 %v11229_v54, 16  ;;  %v735_v56 = vshrl.u32 %v11306_v34, 16 }
  0xb1   : > { %2542 = vst.msk [vmem:[#allocation2 + $0x124] sm:$0xf] %vm2472_vm15, %v2227_v18  ;;  %2541 = vst.msk [vmem:[#allocation2 + $0x120] sm:$0xf] %vm2472_vm15, %v2225_v4  ;;  %9484 = vmatprep.mubr.msk.bf16.mxu0 %vm4377_vm4, %v9924_v22  ;;  %v3004_v1 = vrot.slane %v14901_v43, 5  ;;  %v11290_v18 = vrot.slane %v1279_v5, 7  ;;  %v1241_v4 = vor.u32 %v1239_v28, %v11262_v31  ;;  %v3010_v28 = vor.u32 %v3009_v49, %v11270_v21 }
  0xb2   : > { %2134 = vrot.lane.b32.xlu1 %v11229_v54, %s10182_s6  ;;  %2124 = vrot.lane.b32.xlu0 %v11157_v29, %s10182_s6  ;;  %v673_v17 = vsel %vm10644_vm13, %v665_v12, %v672_v37  ;;  %v2695_v57 = vsel %vm10347_vm8, %v2693_v30, %v11215_v16  ;;  %v1234_v22 = vrot.slane %v10747_v13, 4  ;;  %v1282_v16 = vshll.u32 %v11258_v42, 16  ;;  %v11338_v14 = vld [vmem:[%s10276_s5 + $0x54] sm:$0xf] }
  0xb3   : > { %1790 = vst.msk [vmem:[#allocation2 + $0x48] sm:$0xf] %vm1764_vm3, %v673_v17  ;;  %v1286_v55 = vrot.slane %v11290_v18, 4  ;;  %v3005_v13 = vor.u32 %v3004_v1, %v3003_v39  ;;  %v1250_v12 = vor.u32 %v1248_v58, %v11135_v36  ;;  %v11319_v31 = vrot.slane %v692_v61, 7  ;;  %v11332_v36 = vld [vmem:[%s10276_s5 + $0x16c] sm:$0xf] }
  0xb4   : > { %v2239_v10 = vpop.permute.xlu1 %2238  ;;  %v2229_v15 = vpop.permute.xlu0 %2228  ;;  %v1242_v30 = vsel %vm10644_vm13, %v1234_v22, %v1241_v4  ;;  %v746_v58 = vrot.slane %v744_v26, 7  ;;  %v3012_v61 = vrot.slane %v1282_v16, 5  ;;  %v382_v49 = vsel %vm10629_vm11, 0, %v381_v50  ;;  %v9990_v46 = vld [vmem:[#allocation2 + $0x10] sm:$0xff]  }
  0xb5   : > { %2548 = vst.msk [vmem:[#allocation2 + $0x13c] sm:$0xf] %vm2472_vm15, %v2239_v10  ;;  %2543 = vst.msk [vmem:[#allocation2 + $0x128] sm:$0xf] %vm2472_vm15, %v2229_v15  ;;  %v9925_v35 = vld [vmem:[#allocation2 + $0x18] sm:$0xff]   ;;  %v11315_v10 = vrot.slane %v1291_v59, 5  ;;  %v1294_v2 = vsel %vm10644_vm13, %v1286_v55, %v1293_v32  ;;  %v697_v1 = vor.u32 %v695_v51, %v11319_v31  ;;  %v706_v55 = vor.u32 %v704_v45, %v11220_v63 }
  0xb6   : > { %3246 = vrot.lane.b32.xlu1 %v2690_v23, %s10183_s7  ;;  %3244 = vrot.lane.b32.xlu0 %v2685_v27, %s10183_s7  ;;  %v3704_v23 = vld [vmem:[#allocation2 + $0x12c] sm:$0xf]  ;;  %v3019_v15 = vrot.slane %v1288_v3, 4  ;;  %1891 = vst.msk [vmem:[#allocation2 + $0x154] sm:$0xf] %vm1764_vm3, %v1242_v30  ;;  %v3014_v3 = vrot.slane %v1279_v5, 4  ;;  %v1251_v5 = vsel %vm10644_vm13, %v1243_v44, %v1250_v12 }
  0xb7   : > { %9485 = vmatmul.mubr.msk.bf16.vlgmr.msra.gmra.mxu0 %vm4377_vm4, %v9925_v35  ;;  %v3011_v35 = vrot.slane %v3010_v28, 4  ;;  %383 = vst [vmem:[#allocation2 + $0x16c] sm:$0x8] %v382_v49  ;;  %v690_v43 = vrot.slane %v10827_v6, 4  ;;  %1892 = vst.msk [vmem:[#allocation2 + $0x158] sm:$0xf] %vm1764_vm3, %v1251_v5 }
  0xb8   : > { %v3351_v11 = vpop.permute.xlu1 %3350  ;;  %v3349_v48 = vpop.permute.xlu0 %3348  ;;  %1899 = vst.msk [vmem:[#allocation2 + $0x16c] sm:$0xf] %vm1764_vm3, %v1294_v2  ;;  %v747_v4 = vshll.u32 %v11229_v54, 16  ;;  %v3020_v6 = vor.u32 %v3019_v15, %v11315_v10  ;;  %v3015_v22 = vor.u32 %v3014_v3, %v3012_v61  ;;  %v726_v51 = vshrl.u32 %v11338_v14, 16  ;;  %v11456_v54 = vld [vmem:[%s10276_s5 + $0x164] sm:$0xf] }
  0xb9   : > { %3702 = vst.msk [vmem:[#allocation2 + $0x124] sm:$0xf] %vm3596_vm0, %v3351_v11  ;;  %3701 = vst.msk [vmem:[#allocation2 + $0x120] sm:$0xf] %vm3596_vm0, %v3349_v48  ;;  %v3013_v11 = vsel %vm10347_vm8, %v3011_v35, %v3012_v61  ;;  %v729_v48 = vshll.u32 %v11338_v14, 16  ;;  %v699_v59 = vrot.slane %v11319_v31, 4 }
  0xba   : > { %3248 = vrot.lane.b32.xlu1 %v2695_v57, %s10183_s7  ;;  %3250 = vrot.lane.b32.xlu0 %v2698_v41, %s10183_s7  ;;  %v3006_v41 = vrot.slane %v3005_v13, 4  ;;  %v11344_v57 = vrot.slane %v735_v56, 7  ;;  %v749_v32 = vor.u32 %v747_v4, %v746_v58  ;;  %v11377_v12 = vrot.slane %v1270_v38, 7 }
  0xbb   : > { %v2699_v29 = vrot.slane %v718_v33, 4  ;;  %v3021_v45 = vrot.slane %v3020_v6, 4  ;;  %v738_v63 = vshll.u32 %v11306_v34, 16  ;;  %v698_v38 = vsel %vm10644_vm13, %v690_v43, %v697_v1  ;;  %v3608_v1 = vld [vmem:[#allocation2 + $0x2c] sm:$0xf] }
  0xbc   : > { %v2097_v37 = vpop.permute.xlu1 %2096  ;;  %v3355_v27 = vpop.permute.xlu0 %3354  ;;  %v3008_v25 = vsel %vm10347_vm8, %v3006_v41, %v11270_v21  ;;  %v742_v44 = vrot.slane %v11344_v57, 4  ;;  %v1322_v21 = vshrl.u32 %v11332_v36, 16  ;;  %v3016_v30 = vrot.slane %v3015_v22, 4  ;;  %1795 = vst.msk [vmem:[#allocation2 + $0x54] sm:$0xf] %vm1764_vm3, %v698_v38 }
  0xbd   : > { %2477 = vst.msk [vmem:[#allocation2 + $0x20] sm:$0xf] %vm2472_vm15, %v2097_v37  ;;  %v3705_v8 = vsel %vm11049_vm1, %v3355_v27, %v3704_v23  ;;  %v11383_v37 = vld [vmem:[%s10276_s5 + $0x168] sm:$0xf]  ;;  %v333_v23 = vld [vmem:[#allocation2 + $0x6c] sm:$0x8]  ;;  %v707_v3 = vsel %vm10644_vm13, %v699_v59, %v706_v55 }
  0xbe   : > { %3706 = vst [vmem:[#allocation2 + $0x12c] sm:$0xf] %v3705_v8  ;;  %2258 = vrot.lane.b32.xlu1 %v11226_v47, %s10182_s6  ;;  %2256 = vrot.lane.b32.xlu0 %v10883_v52, %s10182_s6  ;;  %v2700_v27 = vrot.slane %v721_v20, 5  ;;  %v11396_v50 = vrot.slane %v729_v48, 5  ;;  %v2705_v15 = vrot.slane %v726_v51, 4  ;;  %v1313_v58 = vshrl.u32 %v11383_v37, 16 }
  0xbf   : > { %v334_v61 = vsel %vm10629_vm11, 0, %v333_v23  ;;  %v750_v20 = vsel %vm10644_vm13, %v742_v44, %v749_v32  ;;  %v1324_v35 = vrot.slane %v1322_v21, 7  ;;  %v2710_v41 = vrot.slane %v735_v56, 4  ;;  %1796 = vst.msk [vmem:[#allocation2 + $0x58] sm:$0xf] %vm1764_vm3, %v707_v3 }
  0xc0   : > { %v3353_v39 = vpop.permute.xlu1 %3352  ;;  %v2099_v52 = vpop.permute.xlu0 %2098  ;;  %v9926_v17 = vld [vmem:[#allocation2 + $0x120] sm:$0xff]   ;;  %335 = vst [vmem:[#allocation2 + $0x6c] sm:$0x8] %v334_v61  ;;  %v11418_v49 = vrot.slane %v738_v63, 5  ;;  %v11422_v2 = vrot.slane %v1313_v58, 7  ;;  %v1275_v56 = vor.u32 %v1273_v40, %v11377_v12  ;;  %v1268_v5 = vrot.slane %v10922_v7, 4 }
  0xc1   : > { %3703 = vst.msk [vmem:[#allocation2 + $0x128] sm:$0xf] %vm3596_vm0, %v3353_v39  ;;  %9552 = vmatprep.mubr.msk.bf16.mxu1 %vm4377_vm4, %v9926_v17  ;;  %v2706_v39 = vor.u32 %v2705_v15, %v11396_v50  ;;  %v1277_v17 = vrot.slane %v11377_v12, 4  ;;  %v1325_v43 = vshll.u32 %v11332_v36, 16  ;;  %v1284_v47 = vor.u32 %v1282_v16, %v11290_v18  ;;  %v384_v59 = vld [vmem:[#allocation2 + $0x17c] sm:$0x8] }
  0xc2   : > { %2478 = vst.msk [vmem:[#allocation2 + $0x24] sm:$0xf] %vm2472_vm15, %v2099_v52  ;;  %2270 = vrot.lane.b32.xlu1 %v11332_v36, %s10182_s6  ;;  %2260 = vrot.lane.b32.xlu0 %v11258_v42, %s10182_s6  ;;  %v2701_v52 = vor.u32 %v2700_v27, %v2699_v29  ;;  %v2715_v22 = vrot.slane %v744_v26, 4  ;;  %v11452_v42 = vld [vmem:[%s10276_s5 + $0x6c] sm:$0xf]  ;;  %v2711_v18 = vor.u32 %v2710_v41, %v11418_v49  ;;  %v1320_v16 = vrot.slane %v11422_v2, 4 }
  0xc3   : > { %1803 = vst.msk [vmem:[#allocation2 + $0x6c] sm:$0xf] %vm1764_vm3, %v750_v20  ;;  %v2707_v26 = vrot.slane %v2706_v39, 4  ;;  %v1285_v44 = vsel %vm10644_vm13, %v1277_v17, %v1284_v47  ;;  %v11468_v12 = vrot.slane %v726_v51, 7  ;;  %v778_v23 = vshrl.u32 %v11452_v42, 16 }
  0xc4   : > { %v2111_v28 = vpop.permute.xlu1 %2110  ;;  %v2101_v13 = vpop.permute.xlu0 %2100  ;;  %v11476_v38 = vld [vmem:[%s10276_s5 + $0x68] sm:$0xf]  ;;  %1898 = vst.msk [vmem:[#allocation2 + $0x168] sm:$0xf] %vm1764_vm3, %v1285_v44  ;;  %v2712_v51 = vrot.slane %v2711_v18, 4  ;;  %v1307_v27 = vshll.u32 %v11456_v54, 16 }
  0xc5   : > { %2484 = vst.msk [vmem:[#allocation2 + $0x3c] sm:$0xf] %vm2472_vm15, %v2111_v28  ;;  %2479 = vst.msk [vmem:[#allocation2 + $0x28] sm:$0xf] %vm2472_vm15, %v2101_v13  ;;  %v1276_v13 = vsel %vm10644_vm13, %v1268_v5, %v1275_v56  ;;  %v385_v61 = vsel %vm10629_vm11, 0, %v384_v59  ;;  %v724_v41 = vrot.slane %v11009_v62, 4 }
  0xc6   : > { %3382 = vrot.lane.b32.xlu1 %v3013_v11, %s10183_s7  ;;  %3380 = vrot.lane.b32.xlu0 %v3008_v25, %s10183_s7  ;;  %v1327_v11 = vor.u32 %v1325_v43, %v1324_v35  ;;  %v11460_v25 = vld [vmem:[%s10276_s5 + $0x160] sm:$0xf]  ;;  %1897 = vst.msk [vmem:[#allocation2 + $0x164] sm:$0xf] %vm1764_vm3, %v1276_v13  ;;  %v769_v35 = vshrl.u32 %v11476_v38, 16  ;;  %v780_v56 = vrot.slane %v778_v23, 7 }
  0xc7   : > { %386 = vst [vmem:[#allocation2 + $0x17c] sm:$0x8] %v385_v61  ;;  %v781_v5 = vshll.u32 %v11452_v42, 16  ;;  %v11548_v36 = vld [vmem:[%s10276_s5 + $0x60] sm:$0xf]  ;;  %v3033_v59 = vrot.slane %v1313_v58, 4 }
  0xc8   : > { %v3223_v33 = vpop.permute.xlu1 %3222  ;;  %v3221_v31 = vpop.permute.xlu0 %3220  ;;  %v9927_v8 = vld [vmem:[#allocation2 + $0x128] sm:$0xff]   ;;  %v1328_v15 = vsel %vm10644_vm13, %v1320_v16, %v1327_v11  ;;  %v11552_v16 = vld [vmem:[%s10276_s5 + $0x178] sm:$0xf]  ;;  %v3710_v13 = vld [vmem:[#allocation2 + $0x13c] sm:$0xf]  ;;  %v755_v58 = vshll.u32 %v11548_v36, 16 }
  0xc9   : > { %3606 = vst.msk [vmem:[#allocation2 + $0x24] sm:$0xf] %vm3596_vm0, %v3223_v33  ;;  %3605 = vst.msk [vmem:[#allocation2 + $0x20] sm:$0xf] %vm3596_vm0, %v3221_v31  ;;  %9553 = vmatmul.mubr.msk.bf16.gmra.mxu1 %vm4377_vm4, %v9927_v8  ;;  %v2709_v33 = vsel %vm10347_vm8, %v2707_v26, %v11418_v49  ;;  %v1299_v8 = vshll.u32 %v11460_v25, 16  ;;  %v731_v49 = vor.u32 %v729_v48, %v11468_v12  ;;  %v733_v26 = vrot.slane %v11468_v12, 4 }
  0xca   : > { %2128 = vrot.lane.b32.xlu1 %v10985_v60, %s10182_s6  ;;  %3386 = vrot.lane.b32.xlu0 %v3021_v45, %s10183_s7  ;;  %v3018_v60 = vsel %vm10347_vm8, %v3016_v30, %v11315_v10  ;;  %v11439_v10 = vrot.slane %v747_v4, 5  ;;  %v2702_v4 = vrot.slane %v2701_v52, 4  ;;  %v1304_v45 = vshrl.u32 %v11456_v54, 16  ;;  %1905 = vst.msk [vmem:[#allocation2 + $0x17c] sm:$0xf] %vm1764_vm3, %v1328_v15 }
  0xcb   : > { %v1296_v30 = vshrl.u32 %v11460_v25, 16  ;;  %v3023_v17 = vrot.slane %v1299_v8, 5  ;;  %v783_v11 = vor.u32 %v781_v5, %v780_v56  ;;  %v1347_v12 = vshrl.u32 %v11552_v16, 16 }
  0xcc   : > { %v3225_v40 = vpop.permute.xlu1 %3224  ;;  %v3227_v6 = vpop.permute.xlu0 %3226  ;;  %v2716_v29 = vor.u32 %v2715_v22, %v11439_v10  ;;  %v2704_v31 = vsel %vm10347_vm8, %v2702_v4, %v11396_v50  ;;  %v3028_v48 = vrot.slane %v1304_v45, 4  ;;  %v2714_v39 = vsel %vm10347_vm8, %v2712_v51, %v11439_v10 }
  0xcd   : > { %3607 = vst.msk [vmem:[#allocation2 + $0x28] sm:$0xf] %vm3596_vm0, %v3225_v40  ;;  %v3609_v7 = vsel %vm11049_vm1, %v3227_v6, %v3608_v1  ;;  %v3022_v52 = vrot.slane %v1296_v30, 4  ;;  %v11528_v1 = vld [vmem:[%s10276_s5 + $0x17c] sm:$0xf]  ;;  %v1316_v6 = vshll.u32 %v11383_v37, 16  ;;  %v740_v4 = vor.u32 %v738_v63, %v11344_v57 }
  0xce   : > { %3610 = vst [vmem:[#allocation2 + $0x2c] sm:$0xf] %v3609_v7  ;;  %3384 = vrot.lane.b32.xlu1 %v3018_v60, %s10183_s7  ;;  %2130 = vrot.lane.b32.xlu0 %v11338_v14, %s10182_s6  ;;  %v2717_v62 = vrot.slane %v2716_v29, 4  ;;  %v11512_v14 = vrot.slane %v1307_v27, 5  ;;  %v11516_v60 = vrot.slane %v769_v35, 7  ;;  %v11533_v22 = vrot.slane %v1325_v43, 5 }
  0xcf   : > { %v3038_v10 = vrot.slane %v1322_v21, 4  ;;  %v732_v7 = vsel %vm10644_vm13, %v724_v41, %v731_v49  ;;  %v1356_v43 = vshrl.u32 %v11528_v1, 16  ;;  %v11561_v29 = vrot.slane %v1304_v45, 7  ;;  %v11584_v41 = vld [vmem:[%s10276_s5 + $0x64] sm:$0xf] }
  0xd0   : > { %v2235_v32 = vpop.permute.xlu1 %2234  ;;  %v2233_v55 = vpop.permute.xlu0 %2232  ;;  %v9928_v28 = vld [vmem:[#allocation2 + $0x20] sm:$0xff]   ;;  %v3029_v18 = vor.u32 %v3028_v48, %v11512_v14  ;;  %v776_v21 = vrot.slane %v11516_v60, 4  ;;  %1801 = vst.msk [vmem:[#allocation2 + $0x64] sm:$0xf] %vm1764_vm3, %v732_v7  ;;  %v1359_v15 = vshll.u32 %v11528_v1, 16  ;;  %v752_v63 = vshrl.u32 %v11548_v36, 16 }
  0xd1   : > { %2546 = vst.msk [vmem:[#allocation2 + $0x134] sm:$0xf] %vm2472_vm15, %v2235_v32  ;;  %2545 = vst.msk [vmem:[#allocation2 + $0x130] sm:$0xf] %vm2472_vm15, %v2233_v55  ;;  %9488 = vmatprep.mubr.msk.bf16.mxu0 %vm4377_vm4, %v9928_v28  ;;  %v3024_v32 = vor.u32 %v3023_v17, %v3022_v52  ;;  %v336_v55 = vld [vmem:[#allocation2 + $0x7c] sm:$0x8]  ;;  %v741_v56 = vsel %vm10644_vm13, %v733_v26, %v740_v4  ;;  %v1309_v52 = vor.u32 %v1307_v27, %v11561_v29 }
  0xd2   : > { %2142 = vrot.lane.b32.xlu1 %v11452_v42, %s10182_s6  ;;  %2132 = vrot.lane.b32.xlu0 %v11306_v34, %s10182_s6  ;;  %v1358_v51 = vrot.slane %v1356_v43, 7  ;;  %v3031_v34 = vrot.slane %v1316_v6, 5  ;;  %v3030_v45 = vrot.slane %v3029_v18, 4  ;;  %v784_v61 = vsel %vm10644_vm13, %v776_v21, %v783_v11  ;;  %1802 = vst.msk [vmem:[#allocation2 + $0x68] sm:$0xf] %vm1764_vm3, %v741_v56 }
  0xd3   : > { %v11588_v49 = vrot.slane %v1347_v12, 7  ;;  %v763_v7 = vshll.u32 %v11584_v41, 16  ;;  %v279_v11 = vld [vmem:[#allocation2 + $0x170] sm:$0x1] }
  0xd4   : > { %v2247_v20 = vpop.permute.xlu1 %2246  ;;  %v2237_v3 = vpop.permute.xlu0 %2236  ;;  %v1361_v17 = vor.u32 %v1359_v15, %v1358_v51 }
  0xd5   : > { %2552 = vst.msk [vmem:[#allocation2 + $0x14c] sm:$0xf] %vm2472_vm15, %v2247_v20  ;;  %2547 = vst.msk [vmem:[#allocation2 + $0x138] sm:$0xf] %vm2472_vm15, %v2237_v3  ;;  %v9929_v50 = vld [vmem:[#allocation2 + $0x28] sm:$0xff]   ;;  %v3025_v20 = vrot.slane %v3024_v32, 4  ;;  %v3034_v3 = vor.u32 %v3033_v59, %v3031_v34 }
  0xd6   : > { %3254 = vrot.lane.b32.xlu1 %v2709_v33, %s10183_s7  ;;  %3252 = vrot.lane.b32.xlu0 %v2704_v31, %s10183_s7  ;;  %v3039_v33 = vor.u32 %v3038_v10, %v11533_v22  ;;  %v337_v31 = vsel %vm10629_vm11, 0, %v336_v55  ;;  %v760_v10 = vshrl.u32 %v11584_v41, 16  ;;  %v1354_v4 = vrot.slane %v11588_v49, 4  ;;  %v11629_v59 = vld [vmem:[%s10276_s5 + $0x78] sm:$0xf] }
  0xd7   : > { %9489 = vmatmul.mubr.msk.bf16.gmra.mxu0 %vm4377_vm4, %v9929_v50  ;;  %338 = vst [vmem:[#allocation2 + $0x7c] sm:$0x8] %v337_v31  ;;  %v1298_v50 = vrot.slane %v1296_v30, 7  ;;  %v11605_v30 = vrot.slane %v752_v63, 4  ;;  %v3027_v18 = vsel %vm10347_vm8, %v3025_v20, %v11512_v14  ;;  %v3035_v21 = vrot.slane %v3034_v3, 4 }
  0xd8   : > { %v3359_v47 = vpop.permute.xlu1 %3358  ;;  %v3357_v40 = vpop.permute.xlu0 %3356  ;;  %1809 = vst.msk [vmem:[#allocation2 + $0x7c] sm:$0xf] %vm1764_vm3, %v784_v61  ;;  %v3040_v27 = vrot.slane %v3039_v33, 4  ;;  %v280_v14 = vsel %vm10262_vm2, 0, %v279_v11  ;;  %v11642_v51 = vrot.slane %v763_v7, 5  ;;  %v1311_v33 = vrot.slane %v11561_v29, 4 }
  0xd9   : > { %3708 = vst.msk [vmem:[#allocation2 + $0x134] sm:$0xf] %vm3596_vm0, %v3359_v47  ;;  %3707 = vst.msk [vmem:[#allocation2 + $0x130] sm:$0xf] %vm3596_vm0, %v3357_v40  ;;  %v11609_v47 = vrot.slane %v755_v58, 5  ;;  %v11656_v56 = vrot.slane %v760_v10, 7 }
  0xda   : > { %3256 = vrot.lane.b32.xlu1 %v2714_v39, %s10183_s7  ;;  %3258 = vrot.lane.b32.xlu0 %v2717_v62, %s10183_s7  ;;  %v11612_v40 = vld [vmem:[%s10276_s5 + $0x7c] sm:$0xf]  ;;  %281 = vst [vmem:[#allocation2 + $0x170] sm:$0x1] %v280_v14  ;;  %v231_v3 = vld [vmem:[#allocation2 + $0x70] sm:$0x1] }
  0xdb   : > { %v812_v26 = vshrl.u32 %v11612_v40, 16  ;;  %v754_v11 = vrot.slane %v752_v63, 7  ;;  %v11705_v63 = vld [vmem:[%s10276_s5 + $0x174] sm:$0xf] }
  0xdc   : > { %v2105_v28 = vpop.permute.xlu1 %2104  ;;  %v3363_v44 = vpop.permute.xlu0 %3362 }
  0xdd   : > { %2481 = vst.msk [vmem:[#allocation2 + $0x30] sm:$0xf] %vm2472_vm15, %v2105_v28  ;;  %v3711_v57 = vsel %vm11049_vm1, %v3363_v44, %v3710_v13  ;;  %v387_v28 = vld [vmem:[#allocation2 + $0x18c] sm:$0x8]  ;;  %v1318_v13 = vor.u32 %v1316_v6, %v11422_v2  ;;  %v1302_v44 = vrot.slane %v1298_v50, 4  ;;  %v803_v2 = vshrl.u32 %v11629_v59, 16 }
  0xde   : > { %3712 = vst [vmem:[#allocation2 + $0x13c] sm:$0xf] %v3711_v57  ;;  %2266 = vrot.lane.b32.xlu1 %v11456_v54, %s10182_s6  ;;  %2264 = vrot.lane.b32.xlu0 %v11460_v25, %s10182_s6  ;;  %v3032_v54 = vsel %vm10347_vm8, %v3030_v45, %v3031_v34  ;;  %v2724_v34 = vrot.slane %v760_v10, 4  ;;  %v388_v57 = vsel %vm10629_vm11, 0, %v387_v28  ;;  %v1362_v45 = vsel %vm10644_vm13, %v1354_v4, %v1361_v17 }
  0xdf   : > { %v1310_v6 = vsel %vm10644_vm13, %v1302_v44, %v1309_v52  ;;  %389 = vst [vmem:[#allocation2 + $0x18c] sm:$0x8] %v388_v57  ;;  %v1319_v29 = vsel %vm10644_vm13, %v1311_v33, %v1318_v13  ;;  %v815_v52 = vshll.u32 %v11612_v40, 16  ;;  %v2729_v17 = vrot.slane %v769_v35, 4  ;;  %v11714_v13 = vld [vmem:[%s10276_s5 + $0x170] sm:$0xf] }
  0xe0   : > { %v3361_v62 = vpop.permute.xlu1 %3360  ;;  %v2107_v48 = vpop.permute.xlu0 %2106  ;;  %v9930_v39 = vld [vmem:[#allocation2 + $0x130] sm:$0xff]   ;;  %1903 = vst.msk [vmem:[#allocation2 + $0x174] sm:$0xf] %vm1764_vm3, %v1310_v6  ;;  %1911 = vst.msk [vmem:[#allocation2 + $0x18c] sm:$0xf] %vm1764_vm3, %v1362_v45  ;;  %v3037_v25 = vsel %vm10347_vm8, %v3035_v21, %v11533_v22  ;;  %v11689_v35 = vrot.slane %v781_v5, 5  ;;  %v757_v14 = vor.u32 %v755_v58, %v754_v11 }
  0xe1   : > { %3709 = vst.msk [vmem:[#allocation2 + $0x138] sm:$0xf] %vm3596_vm0, %v3361_v62  ;;  %9556 = vmatprep.mubr.msk.bf16.mxu1 %vm4377_vm4, %v9930_v39  ;;  %v814_v62 = vrot.slane %v812_v26, 7  ;;  %v1301_v39 = vor.u32 %v1299_v8, %v1298_v50  ;;  %v2720_v50 = vor.u32 %v11609_v47, %v11605_v30  ;;  %v2734_v10 = vrot.slane %v778_v23, 4  ;;  %v1900_v47 = vld [vmem:[#allocation2 + $0x170] sm:$0xf] }
  0xe2   : > { %2482 = vst.msk [vmem:[#allocation2 + $0x34] sm:$0xf] %vm2472_vm15, %v2107_v48  ;;  %2278 = vrot.lane.b32.xlu1 %v11528_v1, %s10182_s6  ;;  %2268 = vrot.lane.b32.xlu0 %v11383_v37, %s10182_s6  ;;  %v772_v37 = vshll.u32 %v11476_v38, 16  ;;  %v11662_v48 = vrot.slane %v803_v2, 7  ;;  %v339_v44 = vld [vmem:[#allocation2 + $0x8c] sm:$0x8] }
  0xe3   : > { %1904 = vst.msk [vmem:[#allocation2 + $0x178] sm:$0xf] %vm1764_vm3, %v1319_v29  ;;  %v817_v5 = vor.u32 %v815_v52, %v814_v62  ;;  %v1901_v4 = vsel %vm10298_vm5, %v1301_v39, %v1900_v47  ;;  %v2735_v33 = vor.u32 %v2734_v10, %v11689_v35  ;;  %v1330_v58 = vshrl.u32 %v11714_v13, 16  ;;  %v10059_v19 = vld [vmem:[#allocation2 + $0x130] sm:$0xff]  }
  0xe4   : > { %v2119_v32 = vpop.permute.xlu1 %2118  ;;  %v2109_v55 = vpop.permute.xlu0 %2108  ;;  %v11681_v8 = vrot.slane %v772_v37, 5  ;;  %v810_v42 = vrot.slane %v11662_v48, 4  ;;  %1902 = vst [vmem:[#allocation2 + $0x170] sm:$0xf] %v1901_v4  ;;  %v774_v57 = vor.u32 %v772_v37, %v11516_v60  ;;  %v1333_v37 = vshll.u32 %v11714_v13, 16 }
  0xe5   : > { %2488 = vst.msk [vmem:[#allocation2 + $0x4c] sm:$0xf] %vm2472_vm15, %v2119_v32  ;;  %2483 = vst.msk [vmem:[#allocation2 + $0x38] sm:$0xf] %vm2472_vm15, %v2109_v55  ;;  %v765_v32 = vor.u32 %v763_v7, %v11656_v56  ;;  %v2721_v55 = vrot.slane %v2720_v50, 4  ;;  %v1341_v7 = vshll.u32 %v11705_v63, 16 }
  0xe6   : > { %3390 = vrot.lane.b32.xlu1 %v3032_v54, %s10183_s7  ;;  %3388 = vrot.lane.b32.xlu0 %v3027_v18, %s10183_s7  ;;  %v2725_v54 = vor.u32 %v2724_v34, %v11642_v51  ;;  %v3614_v18 = vld [vmem:[#allocation2 + $0x3c] sm:$0xf]  ;;  %v2730_v28 = vor.u32 %v2729_v17, %v11681_v8  ;;  %v767_v39 = vrot.slane %v11656_v56, 4  ;;  %v11781_v4 = vrot.slane %v1359_v15, 5 }
  0xe8   : > { %v3231_v31 = vpop.permute.xlu1 %3230  ;;  %v3229_v61 = vpop.permute.xlu0 %3228  ;;  %v9931_v20 = vld [vmem:[#allocation2 + $0x138] sm:$0xff]   ;;  %v2726_v23 = vrot.slane %v2725_v54, 4 }
  0xe9   : > { %3612 = vst.msk [vmem:[#allocation2 + $0x34] sm:$0xf] %vm3596_vm0, %v3231_v31  ;;  %3611 = vst.msk [vmem:[#allocation2 + $0x30] sm:$0xf] %vm3596_vm0, %v3229_v61  ;;  %9557 = vmatmul.mubr.msk.bf16.gmra.mxu1 %vm4377_vm4, %v9931_v20  ;;  %v758_v31 = vrot.slane %v754_v11, 4  ;;  %v340_v61 = vsel %vm10629_vm11, 0, %v339_v44  ;;  %v2723_v20 = vsel %vm10347_vm8, %v2721_v55, %v11642_v51  ;;  %v775_v11 = vsel %vm10644_vm13, %v767_v39, %v774_v57 }
  0xea   : > { %2136 = vrot.lane.b32.xlu1 %v11548_v36, %s10182_s6  ;;  %3394 = vrot.lane.b32.xlu0 %v3040_v27, %s10183_s7  ;;  %v232_v27 = vsel %vm10262_vm2, 0, %v231_v3  ;;  %v818_v36 = vsel %vm10644_vm13, %v810_v42, %v817_v5  ;;  %v2728_v60 = vsel %vm10347_vm8, %v2726_v23, %v11681_v8  ;;  %v2731_v3 = vrot.slane %v2730_v28, 4  ;;  %341 = vst [vmem:[#allocation2 + $0x8c] sm:$0x8] %v340_v61  ;;  %v11748_v8 = vld [vmem:[%s10276_s5 + $0x188] sm:$0xf] }
  0xeb   : > { %233 = vst [vmem:[#allocation2 + $0x70] sm:$0x1] %v232_v27  ;;  %v766_v29 = vsel %vm10644_vm13, %v758_v31, %v765_v32  ;;  %1815 = vst.msk [vmem:[#allocation2 + $0x8c] sm:$0xf] %vm1764_vm3, %v818_v36  ;;  %v1381_v10 = vshrl.u32 %v11748_v8, 16  ;;  %v1332_v42 = vrot.slane %v1330_v58, 7 }
  0xec   : > { %v3233_v22 = vpop.permute.xlu1 %3232  ;;  %v3235_v21 = vpop.permute.xlu0 %3234  ;;  %1807 = vst.msk [vmem:[#allocation2 + $0x74] sm:$0xf] %vm1764_vm3, %v766_v29  ;;  %1808 = vst.msk [vmem:[#allocation2 + $0x78] sm:$0xf] %vm1764_vm3, %v775_v11  ;;  %v2733_v5 = vsel %vm10347_vm8, %v2731_v3, %v11689_v35  ;;  %v1350_v28 = vshll.u32 %v11552_v16, 16  ;;  %v11810_v31 = vrot.slane %v812_v26, 4 }
  0xed   : > { %3613 = vst.msk [vmem:[#allocation2 + $0x38] sm:$0xf] %vm3596_vm0, %v3233_v22  ;;  %v3615_v30 = vsel %vm11049_vm1, %v3235_v21, %v3614_v18  ;;  %v11764_v22 = vrot.slane %v1341_v7, 5  ;;  %v3041_v21 = vrot.slane %v1330_v58, 4  ;;  %v11777_v23 = vrot.slane %v1381_v10, 7 }
  0xee   : > { %3616 = vst [vmem:[#allocation2 + $0x3c] sm:$0xf] %v3615_v30  ;;  %3392 = vrot.lane.b32.xlu1 %v3037_v25, %s10183_s7  ;;  %2138 = vrot.lane.b32.xlu0 %v11584_v41, %s10182_s6  ;;  %v1338_v41 = vshrl.u32 %v11705_v63, 16  ;;  %v2736_v25 = vrot.slane %v2735_v33, 4  ;;  %v3042_v30 = vrot.slane %v1333_v37, 5  ;;  %v1352_v61 = vor.u32 %v1350_v28, %v11588_v49 }
  0xef   : > { %v11785_v44 = vld [vmem:[%s10276_s5 + $0x74] sm:$0xf]  ;;  %v282_v35 = vld [vmem:[#allocation2 + $0x180] sm:$0x1]  ;;  %v11798_v57 = vld [vmem:[%s10276_s5 + $0x70] sm:$0xf] }
  0xf0   : > { %v2243_v34 = vpop.permute.xlu1 %2242  ;;  %v2241_v6 = vpop.permute.xlu0 %2240  ;;  %v9932_v45 = vld [vmem:[#allocation2 + $0x30] sm:$0xff]   ;;  %v11756_v27 = vrot.slane %v1338_v41, 7  ;;  %v3047_v18 = vrot.slane %v1338_v41, 4  ;;  %v1388_v41 = vrot.slane %v11777_v23, 4  ;;  %v786_v3 = vshrl.u32 %v11798_v57, 16 }
  0xf1   : > { %2550 = vst.msk [vmem:[#allocation2 + $0x144] sm:$0xf] %vm2472_vm15, %v2243_v34  ;;  %2549 = vst.msk [vmem:[#allocation2 + $0x140] sm:$0xf] %vm2472_vm15, %v2241_v6  ;;  %9492 = vmatprep.mubr.msk.bf16.mxu0 %vm4377_vm4, %v9932_v45  ;;  %v3052_v6 = vrot.slane %v1347_v12, 4  ;;  %v283_v12 = vsel %vm10262_vm2, 0, %v282_v35 }
  0xf2   : > { %2150 = vrot.lane.b32.xlu1 %v11612_v40, %s10182_s6  ;;  %2140 = vrot.lane.b32.xlu0 %v11476_v38, %s10182_s6  ;;  %v11742_v38 = vld [vmem:[%s10276_s5 + $0x18c] sm:$0xf]  ;;  %v1804_v62 = vld [vmem:[#allocation2 + $0x70] sm:$0xf]  ;;  %v1343_v34 = vor.u32 %v1341_v7, %v11756_v27  ;;  %v3048_v1 = vor.u32 %v3047_v18, %v11764_v22  ;;  %v390_v45 = vld [vmem:[#allocation2 + $0x19c] sm:$0x8] }
  0xf3   : > { %v1805_v50 = vsel %vm10298_vm5, %v757_v14, %v1804_v62  ;;  %v1390_v56 = vshrl.u32 %v11742_v38, 16  ;;  %v11789_v14 = vrot.slane %v1356_v43, 4  ;;  %v1393_v15 = vshll.u32 %v11742_v38, 16  ;;  %284 = vst [vmem:[#allocation2 + $0x180] sm:$0x1] %v283_v12 }
  0xf4   : > { %v2255_v17 = vpop.permute.xlu1 %2254  ;;  %v2245_v54 = vpop.permute.xlu0 %2244  ;;  %1806 = vst [vmem:[#allocation2 + $0x70] sm:$0xf] %v1805_v50  ;;  %v3043_v43 = vor.u32 %v3042_v30, %v3041_v21  ;;  %v1336_v7 = vrot.slane %v1332_v42, 4  ;;  %v794_v29 = vshrl.u32 %v11785_v44, 16  ;;  %v11819_v39 = vld [vmem:[%s10276_s5 + $0x8c] sm:$0xf] }
  0xf5   : > { %2556 = vst.msk [vmem:[#allocation2 + $0x15c] sm:$0xf] %vm2472_vm15, %v2255_v17  ;;  %2551 = vst.msk [vmem:[#allocation2 + $0x148] sm:$0xf] %vm2472_vm15, %v2245_v54  ;;  %v9933_v51 = vld [vmem:[#allocation2 + $0x38] sm:$0xff]   ;;  %v1392_v47 = vrot.slane %v1390_v56, 7 }
  0xf6   : > { %3262 = vrot.lane.b32.xlu1 %v2728_v60, %s10183_s7  ;;  %3260 = vrot.lane.b32.xlu0 %v2723_v20, %s10183_s7  ;;  %v3716_v60 = vld [vmem:[#allocation2 + $0x14c] sm:$0xf]  ;;  %v3050_v20 = vrot.slane %v1350_v28, 5  ;;  %v11822_v26 = vld [vmem:[%s10276_s5 + $0x88] sm:$0xf]  ;;  %v1344_v17 = vsel %vm10644_vm13, %v1336_v7, %v1343_v34  ;;  %v391_v49 = vsel %vm10629_vm11, 0, %v390_v45 }
  0xf7   : > { %9493 = vmatmul.mubr.msk.bf16.gmra.mxu0 %vm4377_vm4, %v9933_v51  ;;  %v1395_v33 = vor.u32 %v1393_v15, %v1392_v47  ;;  %v3049_v54 = vrot.slane %v3048_v1, 4  ;;  %v797_v51 = vshll.u32 %v11785_v44, 16  ;;  %1909 = vst.msk [vmem:[#allocation2 + $0x184] sm:$0xf] %vm1764_vm3, %v1344_v17  ;;  %392 = vst [vmem:[#allocation2 + $0x19c] sm:$0x8] %v391_v49 }
  0xf8   : > { %v3367_v32 = vpop.permute.xlu1 %3366  ;;  %v3365_v55 = vpop.permute.xlu0 %3364  ;;  %v3053_v50 = vor.u32 %v3052_v6, %v3050_v20  ;;  %v11834_v11 = vrot.slane %v794_v29, 7  ;;  %v846_v18 = vshrl.u32 %v11819_v39, 16  ;;  %v234_v30 = vld [vmem:[#allocation2 + $0x80] sm:$0x1]  ;;  %v837_v28 = vshrl.u32 %v11822_v26, 16 }
  0xf9   : > { %3714 = vst.msk [vmem:[#allocation2 + $0x144] sm:$0xf] %vm3596_vm0, %v3367_v32  ;;  %3713 = vst.msk [vmem:[#allocation2 + $0x140] sm:$0xf] %vm3596_vm0, %v3365_v55  ;;  %v1396_v21 = vsel %vm10644_vm13, %v1388_v41, %v1395_v33  ;;  %v788_v35 = vrot.slane %v786_v3, 7  ;;  %v11876_v45 = vrot.slane %v794_v29, 4 }
  0xfa   : > { %3264 = vrot.lane.b32.xlu1 %v2733_v5, %s10183_s7  ;;  %3266 = vrot.lane.b32.xlu0 %v2736_v25, %s10183_s7  ;;  %v3044_v25 = vrot.slane %v3043_v43, 4  ;;  %v1335_v5 = vor.u32 %v1333_v37, %v1332_v42  ;;  %1917 = vst.msk [vmem:[#allocation2 + $0x19c] sm:$0xf] %vm1764_vm3, %v1396_v21  ;;  %v3051_v42 = vsel %vm10347_vm8, %v3049_v54, %v3050_v20  ;;  %v848_v34 = vrot.slane %v846_v18, 7  ;;  %v1906_v33 = vld [vmem:[#allocation2 + $0x180] sm:$0xf] }
  0xfb   : > { %v11863_v6 = vrot.slane %v837_v28, 7  ;;  %v11872_v1 = vrot.slane %v3053_v50, 4  ;;  %v11874_v43 = vrot.slane %v797_v51, 5  ;;  %v799_v12 = vor.u32 %v797_v51, %v11834_v11  ;;  %v11893_v29 = vld [vmem:[%s10276_s5 + $0x180] sm:$0xf] }
  0xfc   : > { %v2113_v36 = vpop.permute.xlu1 %2112  ;;  %v3371_v58 = vpop.permute.xlu0 %3370  ;;  %v792_v49 = vrot.slane %v788_v35, 4  ;;  %v11898_v54 = vrot.slane %v815_v52, 5  ;;  %v2737_v50 = vrot.slane %v786_v3, 4 }
  0xfd   : > { %2485 = vst.msk [vmem:[#allocation2 + $0x40] sm:$0xf] %vm2472_vm15, %v2113_v36  ;;  %v3717_v62 = vsel %vm11049_vm1, %v3371_v58, %v3716_v60  ;;  %v849_v36 = vshll.u32 %v11819_v39, 16  ;;  %v806_v60 = vshll.u32 %v11629_v59, 16  ;;  %v11882_v58 = vld [vmem:[%s10276_s5 + $0x184] sm:$0xf]  ;;  %v3056_v52 = vsel %vm10347_vm8, %v11872_v1, %v11781_v4 }
  0xfe   : > { %3718 = vst [vmem:[#allocation2 + $0x14c] sm:$0xf] %v3717_v62  ;;  %2274 = vrot.lane.b32.xlu1 %v11705_v63, %s10182_s6  ;;  %2272 = vrot.lane.b32.xlu0 %v11714_v13, %s10182_s6  ;;  %v1345_v63 = vrot.slane %v11756_v27, 4  ;;  %v789_v27 = vshll.u32 %v11798_v57, 16  ;;  %v3058_v13 = vor.u32 %v11789_v14, %v11781_v4  ;;  %v235_v14 = vsel %vm10262_vm2, 0, %v234_v30 }
  0xff   : > { %236 = vst [vmem:[#allocation2 + $0x80] sm:$0x1] %v235_v14  ;;  %v851_v62 = vor.u32 %v849_v36, %v848_v34  ;;  %v844_v17 = vrot.slane %v11863_v6, 4  ;;  %v11914_v3 = vrot.slane %v806_v60, 5 }
 0x100   : > { %v3369_v47 = vpop.permute.xlu1 %3368  ;;  %v2115_v32 = vpop.permute.xlu0 %2114  ;;  %v9934_v55 = vld [vmem:[#allocation2 + $0x140] sm:$0xff]   ;;  %v1353_v37 = vsel %vm10644_vm13, %v1345_v63, %v1352_v61  ;;  %v342_v61 = vld [vmem:[#allocation2 + $0x9c] sm:$0x8]  ;;  %v3059_v20 = vrot.slane %v3058_v13, 4  ;;  %v2738_v51 = vrot.slane %v789_v27, 5 }
 0x101   : > { %3715 = vst.msk [vmem:[#allocation2 + $0x148] sm:$0xf] %vm3596_vm0, %v3369_v47  ;;  %9560 = vmatprep.mubr.msk.bf16.mxu1 %vm4377_vm4, %v9934_v55  ;;  %v1372_v47 = vshrl.u32 %v11882_v58, 16  ;;  %v343_v40 = vsel %vm10629_vm11, 0, %v342_v61  ;;  %v2744_v55 = vor.u32 %v11876_v45, %v11874_v43  ;;  %v3620_v45 = vld [vmem:[#allocation2 + $0x4c] sm:$0xf] }
 0x102   : > { %2486 = vst.msk [vmem:[#allocation2 + $0x44] sm:$0xf] %vm2472_vm15, %v2115_v32  ;;  %2286 = vrot.lane.b32.xlu1 %v11742_v38, %s10182_s6  ;;  %2276 = vrot.lane.b32.xlu0 %v11552_v16, %s10182_s6  ;;  %v3046_v16 = vsel %vm10347_vm8, %v3044_v25, %v11764_v22  ;;  %v1907_v22 = vsel %vm10298_vm5, %v1335_v5, %v1906_v33  ;;  %344 = vst [vmem:[#allocation2 + $0x9c] sm:$0x8] %v343_v40 }
 0x103   : > { %1910 = vst.msk [vmem:[#allocation2 + $0x188] sm:$0xf] %vm1764_vm3, %v1353_v37  ;;  %1908 = vst [vmem:[#allocation2 + $0x180] sm:$0xf] %v1907_v22  ;;  %v791_v25 = vor.u32 %v789_v27, %v788_v35  ;;  %v808_v5 = vor.u32 %v806_v60, %v11662_v48  ;;  %v800_v32 = vsel %vm10644_vm13, %v792_v49, %v799_v12  ;;  %v2748_v48 = vrot.slane %v803_v2, 4 }
 0x104   : > { %v2127_v41 = vpop.permute.xlu1 %2126  ;;  %v2117_v7 = vpop.permute.xlu0 %2116  ;;  %v11921_v35 = vld [vmem:[%s10276_s5 + $0x19c] sm:$0xf]  ;;  %v11924_v27 = vld [vmem:[%s10276_s5 + $0x198] sm:$0xf]  ;;  %1813 = vst.msk [vmem:[#allocation2 + $0x84] sm:$0xf] %vm1764_vm3, %v800_v32  ;;  %v852_v37 = vsel %vm10644_vm13, %v844_v17, %v851_v62  ;;  %v2739_v34 = vor.u32 %v2738_v51, %v2737_v50 }
 0x105   : > { %2492 = vst.msk [vmem:[#allocation2 + $0x5c] sm:$0xf] %vm2472_vm15, %v2127_v41  ;;  %2487 = vst.msk [vmem:[#allocation2 + $0x48] sm:$0xf] %vm2472_vm15, %v2117_v7  ;;  %v11932_v4 = vrot.slane %v1372_v47, 7  ;;  %v1364_v2 = vshrl.u32 %v11893_v29, 16  ;;  %v2749_v17 = vor.u32 %v2748_v48, %v11914_v3 }
 0x106   : > { %3398 = vrot.lane.b32.xlu1 %v3051_v42, %s10183_s7  ;;  %3396 = vrot.lane.b32.xlu0 %v3046_v16, %s10183_s7  ;;  %v1810_v13 = vld [vmem:[#allocation2 + $0x80] sm:$0xf]  ;;  %v801_v42 = vrot.slane %v11834_v11, 4  ;;  %v1424_v14 = vshrl.u32 %v11921_v35, 16  ;;  %1821 = vst.msk [vmem:[#allocation2 + $0x9c] sm:$0xf] %vm1764_vm3, %v852_v37 }
 0x107   : > { %v1811_v16 = vsel %vm10298_vm5, %v791_v25, %v1810_v13  ;;  %v1375_v41 = vshll.u32 %v11882_v58, 16  ;;  %v1366_v12 = vrot.slane %v1364_v2, 7  ;;  %v2745_v61 = vrot.slane %v2744_v55, 4  ;;  %v285_v50 = vld [vmem:[#allocation2 + $0x190] sm:$0x1] }
 0x108   : > { %v3239_v21 = vpop.permute.xlu1 %3238  ;;  %v3237_v63 = vpop.permute.xlu0 %3236  ;;  %v9935_v30 = vld [vmem:[#allocation2 + $0x148] sm:$0xff]   ;;  %1812 = vst [vmem:[#allocation2 + $0x80] sm:$0xf] %v1811_v16  ;;  %v809_v11 = vsel %vm10644_vm13, %v801_v42, %v808_v5  ;;  %v1426_v60 = vrot.slane %v1424_v14, 7  ;;  %v2740_v62 = vrot.slane %v2739_v34, 4  ;;  %v1427_v25 = vshll.u32 %v11921_v35, 16 }
 0x109   : > { %3618 = vst.msk [vmem:[#allocation2 + $0x44] sm:$0xf] %vm3596_vm0, %v3239_v21  ;;  %3617 = vst.msk [vmem:[#allocation2 + $0x40] sm:$0xf] %vm3596_vm0, %v3237_v63  ;;  %9561 = vmatmul.mubr.msk.bf16.gmra.mxu1 %vm4377_vm4, %v9935_v30  ;;  %v1377_v49 = vor.u32 %v1375_v41, %v11932_v4  ;;  %v1370_v5 = vrot.slane %v1366_v12, 4  ;;  %v2747_v32 = vsel %vm10347_vm8, %v2745_v61, %v11914_v3  ;;  %v286_v48 = vsel %vm10262_vm2, 0, %v285_v50 }
 0x10a   : > { %2144 = vrot.lane.b32.xlu1 %v11798_v57, %s10182_s6  ;;  %3402 = vrot.lane.b32.xlu0 %v3059_v20, %s10183_s7  ;;  %v1415_v57 = vshrl.u32 %v11924_v27, 16  ;;  %1814 = vst.msk [vmem:[#allocation2 + $0x88] sm:$0xf] %vm1764_vm3, %v809_v11  ;;  %v2754_v20 = vor.u32 %v11810_v31, %v11898_v54  ;;  %v1429_v31 = vor.u32 %v1427_v25, %v1426_v60  ;;  %v2750_v13 = vrot.slane %v2749_v17, 4  ;;  %v11991_v42 = vld [vmem:[%s10276_s5 + $0x84] sm:$0xf] }
 0x10b   : > { %v2742_v55 = vsel %vm10347_vm8, %v2740_v62, %v11874_v43  ;;  %v11985_v37 = vrot.slane %v1375_v41, 5  ;;  %v1378_v3 = vsel %vm10644_vm13, %v1370_v5, %v1377_v49  ;;  %287 = vst [vmem:[#allocation2 + $0x190] sm:$0x1] %v286_v48  ;;  %v393_v34 = vld [vmem:[#allocation2 + $0x1ac] sm:$0x8]  ;;  %v1379_v60 = vrot.slane %v11932_v4, 4 }
 0x10c   : > { %v3241_v1 = vpop.permute.xlu1 %3240  ;;  %v3243_v33 = vpop.permute.xlu0 %3242  ;;  %v11954_v22 = vrot.slane %v1415_v57, 7  ;;  %v2755_v40 = vrot.slane %v2754_v20, 4  ;;  %1915 = vst.msk [vmem:[#allocation2 + $0x194] sm:$0xf] %vm1764_vm3, %v1378_v3  ;;  %v394_v41 = vsel %vm10629_vm11, 0, %v393_v34  ;;  %v2752_v61 = vsel %vm10347_vm8, %v2750_v13, %v11898_v54 }
 0x10d   : > { %3619 = vst.msk [vmem:[#allocation2 + $0x48] sm:$0xf] %vm3596_vm0, %v3241_v1  ;;  %v3621_v7 = vsel %vm11049_vm1, %v3243_v33, %v3620_v45  ;;  %v3066_v45 = vrot.slane %v1372_v47, 4  ;;  %v3060_v33 = vrot.slane %v1364_v2, 4  ;;  %395 = vst [vmem:[#allocation2 + $0x1ac] sm:$0x8] %v394_v41 }
 0x10e   : > { %3622 = vst [vmem:[#allocation2 + $0x4c] sm:$0xf] %v3621_v7  ;;  %3400 = vrot.lane.b32.xlu1 %v3056_v52, %s10183_s7  ;;  %2146 = vrot.lane.b32.xlu0 %v11785_v44, %s10182_s6  ;;  %v1367_v44 = vshll.u32 %v11893_v29, 16  ;;  %v1422_v30 = vrot.slane %v11954_v22, 4  ;;  %v1384_v52 = vshll.u32 %v11748_v8, 16  ;;  %v828_v50 = vshrl.u32 %v11991_v42, 16 }
 0x10f   : > { %v237_v2 = vld [vmem:[#allocation2 + $0x90] sm:$0x1]  ;;  %v12017_v62 = vld [vmem:[%s10276_s5 + $0x98] sm:$0xf] }
 0x110   : > { %v2251_v51 = vpop.permute.xlu1 %2250  ;;  %v2249_v21 = vpop.permute.xlu0 %2248  ;;  %v9936_v63 = vld [vmem:[#allocation2 + $0x40] sm:$0xff]   ;;  %v1386_v43 = vor.u32 %v1384_v52, %v11777_v23  ;;  %v3061_v7 = vrot.slane %v1367_v44, 5  ;;  %v1430_v47 = vsel %vm10644_vm13, %v1422_v30, %v1429_v31  ;;  %v1369_v20 = vor.u32 %v1367_v44, %v1366_v12 }
 0x111   : > { %2554 = vst.msk [vmem:[#allocation2 + $0x154] sm:$0xf] %vm2472_vm15, %v2251_v51  ;;  %2553 = vst.msk [vmem:[#allocation2 + $0x150] sm:$0xf] %vm2472_vm15, %v2249_v21  ;;  %9496 = vmatprep.mubr.msk.bf16.mxu0 %vm4377_vm4, %v9936_v63  ;;  %v12021_v51 = vld [vmem:[%s10276_s5 + $0x9c] sm:$0xf]  ;;  %v3067_v30 = vor.u32 %v3066_v45, %v11985_v37 }
 0x112   : > { %2158 = vrot.lane.b32.xlu1 %v11819_v39, %s10182_s6  ;;  %2148 = vrot.lane.b32.xlu0 %v11629_v59, %s10182_s6  ;;  %v11988_v59 = vld [vmem:[%s10276_s5 + $0x80] sm:$0xf]  ;;  %1923 = vst.msk [vmem:[#allocation2 + $0x1ac] sm:$0xf] %vm1764_vm3, %v1430_v47  ;;  %v1387_v21 = vsel %vm10644_vm13, %v1379_v60, %v1386_v43  ;;  %v238_v4 = vsel %vm10262_vm2, 0, %v237_v2  ;;  %v880_v12 = vshrl.u32 %v12021_v51, 16  ;;  %v3062_v5 = vor.u32 %v3061_v7, %v3060_v33 }
 0x113   : > { %v820_v23 = vshrl.u32 %v11988_v59, 16  ;;  %1916 = vst.msk [vmem:[#allocation2 + $0x198] sm:$0xf] %vm1764_vm3, %v1387_v21  ;;  %239 = vst [vmem:[#allocation2 + $0x90] sm:$0x1] %v238_v4  ;;  %v12037_v63 = vrot.slane %v828_v50, 7 }
 0x114   : > { %v2263_v16 = vpop.permute.xlu1 %2262  ;;  %v2253_v1 = vpop.permute.xlu0 %2252  ;;  %v871_v44 = vshrl.u32 %v12017_v62, 16  ;;  %v1912_v31 = vld [vmem:[#allocation2 + $0x190] sm:$0xf]  ;;  %v823_v3 = vshll.u32 %v11988_v59, 16  ;;  %v882_v34 = vrot.slane %v880_v12, 7  ;;  %v3076_v45 = vrot.slane %v1390_v56, 4 }
 0x115   : > { %2560 = vst.msk [vmem:[#allocation2 + $0x16c] sm:$0xf] %vm2472_vm15, %v2263_v16  ;;  %2555 = vst.msk [vmem:[#allocation2 + $0x158] sm:$0xf] %vm2472_vm15, %v2253_v1  ;;  %v9937_v11 = vld [vmem:[#allocation2 + $0x48] sm:$0xff]   ;;  %v822_v54 = vrot.slane %v820_v23, 7 }
 0x116   : > { %3270 = vrot.lane.b32.xlu1 %v2747_v32, %s10183_s7  ;;  %3268 = vrot.lane.b32.xlu0 %v2742_v55, %s10183_s7  ;;  %v1913_v32 = vsel %vm10298_vm5, %v1369_v20, %v1912_v31  ;;  %v3722_v55 = vld [vmem:[#allocation2 + $0x15c] sm:$0xf]  ;;  %v12049_v16 = vrot.slane %v871_v44, 7  ;;  %v12053_v1 = vrot.slane %v1393_v15, 5  ;;  %v3071_v43 = vrot.slane %v1381_v10, 4 }
 0x117   : > { %9497 = vmatmul.mubr.msk.bf16.gmra.mxu0 %vm4377_vm4, %v9937_v11  ;;  %1914 = vst [vmem:[#allocation2 + $0x190] sm:$0xf] %v1913_v32  ;;  %v3069_v15 = vrot.slane %v1384_v52, 5  ;;  %v825_v38 = vor.u32 %v823_v3, %v822_v54  ;;  %v883_v41 = vshll.u32 %v12021_v51, 16  ;;  %v3068_v11 = vrot.slane %v3067_v30, 4 }
 0x118   : > { %v3375_v17 = vpop.permute.xlu1 %3374  ;;  %v3373_v49 = vpop.permute.xlu0 %3372  ;;  %v3063_v7 = vrot.slane %v3062_v5, 4  ;;  %v840_v10 = vshll.u32 %v11822_v26, 16  ;;  %v826_v47 = vrot.slane %v822_v54, 4  ;;  %v3077_v52 = vor.u32 %v3076_v45, %v12053_v1  ;;  %v12083_v21 = vld [vmem:[%s10276_s5 + $0x194] sm:$0xf] }
 0x119   : > { %3720 = vst.msk [vmem:[#allocation2 + $0x154] sm:$0xf] %vm3596_vm0, %v3375_v17  ;;  %3719 = vst.msk [vmem:[#allocation2 + $0x150] sm:$0xf] %vm3596_vm0, %v3373_v49  ;;  %v3072_v20 = vor.u32 %v3071_v43, %v3069_v15  ;;  %v3070_v31 = vsel %vm10347_vm8, %v3068_v11, %v3069_v15  ;;  %v345_v5 = vld [vmem:[#allocation2 + $0xac] sm:$0x8] }
 0x11a   : > { %3272 = vrot.lane.b32.xlu1 %v2752_v61, %s10183_s7  ;;  %3274 = vrot.lane.b32.xlu0 %v2755_v40, %s10183_s7  ;;  %v831_v40 = vshll.u32 %v11991_v42, 16  ;;  %v878_v61 = vrot.slane %v12049_v16, 4  ;;  %v1816_v17 = vld [vmem:[#allocation2 + $0x90] sm:$0xf]  ;;  %v842_v49 = vor.u32 %v840_v10, %v11863_v6  ;;  %v3065_v30 = vsel %vm10347_vm8, %v3063_v7, %v11985_v37  ;;  %v12115_v43 = vld [vmem:[%s10276_s5 + $0x1ac] sm:$0xf] }
 0x11b   : > { %v1817_v4 = vsel %vm10298_vm5, %v825_v38, %v1816_v17  ;;  %v12098_v6 = vld [vmem:[%s10276_s5 + $0x190] sm:$0xf]  ;;  %v2757_v45 = vrot.slane %v823_v3, 5  ;;  %v288_v15 = vld [vmem:[#allocation2 + $0x1a0] sm:$0x1]  ;;  %v1406_v38 = vshrl.u32 %v12083_v21, 16 }
 0x11c   : > { %v2121_v48 = vpop.permute.xlu1 %2120  ;;  %v3379_v13 = vpop.permute.xlu0 %3378  ;;  %v833_v56 = vor.u32 %v831_v40, %v12037_v63  ;;  %1818 = vst [vmem:[#allocation2 + $0x90] sm:$0xf] %v1817_v4  ;;  %v1409_v17 = vshll.u32 %v12083_v21, 16 }
 0x11d   : > { %2489 = vst.msk [vmem:[#allocation2 + $0x50] sm:$0xf] %vm2472_vm15, %v2121_v48  ;;  %v3723_v33 = vsel %vm11049_vm1, %v3379_v13, %v3722_v55  ;;  %v2762_v55 = vrot.slane %v828_v50, 4  ;;  %v346_v13 = vsel %vm10629_vm11, 0, %v345_v5  ;;  %v3078_v50 = vrot.slane %v3077_v52, 4 }
 0x11e   : > { %3724 = vst [vmem:[#allocation2 + $0x15c] sm:$0xf] %v3723_v33  ;;  %2282 = vrot.lane.b32.xlu1 %v11882_v58, %s10182_s6  ;;  %2280 = vrot.lane.b32.xlu0 %v11893_v29, %s10182_s6  ;;  %v885_v29 = vor.u32 %v883_v41, %v882_v34  ;;  %v834_v54 = vsel %vm10644_vm13, %v826_v47, %v833_v56  ;;  %v2756_v34 = vrot.slane %v820_v23, 4  ;;  %347 = vst [vmem:[#allocation2 + $0xac] sm:$0x8] %v346_v13 }
 0x11f   : > { %1819 = vst.msk [vmem:[#allocation2 + $0x94] sm:$0xf] %vm1764_vm3, %v834_v54  ;;  %v3073_v33 = vrot.slane %v3072_v20, 4  ;;  %v1398_v23 = vshrl.u32 %v12098_v6, 16  ;;  %v12125_v47 = vld [vmem:[%s10276_s5 + $0x1a8] sm:$0xf] }
 0x120   : > { %v3377_v2 = vpop.permute.xlu1 %3376  ;;  %v2123_v60 = vpop.permute.xlu0 %2122  ;;  %v9938_v58 = vld [vmem:[#allocation2 + $0x150] sm:$0xff]   ;;  %v886_v37 = vsel %vm10644_vm13, %v878_v61, %v885_v29  ;;  %v1458_v29 = vshrl.u32 %v12115_v43, 16  ;;  %v1449_v61 = vshrl.u32 %v12125_v47, 16  ;;  %v12142_v52 = vrot.slane %v840_v10, 5 }
 0x121   : > { %3721 = vst.msk [vmem:[#allocation2 + $0x158] sm:$0xf] %vm3596_vm0, %v3377_v2  ;;  %9564 = vmatprep.mubr.msk.bf16.mxu1 %vm4377_vm4, %v9938_v58  ;;  %v289_v2 = vsel %vm10262_vm2, 0, %v288_v15  ;;  %v12135_v58 = vrot.slane %v1406_v38, 7  ;;  %v2758_v20 = vor.u32 %v2757_v45, %v2756_v34  ;;  %v12159_v10 = vrot.slane %v849_v36, 5 }
 0x122   : > { %2490 = vst.msk [vmem:[#allocation2 + $0x54] sm:$0xf] %vm2472_vm15, %v2123_v60  ;;  %2294 = vrot.lane.b32.xlu1 %v11921_v35, %s10182_s6  ;;  %2284 = vrot.lane.b32.xlu0 %v11748_v8, %s10182_s6  ;;  %v12095_v8 = vrot.slane %v831_v40, 5  ;;  %v835_v40 = vrot.slane %v12037_v63, 4  ;;  %v2767_v60 = vrot.slane %v837_v28, 4  ;;  %v1400_v28 = vrot.slane %v1398_v23, 7 }
 0x123   : > { %1827 = vst.msk [vmem:[#allocation2 + $0xac] sm:$0xf] %vm1764_vm3, %v886_v37  ;;  %290 = vst [vmem:[#allocation2 + $0x1a0] sm:$0x1] %v289_v2  ;;  %v1460_v4 = vrot.slane %v1458_v29, 7  ;;  %v2772_v54 = vrot.slane %v846_v18, 4 }
 0x124   : > { %v2135_v32 = vpop.permute.xlu1 %2134  ;;  %v2125_v48 = vpop.permute.xlu0 %2124  ;;  %v843_v63 = vsel %vm10644_vm13, %v835_v40, %v842_v49  ;;  %v2763_v7 = vor.u32 %v2762_v55, %v12095_v8  ;;  %v3075_v49 = vsel %vm10347_vm8, %v3073_v33, %v12053_v1  ;;  %v1461_v55 = vshll.u32 %v12115_v43, 16 }
 0x125   : > { %2496 = vst.msk [vmem:[#allocation2 + $0x6c] sm:$0xf] %vm2472_vm15, %v2135_v32  ;;  %2491 = vst.msk [vmem:[#allocation2 + $0x58] sm:$0xf] %vm2472_vm15, %v2125_v48  ;;  %v1401_v32 = vshll.u32 %v12098_v6, 16  ;;  %v1411_v48 = vor.u32 %v1409_v17, %v12135_v58  ;;  %v2759_v18 = vrot.slane %v2758_v20, 4  ;;  %v2768_v36 = vor.u32 %v2767_v60, %v12142_v52 }
 0x126   : > { %3406 = vrot.lane.b32.xlu1 %v3070_v31, %s10183_s7  ;;  %3404 = vrot.lane.b32.xlu0 %v3065_v30, %s10183_s7  ;;  %1820 = vst.msk [vmem:[#allocation2 + $0x98] sm:$0xf] %vm1764_vm3, %v843_v63  ;;  %v3626_v30 = vld [vmem:[#allocation2 + $0x5c] sm:$0xf]  ;;  %v2764_v39 = vrot.slane %v2763_v7, 4  ;;  %v1463_v37 = vor.u32 %v1461_v55, %v1460_v4  ;;  %v1418_v40 = vshll.u32 %v11924_v27, 16  ;;  %v2773_v15 = vor.u32 %v2772_v54, %v12159_v10 }
 0x127   : > { %v1403_v13 = vor.u32 %v1401_v32, %v1400_v28  ;;  %v1404_v45 = vrot.slane %v1400_v28, 4  ;;  %v2769_v2 = vrot.slane %v2768_v36, 4  ;;  %v12200_v60 = vld [vmem:[%s10276_s5 + $0x94] sm:$0xf]  ;;  %v1413_v20 = vrot.slane %v12135_v58, 4 }
 0x128   : > { %v3247_v3 = vpop.permute.xlu1 %3246  ;;  %v3245_v56 = vpop.permute.xlu0 %3244  ;;  %v9939_v11 = vld [vmem:[#allocation2 + $0x158] sm:$0xff]   ;;  %v2774_v4 = vrot.slane %v2773_v15, 4  ;;  %v12205_v54 = vrot.slane %v1409_v17, 5  ;;  %v3079_v58 = vrot.slane %v1398_v23, 4  ;;  %v862_v36 = vshrl.u32 %v12200_v60, 16 }
 0x129   : > { %3624 = vst.msk [vmem:[#allocation2 + $0x54] sm:$0xf] %vm3596_vm0, %v3247_v3  ;;  %3623 = vst.msk [vmem:[#allocation2 + $0x50] sm:$0xf] %vm3596_vm0, %v3245_v56  ;;  %9565 = vmatmul.mubr.msk.bf16.gmra.mxu1 %vm4377_vm4, %v9939_v11  ;;  %v1412_v3 = vsel %vm10644_vm13, %v1404_v45, %v1411_v48  ;;  %v2766_v11 = vsel %vm10347_vm8, %v2764_v39, %v12142_v52  ;;  %v2771_v23 = vsel %vm10347_vm8, %v2769_v2, %v12159_v10 }
 0x12a   : > { %2152 = vrot.lane.b32.xlu1 %v11988_v59, %s10182_s6  ;;  %3410 = vrot.lane.b32.xlu0 %v3078_v50, %s10183_s7  ;;  %v12155_v59 = vrot.slane %v1449_v61, 7  ;;  %v1918_v56 = vld [vmem:[#allocation2 + $0x1a0] sm:$0xf]  ;;  %1921 = vst.msk [vmem:[#allocation2 + $0x1a4] sm:$0xf] %vm1764_vm3, %v1412_v3  ;;  %v12259_v2 = vrot.slane %v1427_v25, 5 }
 0x12b   : > { %v1919_v7 = vsel %vm10298_vm5, %v1403_v13, %v1918_v56  ;;  %v3088_v25 = vrot.slane %v1418_v40, 5 }
 0x12c   : > { %v3249_v31 = vpop.permute.xlu1 %3248  ;;  %v3251_v5 = vpop.permute.xlu0 %3250  ;;  %v1456_v34 = vrot.slane %v12155_v59, 4  ;;  %1920 = vst [vmem:[#allocation2 + $0x1a0] sm:$0xf] %v1919_v7 }
 0x12d   : > { %3625 = vst.msk [vmem:[#allocation2 + $0x58] sm:$0xf] %vm3596_vm0, %v3249_v31  ;;  %v3627_v1 = vsel %vm11049_vm1, %v3251_v5, %v3626_v30  ;;  %v3085_v30 = vrot.slane %v1406_v38, 4  ;;  %v3080_v5 = vrot.slane %v1401_v32, 5  ;;  %v240_v38 = vld [vmem:[#allocation2 + $0xa0] sm:$0x1] }
 0x12e   : > { %3628 = vst [vmem:[#allocation2 + $0x5c] sm:$0xf] %v3627_v1  ;;  %3408 = vrot.lane.b32.xlu1 %v3075_v49, %s10183_s7  ;;  %2154 = vrot.lane.b32.xlu0 %v11991_v42, %s10182_s6  ;;  %v1420_v42 = vor.u32 %v1418_v40, %v11954_v22  ;;  %v2761_v22 = vsel %vm10347_vm8, %v2759_v18, %v12095_v8  ;;  %v12216_v1 = vld [vmem:[%s10276_s5 + $0x90] sm:$0xf]  ;;  %v12229_v32 = vld [vmem:[%s10276_s5 + $0xa8] sm:$0xf] }
 0x12f   : > { %v1464_v52 = vsel %vm10644_vm13, %v1456_v34, %v1463_v37  ;;  %v854_v18 = vshrl.u32 %v12216_v1, 16  ;;  %v241_v13 = vsel %vm10262_vm2, 0, %v240_v38  ;;  %v12238_v37 = vld [vmem:[%s10276_s5 + $0xac] sm:$0xf]  ;;  %v12244_v34 = vrot.slane %v862_v36, 7 }
 0x130   : > { %v2259_v50 = vpop.permute.xlu1 %2258  ;;  %v2257_v33 = vpop.permute.xlu0 %2256  ;;  %v9940_v63 = vld [vmem:[#allocation2 + $0x50] sm:$0xff]   ;;  %v1421_v17 = vsel %vm10644_vm13, %v1413_v20, %v1420_v42  ;;  %242 = vst [vmem:[#allocation2 + $0xa0] sm:$0x1] %v241_v13  ;;  %v914_v45 = vshrl.u32 %v12238_v37, 16  ;;  %v3728_v42 = vld [vmem:[#allocation2 + $0x16c] sm:$0xf] }
 0x131   : > { %2558 = vst.msk [vmem:[#allocation2 + $0x164] sm:$0xf] %vm2472_vm15, %v2259_v50  ;;  %2557 = vst.msk [vmem:[#allocation2 + $0x160] sm:$0xf] %vm2472_vm15, %v2257_v33  ;;  %9500 = vmatprep.mubr.msk.bf16.mxu0 %vm4377_vm4, %v9940_v63  ;;  %v856_v10 = vrot.slane %v854_v18, 7  ;;  %v905_v50 = vshrl.u32 %v12229_v32, 16  ;;  %v3086_v33 = vor.u32 %v3085_v30, %v12205_v54  ;;  %v3081_v63 = vor.u32 %v3080_v5, %v3079_v58 }
 0x132   : > { %2166 = vrot.lane.b32.xlu1 %v12021_v51, %s10182_s6  ;;  %2156 = vrot.lane.b32.xlu0 %v11822_v26, %s10182_s6  ;;  %v396_v26 = vld [vmem:[#allocation2 + $0x1bc] sm:$0x8]  ;;  %1922 = vst.msk [vmem:[#allocation2 + $0x1a8] sm:$0xf] %vm1764_vm3, %v1421_v17  ;;  %v857_v56 = vshll.u32 %v12216_v1, 16  ;;  %v916_v7 = vrot.slane %v914_v45, 7 }
 0x133   : > { %v397_v31 = vsel %vm10629_vm11, 0, %v396_v26  ;;  %v3095_v26 = vrot.slane %v1424_v14, 4  ;;  %v3090_v20 = vrot.slane %v1415_v57, 4  ;;  %v874_v57 = vshll.u32 %v12017_v62, 16 }
 0x134   : > { %v2271_v28 = vpop.permute.xlu1 %2270  ;;  %v2261_v49 = vpop.permute.xlu0 %2260  ;;  %398 = vst [vmem:[#allocation2 + $0x1bc] sm:$0x8] %v397_v31  ;;  %v859_v35 = vor.u32 %v857_v56, %v856_v10  ;;  %v860_v31 = vrot.slane %v856_v10, 4 }
 0x135   : > { %2564 = vst.msk [vmem:[#allocation2 + $0x17c] sm:$0xf] %vm2472_vm15, %v2271_v28  ;;  %2559 = vst.msk [vmem:[#allocation2 + $0x168] sm:$0xf] %vm2472_vm15, %v2261_v49  ;;  %v9941_v8 = vld [vmem:[#allocation2 + $0x58] sm:$0xff]   ;;  %v917_v28 = vshll.u32 %v12238_v37, 16  ;;  %v3096_v40 = vor.u32 %v3095_v26, %v12259_v2  ;;  %v3091_v5 = vor.u32 %v3090_v20, %v3088_v25  ;;  %v876_v38 = vor.u32 %v874_v57, %v12049_v16 }
 0x136   : > { %3278 = vrot.lane.b32.xlu1 %v2766_v11, %s10183_s7  ;;  %3276 = vrot.lane.b32.xlu0 %v2761_v22, %s10183_s7  ;;  %1929 = vst.msk [vmem:[#allocation2 + $0x1bc] sm:$0xf] %vm1764_vm3, %v1464_v52  ;;  %v865_v11 = vshll.u32 %v12200_v60, 16  ;;  %v12255_v22 = vrot.slane %v905_v50, 7  ;;  %v3087_v49 = vrot.slane %v3086_v33, 4  ;;  %v12318_v26 = vrot.slane %v880_v12, 4 }
 0x137   : > { %9501 = vmatmul.mubr.msk.bf16.gmra.mxu0 %vm4377_vm4, %v9941_v8  ;;  %v1822_v17 = vld [vmem:[#allocation2 + $0xa0] sm:$0xf]  ;;  %v348_v33 = vld [vmem:[#allocation2 + $0xbc] sm:$0x8]  ;;  %v291_v12 = vld [vmem:[#allocation2 + $0x1b0] sm:$0x1] }
 0x138   : > { %v3383_v48 = vpop.permute.xlu1 %3382  ;;  %v3381_v39 = vpop.permute.xlu0 %3380  ;;  %v867_v14 = vor.u32 %v865_v11, %v12244_v34  ;;  %v912_v58 = vrot.slane %v12255_v22, 4  ;;  %v3089_v13 = vsel %vm10347_vm8, %v3087_v49, %v3088_v25  ;;  %v12304_v16 = vld [vmem:[%s10276_s5 + $0x1a0] sm:$0xf]  ;;  %v12327_v20 = vld [vmem:[%s10276_s5 + $0x1bc] sm:$0xf] }
 0x139   : > { %3726 = vst.msk [vmem:[#allocation2 + $0x164] sm:$0xf] %vm3596_vm0, %v3383_v48  ;;  %3725 = vst.msk [vmem:[#allocation2 + $0x160] sm:$0xf] %vm3596_vm0, %v3381_v39  ;;  %v1823_v48 = vsel %vm10298_vm5, %v859_v35, %v1822_v17 }
 0x13a   : > { %3280 = vrot.lane.b32.xlu1 %v2771_v23, %s10183_s7  ;;  %3282 = vrot.lane.b32.xlu0 %v2774_v4, %s10183_s7  ;;  %v3082_v4 = vrot.slane %v3081_v63, 4  ;;  %v12289_v23 = vld [vmem:[%s10276_s5 + $0x1a4] sm:$0xf]  ;;  %v868_v39 = vsel %vm10644_vm13, %v860_v31, %v867_v14  ;;  %1824 = vst [vmem:[#allocation2 + $0xa0] sm:$0xf] %v1823_v48  ;;  %v292_v31 = vsel %vm10262_vm2, 0, %v291_v12 }
 0x13b   : > { %1825 = vst.msk [vmem:[#allocation2 + $0xa4] sm:$0xf] %vm1764_vm3, %v868_v39  ;;  %v1440_v25 = vshrl.u32 %v12289_v23, 16  ;;  %293 = vst [vmem:[#allocation2 + $0x1b0] sm:$0x1] %v292_v31 }
 0x13c   : > { %v2129_v15 = vpop.permute.xlu1 %2128  ;;  %v3387_v3 = vpop.permute.xlu0 %3386  ;;  %v3084_v10 = vsel %vm10347_vm8, %v3082_v4, %v12205_v54  ;;  %v869_v54 = vrot.slane %v12244_v34, 4  ;;  %v3092_v34 = vrot.slane %v3091_v5, 4  ;;  %v12337_v4 = vld [vmem:[%s10276_s5 + $0x1b8] sm:$0xf]  ;;  %v3632_v48 = vld [vmem:[#allocation2 + $0x6c] sm:$0xf] }
 0x13d   : > { %2493 = vst.msk [vmem:[#allocation2 + $0x60] sm:$0xf] %vm2472_vm15, %v2129_v15  ;;  %v3729_v52 = vsel %vm11049_vm1, %v3387_v3, %v3728_v42  ;;  %v2781_v42 = vrot.slane %v862_v36, 4  ;;  %v349_v3 = vsel %vm10629_vm11, 0, %v348_v33  ;;  %v2775_v36 = vrot.slane %v854_v18, 4 }
 0x13e   : > { %3730 = vst [vmem:[#allocation2 + $0x16c] sm:$0xf] %v3729_v52  ;;  %2290 = vrot.lane.b32.xlu1 %v12083_v21, %s10182_s6  ;;  %2288 = vrot.lane.b32.xlu0 %v12098_v6, %s10182_s6  ;;  %v919_v6 = vor.u32 %v917_v28, %v916_v7  ;;  %v3097_v52 = vrot.slane %v3096_v40, 4  ;;  %350 = vst [vmem:[#allocation2 + $0xbc] sm:$0x8] %v349_v3  ;;  %v877_v51 = vsel %vm10644_vm13, %v869_v54, %v876_v38 }
 0x13f   : > { %v1432_v18 = vshrl.u32 %v12304_v16, 16  ;;  %1826 = vst.msk [vmem:[#allocation2 + $0xa8] sm:$0xf] %vm1764_vm3, %v877_v51  ;;  %v3094_v17 = vsel %vm10347_vm8, %v3092_v34, %v12259_v2 }
 0x140   : > { %v3385_v8 = vpop.permute.xlu1 %3384  ;;  %v2131_v30 = vpop.permute.xlu0 %2130  ;;  %v9942_v21 = vld [vmem:[#allocation2 + $0x160] sm:$0xff]   ;;  %v920_v7 = vsel %vm10644_vm13, %v912_v58, %v919_v6  ;;  %v1483_v6 = vshrl.u32 %v12337_v4, 16  ;;  %v2786_v58 = vrot.slane %v871_v44, 4 }
 0x141   : > { %3727 = vst.msk [vmem:[#allocation2 + $0x168] sm:$0xf] %vm3596_vm0, %v3385_v8  ;;  %9568 = vmatprep.mubr.msk.bf16.mxu1 %vm4377_vm4, %v9942_v21  ;;  %v12343_v8 = vrot.slane %v874_v57, 5  ;;  %v1492_v21 = vshrl.u32 %v12327_v20, 16  ;;  %v1443_v57 = vshll.u32 %v12289_v23, 16  ;;  %v1434_v5 = vrot.slane %v1432_v18, 7 }
 0x142   : > { %2494 = vst.msk [vmem:[#allocation2 + $0x64] sm:$0xf] %vm2472_vm15, %v2131_v30  ;;  %2302 = vrot.lane.b32.xlu1 %v12115_v43, %s10182_s6  ;;  %2292 = vrot.lane.b32.xlu0 %v11924_v27, %s10182_s6  ;;  %v12301_v27 = vrot.slane %v865_v11, 5  ;;  %v12314_v11 = vrot.slane %v883_v41, 5  ;;  %v2776_v41 = vrot.slane %v857_v56, 5  ;;  %v12347_v30 = vrot.slane %v1440_v25, 7 }
 0x143   : > { %1833 = vst.msk [vmem:[#allocation2 + $0xbc] sm:$0xf] %vm1764_vm3, %v920_v7  ;;  %v12367_v38 = vrot.slane %v1483_v6, 7 }
 0x144   : > { %v2143_v63 = vpop.permute.xlu1 %2142  ;;  %v2133_v15 = vpop.permute.xlu0 %2132  ;;  %v2782_v56 = vor.u32 %v2781_v42, %v12301_v27  ;;  %v2777_v40 = vor.u32 %v2776_v41, %v2775_v36  ;;  %v1445_v2 = vor.u32 %v1443_v57, %v12347_v30  ;;  %v2787_v42 = vor.u32 %v2786_v58, %v12343_v8 }
 0x145   : > { %2500 = vst.msk [vmem:[#allocation2 + $0x7c] sm:$0xf] %vm2472_vm15, %v2143_v63  ;;  %2495 = vst.msk [vmem:[#allocation2 + $0x68] sm:$0xf] %vm2472_vm15, %v2133_v15  ;;  %v1495_v63 = vshll.u32 %v12327_v20, 16  ;;  %v2792_v3 = vor.u32 %v12318_v26, %v12314_v11  ;;  %v1452_v36 = vshll.u32 %v12125_v47, 16 }
 0x146   : > { %3414 = vrot.lane.b32.xlu1 %v3089_v13, %s10183_s7  ;;  %3412 = vrot.lane.b32.xlu0 %v3084_v10, %s10183_s7  ;;  %v1435_v13 = vshll.u32 %v12304_v16, 16  ;;  %v2783_v33 = vrot.slane %v2782_v56, 4  ;;  %v2778_v15 = vrot.slane %v2777_v40, 4  ;;  %v1438_v41 = vrot.slane %v1434_v5, 4 }
 0x147   : > { %v2788_v31 = vrot.slane %v2787_v42, 4 }
 0x148   : > { %v3255_v35 = vpop.permute.xlu1 %3254  ;;  %v3253_v14 = vpop.permute.xlu0 %3252  ;;  %v9943_v49 = vld [vmem:[#allocation2 + $0x168] sm:$0xff]   ;;  %v1437_v7 = vor.u32 %v1435_v13, %v1434_v5  ;;  %v1446_v26 = vsel %vm10644_vm13, %v1438_v41, %v1445_v2 }
 0x149   : > { %3630 = vst.msk [vmem:[#allocation2 + $0x64] sm:$0xf] %vm3596_vm0, %v3255_v35  ;;  %3629 = vst.msk [vmem:[#allocation2 + $0x60] sm:$0xf] %vm3596_vm0, %v3253_v14  ;;  %9569 = vmatmul.mubr.msk.bf16.gmra.mxu1 %vm4377_vm4, %v9943_v49  ;;  %v1924_v35 = vld [vmem:[#allocation2 + $0x1b0] sm:$0xf]  ;;  %v2785_v49 = vsel %vm10347_vm8, %v2783_v33, %v12343_v8 }
 0x14a   : > { %2160 = vrot.lane.b32.xlu1 %v12216_v1, %s10182_s6  ;;  %3418 = vrot.lane.b32.xlu0 %v3097_v52, %s10183_s7  ;;  %v1494_v1 = vrot.slane %v1492_v21, 7  ;;  %v1490_v52 = vrot.slane %v12367_v38, 4  ;;  %v12394_v14 = vrot.slane %v1458_v29, 4  ;;  %1927 = vst.msk [vmem:[#allocation2 + $0x1b4] sm:$0xf] %vm1764_vm3, %v1446_v26  ;;  %v1925_v56 = vsel %vm10298_vm5, %v1437_v7, %v1924_v35 }
 0x14b   : > { %v2780_v29 = vsel %vm10347_vm8, %v2778_v15, %v12301_v27  ;;  %1926 = vst [vmem:[#allocation2 + $0x1b0] sm:$0xf] %v1925_v56  ;;  %v1447_v8 = vrot.slane %v12347_v30, 4  ;;  %v3098_v30 = vrot.slane %v1432_v18, 4  ;;  %v2790_v18 = vsel %vm10347_vm8, %v2788_v31, %v12314_v11  ;;  %v12453_v11 = vld [vmem:[%s10276_s5 + $0xbc] sm:$0xf] }
 0x14c   : > { %v3257_v44 = vpop.permute.xlu1 %3256  ;;  %v3259_v39 = vpop.permute.xlu0 %3258  ;;  %v1497_v54 = vor.u32 %v1495_v63, %v1494_v1  ;;  %v12416_v1 = vld [vmem:[%s10276_s5 + $0xa4] sm:$0xf]  ;;  %v12444_v33 = vrot.slane %v1461_v55, 5 }
 0x14d   : > { %3631 = vst.msk [vmem:[#allocation2 + $0x68] sm:$0xf] %vm3596_vm0, %v3257_v44  ;;  %v3633_v10 = vsel %vm11049_vm1, %v3259_v39, %v3632_v48  ;;  %v12422_v48 = vrot.slane %v1443_v57, 5  ;;  %v3099_v39 = vrot.slane %v1435_v13, 5  ;;  %v243_v57 = vld [vmem:[#allocation2 + $0xb0] sm:$0x1] }
 0x14e   : > { %3634 = vst [vmem:[#allocation2 + $0x6c] sm:$0xf] %v3633_v10  ;;  %3416 = vrot.lane.b32.xlu1 %v3094_v17, %s10183_s7  ;;  %2162 = vrot.lane.b32.xlu0 %v12200_v60, %s10182_s6  ;;  %v1454_v60 = vor.u32 %v1452_v36, %v12155_v59  ;;  %v2793_v59 = vrot.slane %v2792_v3, 4  ;;  %v1498_v58 = vsel %vm10644_vm13, %v1490_v52, %v1497_v54  ;;  %v3104_v17 = vrot.slane %v1440_v25, 4  ;;  %v12427_v10 = vld [vmem:[%s10276_s5 + $0xa0] sm:$0xf] }
 0x14f   : > { %v12440_v13 = vld [vmem:[%s10276_s5 + $0xb8] sm:$0xf]  ;;  %v888_v42 = vshrl.u32 %v12427_v10, 16  ;;  %v896_v3 = vshrl.u32 %v12416_v1, 16  ;;  %v244_v7 = vsel %vm10262_vm2, 0, %v243_v57  ;;  %v948_v54 = vshrl.u32 %v12453_v11, 16 }
 0x150   : > { %v2267_v34 = vpop.permute.xlu1 %2266  ;;  %v2265_v51 = vpop.permute.xlu0 %2264  ;;  %v9944_v12 = vld [vmem:[#allocation2 + $0x60] sm:$0xff]   ;;  %v1455_v25 = vsel %vm10644_vm13, %v1447_v8, %v1454_v60  ;;  %245 = vst [vmem:[#allocation2 + $0xb0] sm:$0x1] %v244_v7  ;;  %v939_v52 = vshrl.u32 %v12440_v13, 16  ;;  %v3105_v41 = vor.u32 %v3104_v17, %v12422_v48  ;;  %v891_v26 = vshll.u32 %v12427_v10, 16 }
 0x151   : > { %2562 = vst.msk [vmem:[#allocation2 + $0x174] sm:$0xf] %vm2472_vm15, %v2267_v34  ;;  %2561 = vst.msk [vmem:[#allocation2 + $0x170] sm:$0xf] %vm2472_vm15, %v2265_v51  ;;  %9504 = vmatprep.mubr.msk.bf16.mxu0 %vm4377_vm4, %v9944_v12  ;;  %v890_v43 = vrot.slane %v888_v42, 7  ;;  %v12459_v55 = vrot.slane %v896_v3, 7  ;;  %v3100_v34 = vor.u32 %v3099_v39, %v3098_v30  ;;  %v3115_v31 = vor.u32 %v12394_v14, %v12444_v33 }
 0x152   : > { %2174 = vrot.lane.b32.xlu1 %v12238_v37, %s10182_s6  ;;  %2164 = vrot.lane.b32.xlu0 %v12017_v62, %s10182_s6  ;;  %v399_v62 = vld [vmem:[#allocation2 + $0x1cc] sm:$0x8]  ;;  %1928 = vst.msk [vmem:[#allocation2 + $0x1b8] sm:$0xf] %vm1764_vm3, %v1455_v25  ;;  %v3734_v12 = vld [vmem:[#allocation2 + $0x17c] sm:$0xf] }
 0x153   : > { %v400_v44 = vsel %vm10629_vm11, 0, %v399_v62  ;;  %v899_v35 = vshll.u32 %v12416_v1, 16  ;;  %v3107_v62 = vrot.slane %v1452_v36, 5  ;;  %v908_v17 = vshll.u32 %v12229_v32, 16 }
 0x154   : > { %v2279_v40 = vpop.permute.xlu1 %2278  ;;  %v2269_v5 = vpop.permute.xlu0 %2268  ;;  %401 = vst [vmem:[#allocation2 + $0x1cc] sm:$0x8] %v400_v44  ;;  %v894_v14 = vrot.slane %v890_v43, 4  ;;  %v12493_v36 = vrot.slane %v917_v28, 5  ;;  %v12497_v39 = vrot.slane %v914_v45, 4  ;;  %v3116_v28 = vrot.slane %v3115_v31, 4 }
 0x155   : > { %2568 = vst.msk [vmem:[#allocation2 + $0x18c] sm:$0xf] %vm2472_vm15, %v2279_v40  ;;  %2563 = vst.msk [vmem:[#allocation2 + $0x178] sm:$0xf] %vm2472_vm15, %v2269_v5  ;;  %v9945_v27 = vld [vmem:[#allocation2 + $0x68] sm:$0xff]   ;;  %v901_v8 = vor.u32 %v899_v35, %v12459_v55  ;;  %v951_v40 = vshll.u32 %v12453_v11, 16 }
 0x156   : > { %3286 = vrot.lane.b32.xlu1 %v2785_v49, %s10183_s7  ;;  %3284 = vrot.lane.b32.xlu0 %v2780_v29, %s10183_s7  ;;  %1935 = vst.msk [vmem:[#allocation2 + $0x1cc] sm:$0xf] %vm1764_vm3, %v1498_v58  ;;  %v950_v49 = vrot.slane %v948_v54, 7  ;;  %v3109_v29 = vrot.slane %v1449_v61, 4  ;;  %v893_v58 = vor.u32 %v891_v26, %v890_v43  ;;  %v3106_v5 = vrot.slane %v3105_v41, 4 }
 0x157   : > { %9505 = vmatmul.mubr.msk.bf16.gmra.mxu0 %vm4377_vm4, %v9945_v27  ;;  %v3101_v61 = vrot.slane %v3100_v34, 4  ;;  %v1828_v57 = vld [vmem:[#allocation2 + $0xb0] sm:$0xf]  ;;  %v902_v45 = vsel %vm10644_vm13, %v894_v14, %v901_v8  ;;  %v2795_v7 = vrot.slane %v891_v26, 5  ;;  %v12519_v43 = vld [vmem:[%s10276_s5 + $0x1b4] sm:$0xf] }
 0x158   : > { %v3391_v2 = vpop.permute.xlu1 %3390  ;;  %v3389_v15 = vpop.permute.xlu0 %3388  ;;  %v3110_v25 = vor.u32 %v3109_v29, %v3107_v62  ;;  %v1829_v37 = vsel %vm10298_vm5, %v893_v58, %v1828_v57  ;;  %1831 = vst.msk [vmem:[#allocation2 + $0xb4] sm:$0xf] %vm1764_vm3, %v902_v45  ;;  %v12532_v26 = vrot.slane %v899_v35, 5  ;;  %v12541_v29 = vld [vmem:[%s10276_s5 + $0x1cc] sm:$0xf]  ;;  %v1474_v31 = vshrl.u32 %v12519_v43, 16 }
 0x159   : > { %3732 = vst.msk [vmem:[#allocation2 + $0x174] sm:$0xf] %vm3596_vm0, %v3391_v2  ;;  %3731 = vst.msk [vmem:[#allocation2 + $0x170] sm:$0xf] %vm3596_vm0, %v3389_v15  ;;  %v3108_v2 = vsel %vm10347_vm8, %v3106_v5, %v3107_v62  ;;  %v3103_v15 = vsel %vm10347_vm8, %v3101_v61, %v12422_v48  ;;  %v294_v35 = vld [vmem:[#allocation2 + $0x1c0] sm:$0x1] }
 0x15a   : > { %3288 = vrot.lane.b32.xlu1 %v2790_v18, %s10183_s7  ;;  %3290 = vrot.lane.b32.xlu0 %v2793_v59, %s10183_s7  ;;  %v12470_v59 = vrot.slane %v939_v52, 7  ;;  %v910_v18 = vor.u32 %v908_v17, %v12255_v22  ;;  %1830 = vst [vmem:[#allocation2 + $0xb0] sm:$0xf] %v1829_v37  ;;  %v351_v22 = vld [vmem:[#allocation2 + $0xcc] sm:$0x8]  ;;  %v295_v61 = vsel %vm10262_vm2, 0, %v294_v35 }
 0x15b   : > { %v12550_v5 = vld [vmem:[%s10276_s5 + $0x1c8] sm:$0xf]  ;;  %v12560_v14 = vrot.slane %v1474_v31, 7  ;;  %296 = vst [vmem:[#allocation2 + $0x1c0] sm:$0x1] %v295_v61 }
 0x15c   : > { %v2137_v51 = vpop.permute.xlu1 %2136  ;;  %v3395_v60 = vpop.permute.xlu0 %3394 }
 0x15d   : > { %2497 = vst.msk [vmem:[#allocation2 + $0x70] sm:$0xf] %vm2472_vm15, %v2137_v51  ;;  %v3735_v56 = vsel %vm11049_vm1, %v3395_v60, %v3734_v12  ;;  %v12523_v51 = vld [vmem:[%s10276_s5 + $0x1b0] sm:$0xf]  ;;  %v352_v12 = vsel %vm10629_vm11, 0, %v351_v22  ;;  %v3111_v60 = vrot.slane %v3110_v25, 4 }
 0x15e   : > { %3736 = vst [vmem:[#allocation2 + $0x17c] sm:$0xf] %v3735_v56  ;;  %2298 = vrot.lane.b32.xlu1 %v12289_v23, %s10182_s6  ;;  %2296 = vrot.lane.b32.xlu0 %v12304_v16, %s10182_s6  ;;  %v953_v23 = vor.u32 %v951_v40, %v950_v49  ;;  %v946_v16 = vrot.slane %v12470_v59, 4  ;;  %v2800_v49 = vrot.slane %v896_v3, 4  ;;  %v12536_v56 = vrot.slane %v908_v17, 5 }
 0x15f   : > { %353 = vst [vmem:[#allocation2 + $0xcc] sm:$0x8] %v352_v12  ;;  %v1466_v62 = vshrl.u32 %v12523_v51, 16  ;;  %v2805_v17 = vrot.slane %v905_v50, 4  ;;  %v1477_v50 = vshll.u32 %v12519_v43, 16  ;;  %v3113_v25 = vsel %vm10347_vm8, %v3111_v60, %v12444_v33 }
 0x160   : > { %v3393_v44 = vpop.permute.xlu1 %3392  ;;  %v2139_v27 = vpop.permute.xlu0 %2138  ;;  %v9946_v30 = vld [vmem:[#allocation2 + $0x170] sm:$0xff]   ;;  %v954_v48 = vsel %vm10644_vm13, %v946_v16, %v953_v23  ;;  %v1469_v45 = vshll.u32 %v12523_v51, 16 }
 0x161   : > { %3733 = vst.msk [vmem:[#allocation2 + $0x178] sm:$0xf] %vm3596_vm0, %v3393_v44  ;;  %9572 = vmatprep.mubr.msk.bf16.mxu1 %vm4377_vm4, %v9946_v30  ;;  %v1526_v44 = vshrl.u32 %v12541_v29, 16  ;;  %v2801_v30 = vor.u32 %v2800_v49, %v12532_v26  ;;  %v1468_v16 = vrot.slane %v1466_v62, 7  ;;  %v1479_v33 = vor.u32 %v1477_v50, %v12560_v14 }
 0x162   : > { %2498 = vst.msk [vmem:[#allocation2 + $0x74] sm:$0xf] %vm2472_vm15, %v2139_v27  ;;  %2310 = vrot.lane.b32.xlu1 %v12327_v20, %s10182_s6  ;;  %2300 = vrot.lane.b32.xlu0 %v12125_v47, %s10182_s6  ;;  %v12516_v47 = vrot.slane %v888_v42, 4  ;;  %v903_v42 = vrot.slane %v12459_v55, 4  ;;  %v1517_v27 = vshrl.u32 %v12550_v5, 16 }
 0x163   : > { %1839 = vst.msk [vmem:[#allocation2 + $0xcc] sm:$0xf] %vm1764_vm3, %v954_v48  ;;  %v1486_v48 = vshll.u32 %v12337_v4, 16  ;;  %v1472_v60 = vrot.slane %v1468_v16, 4 }
 0x164   : > { %v2151_v41 = vpop.permute.xlu1 %2150  ;;  %v2141_v34 = vpop.permute.xlu0 %2140  ;;  %v911_v55 = vsel %vm10644_vm13, %v903_v42, %v910_v18  ;;  %v2796_v23 = vor.u32 %v2795_v7, %v12516_v47  ;;  %v12580_v57 = vrot.slane %v1517_v27, 7  ;;  %v3638_v18 = vld [vmem:[#allocation2 + $0x7c] sm:$0xf]  ;;  %v1529_v47 = vshll.u32 %v12541_v29, 16 }
 0x165   : > { %2504 = vst.msk [vmem:[#allocation2 + $0x8c] sm:$0xf] %vm2472_vm15, %v2151_v41  ;;  %2499 = vst.msk [vmem:[#allocation2 + $0x78] sm:$0xf] %vm2472_vm15, %v2141_v34  ;;  %v2802_v7 = vrot.slane %v2801_v30, 4  ;;  %v2811_v41 = vor.u32 %v12497_v39, %v12493_v36  ;;  %v1471_v34 = vor.u32 %v1469_v45, %v1468_v16  ;;  %v1488_v39 = vor.u32 %v1486_v48, %v12367_v38 }
 0x166   : > { %3422 = vrot.lane.b32.xlu1 %v3108_v2, %s10183_s7  ;;  %3420 = vrot.lane.b32.xlu0 %v3103_v15, %s10183_s7  ;;  %1832 = vst.msk [vmem:[#allocation2 + $0xb8] sm:$0xf] %vm1764_vm3, %v911_v55  ;;  %v2806_v15 = vor.u32 %v2805_v17, %v12536_v56  ;;  %v2797_v22 = vrot.slane %v2796_v23, 4  ;;  %v1524_v42 = vrot.slane %v12580_v57, 4  ;;  %v12612_v17 = vrot.slane %v1477_v50, 5 }
 0x167   : > { %v2812_v61 = vrot.slane %v2811_v41, 4  ;;  %v12615_v30 = vld [vmem:[%s10276_s5 + $0xb4] sm:$0xf]  ;;  %v402_v23 = vld [vmem:[#allocation2 + $0x1dc] sm:$0x8]  ;;  %v1481_v16 = vrot.slane %v12560_v14, 4 }
 0x168   : > { %v3263_v3 = vpop.permute.xlu1 %3262  ;;  %v3261_v58 = vpop.permute.xlu0 %3260  ;;  %v9947_v8 = vld [vmem:[#allocation2 + $0x178] sm:$0xff]  }
 0x169   : > { %3636 = vst.msk [vmem:[#allocation2 + $0x74] sm:$0xf] %vm3596_vm0, %v3263_v3  ;;  %3635 = vst.msk [vmem:[#allocation2 + $0x70] sm:$0xf] %vm3596_vm0, %v3261_v58  ;;  %9573 = vmatmul.mubr.msk.bf16.gmra.mxu1 %vm4377_vm4, %v9947_v8  ;;  %v1480_v3 = vsel %vm10644_vm13, %v1472_v60, %v1479_v33  ;;  %v1930_v58 = vld [vmem:[#allocation2 + $0x1c0] sm:$0xf]  ;;  %v2804_v8 = vsel %vm10347_vm8, %v2802_v7, %v12536_v56  ;;  %v1489_v14 = vsel %vm10644_vm13, %v1481_v16, %v1488_v39 }
 0x16a   : > { %2168 = vrot.lane.b32.xlu1 %v12427_v10, %s10182_s6  ;;  %3426 = vrot.lane.b32.xlu0 %v3116_v28, %s10183_s7  ;;  %v1528_v10 = vrot.slane %v1526_v44, 7  ;;  %1933 = vst.msk [vmem:[#allocation2 + $0x1c4] sm:$0xf] %vm1764_vm3, %v1480_v3  ;;  %v1931_v38 = vsel %vm10298_vm5, %v1471_v34, %v1930_v58  ;;  %v12626_v56 = vrot.slane %v1474_v31, 4  ;;  %1934 = vst.msk [vmem:[#allocation2 + $0x1c8] sm:$0xf] %vm1764_vm3, %v1489_v14 }
 0x16b   : > { %1932 = vst [vmem:[#allocation2 + $0x1c0] sm:$0xf] %v1931_v38  ;;  %v3118_v33 = vrot.slane %v1469_v45, 5  ;;  %v12666_v60 = vrot.slane %v1495_v63, 5  ;;  %v933_v63 = vshll.u32 %v12615_v30, 16  ;;  %v12687_v39 = vrot.slane %v951_v40, 5 }
 0x16c   : > { %v3265_v28 = vpop.permute.xlu1 %3264  ;;  %v3267_v37 = vpop.permute.xlu0 %3266  ;;  %v1531_v12 = vor.u32 %v1529_v47, %v1528_v10  ;;  %v3124_v20 = vor.u32 %v12626_v56, %v12612_v17  ;;  %v3740_v58 = vld [vmem:[#allocation2 + $0x18c] sm:$0xf]  ;;  %v3128_v56 = vrot.slane %v1483_v6, 4 }
 0x16d   : > { %3637 = vst.msk [vmem:[#allocation2 + $0x78] sm:$0xf] %vm3596_vm0, %v3265_v28  ;;  %v3639_v2 = vsel %vm11049_vm1, %v3267_v37, %v3638_v18  ;;  %v3117_v28 = vrot.slane %v1466_v62, 4  ;;  %v12634_v18 = vld [vmem:[%s10276_s5 + $0xb0] sm:$0xf]  ;;  %v930_v37 = vshrl.u32 %v12615_v30, 16 }
 0x16e   : > { %3640 = vst [vmem:[#allocation2 + $0x7c] sm:$0xf] %v3639_v2  ;;  %3424 = vrot.lane.b32.xlu1 %v3113_v25, %s10183_s7  ;;  %2170 = vrot.lane.b32.xlu0 %v12416_v1, %s10182_s6  ;;  %v2807_v1 = vrot.slane %v2806_v15, 4  ;;  %v1532_v50 = vsel %vm10644_vm13, %v1524_v42, %v1531_v12  ;;  %v12642_v2 = vld [vmem:[%s10276_s5 + $0xc8] sm:$0xf]  ;;  %v922_v7 = vshrl.u32 %v12634_v18, 16 }
 0x16f   : > { %v246_v62 = vld [vmem:[#allocation2 + $0xc0] sm:$0x1]  ;;  %v12657_v34 = vrot.slane %v930_v37, 7  ;;  %v12660_v12 = vld [vmem:[%s10276_s5 + $0xcc] sm:$0xf] }
 0x170   : > { %v2275_v49 = vpop.permute.xlu1 %2274  ;;  %v2273_v55 = vpop.permute.xlu0 %2272  ;;  %v9948_v35 = vld [vmem:[#allocation2 + $0x70] sm:$0xff]   ;;  %v2809_v15 = vsel %vm10347_vm8, %v2807_v1, %v12493_v36  ;;  %v247_v42 = vsel %vm10262_vm2, 0, %v246_v62  ;;  %v3133_v36 = vrot.slane %v1492_v21, 4  ;;  %v982_v45 = vshrl.u32 %v12660_v12, 16 }
 0x171   : > { %2566 = vst.msk [vmem:[#allocation2 + $0x184] sm:$0xf] %vm2472_vm15, %v2275_v49  ;;  %2565 = vst.msk [vmem:[#allocation2 + $0x180] sm:$0xf] %vm2472_vm15, %v2273_v55  ;;  %9508 = vmatprep.mubr.msk.bf16.mxu0 %vm4377_vm4, %v9948_v35  ;;  %v973_v49 = vshrl.u32 %v12642_v2, 16  ;;  %v924_v55 = vrot.slane %v922_v7, 7  ;;  %v3119_v21 = vor.u32 %v3118_v33, %v3117_v28  ;;  %v935_v38 = vor.u32 %v933_v63, %v12657_v34 }
 0x172   : > { %2182 = vrot.lane.b32.xlu1 %v12453_v11, %s10182_s6  ;;  %2172 = vrot.lane.b32.xlu0 %v12229_v32, %s10182_s6  ;;  %v2799_v32 = vsel %vm10347_vm8, %v2797_v22, %v12532_v26  ;;  %v403_v26 = vsel %vm10629_vm11, 0, %v402_v23  ;;  %248 = vst [vmem:[#allocation2 + $0xc0] sm:$0x1] %v247_v42  ;;  %v984_v35 = vrot.slane %v982_v45, 7  ;;  %v3134_v23 = vor.u32 %v3133_v36, %v12666_v60  ;;  %v12729_v42 = vld [vmem:[%s10276_s5 + $0x1c0] sm:$0xf] }
 0x173   : > { %404 = vst [vmem:[#allocation2 + $0x1dc] sm:$0x8] %v403_v26  ;;  %v12683_v1 = vrot.slane %v973_v49, 7  ;;  %v985_v40 = vshll.u32 %v12660_v12, 16  ;;  %v3125_v28 = vrot.slane %v3124_v20, 4  ;;  %v3120_v6 = vrot.slane %v3119_v21, 4 }
 0x174   : > { %v2287_v25 = vpop.permute.xlu1 %2286  ;;  %v2277_v10 = vpop.permute.xlu0 %2276  ;;  %1941 = vst.msk [vmem:[#allocation2 + $0x1dc] sm:$0xf] %vm1764_vm3, %v1532_v50  ;;  %v3126_v50 = vrot.slane %v1486_v48, 5  ;;  %v12717_v33 = vrot.slane %v922_v7, 4  ;;  %v3135_v11 = vrot.slane %v3134_v23, 4  ;;  %v937_v36 = vrot.slane %v12657_v34, 4 }
 0x175   : > { %2572 = vst.msk [vmem:[#allocation2 + $0x19c] sm:$0xf] %vm2472_vm15, %v2287_v25  ;;  %2567 = vst.msk [vmem:[#allocation2 + $0x188] sm:$0xf] %vm2472_vm15, %v2277_v10  ;;  %v9949_v31 = vld [vmem:[#allocation2 + $0x78] sm:$0xff]   ;;  %v942_v25 = vshll.u32 %v12440_v13, 16  ;;  %v987_v26 = vor.u32 %v985_v40, %v984_v35  ;;  %v3122_v20 = vsel %vm10347_vm8, %v3120_v6, %v12612_v17 }
 0x176   : > { %3294 = vrot.lane.b32.xlu1 %v2804_v8, %s10183_s7  ;;  %3292 = vrot.lane.b32.xlu0 %v2799_v32, %s10183_s7  ;;  %v928_v10 = vrot.slane %v924_v55, 4  ;;  %v12745_v34 = vrot.slane %v933_v63, 5  ;;  %v1500_v63 = vshrl.u32 %v12729_v42, 16 }
 0x177   : > { %9509 = vmatmul.mubr.msk.bf16.gmra.mxu0 %vm4377_vm4, %v9949_v31  ;;  %v980_v31 = vrot.slane %v12683_v1, 4  ;;  %v944_v48 = vor.u32 %v942_v25, %v12470_v59  ;;  %v2819_v59 = vrot.slane %v930_v37, 4  ;;  %v354_v37 = vld [vmem:[#allocation2 + $0xdc] sm:$0x8] }
 0x178   : > { %v3399_v22 = vpop.permute.xlu1 %3398  ;;  %v3397_v41 = vpop.permute.xlu0 %3396  ;;  %v1502_v6 = vrot.slane %v1500_v63, 7 }
 0x179   : > { %3738 = vst.msk [vmem:[#allocation2 + $0x184] sm:$0xf] %vm3596_vm0, %v3399_v22  ;;  %3737 = vst.msk [vmem:[#allocation2 + $0x180] sm:$0xf] %vm3596_vm0, %v3397_v41  ;;  %v1834_v41 = vld [vmem:[#allocation2 + $0xc0] sm:$0xf]  ;;  %v988_v21 = vsel %vm10644_vm13, %v980_v31, %v987_v26 }
 0x17a   : > { %3296 = vrot.lane.b32.xlu1 %v2809_v15, %s10183_s7  ;;  %3298 = vrot.lane.b32.xlu0 %v2812_v61, %s10183_s7  ;;  %v925_v61 = vshll.u32 %v12634_v18, 16  ;;  %v936_v15 = vsel %vm10644_vm13, %v928_v10, %v935_v38  ;;  %v2824_v38 = vrot.slane %v939_v52, 4 }
 0x17b   : > { %1837 = vst.msk [vmem:[#allocation2 + $0xc4] sm:$0xf] %vm1764_vm3, %v936_v15 }
 0x17c   : > { %v2145_v3 = vpop.permute.xlu1 %2144  ;;  %v3403_v8 = vpop.permute.xlu0 %3402  ;;  %v927_v16 = vor.u32 %v925_v61, %v924_v55  ;;  %v12719_v22 = vrot.slane %v925_v61, 5  ;;  %v3127_v55 = vsel %vm10347_vm8, %v3125_v28, %v3126_v50  ;;  %v12753_v61 = vrot.slane %v942_v25, 5 }
 0x17d   : > { %2501 = vst.msk [vmem:[#allocation2 + $0x80] sm:$0xf] %vm2472_vm15, %v2145_v3  ;;  %v3741_v32 = vsel %vm11049_vm1, %v3403_v8, %v3740_v58  ;;  %v355_v58 = vsel %vm10629_vm11, 0, %v354_v37  ;;  %v945_v8 = vsel %vm10644_vm13, %v937_v36, %v944_v48  ;;  %v2820_v28 = vor.u32 %v2819_v59, %v12745_v34 }
 0x17e   : > { %3742 = vst [vmem:[#allocation2 + $0x18c] sm:$0xf] %v3741_v32  ;;  %2306 = vrot.lane.b32.xlu1 %v12519_v43, %s10182_s6  ;;  %2304 = vrot.lane.b32.xlu0 %v12523_v51, %s10182_s6  ;;  %v12710_v43 = vrot.slane %v948_v54, 4  ;;  %v3129_v54 = vor.u32 %v3128_v56, %v3126_v50  ;;  %v1835_v7 = vsel %vm10298_vm5, %v927_v16, %v1834_v41  ;;  %356 = vst [vmem:[#allocation2 + $0xdc] sm:$0x8] %v355_v58 }
 0x17f   : > { %1836 = vst [vmem:[#allocation2 + $0xc0] sm:$0xf] %v1835_v7  ;;  %1838 = vst.msk [vmem:[#allocation2 + $0xc8] sm:$0xf] %vm1764_vm3, %v945_v8  ;;  %v12762_v32 = vld [vmem:[%s10276_s5 + $0x1dc] sm:$0xf]  ;;  %v2815_v26 = vor.u32 %v12719_v22, %v12717_v33 }
 0x180   : > { %v3401_v14 = vpop.permute.xlu1 %3400  ;;  %v2147_v51 = vpop.permute.xlu0 %2146  ;;  %v9950_v62 = vld [vmem:[#allocation2 + $0x180] sm:$0xff]   ;;  %v3130_v17 = vrot.slane %v3129_v54, 4  ;;  %1845 = vst.msk [vmem:[#allocation2 + $0xdc] sm:$0xf] %vm1764_vm3, %v988_v21  ;;  %v297_v56 = vld [vmem:[#allocation2 + $0x1d0] sm:$0x1]  ;;  %v2830_v48 = vor.u32 %v12710_v43, %v12687_v39 }
 0x181   : > { %3739 = vst.msk [vmem:[#allocation2 + $0x188] sm:$0xf] %vm3596_vm0, %v3401_v14  ;;  %9576 = vmatprep.mubr.msk.bf16.mxu1 %vm4377_vm4, %v9950_v62  ;;  %v12767_v50 = vld [vmem:[%s10276_s5 + $0x1d8] sm:$0xf]  ;;  %v298_v52 = vsel %vm10262_vm2, 0, %v297_v56  ;;  %v1560_v14 = vshrl.u32 %v12762_v32, 16  ;;  %v2825_v62 = vor.u32 %v2824_v38, %v12753_v61 }
 0x182   : > { %2502 = vst.msk [vmem:[#allocation2 + $0x84] sm:$0xf] %vm2472_vm15, %v2147_v51  ;;  %2318 = vrot.lane.b32.xlu1 %v12541_v29, %s10182_s6  ;;  %2308 = vrot.lane.b32.xlu0 %v12337_v4, %s10182_s6  ;;  %v12741_v4 = vld [vmem:[%s10276_s5 + $0x1c4] sm:$0xf]  ;;  %299 = vst [vmem:[#allocation2 + $0x1d0] sm:$0x1] %v298_v52  ;;  %v3132_v22 = vsel %vm10347_vm8, %v3130_v17, %v12666_v60 }
 0x183   : > { %v1508_v23 = vshrl.u32 %v12741_v4, 16  ;;  %v1551_v51 = vshrl.u32 %v12767_v50, 16  ;;  %v1511_v15 = vshll.u32 %v12741_v4, 16  ;;  %v1503_v33 = vshll.u32 %v12729_v42, 16  ;;  %v3644_v41 = vld [vmem:[#allocation2 + $0x8c] sm:$0xf] }
 0x184   : > { %v2159_v35 = vpop.permute.xlu1 %2158  ;;  %v2149_v3 = vpop.permute.xlu0 %2148  ;;  %v12802_v43 = vrot.slane %v1529_v47, 5  ;;  %v2821_v7 = vrot.slane %v2820_v28, 4  ;;  %v1563_v37 = vshll.u32 %v12762_v32, 16  ;;  %v12812_v47 = vrot.slane %v2825_v62, 4  ;;  %v12822_v8 = vld [vmem:[%s10276_s5 + $0xc0] sm:$0xf] }
 0x185   : > { %2508 = vst.msk [vmem:[#allocation2 + $0x9c] sm:$0xf] %vm2472_vm15, %v2159_v35  ;;  %2503 = vst.msk [vmem:[#allocation2 + $0x88] sm:$0xf] %vm2472_vm15, %v2149_v3  ;;  %v12778_v31 = vrot.slane %v1508_v23, 7  ;;  %v1505_v36 = vor.u32 %v1503_v33, %v1502_v6  ;;  %v12814_v21 = vrot.slane %v2830_v48, 4 }
 0x186   : > { %3430 = vrot.lane.b32.xlu1 %v3127_v55, %s10183_s7  ;;  %3428 = vrot.lane.b32.xlu0 %v3122_v20, %s10183_s7  ;;  %v2816_v55 = vrot.slane %v2815_v26, 4  ;;  %v12816_v35 = vrot.slane %v1511_v15, 5  ;;  %v1520_v3 = vshll.u32 %v12550_v5, 16  ;;  %v1506_v38 = vrot.slane %v1502_v6, 4  ;;  %v12852_v48 = vld [vmem:[%s10276_s5 + $0xc4] sm:$0xf] }
 0x187   : > { %v1513_v20 = vor.u32 %v1511_v15, %v12778_v31  ;;  %v12833_v26 = vrot.slane %v1508_v23, 4  ;;  %v12837_v6 = vrot.slane %v1500_v63, 4  ;;  %v12839_v62 = vrot.slane %v1503_v33, 5  ;;  %v405_v33 = vld [vmem:[#allocation2 + $0x1ec] sm:$0x8] }
 0x188   : > { %v3271_v16 = vpop.permute.xlu1 %3270  ;;  %v3269_v25 = vpop.permute.xlu0 %3268  ;;  %v9951_v10 = vld [vmem:[#allocation2 + $0x188] sm:$0xff]   ;;  %v1515_v63 = vrot.slane %v12778_v31, 4  ;;  %v2823_v15 = vsel %vm10347_vm8, %v2821_v7, %v12753_v61  ;;  %v406_v31 = vsel %vm10629_vm11, 0, %v405_v33  ;;  %v964_v7 = vshrl.u32 %v12852_v48, 16 }
 0x189   : > { %3642 = vst.msk [vmem:[#allocation2 + $0x84] sm:$0xf] %vm3596_vm0, %v3271_v16  ;;  %3641 = vst.msk [vmem:[#allocation2 + $0x80] sm:$0xf] %vm3596_vm0, %v3269_v25  ;;  %9577 = vmatmul.mubr.msk.bf16.gmra.mxu1 %vm4377_vm4, %v9951_v10  ;;  %v1936_v56 = vld [vmem:[#allocation2 + $0x1d0] sm:$0xf]  ;;  %v1522_v25 = vor.u32 %v1520_v3, %v12580_v57  ;;  %v1514_v57 = vsel %vm10644_vm13, %v1506_v38, %v1513_v20 }
 0x18a   : > { %2176 = vrot.lane.b32.xlu1 %v12634_v18, %s10182_s6  ;;  %3434 = vrot.lane.b32.xlu0 %v3135_v11, %s10183_s7  ;;  %v1562_v18 = vrot.slane %v1560_v14, 7  ;;  %v12798_v11 = vrot.slane %v1551_v51, 7  ;;  %v956_v10 = vshrl.u32 %v12822_v8, 16  ;;  %v1937_v28 = vsel %vm10298_vm5, %v1505_v36, %v1936_v56  ;;  %1939 = vst.msk [vmem:[#allocation2 + $0x1d4] sm:$0xf] %vm1764_vm3, %v1514_v57 }
 0x18b   : > { %1938 = vst [vmem:[#allocation2 + $0x1d0] sm:$0xf] %v1937_v28  ;;  %v12875_v36 = vld [vmem:[%s10276_s5 + $0xd8] sm:$0xf]  ;;  %407 = vst [vmem:[#allocation2 + $0x1ec] sm:$0x8] %v406_v31  ;;  %v3143_v56 = vor.u32 %v12833_v26, %v12816_v35 }
 0x18c   : > { %v3273_v54 = vpop.permute.xlu1 %3272  ;;  %v3275_v59 = vpop.permute.xlu0 %3274  ;;  %v1565_v58 = vor.u32 %v1563_v37, %v1562_v18  ;;  %v1558_v17 = vrot.slane %v12798_v11, 4  ;;  %v12849_v23 = vrot.slane %v956_v10, 7  ;;  %v249_v18 = vld [vmem:[#allocation2 + $0xd0] sm:$0x1]  ;;  %v959_v20 = vshll.u32 %v12822_v8, 16 }
 0x18d   : > { %3643 = vst.msk [vmem:[#allocation2 + $0x88] sm:$0xf] %vm3596_vm0, %v3273_v54  ;;  %v3645_v60 = vsel %vm11049_vm1, %v3275_v59, %v3644_v41  ;;  %v1523_v59 = vsel %vm10644_vm13, %v1515_v63, %v1522_v25  ;;  %v250_v61 = vsel %vm10262_vm2, 0, %v249_v18  ;;  %v12898_v29 = vrot.slane %v964_v7, 7  ;;  %v3746_v63 = vld [vmem:[#allocation2 + $0x19c] sm:$0xf] }
 0x18e   : > { %3646 = vst [vmem:[#allocation2 + $0x8c] sm:$0xf] %v3645_v60  ;;  %3432 = vrot.lane.b32.xlu1 %v3132_v22, %s10183_s7  ;;  %2178 = vrot.lane.b32.xlu0 %v12615_v30, %s10182_s6  ;;  %v1566_v22 = vsel %vm10644_vm13, %v1558_v17, %v1565_v58  ;;  %1940 = vst.msk [vmem:[#allocation2 + $0x1d8] sm:$0xf] %vm1764_vm3, %v1523_v59  ;;  %v12883_v60 = vrot.slane %v1526_v44, 4  ;;  %v967_v25 = vshll.u32 %v12852_v48, 16 }
 0x18f   : > { %251 = vst [vmem:[#allocation2 + $0xd0] sm:$0x1] %v250_v61  ;;  %1947 = vst.msk [vmem:[#allocation2 + $0x1ec] sm:$0xf] %vm1764_vm3, %v1566_v22  ;;  %v12892_v58 = vld [vmem:[%s10276_s5 + $0xdc] sm:$0xf] }
 0x190   : > { %v2283_v52 = vpop.permute.xlu1 %2282  ;;  %v2281_v30 = vpop.permute.xlu0 %2280  ;;  %v9952_v16 = vld [vmem:[#allocation2 + $0x80] sm:$0xff]   ;;  %v1016_v44 = vshrl.u32 %v12892_v58, 16  ;;  %v3153_v33 = vor.u32 %v12883_v60, %v12802_v43  ;;  %v969_v22 = vor.u32 %v967_v25, %v12898_v29  ;;  %v962_v60 = vrot.slane %v12849_v23, 4 }
 0x191   : > { %2570 = vst.msk [vmem:[#allocation2 + $0x194] sm:$0xf] %vm2472_vm15, %v2283_v52  ;;  %2569 = vst.msk [vmem:[#allocation2 + $0x190] sm:$0xf] %vm2472_vm15, %v2281_v30  ;;  %9512 = vmatprep.mubr.msk.bf16.mxu0 %vm4377_vm4, %v9952_v16  ;;  %v1007_v52 = vshrl.u32 %v12875_v36, 16 }
 0x192   : > { %2190 = vrot.lane.b32.xlu1 %v12660_v12, %s10182_s6  ;;  %2180 = vrot.lane.b32.xlu0 %v12440_v13, %s10182_s6  ;;  %v2818_v13 = vsel %vm10347_vm8, %v2816_v55, %v12745_v34  ;;  %v2828_v55 = vsel %vm10347_vm8, %v12812_v47, %v12687_v39  ;;  %v3138_v39 = vor.u32 %v12839_v62, %v12837_v6  ;;  %v9970_v30 = vld [vmem:[%s14824_s1] sm:$0x3f]   ;;  %v9971_v16 = vld [vmem:[%s14824_s1 + $0x10] sm:$0x3f]   ;;  %v1018_v28 = vrot.slane %v1016_v44, 7 }
 0x193   : > { %v961_v47 = vor.u32 %v959_v20, %v12849_v23  ;;  %v12923_v26 = vrot.slane %v1007_v52, 7  ;;  %v12927_v6 = vrot.slane %v1520_v3, 5  ;;  %v3147_v62 = vrot.slane %v1517_v27, 4  ;;  %9876 = vmatprep.subr.msk.bf16.mxu1 %vm4570_vm14, %v9970_v30  ;;  %9877 = vmatprep.subr.msk.bf16.mxu0 %vm4570_vm14, %v9971_v16  ;;  %v12963_v23 = vld [vmem:[%s10276_s5 + $0x1d0] sm:$0xf] }
 0x194   : > { %v2295_v54 = vpop.permute.xlu1 %2294  ;;  %v2285_v41 = vpop.permute.xlu0 %2284  ;;  %v1019_v3 = vshll.u32 %v12892_v58, 16 }
 0x195   : > { %2576 = vst.msk [vmem:[#allocation2 + $0x1ac] sm:$0xf] %vm2472_vm15, %v2295_v54  ;;  %2571 = vst.msk [vmem:[#allocation2 + $0x198] sm:$0xf] %vm2472_vm15, %v2285_v41  ;;  %v9953_v34 = vld [vmem:[#allocation2 + $0x88] sm:$0xff]   ;;  %v3139_v54 = vrot.slane %v3138_v39, 4 }
 0x196   : > { %3302 = vrot.lane.b32.xlu1 %v2823_v15, %s10183_s7  ;;  %3300 = vrot.lane.b32.xlu0 %v2818_v13, %s10183_s7  ;;  %v3144_v13 = vrot.slane %v3143_v56, 4  ;;  %v1840_v18 = vld [vmem:[#allocation2 + $0xd0] sm:$0xf]  ;;  %v976_v41 = vshll.u32 %v12642_v2, 16  ;;  %v1021_v59 = vor.u32 %v1019_v3, %v1018_v28  ;;  %v1014_v61 = vrot.slane %v12923_v26, 4 }
 0x197   : > { %9513 = vmatmul.mubr.msk.bf16.gmra.mxu0 %vm4377_vm4, %v9953_v34  ;;  %v1841_v31 = vsel %vm10298_vm5, %v961_v47, %v1840_v18  ;;  %v6834_v34 = vsel %vm4570_vm14, %v9971_v16, 0  ;;  %v3154_v47 = vrot.slane %v3153_v33, 4  ;;  %v971_v28 = vrot.slane %v12898_v29, 4  ;;  %v300_v33 = vld [vmem:[#allocation2 + $0x1e0] sm:$0x1] }
 0x198   : > { %v3407_v17 = vpop.permute.xlu1 %3406  ;;  %v3405_v38 = vpop.permute.xlu0 %3404  ;;  %1842 = vst [vmem:[#allocation2 + $0xd0] sm:$0xf] %v1841_v31  ;;  %9743 = vmatpush3.bf16.msra.mxu0 %v6834_v34  ;;  %v978_v56 = vor.u32 %v976_v41, %v12683_v1  ;;  %v3146_v39 = vsel %vm10347_vm8, %v3144_v13, %v12927_v6  ;;  %v3141_v1 = vsel %vm10347_vm8, %v3139_v54, %v12816_v35  ;;  %v2838_v29 = vrot.slane %v964_v7, 4  ;;  %v13006_v13 = vld [vmem:[%s10276_s5 + $0x1ec] sm:$0xf] }
 0x199   : > { %3744 = vst.msk [vmem:[#allocation2 + $0x194] sm:$0xf] %vm3596_vm0, %v3407_v17  ;;  %3743 = vst.msk [vmem:[#allocation2 + $0x190] sm:$0xf] %vm3596_vm0, %v3405_v38  ;;  %v1022_v16 = vsel %vm10644_vm13, %v1014_v61, %v1021_v59  ;;  %v13001_v7 = vrot.slane %v976_v41, 5  ;;  %v301_v31 = vsel %vm10262_vm2, 0, %v300_v33 }
 0x19a   : > { %3304 = vrot.lane.b32.xlu1 %v2828_v55, %s10183_s7  ;;  %3306 = vrot.lane.b32.xlu0 %v12814_v21, %s10183_s7  ;;  %v5637_v21 = vsel %vm4570_vm14, %v9970_v30, 0  ;;  %v3148_v55 = vor.u32 %v3147_v62, %v12927_v6  ;;  %v357_v30 = vld [vmem:[#allocation2 + $0xec] sm:$0x8]  ;;  %v12979_v6 = vrot.slane %v956_v10, 4  ;;  %v1534_v10 = vshrl.u32 %v12963_v23, 16 }
 0x19b   : > { %9613 = vmatpush3.bf16.msra.mxu1 %v5637_v21  ;;  %v358_v35 = vsel %vm10629_vm11, 0, %v357_v30  ;;  %v13013_v54 = vld [vmem:[%s10276_s5 + $0x1e8] sm:$0xf]  ;;  %302 = vst [vmem:[#allocation2 + $0x1e0] sm:$0x1] %v301_v31 }
 0x19c   : > { %v2153_v57 = vpop.permute.xlu1 %2152  ;;  %v3411_v15 = vpop.permute.xlu0 %3410  ;;  %v3149_v62 = vrot.slane %v3148_v55, 4  ;;  %359 = vst [vmem:[#allocation2 + $0xec] sm:$0x8] %v358_v35  ;;  %v1536_v18 = vrot.slane %v1534_v10, 7  ;;  %v13066_v31 = vld [vmem:[%s10276_s5 + $0xd0] sm:$0xf] }
 0x19d   : > { %2505 = vst.msk [vmem:[#allocation2 + $0x90] sm:$0xf] %vm2472_vm15, %v2153_v57  ;;  %v3747_v27 = vsel %vm11049_vm1, %v3411_v15, %v3746_v63  ;;  %v12985_v63 = vrot.slane %v967_v25, 5  ;;  %v12990_v15 = vld [vmem:[%s10276_s5 + $0x1d4] sm:$0xf]  ;;  %v2843_v25 = vrot.slane %v973_v49, 4 }
 0x19e   : > { %3748 = vst [vmem:[#allocation2 + $0x19c] sm:$0xf] %v3747_v27  ;;  %2314 = vrot.lane.b32.xlu1 %v12741_v4, %s10182_s6  ;;  %2312 = vrot.lane.b32.xlu0 %v12729_v42, %s10182_s6  ;;  %v970_v42 = vsel %vm10644_vm13, %v962_v60, %v969_v22  ;;  %1851 = vst.msk [vmem:[#allocation2 + $0xec] sm:$0xf] %vm1764_vm3, %v1022_v16  ;;  %v1542_v22 = vshrl.u32 %v12990_v15, 16  ;;  %v1594_v27 = vshrl.u32 %v13006_v13, 16 }
 0x19f   : > { %1843 = vst.msk [vmem:[#allocation2 + $0xd4] sm:$0xf] %vm1764_vm3, %v970_v42  ;;  %v1585_v49 = vshrl.u32 %v13013_v54, 16  ;;  %v1537_v60 = vshll.u32 %v12963_v23, 16  ;;  %v1597_v16 = vshll.u32 %v13006_v13, 16 }
 0x1a0   : > { %v3409_v17 = vpop.permute.xlu1 %3408  ;;  %v2155_v38 = vpop.permute.xlu0 %2154  ;;  %v9954_v4 = vld [vmem:[#allocation2 + $0x190] sm:$0xff]   ;;  %v13022_v34 = vrot.slane %v1542_v22, 7  ;;  %v1596_v55 = vrot.slane %v1594_v27, 7 }
 0x1a1   : > { %3745 = vst.msk [vmem:[#allocation2 + $0x198] sm:$0xf] %vm3596_vm0, %v3409_v17  ;;  %9580 = vmatprep.mubr.msk.bf16.mxu1 %vm4377_vm4, %v9954_v4  ;;  %v13032_v17 = vrot.slane %v1585_v49, 7  ;;  %v2839_v4 = vor.u32 %v2838_v29, %v12985_v63  ;;  %v1539_v30 = vor.u32 %v1537_v60, %v1536_v18  ;;  %v1540_v29 = vrot.slane %v1536_v18, 4  ;;  %v13073_v18 = vld [vmem:[%s10276_s5 + $0xd4] sm:$0xf] }
 0x1a2   : > { %2506 = vst.msk [vmem:[#allocation2 + $0x94] sm:$0xf] %vm2472_vm15, %v2155_v38  ;;  %2326 = vrot.lane.b32.xlu1 %v12762_v32, %s10182_s6  ;;  %2316 = vrot.lane.b32.xlu0 %v12550_v5, %s10182_s6  ;;  %v2833_v5 = vrot.slane %v959_v20, 5  ;;  %v979_v20 = vsel %vm10644_vm13, %v971_v28, %v978_v56  ;;  %v3151_v38 = vsel %vm10347_vm8, %v3149_v62, %v12802_v43  ;;  %v1545_v56 = vshll.u32 %v12990_v15, 16  ;;  %v1942_v12 = vld [vmem:[#allocation2 + $0x1e0] sm:$0xf] }
 0x1a3   : > { %1844 = vst.msk [vmem:[#allocation2 + $0xd8] sm:$0xf] %vm1764_vm3, %v979_v20  ;;  %v13047_v28 = vrot.slane %v985_v40, 5  ;;  %v1599_v40 = vor.u32 %v1597_v16, %v1596_v55  ;;  %v1554_v62 = vshll.u32 %v12767_v50, 16  ;;  %v1592_v35 = vrot.slane %v13032_v17, 4 }
 0x1a4   : > { %v2167_v21 = vpop.permute.xlu1 %2166  ;;  %v2157_v57 = vpop.permute.xlu0 %2156  ;;  %v408_v55 = vld [vmem:[#allocation2 + $0x1fc] sm:$0x8] }
 0x1a5   : > { %2512 = vst.msk [vmem:[#allocation2 + $0xac] sm:$0xf] %vm2472_vm15, %v2167_v21  ;;  %2507 = vst.msk [vmem:[#allocation2 + $0x98] sm:$0xf] %vm2472_vm15, %v2157_v57  ;;  %v2840_v21 = vrot.slane %v2839_v4, 4  ;;  %v1549_v4 = vrot.slane %v13022_v34, 4 }
 0x1a6   : > { %3438 = vrot.lane.b32.xlu1 %v3146_v39, %s10183_s7  ;;  %3436 = vrot.lane.b32.xlu0 %v3141_v1, %s10183_s7  ;;  %v3650_v39 = vld [vmem:[#allocation2 + $0x9c] sm:$0xf]  ;;  %v3164_v32 = vrot.slane %v1554_v62, 5 }
 0x1a8   : > { %v3279_v41 = vpop.permute.xlu1 %3278  ;;  %v3277_v59 = vpop.permute.xlu0 %3276  ;;  %v9955_v61 = vld [vmem:[#allocation2 + $0x198] sm:$0xff]  }
 0x1a9   : > { %3648 = vst.msk [vmem:[#allocation2 + $0x94] sm:$0xf] %vm3596_vm0, %v3279_v41  ;;  %3647 = vst.msk [vmem:[#allocation2 + $0x90] sm:$0xf] %vm3596_vm0, %v3277_v59  ;;  %9581 = vmatmul.mubr.msk.bf16.gmra.mxu1 %vm4377_vm4, %v9955_v61  ;;  %v1943_v41 = vsel %vm10298_vm5, %v1539_v30, %v1942_v12  ;;  %v13082_v61 = vrot.slane %v1545_v56, 5  ;;  %v3161_v30 = vrot.slane %v1542_v22, 4 }
 0x1aa   : > { %2184 = vrot.lane.b32.xlu1 %v12822_v8, %s10182_s6  ;;  %3442 = vrot.lane.b32.xlu0 %v3154_v47, %s10183_s7  ;;  %v2834_v8 = vor.u32 %v2833_v5, %v12979_v6  ;;  %v2844_v47 = vor.u32 %v2843_v25, %v13001_v7  ;;  %v1547_v6 = vor.u32 %v1545_v56, %v13022_v34  ;;  %v2848_v5 = vrot.slane %v982_v45, 4 }
 0x1ab   : > { %1944 = vst [vmem:[#allocation2 + $0x1e0] sm:$0xf] %v1943_v41  ;;  %v990_v56 = vshrl.u32 %v13066_v31, 16 }
 0x1ac   : > { %v3281_v42 = vpop.permute.xlu1 %3280  ;;  %v3283_v1 = vpop.permute.xlu0 %3282  ;;  %v2835_v57 = vrot.slane %v2834_v8, 4  ;;  %v2845_v33 = vrot.slane %v2844_v47, 4  ;;  %v1548_v59 = vsel %vm10644_vm13, %v1540_v29, %v1547_v6  ;;  %v2842_v8 = vsel %vm10347_vm8, %v2840_v21, %v13001_v7  ;;  %v13126_v29 = vld [vmem:[%s10276_s5 + $0xec] sm:$0xf] }
 0x1ad   : > { %3649 = vst.msk [vmem:[#allocation2 + $0x98] sm:$0xf] %vm3596_vm0, %v3281_v42  ;;  %v3651_v43 = vsel %vm11049_vm1, %v3283_v1, %v3650_v39  ;;  %v13097_v42 = vld [vmem:[%s10276_s5 + $0xe8] sm:$0xf]  ;;  %v409_v39 = vsel %vm10629_vm11, 0, %v408_v55  ;;  %v992_v6 = vrot.slane %v990_v56, 7 }
 0x1ae   : > { %3652 = vst [vmem:[#allocation2 + $0x9c] sm:$0xf] %v3651_v43  ;;  %3440 = vrot.lane.b32.xlu1 %v3151_v38, %s10183_s7  ;;  %2186 = vrot.lane.b32.xlu0 %v12852_v48, %s10182_s6  ;;  %v1556_v48 = vor.u32 %v1554_v62, %v12798_v11  ;;  %v2849_v11 = vor.u32 %v2848_v5, %v13047_v28  ;;  %1945 = vst.msk [vmem:[#allocation2 + $0x1e4] sm:$0xf] %vm1764_vm3, %v1548_v59  ;;  %v252_v1 = vld [vmem:[#allocation2 + $0xe0] sm:$0x1] }
 0x1af   : > { %v1600_v38 = vsel %vm10644_vm13, %v1592_v35, %v1599_v40  ;;  %410 = vst [vmem:[#allocation2 + $0x1fc] sm:$0x8] %v409_v39  ;;  %v998_v5 = vshrl.u32 %v13073_v18, 16  ;;  %v2847_v40 = vsel %vm10347_vm8, %v2845_v33, %v13047_v28  ;;  %v3155_v35 = vrot.slane %v1534_v10, 4 }
 0x1b0   : > { %v2291_v45 = vpop.permute.xlu1 %2290  ;;  %v2289_v20 = vpop.permute.xlu0 %2288  ;;  %v9956_v25 = vld [vmem:[#allocation2 + $0x90] sm:$0xff]   ;;  %v1557_v7 = vsel %vm10644_vm13, %v1549_v4, %v1556_v48  ;;  %1953 = vst.msk [vmem:[#allocation2 + $0x1fc] sm:$0xf] %vm1764_vm3, %v1600_v38  ;;  %v2850_v22 = vrot.slane %v2849_v11, 4  ;;  %v3156_v21 = vrot.slane %v1537_v60, 5  ;;  %v1041_v28 = vshrl.u32 %v13097_v42, 16 }
 0x1b1   : > { %2574 = vst.msk [vmem:[#allocation2 + $0x1a4] sm:$0xf] %vm2472_vm15, %v2291_v45  ;;  %2573 = vst.msk [vmem:[#allocation2 + $0x1a0] sm:$0xf] %vm2472_vm15, %v2289_v20  ;;  %9516 = vmatprep.mubr.msk.bf16.mxu0 %vm4377_vm4, %v9956_v25  ;;  %v13130_v20 = vrot.slane %v998_v5, 7  ;;  %v1050_v25 = vshrl.u32 %v13126_v29, 16  ;;  %v3162_v10 = vor.u32 %v3161_v30, %v13082_v61 }
 0x1b2   : > { %2198 = vrot.lane.b32.xlu1 %v12892_v58, %s10182_s6  ;;  %2188 = vrot.lane.b32.xlu0 %v12642_v2, %s10182_s6  ;;  %v2837_v2 = vsel %vm10347_vm8, %v2835_v57, %v12985_v63  ;;  %v253_v63 = vsel %vm10262_vm2, 0, %v252_v1  ;;  %1946 = vst.msk [vmem:[#allocation2 + $0x1e8] sm:$0xf] %vm1764_vm3, %v1557_v7  ;;  %v993_v57 = vshll.u32 %v13066_v31, 16  ;;  %v1001_v33 = vshll.u32 %v13073_v18, 16 }
 0x1b3   : > { %254 = vst [vmem:[#allocation2 + $0xe0] sm:$0x1] %v253_v63  ;;  %v1052_v48 = vrot.slane %v1050_v25, 7  ;;  %v13146_v41 = vrot.slane %v1041_v28, 7  ;;  %v13150_v59 = vrot.slane %v1563_v37, 5  ;;  %v3171_v11 = vrot.slane %v1560_v14, 4 }
 0x1b4   : > { %v2303_v47 = vpop.permute.xlu1 %2302  ;;  %v2293_v34 = vpop.permute.xlu0 %2292  ;;  %v995_v60 = vor.u32 %v993_v57, %v992_v6  ;;  %v3157_v55 = vor.u32 %v3156_v21, %v3155_v35  ;;  %v3752_v4 = vld [vmem:[#allocation2 + $0x1ac] sm:$0xf]  ;;  %v1003_v39 = vor.u32 %v1001_v33, %v13130_v20  ;;  %v1053_v1 = vshll.u32 %v13126_v29, 16 }
 0x1b5   : > { %2580 = vst.msk [vmem:[#allocation2 + $0x1bc] sm:$0xf] %vm2472_vm15, %v2303_v47  ;;  %2575 = vst.msk [vmem:[#allocation2 + $0x1a8] sm:$0xf] %vm2472_vm15, %v2293_v34  ;;  %v9957_v43 = vld [vmem:[#allocation2 + $0x98] sm:$0xff]   ;;  %v3163_v14 = vrot.slane %v3162_v10, 4 }
 0x1b6   : > { %3310 = vrot.lane.b32.xlu1 %v2842_v8, %s10183_s7  ;;  %3308 = vrot.lane.b32.xlu0 %v2837_v2, %s10183_s7  ;;  %v3166_v2 = vrot.slane %v1551_v51, 4  ;;  %v1055_v51 = vor.u32 %v1053_v1, %v1052_v48  ;;  %v1010_v30 = vshll.u32 %v12875_v36, 16  ;;  %v1048_v7 = vrot.slane %v13146_v41, 4 }
 0x1b7   : > { %9517 = vmatmul.mubr.msk.bf16.gmra.mxu0 %vm4377_vm4, %v9957_v43  ;;  %v996_v62 = vrot.slane %v992_v6, 4  ;;  %v3158_v63 = vrot.slane %v3157_v55, 4  ;;  %v3172_v43 = vor.u32 %v3171_v11, %v13150_v59  ;;  %v360_v6 = vld [vmem:[#allocation2 + $0xfc] sm:$0x8]  ;;  %v1005_v10 = vrot.slane %v13130_v20, 4 }
 0x1b8   : > { %v3415_v12 = vpop.permute.xlu1 %3414  ;;  %v3413_v45 = vpop.permute.xlu0 %3412  ;;  %v1012_v21 = vor.u32 %v1010_v30, %v12923_v26  ;;  %v3165_v26 = vsel %vm10347_vm8, %v3163_v14, %v3164_v32  ;;  %v13198_v48 = vrot.slane %v990_v56, 4  ;;  %v361_v11 = vsel %vm10629_vm11, 0, %v360_v6 }
 0x1b9   : > { %3750 = vst.msk [vmem:[#allocation2 + $0x1a4] sm:$0xf] %vm3596_vm0, %v3415_v12  ;;  %3749 = vst.msk [vmem:[#allocation2 + $0x1a0] sm:$0xf] %vm3596_vm0, %v3413_v45  ;;  %v13180_v12 = vld [vmem:[%s10276_s5 + $0x1e0] sm:$0xf]  ;;  %v1056_v45 = vsel %vm10644_vm13, %v1048_v7, %v1055_v51 }
 0x1ba   : > { %3312 = vrot.lane.b32.xlu1 %v2847_v40, %s10183_s7  ;;  %3314 = vrot.lane.b32.xlu0 %v2850_v22, %s10183_s7  ;;  %v1846_v47 = vld [vmem:[#allocation2 + $0xe0] sm:$0xf]  ;;  %v2852_v20 = vrot.slane %v993_v57, 5  ;;  %362 = vst [vmem:[#allocation2 + $0xfc] sm:$0x8] %v361_v11  ;;  %v13216_v56 = vrot.slane %v1001_v33, 5 }
 0x1bb   : > { %v1847_v34 = vsel %vm10298_vm5, %v995_v60, %v1846_v47  ;;  %v3160_v60 = vsel %vm10347_vm8, %v3158_v63, %v13082_v61  ;;  %v1013_v61 = vsel %vm10644_vm13, %v1005_v10, %v1012_v21  ;;  %1857 = vst.msk [vmem:[#allocation2 + $0xfc] sm:$0xf] %vm1764_vm3, %v1056_v45  ;;  %v2857_v57 = vrot.slane %v998_v5, 4  ;;  %v303_v47 = vld [vmem:[#allocation2 + $0x1f0] sm:$0x1] }
 0x1bc   : > { %v2161_v38 = vpop.permute.xlu1 %2160  ;;  %v3419_v8 = vpop.permute.xlu0 %3418  ;;  %1848 = vst [vmem:[#allocation2 + $0xe0] sm:$0xf] %v1847_v34  ;;  %1850 = vst.msk [vmem:[#allocation2 + $0xe8] sm:$0xf] %vm1764_vm3, %v1013_v61  ;;  %v13228_v34 = vld [vmem:[%s10276_s5 + $0x1f8] sm:$0xf]  ;;  %v2853_v21 = vor.u32 %v2852_v20, %v13198_v48 }
 0x1bd   : > { %2509 = vst.msk [vmem:[#allocation2 + $0xa0] sm:$0xf] %vm2472_vm15, %v2161_v38  ;;  %v3753_v37 = vsel %vm11049_vm1, %v3419_v8, %v3752_v4  ;;  %v13205_v8 = vld [vmem:[%s10276_s5 + $0x1e4] sm:$0xf]  ;;  %v304_v51 = vsel %vm10262_vm2, 0, %v303_v47  ;;  %v1619_v5 = vshrl.u32 %v13228_v34, 16 }
 0x1be   : > { %3754 = vst [vmem:[#allocation2 + $0x1ac] sm:$0xf] %v3753_v37  ;;  %2322 = vrot.lane.b32.xlu1 %v12990_v15, %s10182_s6  ;;  %2320 = vrot.lane.b32.xlu0 %v12963_v23, %s10182_s6  ;;  %v3167_v15 = vor.u32 %v3166_v2, %v3164_v32  ;;  %v1004_v23 = vsel %vm10644_vm13, %v996_v62, %v1003_v39  ;;  %v1568_v2 = vshrl.u32 %v13180_v12, 16  ;;  %v13221_v39 = vld [vmem:[%s10276_s5 + $0x1fc] sm:$0xf]  ;;  %v1576_v37 = vshrl.u32 %v13205_v8, 16 }
 0x1bf   : > { %1849 = vst.msk [vmem:[#allocation2 + $0xe4] sm:$0xf] %vm1764_vm3, %v1004_v23  ;;  %v1628_v14 = vshrl.u32 %v13221_v39, 16  ;;  %305 = vst [vmem:[#allocation2 + $0x1f0] sm:$0x1] %v304_v51  ;;  %v13235_v63 = vrot.slane %v1010_v30, 5 }
 0x1c0   : > { %v3417_v22 = vpop.permute.xlu1 %3416  ;;  %v2163_v40 = vpop.permute.xlu0 %2162  ;;  %v9958_v35 = vld [vmem:[#allocation2 + $0x1a0] sm:$0xff]   ;;  %v3168_v4 = vrot.slane %v3167_v15, 4  ;;  %v1570_v32 = vrot.slane %v1568_v2, 7  ;;  %v13251_v30 = vrot.slane %v1619_v5, 7  ;;  %v2858_v15 = vor.u32 %v2857_v57, %v13216_v56  ;;  %v3656_v45 = vld [vmem:[#allocation2 + $0xac] sm:$0xf] }
 0x1c1   : > { %3751 = vst.msk [vmem:[#allocation2 + $0x1a8] sm:$0xf] %vm3596_vm0, %v3417_v22  ;;  %9584 = vmatprep.mubr.msk.bf16.mxu1 %vm4377_vm4, %v9958_v35  ;;  %v2862_v22 = vrot.slane %v1007_v52, 4  ;;  %v1630_v35 = vrot.slane %v1628_v14, 7  ;;  %v1579_v52 = vshll.u32 %v13205_v8, 16  ;;  %v13262_v23 = vrot.slane %v1019_v3, 5 }
 0x1c2   : > { %2510 = vst.msk [vmem:[#allocation2 + $0xa4] sm:$0xf] %vm2472_vm15, %v2163_v40  ;;  %2334 = vrot.lane.b32.xlu1 %v13006_v13, %s10182_s6  ;;  %2324 = vrot.lane.b32.xlu0 %v12767_v50, %s10182_s6  ;;  %v3173_v50 = vrot.slane %v3172_v43, 4  ;;  %v13239_v43 = vrot.slane %v1576_v37, 7  ;;  %v1571_v40 = vshll.u32 %v13180_v12, 16  ;;  %v1626_v11 = vrot.slane %v13251_v30, 4 }
 0x1c3   : > { %v2863_v58 = vor.u32 %v2862_v22, %v13235_v63  ;;  %v1574_v20 = vrot.slane %v1570_v32, 4  ;;  %v411_v22 = vld [vmem:[#allocation2 + $0x20c] sm:$0x8] }
 0x1c4   : > { %v2175_v55 = vpop.permute.xlu1 %2174  ;;  %v2165_v38 = vpop.permute.xlu0 %2164  ;;  %v1581_v3 = vor.u32 %v1579_v52, %v13239_v43 }
 0x1c5   : > { %2516 = vst.msk [vmem:[#allocation2 + $0xbc] sm:$0xf] %vm2472_vm15, %v2175_v55  ;;  %2511 = vst.msk [vmem:[#allocation2 + $0xa8] sm:$0xf] %vm2472_vm15, %v2165_v38  ;;  %v2859_v55 = vrot.slane %v2858_v15, 4  ;;  %v2854_v38 = vrot.slane %v2853_v21, 4 }
 0x1c6   : > { %3446 = vrot.lane.b32.xlu1 %v3165_v26, %s10183_s7  ;;  %3444 = vrot.lane.b32.xlu0 %v3160_v60, %s10183_s7  ;;  %v2867_v26 = vrot.slane %v1016_v44, 4  ;;  %v1573_v60 = vor.u32 %v1571_v40, %v1570_v32  ;;  %v13295_v32 = vld [vmem:[%s10276_s5 + $0xe4] sm:$0xf] }
 0x1c7   : > { %v2861_v15 = vsel %vm10347_vm8, %v2859_v55, %v13235_v63  ;;  %v2856_v21 = vsel %vm10347_vm8, %v2854_v38, %v13216_v56  ;;  %v3180_v55 = vrot.slane %v1576_v37, 4  ;;  %v3174_v38 = vrot.slane %v1568_v2, 4 }
 0x1c8   : > { %v3287_v33 = vpop.permute.xlu1 %3286  ;;  %v3285_v7 = vpop.permute.xlu0 %3284  ;;  %v9959_v62 = vld [vmem:[#allocation2 + $0x1a8] sm:$0xff]   ;;  %v2868_v51 = vor.u32 %v2867_v26, %v13262_v23  ;;  %v13316_v26 = vld [vmem:[%s10276_s5 + $0xf8] sm:$0xf] }
 0x1c9   : > { %3654 = vst.msk [vmem:[#allocation2 + $0xa4] sm:$0xf] %vm3596_vm0, %v3287_v33  ;;  %3653 = vst.msk [vmem:[#allocation2 + $0xa0] sm:$0xf] %vm3596_vm0, %v3285_v7  ;;  %9585 = vmatmul.mubr.msk.bf16.gmra.mxu1 %vm4377_vm4, %v9959_v62  ;;  %v13288_v33 = vld [vmem:[%s10276_s5 + $0xe0] sm:$0xf]  ;;  %v1582_v62 = vsel %vm10644_vm13, %v1574_v20, %v1581_v3 }
 0x1ca   : > { %2192 = vrot.lane.b32.xlu1 %v13066_v31, %s10182_s6  ;;  %3450 = vrot.lane.b32.xlu0 %v3173_v50, %s10183_s7  ;;  %v3170_v31 = vsel %vm10347_vm8, %v3168_v4, %v13150_v59  ;;  %v1631_v59 = vshll.u32 %v13221_v39, 16  ;;  %v1588_v50 = vshll.u32 %v13013_v54, 16  ;;  %v1948_v4 = vld [vmem:[#allocation2 + $0x1f0] sm:$0xf]  ;;  %1951 = vst.msk [vmem:[#allocation2 + $0x1f4] sm:$0xf] %vm1764_vm3, %v1582_v62 }
 0x1cb   : > { %v1949_v7 = vsel %vm10298_vm5, %v1573_v60, %v1948_v4  ;;  %v2869_v60 = vrot.slane %v2868_v51, 4  ;;  %v3175_v20 = vrot.slane %v1571_v40, 5  ;;  %v1027_v4 = vshll.u32 %v13288_v33, 16 }
 0x1cc   : > { %v3289_v6 = vpop.permute.xlu1 %3288  ;;  %v3291_v10 = vpop.permute.xlu0 %3290  ;;  %v1633_v44 = vor.u32 %v1631_v59, %v1630_v35  ;;  %1950 = vst [vmem:[#allocation2 + $0x1f0] sm:$0xf] %v1949_v7  ;;  %v1075_v37 = vshrl.u32 %v13316_v26, 16  ;;  %v1035_v40 = vshll.u32 %v13295_v32, 16  ;;  %v13372_v7 = vrot.slane %v1597_v16, 5 }
 0x1cd   : > { %3655 = vst.msk [vmem:[#allocation2 + $0xa8] sm:$0xf] %vm3596_vm0, %v3289_v6  ;;  %v3657_v48 = vsel %vm11049_vm1, %v3291_v10, %v3656_v45  ;;  %v412_v6 = vsel %vm10629_vm11, 0, %v411_v22  ;;  %v255_v45 = vld [vmem:[#allocation2 + $0xf0] sm:$0x1]  ;;  %v3190_v22 = vrot.slane %v1594_v27, 4 }
 0x1ce   : > { %3658 = vst [vmem:[#allocation2 + $0xac] sm:$0xf] %v3657_v48  ;;  %3448 = vrot.lane.b32.xlu1 %v3170_v31, %s10183_s7  ;;  %2194 = vrot.lane.b32.xlu0 %v13073_v18, %s10182_s6  ;;  %v1590_v18 = vor.u32 %v1588_v50, %v13032_v17  ;;  %v2864_v17 = vrot.slane %v2863_v58, 4  ;;  %v1634_v35 = vsel %vm10644_vm13, %v1626_v11, %v1633_v44  ;;  %v1583_v31 = vrot.slane %v13239_v43, 4 }
 0x1cf   : > { %413 = vst [vmem:[#allocation2 + $0x20c] sm:$0x8] %v412_v6  ;;  %v256_v63 = vsel %vm10262_vm2, 0, %v255_v45  ;;  %v13337_v44 = vrot.slane %v1579_v52, 5  ;;  %v1032_v11 = vshrl.u32 %v13295_v32, 16 }
 0x1d0   : > { %v2299_v61 = vpop.permute.xlu1 %2298  ;;  %v2297_v57 = vpop.permute.xlu0 %2296  ;;  %v9960_v47 = vld [vmem:[#allocation2 + $0xa0] sm:$0xff]   ;;  %v1591_v48 = vsel %vm10644_vm13, %v1583_v31, %v1590_v18  ;;  %1959 = vst.msk [vmem:[#allocation2 + $0x20c] sm:$0xf] %vm1764_vm3, %v1634_v35  ;;  %257 = vst [vmem:[#allocation2 + $0xf0] sm:$0x1] %v256_v63  ;;  %v2866_v58 = vsel %vm10347_vm8, %v2864_v17, %v13262_v23  ;;  %v13368_v18 = vrot.slane %v1075_v37, 7  ;;  %v3176_v17 = vor.u32 %v3175_v20, %v3174_v38 }
 0x1d1   : > { %2578 = vst.msk [vmem:[#allocation2 + $0x1b4] sm:$0xf] %vm2472_vm15, %v2299_v61  ;;  %2577 = vst.msk [vmem:[#allocation2 + $0x1b0] sm:$0xf] %vm2472_vm15, %v2297_v57  ;;  %9520 = vmatprep.mubr.msk.bf16.mxu0 %vm4377_vm4, %v9960_v47  ;;  %v13349_v23 = vld [vmem:[%s10276_s5 + $0xfc] sm:$0xf]  ;;  %v3181_v62 = vor.u32 %v3180_v55, %v13337_v44 }
 0x1d2   : > { %2206 = vrot.lane.b32.xlu1 %v13126_v29, %s10182_s6  ;;  %2196 = vrot.lane.b32.xlu0 %v12875_v36, %s10182_s6  ;;  %v1024_v36 = vshrl.u32 %v13288_v33, 16  ;;  %1952 = vst.msk [vmem:[#allocation2 + $0x1f8] sm:$0xf] %vm1764_vm3, %v1591_v48  ;;  %v13353_v57 = vrot.slane %v1032_v11, 7  ;;  %v1084_v47 = vshrl.u32 %v13349_v23, 16  ;;  %v1087_v6 = vshll.u32 %v13349_v23, 16 }
 0x1d3   : > { %v3758_v31 = vld [vmem:[#allocation2 + $0x1bc] sm:$0xf]  ;;  %v3182_v63 = vrot.slane %v3181_v62, 4  ;;  %v13480_v29 = vld [vmem:[%s10276_s5 + $0xf0] sm:$0xf] }
 0x1d4   : > { %v2311_v10 = vpop.permute.xlu1 %2310  ;;  %v2301_v43 = vpop.permute.xlu0 %2300  ;;  %v1026_v3 = vrot.slane %v1024_v36, 7  ;;  %v1086_v51 = vrot.slane %v1084_v47, 7 }
 0x1d5   : > { %2584 = vst.msk [vmem:[#allocation2 + $0x1cc] sm:$0xf] %vm2472_vm15, %v2311_v10  ;;  %2579 = vst.msk [vmem:[#allocation2 + $0x1b8] sm:$0xf] %vm2472_vm15, %v2301_v43  ;;  %v9961_v56 = vld [vmem:[#allocation2 + $0xa8] sm:$0xff]   ;;  %v3185_v10 = vrot.slane %v1585_v49, 4 }
 0x1d6   : > { %3318 = vrot.lane.b32.xlu1 %v2861_v15, %s10183_s7  ;;  %3316 = vrot.lane.b32.xlu0 %v2856_v21, %s10183_s7  ;;  %v1029_v2 = vor.u32 %v1027_v4, %v1026_v3  ;;  %v1037_v21 = vor.u32 %v1035_v40, %v13353_v57  ;;  %v1089_v27 = vor.u32 %v1087_v6, %v1086_v51  ;;  %v1044_v43 = vshll.u32 %v13097_v42, 16  ;;  %v13417_v51 = vld [vmem:[%s10276_s5 + $0x1f0] sm:$0xf] }
 0x1d7   : > { %9521 = vmatmul.mubr.msk.bf16.gmra.mxu0 %vm4377_vm4, %v9961_v56  ;;  %v1852_v45 = vld [vmem:[#allocation2 + $0xf0] sm:$0xf]  ;;  %v1030_v48 = vrot.slane %v1026_v3, 4  ;;  %v3183_v49 = vrot.slane %v1588_v50, 5  ;;  %v3177_v56 = vrot.slane %v3176_v17, 4 }
 0x1d8   : > { %v3423_v61 = vpop.permute.xlu1 %3422  ;;  %v3421_v52 = vpop.permute.xlu0 %3420  ;;  %v1853_v13 = vsel %vm10298_vm5, %v1029_v2, %v1852_v45  ;;  %v1046_v38 = vor.u32 %v1044_v43, %v13146_v41  ;;  %v363_v3 = vld [vmem:[#allocation2 + $0x10c] sm:$0x8]  ;;  %v306_v45 = vld [vmem:[#allocation2 + $0x200] sm:$0x1] }
 0x1d9   : > { %3756 = vst.msk [vmem:[#allocation2 + $0x1b4] sm:$0xf] %vm3596_vm0, %v3423_v61  ;;  %3755 = vst.msk [vmem:[#allocation2 + $0x1b0] sm:$0xf] %vm3596_vm0, %v3421_v52  ;;  %v1038_v20 = vsel %vm10644_vm13, %v1030_v48, %v1037_v21  ;;  %v3186_v50 = vor.u32 %v3185_v10, %v3183_v49  ;;  %v1039_v61 = vrot.slane %v13353_v57, 4  ;;  %v3184_v52 = vsel %vm10347_vm8, %v3182_v63, %v3183_v49 }
 0x1da   : > { %3320 = vrot.lane.b32.xlu1 %v2866_v58, %s10183_s7  ;;  %3322 = vrot.lane.b32.xlu0 %v2869_v60, %s10183_s7  ;;  %v1082_v60 = vrot.slane %v13368_v18, 4  ;;  %1854 = vst [vmem:[#allocation2 + $0xf0] sm:$0xf] %v1853_v13  ;;  %1855 = vst.msk [vmem:[#allocation2 + $0xf4] sm:$0xf] %vm1764_vm3, %v1038_v20  ;;  %v3179_v2 = vsel %vm10347_vm8, %v3177_v56, %v13337_v44  ;;  %v2876_v57 = vrot.slane %v1032_v11, 4 }
 0x1db   : > { %v2870_v44 = vrot.slane %v1024_v36, 4  ;;  %v2871_v11 = vrot.slane %v1027_v4, 5  ;;  %v1602_v21 = vshrl.u32 %v13417_v51, 16  ;;  %v2881_v10 = vrot.slane %v1041_v28, 4 }
 0x1dc   : > { %v2169_v35 = vpop.permute.xlu1 %2168  ;;  %v3427_v15 = vpop.permute.xlu0 %3426  ;;  %v1090_v41 = vsel %vm10644_vm13, %v1082_v60, %v1089_v27  ;;  %v307_v27 = vsel %vm10262_vm2, 0, %v306_v45  ;;  %v1605_v63 = vshll.u32 %v13417_v51, 16 }
 0x1dd   : > { %2513 = vst.msk [vmem:[#allocation2 + $0xb0] sm:$0xf] %vm2472_vm15, %v2169_v35  ;;  %v3759_v16 = vsel %vm11049_vm1, %v3427_v15, %v3758_v31  ;;  %v13421_v35 = vrot.slane %v1035_v40, 5  ;;  %v13426_v31 = vld [vmem:[%s10276_s5 + $0x1f4] sm:$0xf]  ;;  %v1047_v15 = vsel %vm10644_vm13, %v1039_v61, %v1046_v38  ;;  %v3187_v40 = vrot.slane %v3186_v50, 4 }
 0x1de   : > { %3760 = vst [vmem:[#allocation2 + $0x1bc] sm:$0xf] %v3759_v16  ;;  %2330 = vrot.lane.b32.xlu1 %v13205_v8, %s10182_s6  ;;  %2328 = vrot.lane.b32.xlu0 %v13180_v12, %s10182_s6  ;;  %v3191_v12 = vor.u32 %v3190_v22, %v13372_v7  ;;  %1856 = vst.msk [vmem:[#allocation2 + $0xf8] sm:$0xf] %vm1764_vm3, %v1047_v15  ;;  %v13441_v16 = vrot.slane %v1044_v43, 5  ;;  %v1610_v13 = vshrl.u32 %v13426_v31, 16 }
 0x1df   : > { %v1604_v49 = vrot.slane %v1602_v21, 7  ;;  %308 = vst [vmem:[#allocation2 + $0x200] sm:$0x1] %v307_v27  ;;  %v2877_v4 = vor.u32 %v2876_v57, %v13421_v35  ;;  %v2872_v28 = vor.u32 %v2871_v11, %v2870_v44  ;;  %v3189_v56 = vsel %vm10347_vm8, %v3187_v40, %v13372_v7 }
 0x1e0   : > { %v3425_v58 = vpop.permute.xlu1 %3424  ;;  %v2171_v55 = vpop.permute.xlu0 %2170  ;;  %v9962_v8 = vld [vmem:[#allocation2 + $0x1b0] sm:$0xff]   ;;  %v3192_v22 = vrot.slane %v3191_v12, 4  ;;  %v1612_v43 = vrot.slane %v1610_v13, 7  ;;  %v2882_v38 = vor.u32 %v2881_v10, %v13441_v16  ;;  %v2886_v50 = vrot.slane %v1050_v25, 4 }
 0x1e1   : > { %3757 = vst.msk [vmem:[#allocation2 + $0x1b8] sm:$0xf] %vm3596_vm0, %v3425_v58  ;;  %9588 = vmatprep.mubr.msk.bf16.mxu1 %vm4377_vm4, %v9962_v8  ;;  %v1613_v58 = vshll.u32 %v13426_v31, 16  ;;  %v1607_v20 = vor.u32 %v1605_v63, %v1604_v49  ;;  %v1622_v61 = vshll.u32 %v13228_v34, 16  ;;  %v1608_v25 = vrot.slane %v1604_v49, 4 }
 0x1e2   : > { %2514 = vst.msk [vmem:[#allocation2 + $0xb4] sm:$0xf] %vm2472_vm15, %v2171_v55  ;;  %2342 = vrot.lane.b32.xlu1 %v13221_v39, %s10182_s6  ;;  %2332 = vrot.lane.b32.xlu0 %v13013_v54, %s10182_s6  ;;  %v364_v54 = vsel %vm10629_vm11, 0, %v363_v3  ;;  %v13464_v55 = vrot.slane %v1053_v1, 5  ;;  %v2878_v3 = vrot.slane %v2877_v4, 4  ;;  %v2873_v1 = vrot.slane %v2872_v28, 4 }
 0x1e3   : > { %365 = vst [vmem:[#allocation2 + $0x10c] sm:$0x8] %v364_v54  ;;  %v1624_v57 = vor.u32 %v1622_v61, %v13251_v30  ;;  %v1058_v11 = vshrl.u32 %v13480_v29, 16  ;;  %v3193_v10 = vrot.slane %v1602_v21, 4  ;;  %v1617_v27 = vrot.slane %v1612_v43, 4 }
 0x1e4   : > { %v2183_v62 = vpop.permute.xlu1 %2182  ;;  %v2173_v17 = vpop.permute.xlu0 %2172  ;;  %1863 = vst.msk [vmem:[#allocation2 + $0x10c] sm:$0xf] %vm1764_vm3, %v1090_v41  ;;  %v1615_v41 = vor.u32 %v1613_v58, %v1612_v43  ;;  %v2887_v15 = vor.u32 %v2886_v50, %v13464_v55  ;;  %v2880_v30 = vsel %vm10347_vm8, %v2878_v3, %v13441_v16  ;;  %v2875_v45 = vsel %vm10347_vm8, %v2873_v1, %v13421_v35 }
 0x1e5   : > { %2520 = vst.msk [vmem:[#allocation2 + $0xcc] sm:$0xf] %vm2472_vm15, %v2183_v62  ;;  %2515 = vst.msk [vmem:[#allocation2 + $0xb8] sm:$0xf] %vm2472_vm15, %v2173_v17  ;;  %v1625_v35 = vsel %vm10644_vm13, %v1617_v27, %v1624_v57  ;;  %v3197_v28 = vrot.slane %v1613_v58, 5  ;;  %v3202_v24 = vrot.slane %v1622_v61, 5 }
 0x1e6   : > { %3454 = vrot.lane.b32.xlu1 %v3184_v52, %s10183_s7  ;;  %3452 = vrot.lane.b32.xlu0 %v3179_v2, %s10183_s7  ;;  %v13477_v52 = vld [vmem:[%s10276_s5 + $0xf4] sm:$0xf]  ;;  %v1954_v2 = vld [vmem:[#allocation2 + $0x200] sm:$0xf]  ;;  %v1616_v40 = vsel %vm10644_vm13, %v1608_v25, %v1615_v41  ;;  %v2888_v43 = vrot.slane %v2887_v15, 4  ;;  %s10124_s5 = sshll.u32 %s10185_s30, 4  ;;  %s10125_s5 = int_to_ptr.vmem [resolvable:$false] %s10124_s5 }
 0x1e7   : > { %v1066_v44 = vshrl.u32 %v13477_v52, 16  ;;  %1957 = vst.msk [vmem:[#allocation2 + $0x204] sm:$0xf] %vm1764_vm3, %v1616_v40  ;;  %1958 = vst.msk [vmem:[#allocation2 + $0x208] sm:$0xf] %vm1764_vm3, %v1625_v35  ;;  %p10127_p0 = scmp.lt.s32.totalorder %s14776_s14, %s10125_s5 }
 0x1e8   : > { %v3295_v60 = vpop.permute.xlu1 %3294  ;;  %v3293_v48 = vpop.permute.xlu0 %3292  ;;  %v9963_v36 = vld [vmem:[#allocation2 + $0x1b8] sm:$0xff]  }
 0x1e9   : > { %3660 = vst.msk [vmem:[#allocation2 + $0xb4] sm:$0xf] %vm3596_vm0, %v3295_v60  ;;  %3659 = vst.msk [vmem:[#allocation2 + $0xb0] sm:$0xf] %vm3596_vm0, %v3293_v48  ;;  %9589 = vmatmul.mubr.msk.bf16.gmra.mxu1 %vm4377_vm4, %v9963_v36  ;;  %v258_v60 = vld [vmem:[#allocation2 + $0x100] sm:$0x1] }
 0x1ea   : > { %2200 = vrot.lane.b32.xlu1 %v13288_v33, %s10182_s6  ;;  %3458 = vrot.lane.b32.xlu0 %v3192_v22, %s10183_s7  ;;  %v3662_v33 = vld [vmem:[#allocation2 + $0xbc] sm:$0xf]  ;;  %v2883_v22 = vrot.slane %v2882_v38, 4  ;;  %v3194_v48 = vrot.slane %v1605_v63, 5  ;;  %v1068_v36 = vrot.slane %v1066_v44, 7  ;;  %v259_v16 = vsel %vm10262_vm2, 0, %v258_v60 }
 0x1eb   : > { %260 = vst [vmem:[#allocation2 + $0x100] sm:$0x1] %v259_v16  ;;  %v3199_v63 = vrot.slane %v1610_v13, 4  ;;  %v1078_v13 = vshll.u32 %v13316_v26, 16  ;;  %v2895_v27 = vrot.slane %v1066_v44, 4  ;;  %v2889_v60 = vrot.slane %v1058_v11, 4 }
 0x1ec   : > { %v3297_v8 = vpop.permute.xlu1 %3296  ;;  %v3299_v12 = vpop.permute.xlu0 %3298  ;;  %v2900_v44 = vrot.slane %v1075_v37, 4  ;;  %v2903_v37 = vrot.slane %v1087_v6, 5 }
 0x1ed   : > { %3661 = vst.msk [vmem:[#allocation2 + $0xb8] sm:$0xf] %vm3596_vm0, %v3297_v8  ;;  %v3663_v7 = vsel %vm11049_vm1, %v3299_v12, %v3662_v33  ;;  %v1061_v8 = vshll.u32 %v13480_v29, 16  ;;  %v2885_v33 = vsel %vm10347_vm8, %v2883_v22, %v13464_v55  ;;  %v3195_v12 = vor.u32 %v3194_v48, %v3193_v10 }
 0x1ee   : > { %3664 = vst [vmem:[#allocation2 + $0xbc] sm:$0xf] %v3663_v7  ;;  %3456 = vrot.lane.b32.xlu1 %v3189_v56, %s10183_s7  ;;  %2202 = vrot.lane.b32.xlu0 %v13295_v32, %s10182_s6  ;;  %v1955_v32 = vsel %vm10298_vm5, %v1607_v20, %v1954_v2  ;;  %v1069_v56 = vshll.u32 %v13477_v52, 16  ;;  %v13534_v7 = vrot.slane %v1631_v59, 5  ;;  %v3209_v55 = vrot.slane %v1628_v14, 4 }
 0x1ef   : > { %1956 = vst [vmem:[#allocation2 + $0x200] sm:$0xf] %v1955_v32  ;;  %v3200_v3 = vor.u32 %v3199_v63, %v3197_v28  ;;  %v3196_v1 = vrot.slane %v3195_v12, 4  ;;  %v1080_v25 = vor.u32 %v1078_v13, %v13368_v18  ;;  %v1073_v22 = vrot.slane %v1068_v36, 4 }
 0x1f0   : > { %v2307_v54 = vpop.permute.xlu1 %2306  ;;  %v2305_v62 = vpop.permute.xlu0 %2304  ;;  %v9964_v17 = vld [vmem:[#allocation2 + $0xb0] sm:$0xff]   ;;  %v1071_v50 = vor.u32 %v1069_v56, %v1068_v36  ;;  %v3204_v18 = vrot.slane %v1619_v5, 4  ;;  %v3210_v57 = vor.u32 %v3209_v55, %v13534_v7  ;;  %v2893_v10 = vrot.slane %v1069_v56, 5 }
 0x1f1   : > { %2582 = vst.msk [vmem:[#allocation2 + $0x1c4] sm:$0xf] %vm2472_vm15, %v2307_v54  ;;  %2581 = vst.msk [vmem:[#allocation2 + $0x1c0] sm:$0xf] %vm2472_vm15, %v2305_v62  ;;  %9524 = vmatprep.mubr.msk.bf16.mxu0 %vm4377_vm4, %v9964_v17  ;;  %v3764_v62 = vld [vmem:[#allocation2 + $0x1cc] sm:$0xf]  ;;  %v3198_v15 = vsel %vm10347_vm8, %v3196_v1, %v3197_v28  ;;  %v1081_v40 = vsel %vm10644_vm13, %v1073_v22, %v1080_v25 }
 0x1f2   : > { %2214 = vrot.lane.b32.xlu1 %v13349_v23, %s10182_s6  ;;  %2204 = vrot.lane.b32.xlu0 %v13097_v42, %s10182_s6  ;;  %v1060_v42 = vrot.slane %v1058_v11, 7  ;;  %v1858_v2 = vld [vmem:[#allocation2 + $0x100] sm:$0xf]  ;;  %v3201_v32 = vrot.slane %v3200_v3, 4  ;;  %1862 = vst.msk [vmem:[#allocation2 + $0x108] sm:$0xf] %vm1764_vm3, %v1081_v40  ;;  %v3205_v61 = vor.u32 %v3204_v18, %v3202_v24 }
 0x1f3   : > { %v3211_v9 = vrot.slane %v3210_v57, 4  ;;  %v2890_v48 = vrot.slane %v1061_v8, 5 }
 0x1f4   : > { %v2319_v49 = vpop.permute.xlu1 %2318  ;;  %v2309_v4 = vpop.permute.xlu0 %2308  ;;  %v1063_v58 = vor.u32 %v1061_v8, %v1060_v42  ;;  %v1064_v41 = vrot.slane %v1060_v42, 4  ;;  %v3203_v5 = vsel %vm10347_vm8, %v3201_v32, %v3202_v24  ;;  %v3206_v16 = vrot.slane %v3205_v61, 4 }
 0x1f5   : > { %2588 = vst.msk [vmem:[#allocation2 + $0x1dc] sm:$0xf] %vm2472_vm15, %v2319_v49  ;;  %2583 = vst.msk [vmem:[#allocation2 + $0x1c8] sm:$0xf] %vm2472_vm15, %v2309_v4  ;;  %v9965_v21 = vld [vmem:[#allocation2 + $0xb8] sm:$0xff]   ;;  %v2896_v49 = vor.u32 %v2895_v27, %v2893_v10  ;;  %v2891_v11 = vor.u32 %v2890_v48, %v2889_v60  ;;  %v2905_v8 = vrot.slane %v1084_v47, 4 }
 0x1f6   : > { %3326 = vrot.lane.b32.xlu1 %v2880_v30, %s10183_s7  ;;  %3324 = vrot.lane.b32.xlu0 %v2875_v45, %s10183_s7  ;;  %v1072_v59 = vsel %vm10644_vm13, %v1064_v41, %v1071_v50  ;;  %v1859_v39 = vsel %vm10298_vm5, %v1063_v58, %v1858_v2  ;;  %vm197_vm5 = vcmask 93184   ;;  %v3668_v50 = vld [vmem:[#allocation2 + $0xcc] sm:$0xf] }
 0x1f7   : > { %9525 = vmatmul.mubr.msk.bf16.gmra.mxu0 %vm4377_vm4, %v9965_v21  ;;  %1861 = vst.msk [vmem:[#allocation2 + $0x104] sm:$0xf] %vm1764_vm3, %v1072_v59  ;;  %1860 = vst [vmem:[#allocation2 + $0x100] sm:$0xf] %v1859_v39  ;;  %v2897_v12 = vrot.slane %v2896_v49, 4 }
 0x1f8   : > { %v3431_v38 = vpop.permute.xlu1 %3430  ;;  %v3429_v20 = vpop.permute.xlu0 %3428 }
 0x1f9   : > { %3762 = vst.msk [vmem:[#allocation2 + $0x1c4] sm:$0xf] %vm3596_vm0, %v3431_v38  ;;  %3761 = vst.msk [vmem:[#allocation2 + $0x1c0] sm:$0xf] %vm3596_vm0, %v3429_v20  ;;  %v2892_v38 = vrot.slane %v2891_v11, 4 }
 0x1fa   : > { %3328 = vrot.lane.b32.xlu1 %v2885_v33, %s10183_s7  ;;  %3330 = vrot.lane.b32.xlu0 %v2888_v43, %s10183_s7  ;;  %v3208_v33 = vsel %vm10347_vm8, %v3206_v16, %v13534_v7 }
 0x1fb   : > { %v2894_v58 = vsel %vm10347_vm8, %v2892_v38, %v2893_v10 }
 0x1fc   : > { %v2177_v54 = vpop.permute.xlu1 %2176  ;;  %v3435_v17 = vpop.permute.xlu0 %3434 }
 0x1fd   : > { %2517 = vst.msk [vmem:[#allocation2 + $0xc0] sm:$0xf] %vm2472_vm15, %v2177_v54  ;;  %v3765_v14 = vsel %vm11049_vm1, %v3435_v17, %v3764_v62  ;;  %v3770_v17 = vld [vmem:[#allocation2 + $0x1dc] sm:$0xf] }
 0x1fe   : > { %3766 = vst [vmem:[#allocation2 + $0x1cc] sm:$0xf] %v3765_v14  ;;  %2338 = vrot.lane.b32.xlu1 %v13426_v31, %s10182_s6  ;;  %2336 = vrot.lane.b32.xlu0 %v13417_v51, %s10182_s6  ;;  %v10184_v51 = vmov 0  }
 0x1ff   : > { %198 = vst.msk [vmem:[#allocation2] sm:$0xf] %vm197_vm5, %v10184_v51  ;;  %199 = vst.msk [vmem:[#allocation2 + $0x4] sm:$0xf] %vm197_vm5, %v10184_v51 }
 0x200   : > { %v3433_v31 = vpop.permute.xlu1 %3432  ;;  %v2179_v30 = vpop.permute.xlu0 %2178  ;;  %v9966_v45 = vld [vmem:[#allocation2 + $0x1c0] sm:$0xff]   ;;  %200 = vst.msk [vmem:[#allocation2 + $0x8] sm:$0xf] %vm197_vm5, %v10184_v51  ;;  %201 = vst.msk [vmem:[#allocation2 + $0xc] sm:$0xf] %vm197_vm5, %v10184_v51 }
 0x201   : > { %203 = vst.msk [vmem:[#allocation2 + $0x210] sm:$0xf] %vm197_vm5, %v10184_v51  ;;  %204 = vst.msk [vmem:[#allocation2 + $0x214] sm:$0xf] %vm197_vm5, %v10184_v51  ;;  %9592 = vmatprep.mubr.msk.bf16.mxu1 %vm4377_vm4, %v9966_v45 }
 0x202   : > { %205 = vst.msk [vmem:[#allocation2 + $0x218] sm:$0xf] %vm197_vm5, %v10184_v51  ;;  %206 = vst.msk [vmem:[#allocation2 + $0x21c] sm:$0xf] %vm197_vm5, %v10184_v51  ;;  %3460 = vrot.lane.b32.xlu1 %v3198_v15, %s10183_s7  ;;  %2340 = vrot.lane.b32.xlu0 %v13228_v34, %s10182_s6  ;;  %v2898_v34 = vrot.slane %v1078_v13, 5 }
 0x203   : > { %3763 = vst.msk [vmem:[#allocation2 + $0x1c8] sm:$0xf] %vm3596_vm0, %v3433_v31 }
 0x204   : > { %2518 = vst.msk [vmem:[#allocation2 + $0xc4] sm:$0xf] %vm2472_vm15, %v2179_v30  ;;  %v2191_v36 = vpop.permute.xlu1 %2190  ;;  %v2181_v42 = vpop.permute.xlu0 %2180  ;;  %v2901_v20 = vor.u32 %v2900_v44, %v2898_v34 }
 0x205   : > { %2524 = vst.msk [vmem:[#allocation2 + $0xdc] sm:$0xf] %vm2472_vm15, %v2191_v36  ;;  %2519 = vst.msk [vmem:[#allocation2 + $0xc8] sm:$0xf] %vm2472_vm15, %v2181_v42 }
 0x206   : > { %3466 = vrot.lane.b32.xlu1 %v3211_v9, %s10183_s7  ;;  %3462 = vrot.lane.b32.xlu0 %v3203_v5, %s10183_s7  ;;  %v210_v4 = vld [vmem:[#allocation2] sm:$0x1]  ;;  %v2902_v13 = vrot.slane %v2901_v20, 4 }
 0x207   : > { %v211_v28 = vsel %vm10262_vm2, 0, %v210_v4  ;;  %v315_v63 = vld [vmem:[#allocation2 + $0xc] sm:$0x8] }
 0x208   : > { %v3303_v35 = vpop.permute.xlu1 %3302  ;;  %v3301_v21 = vpop.permute.xlu0 %3300  ;;  %212 = vst [vmem:[#allocation2] sm:$0x1] %v211_v28  ;;  %v316_v56 = vsel %vm10629_vm11, 0, %v315_v63  ;;  %v2904_v41 = vsel %vm10347_vm8, %v2902_v13, %v2903_v37 }
 0x209   : > { %3666 = vst.msk [vmem:[#allocation2 + $0xc4] sm:$0xf] %vm3596_vm0, %v3303_v35  ;;  %3665 = vst.msk [vmem:[#allocation2 + $0xc0] sm:$0xf] %vm3596_vm0, %v3301_v21 }
 0x20a   : > { %v9967_v43 = vld [vmem:[#allocation2 + $0x1c8] sm:$0xff]   ;;  %2210 = vrot.lane.b32.xlu1 %v13477_v52, %s10182_s6  ;;  %2208 = vrot.lane.b32.xlu0 %v13480_v29, %s10182_s6  ;;  %317 = vst [vmem:[#allocation2 + $0xc] sm:$0x8] %v316_v56  ;;  %v2906_v52 = vor.u32 %v2905_v8, %v2903_v37  ;;  %v2899_v29 = vsel %vm10347_vm8, %v2897_v12, %v2898_v34 }
 0x20b   : > { %9593 = vmatmul.mubr.msk.bf16.gmra.mxu1 %vm4377_vm4, %v9967_v43 }
 0x20c   : > { %v3305_v6 = vpop.permute.xlu1 %3304  ;;  %v3307_v23 = vpop.permute.xlu0 %3306  ;;  %v3674_v30 = vld [vmem:[#allocation2 + $0xdc] sm:$0xf] }
 0x20d   : > { %3667 = vst.msk [vmem:[#allocation2 + $0xc8] sm:$0xf] %vm3596_vm0, %v3305_v6  ;;  %v3669_v47 = vsel %vm11049_vm1, %v3307_v23, %v3668_v50 }
 0x20e   : > { %3670 = vst [vmem:[#allocation2 + $0xcc] sm:$0xf] %v3669_v47  ;;  %2212 = vrot.lane.b32.xlu1 %v13316_v26, %s10182_s6  ;;  %3464 = vrot.lane.b32.xlu0 %v3208_v33, %s10183_s7  ;;  %v2907_v26 = vrot.slane %v2906_v52, 4 }
 0x210   : > { %v2315_v7 = vpop.permute.xlu1 %2314  ;;  %v2313_v55 = vpop.permute.xlu0 %2312  ;;  %v9968_v3 = vld [vmem:[#allocation2 + $0xc0] sm:$0xff]  }
 0x211   : > { %2586 = vst.msk [vmem:[#allocation2 + $0x1d4] sm:$0xf] %vm2472_vm15, %v2315_v7  ;;  %2585 = vst.msk [vmem:[#allocation2 + $0x1d0] sm:$0xf] %vm2472_vm15, %v2313_v55  ;;  %9528 = vmatprep.mubr.msk.bf16.mxu0 %vm4377_vm4, %v9968_v3 }
 0x212   : > { %3334 = vrot.lane.b32.xlu1 %v2899_v29, %s10183_s7  ;;  %3332 = vrot.lane.b32.xlu0 %v2894_v58, %s10183_s7 }
 0x214   : > { %v2327_v1 = vpop.permute.xlu1 %2326  ;;  %v2317_v25 = vpop.permute.xlu0 %2316 }
 0x215   : > { %2592 = vst.msk [vmem:[#allocation2 + $0x1ec] sm:$0xf] %vm2472_vm15, %v2327_v1  ;;  %2587 = vst.msk [vmem:[#allocation2 + $0x1d8] sm:$0xf] %vm2472_vm15, %v2317_v25  ;;  %v9969_v2 = vld [vmem:[#allocation2 + $0xc8] sm:$0xff]  }
 0x216   : > { %3338 = vrot.lane.b32.xlu0 %v2907_v26, %s10183_s7  ;;  %3336 = vrot.lane.b32.xlu1 %v2904_v41, %s10183_s7  ;;  %s10126_s7 = scalar_lea.vmem %s10125_s5, 16384 }
 0x217   : > { %9529 = vmatmul.mubr.msk.bf16.gmra.mxu0 %vm4377_vm4, %v9969_v2  ;;  %p10128_p1 = scmp.lt.s32.totalorder %s10126_s7, %s10120_s28 }
 0x218   : > { %v3439_v54 = vpop.permute.xlu1 %3438  ;;  %v3437_v62 = vpop.permute.xlu0 %3436 }
 0x219   : > { %3768 = vst.msk [vmem:[#allocation2 + $0x1d4] sm:$0xf] %vm3596_vm0, %v3439_v54  ;;  %3767 = vst.msk [vmem:[#allocation2 + $0x1d0] sm:$0xf] %vm3596_vm0, %v3437_v62  ;;  %p10129_p2 = por %p10128_p1, %p10127_p0 }
 0x21b   : > { %p10130_p3 = pnand %p10129_p2, %p10123_p13 }
 0x21c   : > { %v2185_v53 = vpop.permute.xlu1 %2184  ;;  %v3443_v59 = vpop.permute.xlu0 %3442  ;;  %v3776_v34 = vld [vmem:[#allocation2 + $0x1ec] sm:$0xf] }
 0x21d   : > { %2521 = vst.msk [vmem:[#allocation2 + $0xd0] sm:$0xf] %vm2472_vm15, %v2185_v53  ;;  %v3771_v39 = vsel %vm11049_vm1, %v3443_v59, %v3770_v17 }
 0x21e   : > { %3772 = vst [vmem:[#allocation2 + $0x1dc] sm:$0xf] %v3771_v39 }
 0x220   : > { %v3441_v14 = vpop.permute.xlu1 %3440  ;;  %v2187_v22 = vpop.permute.xlu0 %2186  ;;  %v9972_v24 = vld [vmem:[#allocation2 + $0x1d0] sm:$0xff]  }
 0x221   : > { %3769 = vst.msk [vmem:[#allocation2 + $0x1d8] sm:$0xf] %vm3596_vm0, %v3441_v14  ;;  %9596 = vmatprep.mubr.msk.bf16.mxu1 %vm4377_vm4, %v9972_v24 }
 0x222   : > { %2522 = vst.msk [vmem:[#allocation2 + $0xd4] sm:$0xf] %vm2472_vm15, %v2187_v22 }
 0x224   : > { %v2199_v18 = vpop.permute.xlu1 %2198  ;;  %v2189_v57 = vpop.permute.xlu0 %2188 }
 0x225   : > { %2528 = vst.msk [vmem:[#allocation2 + $0xec] sm:$0xf] %vm2472_vm15, %v2199_v18  ;;  %2523 = vst.msk [vmem:[#allocation2 + $0xd8] sm:$0xf] %vm2472_vm15, %v2189_v57 }
 0x228   : > { %v3311_v32 = vpop.permute.xlu1 %3310  ;;  %v3309_v15 = vpop.permute.xlu0 %3308  ;;  %v9973_v40 = vld [vmem:[#allocation2 + $0x1d8] sm:$0xff]  }
 0x229   : > { %3672 = vst.msk [vmem:[#allocation2 + $0xd4] sm:$0xf] %vm3596_vm0, %v3311_v32  ;;  %3671 = vst.msk [vmem:[#allocation2 + $0xd0] sm:$0xf] %vm3596_vm0, %v3309_v15  ;;  %9597 = vmatmul.mubr.msk.bf16.gmra.mxu1 %vm4377_vm4, %v9973_v40  ;;  %v13688_v32 = vpop.f32.mrf.mxu1 }
 0x22a   : > { %14902 = vst [vmem:[#allocation6_spill] sm:$0xff] %v13688_v32  ;;  %v10077_v32 = vld [vmem:[#allocation2 + $0x170] sm:$0xff]  }
 0x22c   : > { %v3313_v31 = vpop.permute.xlu1 %3312  ;;  %v3315_v45 = vpop.permute.xlu0 %3314  ;;  %v3680_v37 = vld [vmem:[#allocation2 + $0xec] sm:$0xf] }
 0x22d   : > { %3673 = vst.msk [vmem:[#allocation2 + $0xd8] sm:$0xf] %vm3596_vm0, %v3313_v31  ;;  %v3675_v51 = vsel %vm11049_vm1, %v3315_v45, %v3674_v30  ;;  %v13694_v45 = vpop.f32.mrf.mxu1 }
 0x22e   : > { %3676 = vst [vmem:[#allocation2 + $0xdc] sm:$0xf] %v3675_v51  ;;  %14903 = vst [vmem:[#allocation7_spill] sm:$0xff] %v13694_v45 }
 0x230   : > { %v2323_v9 = vpop.permute.xlu1 %2322  ;;  %v2321_v5 = vpop.permute.xlu0 %2320  ;;  %v9974_v61 = vld [vmem:[#allocation2 + $0xd0] sm:$0xff]  }
 0x231   : > { %2590 = vst.msk [vmem:[#allocation2 + $0x1e4] sm:$0xf] %vm2472_vm15, %v2323_v9  ;;  %2589 = vst.msk [vmem:[#allocation2 + $0x1e0] sm:$0xf] %vm2472_vm15, %v2321_v5  ;;  %9532 = vmatprep.mubr.msk.bf16.mxu0 %vm4377_vm4, %v9974_v61  ;;  %v13698_v5 = vpop.f32.mrf.mxu1 }
 0x232   : > { %14904 = vst [vmem:[#allocation8_spill] sm:$0xff] %v13698_v5  ;;  %v10074_v5 = vld [vmem:[#allocation2 + $0x168] sm:$0xff]  }
 0x234   : > { %v2335_v10 = vpop.permute.xlu1 %2334  ;;  %v2325_v27 = vpop.permute.xlu0 %2324 }
 0x235   : > { %2596 = vst.msk [vmem:[#allocation2 + $0x1fc] sm:$0xf] %vm2472_vm15, %v2335_v10  ;;  %2591 = vst.msk [vmem:[#allocation2 + $0x1e8] sm:$0xf] %vm2472_vm15, %v2325_v27  ;;  %v9975_v60 = vld [vmem:[#allocation2 + $0xd8] sm:$0xff]  }
 0x236   : > { %9533 = vmatmul.mubr.msk.bf16.gmra.mxu0 %vm4377_vm4, %v9975_v60  ;;  %v13700_v60 = vpop.f32.mrf.mxu0 }
 0x238   : > { %v3447_v48 = vpop.permute.xlu1 %3446  ;;  %v3445_v36 = vpop.permute.xlu0 %3444 }
 0x239   : > { %3774 = vst.msk [vmem:[#allocation2 + $0x1e4] sm:$0xf] %vm3596_vm0, %v3447_v48  ;;  %3773 = vst.msk [vmem:[#allocation2 + $0x1e0] sm:$0xf] %vm3596_vm0, %v3445_v36  ;;  %v13705_v48 = vpop.f32.mrf.mxu1 }
 0x23a   : > { %14905 = vst [vmem:[#allocation9_spill] sm:$0xff] %v13705_v48 }
 0x23c   : > { %v2193_v42 = vpop.permute.xlu1 %2192  ;;  %v3451_v44 = vpop.permute.xlu0 %3450  ;;  %v3782_v58 = vld [vmem:[#allocation2 + $0x1fc] sm:$0xf] }
 0x23d   : > { %2525 = vst.msk [vmem:[#allocation2 + $0xe0] sm:$0xf] %vm2472_vm15, %v2193_v42  ;;  %v3777_v16 = vsel %vm11049_vm1, %v3451_v44, %v3776_v34  ;;  %v13707_v34 = vpop.f32.mrf.mxu0  ;;  %v13711_v44 = vpop.f32.mrf.mxu1 }
 0x23e   : > { %3778 = vst [vmem:[#allocation2 + $0x1ec] sm:$0xf] %v3777_v16  ;;  %14906 = vst [vmem:[#allocation10_spill] sm:$0xff] %v13711_v44  ;;  %v10070_v44 = vld [vmem:[#allocation2 + $0x158] sm:$0xff]  }
 0x240   : > { %v3449_v49 = vpop.permute.xlu1 %3448  ;;  %v2195_v11 = vpop.permute.xlu0 %2194  ;;  %v9976_v4 = vld [vmem:[#allocation2 + $0x1e0] sm:$0xff]  }
 0x241   : > { %3775 = vst.msk [vmem:[#allocation2 + $0x1e8] sm:$0xf] %vm3596_vm0, %v3449_v49  ;;  %9600 = vmatprep.mubr.msk.bf16.mxu1 %vm4377_vm4, %v9976_v4  ;;  %v9987_v49 = vld [vmem:[#allocation2] sm:$0xff]  }
 0x242   : > { %2526 = vst.msk [vmem:[#allocation2 + $0xe4] sm:$0xf] %vm2472_vm15, %v2195_v11 }
 0x244   : > { %v2207_v35 = vpop.permute.xlu1 %2206  ;;  %v2197_v21 = vpop.permute.xlu0 %2196 }
 0x245   : > { %2532 = vst.msk [vmem:[#allocation2 + $0xfc] sm:$0xf] %vm2472_vm15, %v2207_v35  ;;  %2527 = vst.msk [vmem:[#allocation2 + $0xe8] sm:$0xf] %vm2472_vm15, %v2197_v21  ;;  %v13713_v21 = vpop.f32.mrf.mxu0 }
 0x248   : > { %v3319_v43 = vpop.permute.xlu1 %3318  ;;  %v3317_v28 = vpop.permute.xlu0 %3316  ;;  %v9977_v63 = vld [vmem:[#allocation2 + $0x1e8] sm:$0xff]  }
 0x249   : > { %3678 = vst.msk [vmem:[#allocation2 + $0xe4] sm:$0xf] %vm3596_vm0, %v3319_v43  ;;  %3677 = vst.msk [vmem:[#allocation2 + $0xe0] sm:$0xf] %vm3596_vm0, %v3317_v28  ;;  %9601 = vmatmul.mubr.msk.bf16.gmra.mxu1 %vm4377_vm4, %v9977_v63  ;;  %v13718_v28 = vpop.f32.mrf.mxu1 }
 0x24a   : > { %14907 = vst [vmem:[#allocation11_spill] sm:$0xff] %v13718_v28  ;;  %v10069_v28 = vld [vmem:[#allocation2 + $0x150] sm:$0xff]  }
 0x24c   : > { %v3321_v56 = vpop.permute.xlu1 %3320  ;;  %v3323_v8 = vpop.permute.xlu0 %3322  ;;  %v3686_v53 = vld [vmem:[#allocation2 + $0xfc] sm:$0xf] }
 0x24d   : > { %3679 = vst.msk [vmem:[#allocation2 + $0xe8] sm:$0xf] %vm3596_vm0, %v3321_v56  ;;  %v3681_v33 = vsel %vm11049_vm1, %v3323_v8, %v3680_v37  ;;  %v13722_v56 = vpop.f32.mrf.mxu0  ;;  %v13724_v37 = vpop.f32.mrf.mxu1  ;;  %v9988_v8 = vld [vmem:[#allocation2 + $0x8] sm:$0xff]  }
 0x24e   : > { %3682 = vst [vmem:[#allocation2 + $0xec] sm:$0xf] %v3681_v33  ;;  %14908 = vst [vmem:[#allocation12_spill] sm:$0xff] %v13724_v37  ;;  %v10067_v37 = vld [vmem:[#allocation2 + $0x150] sm:$0xff]  }
 0x24f   : > { %v13727_v33 = vpop.f32.mrf.mxu0 }
 0x250   : > { %v2331_v12 = vpop.permute.xlu1 %2330  ;;  %v2329_v38 = vpop.permute.xlu0 %2328  ;;  %v9978_v20 = vld [vmem:[#allocation2 + $0xe0] sm:$0xff]  }
 0x251   : > { %2594 = vst.msk [vmem:[#allocation2 + $0x1f4] sm:$0xf] %vm2472_vm15, %v2331_v12  ;;  %2593 = vst.msk [vmem:[#allocation2 + $0x1f0] sm:$0xf] %vm2472_vm15, %v2329_v38  ;;  %9536 = vmatprep.mubr.msk.bf16.mxu0 %vm4377_vm4, %v9978_v20  ;;  %v13729_v38 = vpop.f32.mrf.mxu1  ;;  %v9991_v20 = vld [vmem:[#allocation2 + $0x20] sm:$0xff]  }
 0x252   : > { %14909 = vst [vmem:[#allocation13_spill] sm:$0xff] %v13729_v38  ;;  %v10065_v38 = vld [vmem:[#allocation2 + $0x140] sm:$0xff]  }
 0x254   : > { %v2343_v6 = vpop.permute.xlu1 %2342  ;;  %v2333_v50 = vpop.permute.xlu0 %2332 }
 0x255   : > { %2600 = vst.msk [vmem:[#allocation2 + $0x20c] sm:$0xf] %vm2472_vm15, %v2343_v6  ;;  %2595 = vst.msk [vmem:[#allocation2 + $0x1f8] sm:$0xf] %vm2472_vm15, %v2333_v50  ;;  %v9979_v23 = vld [vmem:[#allocation2 + $0xe8] sm:$0xff]   ;;  %v13732_v6 = vpop.f32.mrf.mxu0  ;;  %v13736_v50 = vpop.f32.mrf.mxu1 }
 0x256   : > { %9537 = vmatmul.mubr.msk.bf16.gmra.mxu0 %vm4377_vm4, %v9979_v23  ;;  %14910 = vst [vmem:[#allocation14_spill] sm:$0xff] %v13736_v50 }
 0x257   : > { %v13739_v23 = vpop.f32.mrf.mxu0 }
 0x258   : > { %v3455_v47 = vpop.permute.xlu1 %3454  ;;  %v3453_v52 = vpop.permute.xlu0 %3452 }
 0x259   : > { %3780 = vst.msk [vmem:[#allocation2 + $0x1f4] sm:$0xf] %vm3596_vm0, %v3455_v47  ;;  %3779 = vst.msk [vmem:[#allocation2 + $0x1f0] sm:$0xf] %vm3596_vm0, %v3453_v52  ;;  %v13741_v47 = vpop.f32.mrf.mxu1  ;;  %v9992_v52 = vld [vmem:[#allocation2 + $0x18] sm:$0xff]  }
 0x25a   : > { %14911 = vst [vmem:[#allocation15_spill] sm:$0xff] %v13741_v47 }
 0x25c   : > { %v2201_v29 = vpop.permute.xlu1 %2200  ;;  %v3459_v13 = vpop.permute.xlu0 %3458  ;;  %v3788_v15 = vld [vmem:[#allocation2 + $0x20c] sm:$0xf] }
 0x25d   : > { %2529 = vst.msk [vmem:[#allocation2 + $0xf0] sm:$0xf] %vm2472_vm15, %v2201_v29  ;;  %v3783_v7 = vsel %vm11049_vm1, %v3459_v13, %v3782_v58  ;;  %v9993_v29 = vld [vmem:[#allocation2 + $0x20] sm:$0xff]   ;;  %v9994_v58 = vld [vmem:[#allocation2 + $0x28] sm:$0xff]   ;;  %v9995_v13 = vld [vmem:[#allocation2 + $0x30] sm:$0xff]  }
 0x25e   : > { %3784 = vst [vmem:[#allocation2 + $0x1fc] sm:$0xf] %v3783_v7  ;;  %v13744_v7 = vpop.f32.mrf.mxu0 }
 0x260   : > { %v3457_v55 = vpop.permute.xlu1 %3456  ;;  %v2203_v3 = vpop.permute.xlu0 %2202  ;;  %v9980_v26 = vld [vmem:[#allocation2 + $0x1f0] sm:$0xff]  }
 0x261   : > { %3781 = vst.msk [vmem:[#allocation2 + $0x1f8] sm:$0xf] %vm3596_vm0, %v3457_v55  ;;  %9604 = vmatprep.mubr.msk.bf16.mxu1 %vm4377_vm4, %v9980_v26  ;;  %v13748_v55 = vpop.f32.mrf.mxu1 }
 0x262   : > { %2530 = vst.msk [vmem:[#allocation2 + $0xf4] sm:$0xf] %vm2472_vm15, %v2203_v3  ;;  %14912 = vst [vmem:[#allocation16_spill] sm:$0xff] %v13748_v55  ;;  %v13751_v3 = vpop.f32.mrf.mxu0 }
 0x263   : > { %v13753_v26 = vpop.f32.mrf.mxu1 }
 0x264   : > { %v2215_v41 = vpop.permute.xlu1 %2214  ;;  %v2205_v1 = vpop.permute.xlu0 %2204  ;;  %14913 = vst [vmem:[#allocation17_spill] sm:$0xff] %v13753_v26  ;;  %v10054_v26 = vld [vmem:[#allocation2 + $0x118] sm:$0xff]  }
 0x265   : > { %2536 = vst.msk [vmem:[#allocation2 + $0x10c] sm:$0xf] %vm2472_vm15, %v2215_v41  ;;  %2531 = vst.msk [vmem:[#allocation2 + $0xf8] sm:$0xf] %vm2472_vm15, %v2205_v1  ;;  %v9996_v41 = vld [vmem:[#allocation2 + $0x28] sm:$0xff]   ;;  %v13755_v1 = vpop.f32.mrf.mxu0 }
 0x268   : > { %v3327_v25 = vpop.permute.xlu1 %3326  ;;  %v3325_v2 = vpop.permute.xlu0 %3324  ;;  %v9981_v54 = vld [vmem:[#allocation2 + $0x1f8] sm:$0xff]  }
 0x269   : > { %3684 = vst.msk [vmem:[#allocation2 + $0xf4] sm:$0xf] %vm3596_vm0, %v3327_v25  ;;  %3683 = vst.msk [vmem:[#allocation2 + $0xf0] sm:$0xf] %vm3596_vm0, %v3325_v2  ;;  %9605 = vmatmul.mubr.msk.bf16.gmra.mxu1 %vm4377_vm4, %v9981_v54  ;;  %v9997_v25 = vld [vmem:[#allocation2 + $0x30] sm:$0xff]   ;;  %v9998_v2 = vld [vmem:[#allocation2 + $0x38] sm:$0xff]   ;;  %v13757_v54 = vpop.f32.mrf.mxu1 }
 0x26a   : > { %14914 = vst [vmem:[#allocation18_spill] sm:$0xff] %v13757_v54 }
 0x26c   : > { %v3329_v62 = vpop.permute.xlu1 %3328  ;;  %v3331_v17 = vpop.permute.xlu0 %3330  ;;  %v3692_v16 = vld [vmem:[#allocation2 + $0x10c] sm:$0xf] }
 0x26d   : > { %3685 = vst.msk [vmem:[#allocation2 + $0xf8] sm:$0xf] %vm3596_vm0, %v3329_v62  ;;  %v3687_v59 = vsel %vm11049_vm1, %v3331_v17, %v3686_v53  ;;  %v9999_v62 = vld [vmem:[#allocation2 + $0x40] sm:$0xff]   ;;  %v13763_v53 = vpop.f32.mrf.mxu0  ;;  %v13765_v17 = vpop.f32.mrf.mxu1 }
 0x26e   : > { %3688 = vst [vmem:[#allocation2 + $0xfc] sm:$0xf] %v3687_v59  ;;  %14915 = vst [vmem:[#allocation19_spill] sm:$0xff] %v13765_v17  ;;  %v10000_v59 = vld [vmem:[#allocation2 + $0x38] sm:$0xff]  }
 0x270   : > { %v2339_v39 = vpop.permute.xlu1 %2338  ;;  %v2337_v14 = vpop.permute.xlu0 %2336  ;;  %v9982_v22 = vld [vmem:[#allocation2 + $0xf0] sm:$0xff]  }
 0x271   : > { %2598 = vst.msk [vmem:[#allocation2 + $0x204] sm:$0xf] %vm2472_vm15, %v2339_v39  ;;  %2597 = vst.msk [vmem:[#allocation2 + $0x200] sm:$0xf] %vm2472_vm15, %v2337_v14  ;;  %9540 = vmatprep.mubr.msk.bf16.mxu0 %vm4377_vm4, %v9982_v22  ;;  %v13767_v39 = vpop.f32.mrf.mxu0  ;;  %v10001_v14 = vld [vmem:[#allocation2 + $0x40] sm:$0xff]   ;;  %v10002_v22 = vld [vmem:[#allocation2 + $0x48] sm:$0xff]  }
 0x274   : > { %v3461_v24 = vpop.permute.xlu1 %3460  ;;  %v2341_v18 = vpop.permute.xlu0 %2340 }
 0x275   : > { %3785 = vst.msk [vmem:[#allocation2 + $0x200] sm:$0xf] %vm3596_vm0, %v3461_v24  ;;  %v9983_v57 = vld [vmem:[#allocation2 + $0xf8] sm:$0xff]   ;;  %v13769_v24 = vpop.f32.mrf.mxu1 }
 0x276   : > { %2599 = vst.msk [vmem:[#allocation2 + $0x208] sm:$0xf] %vm2472_vm15, %v2341_v18  ;;  %9541 = vmatmul.mubr.msk.bf16.gmra.mxu0 %vm4377_vm4, %v9983_v57  ;;  %14916 = vst [vmem:[#allocation20_spill] sm:$0xff] %v13769_v24  ;;  %v10003_v18 = vld [vmem:[#allocation2 + $0x50] sm:$0xff]   ;;  %v13772_v57 = vpop.f32.mrf.mxu0 }
 0x278   : > { %v3467_v40 = vpop.permute.xlu1 %3466  ;;  %v3463_v31 = vpop.permute.xlu0 %3462 }
 0x279   : > { %v3789_v30 = vsel %vm11049_vm1, %v3467_v40, %v3788_v15  ;;  %3786 = vst.msk [vmem:[#allocation2 + $0x204] sm:$0xf] %vm3596_vm0, %v3463_v31  ;;  %v13777_v15 = vpop.f32.mrf.mxu1  ;;  %v13779_v40 = vpop.f32.mrf.mxu0 }
 0x27a   : > { %3790 = vst [vmem:[#allocation2 + $0x20c] sm:$0xf] %v3789_v30  ;;  %14917 = vst [vmem:[#allocation21_spill] sm:$0xff] %v13777_v15  ;;  %v10004_v30 = vld [vmem:[#allocation2 + $0x48] sm:$0xff]  }
 0x27b   : > { %v13781_v31 = vpop.f32.mrf.mxu1 }
 0x27c   : > { %v2211_v51 = vpop.permute.xlu1 %2210  ;;  %v2209_v9 = vpop.permute.xlu0 %2208  ;;  %14918 = vst [vmem:[#allocation22_spill] sm:$0xff] %v13781_v31  ;;  %v10046_v31 = vld [vmem:[#allocation2 + $0xf8] sm:$0xff]  }
 0x27d   : > { %2534 = vst.msk [vmem:[#allocation2 + $0x104] sm:$0xf] %vm2472_vm15, %v2211_v51  ;;  %2533 = vst.msk [vmem:[#allocation2 + $0x100] sm:$0xf] %vm2472_vm15, %v2209_v9  ;;  %v10005_v51 = vld [vmem:[#allocation2 + $0x50] sm:$0xff]   ;;  %v10006_v9 = vld [vmem:[#allocation2 + $0x58] sm:$0xff]  }
 0x280   : > { %v2213_v61 = vpop.permute.xlu1 %2212  ;;  %v3465_v10 = vpop.permute.xlu0 %3464  ;;  %v9984_v27 = vld [vmem:[#allocation2 + $0x200] sm:$0xff]  }
 0x281   : > { %2535 = vst.msk [vmem:[#allocation2 + $0x108] sm:$0xf] %vm2472_vm15, %v2213_v61  ;;  %9608 = vmatprep.mubr.msk.bf16.mxu1 %vm4377_vm4, %v9984_v27  ;;  %v10007_v61 = vld [vmem:[#allocation2 + $0x60] sm:$0xff]   ;;  %v13788_v27 = vpop.f32.mrf.mxu1 }
 0x282   : > { %3787 = vst.msk [vmem:[#allocation2 + $0x208] sm:$0xf] %vm3596_vm0, %v3465_v10  ;;  %v13784_v10 = vpop.f32.mrf.mxu0  ;;  %14919 = vst [vmem:[#allocation23_spill] sm:$0xff] %v13788_v27 }
 0x284   : > { %v3335_v36 = vpop.permute.xlu1 %3334  ;;  %v3333_v42 = vpop.permute.xlu0 %3332 }
 0x285   : > { %3690 = vst.msk [vmem:[#allocation2 + $0x104] sm:$0xf] %vm3596_vm0, %v3335_v36  ;;  %3689 = vst.msk [vmem:[#allocation2 + $0x100] sm:$0xf] %vm3596_vm0, %v3333_v42  ;;  %v13791_v36 = vpop.f32.mrf.mxu0  ;;  %v13793_v42 = vpop.f32.mrf.mxu1 }
 0x286   : > { %14920 = vst [vmem:[#allocation24_spill] sm:$0xff] %v13793_v42  ;;  %v10042_v42 = vld [vmem:[#allocation2 + $0xe8] sm:$0xff]  }
 0x288   : > { %v3339_v11 = vpop.permute.xlu0 %3338  ;;  %v3337_v4 = vpop.permute.xlu1 %3336 }
 0x289   : > { %v9985_v35 = vld [vmem:[#allocation2 + $0x208] sm:$0xff]   ;;  %v3693_v43 = vsel %vm11049_vm1, %v3339_v11, %v3692_v16  ;;  %3691 = vst.msk [vmem:[#allocation2 + $0x108] sm:$0xf] %vm3596_vm0, %v3337_v4  ;;  %v10008_v16 = vld [vmem:[#allocation2 + $0x58] sm:$0xff]   ;;  %v10009_v11 = vld [vmem:[#allocation2 + $0x60] sm:$0xff]  }
 0x28a   : > { %3694 = vst [vmem:[#allocation2 + $0x10c] sm:$0xf] %v3693_v43  ;;  %9609 = vmatmul.mubr.msk.bf16.gmra.mxu1 %vm4377_vm4, %v9985_v35  ;;  %v10010_v4 = vld [vmem:[#allocation2 + $0x68] sm:$0xff]   ;;  %v10011_v35 = vld [vmem:[#allocation2 + $0x70] sm:$0xff]   ;;  %v13800_v43 = vpop.f32.mrf.mxu1 }
 0x28b   : > { %9614 = vmatprep.mubr.msk.bf16.mxu1 %vm4377_vm4, %v9987_v49  ;;  %v13795_v49 = vpop.f32.mrf.mxu0  ;;  %14921 = vst [vmem:[#allocation25_spill] sm:$0xff] %v13800_v43  ;;  %v10041_v43 = vld [vmem:[#allocation2 + $0xe0] sm:$0xff]  }
 0x28c   : > { %v9986_v63 = vld [vmem:[#allocation2 + $0x100] sm:$0xff]  }
 0x28d   : > { %9544 = vmatprep.mubr.msk.bf16.mxu0 %vm4377_vm4, %v9986_v63  ;;  %v13803_v63 = vpop.f32.mrf.mxu0  ;;  %v10049_v24 = vld [vmem:[#allocation2 + $0x100] sm:$0xff]  }
 0x291   : > { %v9989_v12 = vld [vmem:[#allocation2 + $0x108] sm:$0xff]  }
 0x292   : > { %9615 = vmatmul.mubr.msk.bf16.vlgmr.msra.gmra.mxu1 %vm4377_vm4, %v9988_v8  ;;  %9545 = vmatmul.mubr.msk.bf16.gmra.mxu0 %vm4377_vm4, %v9989_v12  ;;  %v13805_v8 = vpop.f32.mrf.mxu1  ;;  %v13807_v12 = vpop.f32.mrf.mxu0 }
 0x293   : > { %9618 = vmatprep.mubr.msk.bf16.mxu1 %vm4377_vm4, %v9990_v46  ;;  %9744 = vmatprep.mubr.msk.bf16.mxu0 %vm4377_vm4, %v9991_v20  ;;  %14922 = vst [vmem:[#allocation26_spill] sm:$0xff] %v13805_v8  ;;  %v10012_v46 = vld [vmem:[#allocation2 + $0x68] sm:$0xff]   ;;  %v10013_v20 = vld [vmem:[#allocation2 + $0x70] sm:$0xff]   ;;  %v10039_v8 = vld [vmem:[#allocation2 + $0xe0] sm:$0xff]  }
 0x29a   : > { %9619 = vmatmul.mubr.msk.bf16.gmra.mxu1 %vm4377_vm4, %v9992_v52  ;;  %9745 = vmatmul.mubr.msk.bf16.vlgmr.msra.gmra.mxu0 %vm4377_vm4, %v9994_v58  ;;  %v10014_v52 = vld [vmem:[#allocation2 + $0x78] sm:$0xff]   ;;  %v10015_v58 = vld [vmem:[#allocation2 + $0x80] sm:$0xff]  }
 0x29b   : > { %9622 = vmatprep.mubr.msk.bf16.mxu1 %vm4377_vm4, %v9993_v29  ;;  %9748 = vmatprep.mubr.msk.bf16.mxu0 %vm4377_vm4, %v9995_v13  ;;  %v13809_v29 = vpop.f32.mrf.mxu1  ;;  %v13815_v13 = vpop.f32.mrf.mxu0 }
 0x29c   : > { %14923 = vst [vmem:[#allocation27_spill] sm:$0xff] %v13809_v29  ;;  %v10037_v29 = vld [vmem:[#allocation2 + $0xd0] sm:$0xff]  }
 0x2a2   : > { %9623 = vmatmul.mubr.msk.bf16.gmra.mxu1 %vm4377_vm4, %v9996_v41  ;;  %9749 = vmatmul.mubr.msk.bf16.gmra.mxu0 %vm4377_vm4, %v9998_v2  ;;  %v13817_v41 = vpop.f32.mrf.mxu1  ;;  %v10016_v2 = vld [vmem:[#allocation2 + $0x78] sm:$0xff]  }
 0x2a3   : > { %9626 = vmatprep.mubr.msk.bf16.mxu1 %vm4377_vm4, %v9997_v25  ;;  %9752 = vmatprep.mubr.msk.bf16.mxu0 %vm4377_vm4, %v9999_v62  ;;  %14924 = vst [vmem:[#allocation28_spill] sm:$0xff] %v13817_v41  ;;  %v13819_v25 = vpop.f32.mrf.mxu0  ;;  %v10017_v62 = vld [vmem:[#allocation2 + $0x80] sm:$0xff]  }
 0x2aa   : > { %9627 = vmatmul.mubr.msk.bf16.gmra.mxu1 %vm4377_vm4, %v10000_v59  ;;  %9753 = vmatmul.mubr.msk.bf16.gmra.mxu0 %vm4377_vm4, %v10002_v22  ;;  %v10018_v59 = vld [vmem:[#allocation2 + $0x88] sm:$0xff]   ;;  %v10019_v22 = vld [vmem:[#allocation2 + $0x90] sm:$0xff]  }
 0x2ab   : > { %9630 = vmatprep.mubr.msk.bf16.mxu1 %vm4377_vm4, %v10001_v14  ;;  %9756 = vmatprep.mubr.msk.bf16.mxu0 %vm4377_vm4, %v10003_v18  ;;  %v13821_v14 = vpop.f32.mrf.mxu1  ;;  %v13824_v18 = vpop.f32.mrf.mxu0 }
 0x2ac   : > { %14925 = vst [vmem:[#allocation29_spill] sm:$0xff] %v13821_v14  ;;  %v10033_v14 = vld [vmem:[#allocation2 + $0xc0] sm:$0xff]  }
 0x2b2   : > { %9631 = vmatmul.mubr.msk.bf16.gmra.mxu1 %vm4377_vm4, %v10004_v30  ;;  %9757 = vmatmul.mubr.msk.bf16.gmra.mxu0 %vm4377_vm4, %v10006_v9  ;;  %v13828_v30 = vpop.f32.mrf.mxu1 }
 0x2b3   : > { %9634 = vmatprep.mubr.msk.bf16.mxu1 %vm4377_vm4, %v10005_v51  ;;  %9760 = vmatprep.mubr.msk.bf16.mxu0 %vm4377_vm4, %v10007_v61  ;;  %14926 = vst [vmem:[#allocation30_spill] sm:$0xff] %v13828_v30  ;;  %v13831_v51 = vpop.f32.mrf.mxu0  ;;  %v10020_v61 = vld [vmem:[#allocation2 + $0x88] sm:$0xff]  }
 0x2b4   : > { %v13833_v9 = vpop.f32.mrf.mxu1 }
 0x2b5   : > { %14927 = vst [vmem:[#allocation31_spill] sm:$0xff] %v13833_v9  ;;  %v10030_v9 = vld [vmem:[#allocation2 + $0xb8] sm:$0xff]  }
 0x2ba   : > { %9635 = vmatmul.mubr.msk.bf16.gmra.mxu1 %vm4377_vm4, %v10008_v16  ;;  %9761 = vmatmul.mubr.msk.bf16.gmra.mxu0 %vm4377_vm4, %v10010_v4  ;;  %v10021_v16 = vld [vmem:[#allocation2 + $0x90] sm:$0xff]   ;;  %v10023_v4 = vld [vmem:[#allocation2 + $0xa0] sm:$0xff]  }
 0x2bb   : > { %9638 = vmatprep.mubr.msk.bf16.mxu1 %vm4377_vm4, %v10009_v11  ;;  %9764 = vmatprep.mubr.msk.bf16.mxu0 %vm4377_vm4, %v10011_v35  ;;  %v10022_v11 = vld [vmem:[#allocation2 + $0x98] sm:$0xff]   ;;  %v13836_v35 = vpop.f32.mrf.mxu0 }
 0x2c2   : > { %9639 = vmatmul.mubr.msk.bf16.gmra.mxu1 %vm4377_vm4, %v10012_v46  ;;  %9765 = vmatmul.mubr.msk.bf16.gmra.mxu0 %vm4377_vm4, %v10014_v52  ;;  %v13840_v46 = vpop.f32.mrf.mxu1 }
 0x2c3   : > { %9642 = vmatprep.mubr.msk.bf16.mxu1 %vm4377_vm4, %v10013_v20  ;;  %9768 = vmatprep.mubr.msk.bf16.mxu0 %vm4377_vm4, %v10015_v58  ;;  %14928 = vst [vmem:[#allocation32_spill] sm:$0xff] %v13840_v46  ;;  %v13843_v20 = vpop.f32.mrf.mxu0  ;;  %v10024_v58 = vld [vmem:[#allocation2 + $0x98] sm:$0xff]   ;;  %v10029_v46 = vld [vmem:[#allocation2 + $0xb0] sm:$0xff]  }
 0x2c4   : > { %v13845_v52 = vpop.f32.mrf.mxu1 }
 0x2c5   : > { %14929 = vst [vmem:[#allocation33_spill] sm:$0xff] %v13845_v52 }
 0x2ca   : > { %9643 = vmatmul.mubr.msk.bf16.gmra.mxu1 %vm4377_vm4, %v10016_v2  ;;  %9769 = vmatmul.mubr.msk.bf16.gmra.mxu0 %vm4377_vm4, %v10018_v59  ;;  %v13847_v2 = vpop.f32.mrf.mxu0  ;;  %v10026_v59 = vld [vmem:[#allocation2 + $0xa8] sm:$0xff]  }
 0x2cb   : > { %9646 = vmatprep.mubr.msk.bf16.mxu1 %vm4377_vm4, %v10017_v62  ;;  %9772 = vmatprep.mubr.msk.bf16.mxu0 %vm4377_vm4, %v10019_v22  ;;  %v10025_v62 = vld [vmem:[#allocation2 + $0xa0] sm:$0xff]   ;;  %v13849_v22 = vpop.f32.mrf.mxu1 }
 0x2cc   : > { %14930 = vst [vmem:[#allocation34_spill] sm:$0xff] %v13849_v22 }
 0x2d2   : > { %9647 = vmatmul.mubr.msk.bf16.gmra.mxu1 %vm4377_vm4, %v10020_v61  ;;  %9773 = vmatmul.mubr.msk.bf16.gmra.mxu0 %vm4377_vm4, %v10022_v11  ;;  %v10027_v61 = vld [vmem:[#allocation2 + $0xb0] sm:$0xff]   ;;  %v13857_v11 = vpop.f32.mrf.mxu1 }
 0x2d3   : > { %9650 = vmatprep.mubr.msk.bf16.mxu1 %vm4377_vm4, %v10021_v16  ;;  %9776 = vmatprep.mubr.msk.bf16.mxu0 %vm4377_vm4, %v10023_v4  ;;  %v13855_v16 = vpop.f32.mrf.mxu0  ;;  %14931 = vst [vmem:[#allocation35_spill] sm:$0xff] %v13857_v11  ;;  %v10028_v4 = vld [vmem:[#allocation2 + $0xa8] sm:$0xff]   ;;  %v10032_v11 = vld [vmem:[#allocation2 + $0xb8] sm:$0xff]  }
 0x2d4   : > { %v13861_v30 = vpop.f32.mrf.mxu1 }
 0x2d5   : > { %v13859_v52 = vpop.f32.mrf.mxu0  ;;  %14932 = vst [vmem:[#allocation36_spill] sm:$0xff] %v13861_v30  ;;  %v10034_v30 = vld [vmem:[#allocation2 + $0xc8] sm:$0xff]  }
 0x2d7   : > { %v13864_v22 = vpop.f32.mrf.mxu0 }
 0x2da   : > { %9651 = vmatmul.mubr.msk.bf16.gmra.mxu1 %vm4377_vm4, %v10024_v58  ;;  %9777 = vmatmul.mubr.msk.bf16.gmra.mxu0 %vm4377_vm4, %v10026_v59  ;;  %v10031_v58 = vld [vmem:[#allocation2 + $0xc0] sm:$0xff]   ;;  %v13871_v59 = vpop.f32.mrf.mxu0 }
 0x2db   : > { %9654 = vmatprep.mubr.msk.bf16.mxu1 %vm4377_vm4, %v10025_v62  ;;  %9780 = vmatprep.mubr.msk.bf16.mxu0 %vm4377_vm4, %v10027_v61  ;;  %v13869_v62 = vpop.f32.mrf.mxu1 }
 0x2dc   : > { %14933 = vst [vmem:[#allocation37_spill] sm:$0xff] %v13869_v62  ;;  %v13876_v41 = vpop.f32.mrf.mxu0 }
 0x2dd   : > { %v13873_v61 = vpop.f32.mrf.mxu1 }
 0x2de   : > { %14934 = vst [vmem:[#allocation38_spill] sm:$0xff] %v13873_v61  ;;  %v10036_v61 = vld [vmem:[#allocation2 + $0xc8] sm:$0xff]  }
 0x2e2   : > { %9655 = vmatmul.mubr.msk.bf16.gmra.mxu1 %vm4377_vm4, %v10028_v4  ;;  %9781 = vmatmul.mubr.msk.bf16.gmra.mxu0 %vm4377_vm4, %v10030_v9  ;;  %v10035_v4 = vld [vmem:[#allocation2 + $0xd0] sm:$0xff]   ;;  %v13880_v9 = vpop.f32.mrf.mxu1 }
 0x2e3   : > { %9658 = vmatprep.mubr.msk.bf16.mxu1 %vm4377_vm4, %v10029_v46  ;;  %9784 = vmatprep.mubr.msk.bf16.mxu0 %vm4377_vm4, %v10031_v58  ;;  %14935 = vst [vmem:[#allocation39_spill] sm:$0xff] %v13880_v9  ;;  %v13883_v46 = vpop.f32.mrf.mxu0 }
 0x2e4   : > { %v13885_v58 = vpop.f32.mrf.mxu1 }
 0x2e5   : > { %14936 = vst [vmem:[#allocation40_spill] sm:$0xff] %v13885_v58  ;;  %v13887_v62 = vpop.f32.mrf.mxu0  ;;  %v10040_v58 = vld [vmem:[#allocation2 + $0xd8] sm:$0xff]  }
 0x2ea   : > { %9659 = vmatmul.mubr.msk.bf16.gmra.mxu1 %vm4377_vm4, %v10032_v11  ;;  %9785 = vmatmul.mubr.msk.bf16.gmra.mxu0 %vm4377_vm4, %v10034_v30  ;;  %v10038_v11 = vld [vmem:[#allocation2 + $0xd8] sm:$0xff]   ;;  %v13895_v30 = vpop.f32.mrf.mxu0 }
 0x2eb   : > { %9662 = vmatprep.mubr.msk.bf16.mxu1 %vm4377_vm4, %v10033_v14  ;;  %9788 = vmatprep.mubr.msk.bf16.mxu0 %vm4377_vm4, %v10035_v4  ;;  %v13892_v14 = vpop.f32.mrf.mxu1 }
 0x2ec   : > { %14937 = vst [vmem:[#allocation41_spill] sm:$0xff] %v13892_v14  ;;  %v13899_v9 = vpop.f32.mrf.mxu0  ;;  %v10045_v14 = vld [vmem:[#allocation2 + $0xf0] sm:$0xff]  }
 0x2ed   : > { %v13897_v4 = vpop.f32.mrf.mxu1 }
 0x2ee   : > { %14938 = vst [vmem:[#allocation42_spill] sm:$0xff] %v13897_v4  ;;  %v10044_v4 = vld [vmem:[#allocation2 + $0xe8] sm:$0xff]  }
 0x2ef   : > { %v13901_v27 = vpop.f32.mrf.mxu1 }
 0x2f0   : > { %14939 = vst [vmem:[#allocation43_spill] sm:$0xff] %v13901_v27 }
 0x2f2   : > { %9663 = vmatmul.mubr.msk.bf16.gmra.mxu1 %vm4377_vm4, %v10036_v61  ;;  %9789 = vmatmul.mubr.msk.bf16.gmra.mxu0 %vm4377_vm4, %v10038_v11  ;;  %v13909_v61 = vpop.f32.mrf.mxu1 }
 0x2f3   : > { %9666 = vmatprep.mubr.msk.bf16.mxu1 %vm4377_vm4, %v10037_v29  ;;  %9792 = vmatprep.mubr.msk.bf16.mxu0 %vm4377_vm4, %v10039_v8  ;;  %v10043_v29 = vld [vmem:[#allocation2 + $0xf0] sm:$0xff]   ;;  %v13907_v8 = vpop.f32.mrf.mxu0  ;;  %14940 = vst [vmem:[#allocation44_spill] sm:$0xff] %v13909_v61  ;;  %v10048_v61 = vld [vmem:[#allocation2 + $0xf8] sm:$0xff]  }
 0x2f4   : > { %v13913_v15 = vpop.f32.mrf.mxu1 }
 0x2f5   : > { %v13911_v11 = vpop.f32.mrf.mxu0  ;;  %14941 = vst [vmem:[#allocation45_spill] sm:$0xff] %v13913_v15  ;;  %v10050_v15 = vld [vmem:[#allocation2 + $0x108] sm:$0xff]  }
 0x2f7   : > { %v13916_v27 = vpop.f32.mrf.mxu0 }
 0x2fa   : > { %9667 = vmatmul.mubr.msk.bf16.gmra.mxu1 %vm4377_vm4, %v10040_v58  ;;  %9793 = vmatmul.mubr.msk.bf16.gmra.mxu0 %vm4377_vm4, %v10042_v42  ;;  %v10047_v58 = vld [vmem:[#allocation2 + $0x100] sm:$0xff]   ;;  %v13920_v42 = vpop.f32.mrf.mxu1 }
 0x2fb   : > { %9670 = vmatprep.mubr.msk.bf16.mxu1 %vm4377_vm4, %v10041_v43  ;;  %9796 = vmatprep.mubr.msk.bf16.mxu0 %vm4377_vm4, %v10043_v29  ;;  %14942 = vst [vmem:[#allocation46_spill] sm:$0xff] %v13920_v42  ;;  %v13923_v43 = vpop.f32.mrf.mxu0  ;;  %v309_v42 = vld [vmem:[#allocation2 + $0x210] sm:$0x1] }
 0x2fc   : > { %v13925_v29 = vpop.f32.mrf.mxu1  ;;  %v310_v55 = vsel %vm10262_vm2, 0, %v309_v42  ;;  %v10056_v42 = vld [vmem:[#allocation2 + $0x118] sm:$0xff]   ;;  %vm8419_vm2 = vcmask 519168  }
 0x2fd   : > { %14943 = vst [vmem:[#allocation47_spill] sm:$0xff] %v13925_v29  ;;  %v13928_v17 = vpop.f32.mrf.mxu0  ;;  %v10052_v29 = vld [vmem:[#allocation2 + $0x108] sm:$0xff]   ;;  %311 = vst [vmem:[#allocation2 + $0x210] sm:$0x1] %v310_v55 }
 0x302   : > { %9671 = vmatmul.mubr.msk.bf16.gmra.mxu1 %vm4377_vm4, %v10044_v4  ;;  %9797 = vmatmul.mubr.msk.bf16.gmra.mxu0 %vm4377_vm4, %v10046_v31  ;;  %v10051_v4 = vld [vmem:[#allocation2 + $0x110] sm:$0xff]   ;;  %v13932_v31 = vpop.f32.mrf.mxu1 }
 0x303   : > { %9674 = vmatprep.mubr.msk.bf16.mxu1 %vm4377_vm4, %v10045_v14  ;;  %9800 = vmatprep.mubr.msk.bf16.mxu0 %vm4377_vm4, %v10047_v58  ;;  %14944 = vst [vmem:[#allocation48_spill] sm:$0xff] %v13932_v31  ;;  %v13935_v14 = vpop.f32.mrf.mxu0  ;;  %v10058_v31 = vld [vmem:[#allocation2 + $0x128] sm:$0xff]  }
 0x304   : > { %v13937_v58 = vpop.f32.mrf.mxu1 }
 0x305   : > { %14945 = vst [vmem:[#allocation49_spill] sm:$0xff] %v13937_v58  ;;  %v13939_v54 = vpop.f32.mrf.mxu0 }
 0x306   : > { %v13943_v47 = vpop.f32.mrf.mxu1 }
 0x307   : > { %14946 = vst [vmem:[#allocation50_spill] sm:$0xff] %v13943_v47  ;;  %v13951_v58 = vpop.f32.mrf.mxu0 }
 0x308   : > { %v13953_v0 = vpop.f32.mrf.mxu1 }
 0x309   : > { %14947 = vst [vmem:[#allocation51_spill] sm:$0xff] %v13953_v0  ;;  %v13955_v47 = vpop.f32.mrf.mxu0  ;;  %v10061_v0 = vld [vmem:[#allocation2 + $0x130] sm:$0xff]  }
 0x30a   : > { %9675 = vmatmul.mubr.msk.bf16.gmra.mxu1 %vm4377_vm4, %v10048_v61  ;;  %9801 = vmatmul.mubr.msk.bf16.gmra.mxu0 %vm4377_vm4, %v10050_v15  ;;  %v10053_v61 = vld [vmem:[#allocation2 + $0x110] sm:$0xff]   ;;  %v10055_v15 = vld [vmem:[#allocation2 + $0x120] sm:$0xff]   ;;  %v13957_v55 = vpop.f32.mrf.mxu1 }
 0x30b   : > { %9678 = vmatprep.mubr.msk.bf16.mxu1 %vm4377_vm4, %v10049_v24  ;;  %9804 = vmatprep.mubr.msk.bf16.mxu0 %vm4377_vm4, %v10051_v4  ;;  %v414_v24 = vld [vmem:[#allocation2 + $0x21c] sm:$0x8]  ;;  %14948 = vst [vmem:[#allocation52_spill] sm:$0xff] %v13957_v55 }
 0x30c   : > { %v415_v4 = vsel %vm10629_vm11, 0, %v414_v24  ;;  %v10062_v55 = vld [vmem:[#allocation2 + $0x138] sm:$0xff]  }
 0x30d   : > { %416 = vst [vmem:[#allocation2 + $0x21c] sm:$0x8] %v415_v4  ;;  %v10060_v4 = vld [vmem:[#allocation2 + $0x128] sm:$0xff]  }
 0x312   : > { %9679 = vmatmul.mubr.msk.bf16.gmra.mxu1 %vm4377_vm4, %v10052_v29  ;;  %9805 = vmatmul.mubr.msk.bf16.gmra.mxu0 %vm4377_vm4, %v10054_v26  ;;  %v10057_v29 = vld [vmem:[#allocation2 + $0x120] sm:$0xff]   ;;  %v13965_v26 = vpop.f32.mrf.mxu1 }
 0x313   : > { %9682 = vmatprep.mubr.msk.bf16.mxu1 %vm4377_vm4, %v10053_v61  ;;  %9808 = vmatprep.mubr.msk.bf16.mxu0 %vm4377_vm4, %v10055_v15  ;;  %v13960_v61 = vpop.f32.mrf.mxu0  ;;  %14950 = vst [vmem:[#allocation54_spill] sm:$0xff] %v13965_v26 }
 0x314   : > { %14949 = vst [vmem:[#allocation53_spill] sm:$0xff] %v13960_v61  ;;  %v13969_v15 = vpop.f32.mrf.mxu1  ;;  %v10093_v61 = vld [vmem:[#allocation2 + $0x1b0] sm:$0xff]  }
 0x315   : > { %v13967_v24 = vpop.f32.mrf.mxu0  ;;  %14952 = vst [vmem:[#allocation56_spill] sm:$0xff] %v13969_v15  ;;  %v10064_v15 = vld [vmem:[#allocation2 + $0x138] sm:$0xff]  }
 0x316   : > { %14951 = vst [vmem:[#allocation55_spill] sm:$0xff] %v13967_v24 }
 0x317   : > { %v13972_v50 = vpop.f32.mrf.mxu0 }
 0x318   : > { %14953 = vst [vmem:[#allocation57_spill] sm:$0xff] %v13972_v50  ;;  %v10092_v50 = vld [vmem:[#allocation2 + $0x1a8] sm:$0xff]  }
 0x31a   : > { %9683 = vmatmul.mubr.msk.bf16.gmra.mxu1 %vm4377_vm4, %v10056_v42  ;;  %9809 = vmatmul.mubr.msk.bf16.gmra.mxu0 %vm4377_vm4, %v10058_v31  ;;  %v10063_v42 = vld [vmem:[#allocation2 + $0x140] sm:$0xff]   ;;  %v13976_v31 = vpop.f32.mrf.mxu1 }
 0x31b   : > { %9686 = vmatprep.mubr.msk.bf16.mxu1 %vm4377_vm4, %v10057_v29  ;;  %9812 = vmatprep.mubr.msk.bf16.mxu0 %vm4377_vm4, %v10059_v19  ;;  %14954 = vst [vmem:[#allocation58_spill] sm:$0xff] %v13976_v31  ;;  %v13979_v29 = vpop.f32.mrf.mxu0 }
 0x31c   : > { %14955 = vst [vmem:[#allocation59_spill] sm:$0xff] %v13979_v29  ;;  %v13981_v19 = vpop.f32.mrf.mxu1 }
 0x31d   : > { %14956 = vst [vmem:[#allocation60_spill] sm:$0xff] %v13981_v19  ;;  %v13983_v26 = vpop.f32.mrf.mxu0  ;;  %v10068_v19 = vld [vmem:[#allocation2 + $0x148] sm:$0xff]  }
 0x31e   : > { %14957 = vst [vmem:[#allocation61_spill] sm:$0xff] %v13983_v26 }
 0x322   : > { %9687 = vmatmul.mubr.msk.bf16.gmra.mxu1 %vm4377_vm4, %v10060_v4  ;;  %9813 = vmatmul.mubr.msk.bf16.gmra.mxu0 %vm4377_vm4, %v10062_v55  ;;  %v10066_v4 = vld [vmem:[#allocation2 + $0x148] sm:$0xff]   ;;  %v13991_v55 = vpop.f32.mrf.mxu0 }
 0x323   : > { %9690 = vmatprep.mubr.msk.bf16.mxu1 %vm4377_vm4, %v10061_v0  ;;  %9816 = vmatprep.mubr.msk.bf16.mxu0 %vm4377_vm4, %v10063_v42  ;;  %v13988_v0 = vpop.f32.mrf.mxu1  ;;  %14959 = vst [vmem:[#allocation63_spill] sm:$0xff] %v13991_v55 }
 0x324   : > { %14958 = vst [vmem:[#allocation62_spill] sm:$0xff] %v13988_v0  ;;  %v13995_v31 = vpop.f32.mrf.mxu0  ;;  %v10073_v0 = vld [vmem:[#allocation2 + $0x160] sm:$0xff]  }
 0x325   : > { %v13993_v42 = vpop.f32.mrf.mxu1  ;;  %14961 = vst [vmem:[#allocation65_spill] sm:$0xff] %v13995_v31  ;;  %v10090_v31 = vld [vmem:[#allocation2 + $0x1a8] sm:$0xff]  }
 0x326   : > { %14960 = vst [vmem:[#allocation64_spill] sm:$0xff] %v13993_v42  ;;  %v10072_v42 = vld [vmem:[#allocation2 + $0x158] sm:$0xff]  }
 0x327   : > { %v13997_v48 = vpop.f32.mrf.mxu1 }
 0x328   : > { %14962 = vst [vmem:[#allocation66_spill] sm:$0xff] %v13997_v48 }
 0x32a   : > { %9691 = vmatmul.mubr.msk.bf16.gmra.mxu1 %vm4377_vm4, %v10064_v15  ;;  %9817 = vmatmul.mubr.msk.bf16.gmra.mxu0 %vm4377_vm4, %v10066_v4  ;;  %v14005_v15 = vpop.f32.mrf.mxu1 }
 0x32b   : > { %9694 = vmatprep.mubr.msk.bf16.mxu1 %vm4377_vm4, %v10065_v38  ;;  %9820 = vmatprep.mubr.msk.bf16.mxu0 %vm4377_vm4, %v10067_v37  ;;  %v10071_v38 = vld [vmem:[#allocation2 + $0x160] sm:$0xff]   ;;  %v14003_v37 = vpop.f32.mrf.mxu0  ;;  %14964 = vst [vmem:[#allocation68_spill] sm:$0xff] %v14005_v15  ;;  %v10076_v15 = vld [vmem:[#allocation2 + $0x168] sm:$0xff]  }
 0x32c   : > { %14963 = vst [vmem:[#allocation67_spill] sm:$0xff] %v14003_v37  ;;  %v14009_v45 = vpop.f32.mrf.mxu1 }
 0x32d   : > { %v14007_v4 = vpop.f32.mrf.mxu0  ;;  %14966 = vst [vmem:[#allocation70_spill] sm:$0xff] %v14009_v45  ;;  %v10078_v45 = vld [vmem:[#allocation2 + $0x178] sm:$0xff]  }
 0x32e   : > { %14965 = vst [vmem:[#allocation69_spill] sm:$0xff] %v14007_v4 }
 0x32f   : > { %v14012_v48 = vpop.f32.mrf.mxu0 }
 0x330   : > { %14967 = vst [vmem:[#allocation71_spill] sm:$0xff] %v14012_v48 }
 0x332   : > { %9695 = vmatmul.mubr.msk.bf16.gmra.mxu1 %vm4377_vm4, %v10068_v19  ;;  %9821 = vmatmul.mubr.msk.bf16.gmra.mxu0 %vm4377_vm4, %v10070_v44  ;;  %v10075_v19 = vld [vmem:[#allocation2 + $0x170] sm:$0xff]   ;;  %v14016_v44 = vpop.f32.mrf.mxu1 }
 0x333   : > { %9698 = vmatprep.mubr.msk.bf16.mxu1 %vm4377_vm4, %v10069_v28  ;;  %9824 = vmatprep.mubr.msk.bf16.mxu0 %vm4377_vm4, %v10071_v38  ;;  %14968 = vst [vmem:[#allocation72_spill] sm:$0xff] %v14016_v44  ;;  %v14019_v28 = vpop.f32.mrf.mxu0 }
 0x334   : > { %14969 = vst [vmem:[#allocation73_spill] sm:$0xff] %v14019_v28  ;;  %v14021_v38 = vpop.f32.mrf.mxu1  ;;  %v10081_v28 = vld [vmem:[#allocation2 + $0x180] sm:$0xff]  }
 0x335   : > { %14970 = vst [vmem:[#allocation74_spill] sm:$0xff] %v14021_v38  ;;  %v14024_v4 = vpop.f32.mrf.mxu0  ;;  %v10080_v38 = vld [vmem:[#allocation2 + $0x178] sm:$0xff]  }
 0x336   : > { %14971 = vst [vmem:[#allocation75_spill] sm:$0xff] %v14024_v4 }
 0x33a   : > { %9699 = vmatmul.mubr.msk.bf16.gmra.mxu1 %vm4377_vm4, %v10072_v42  ;;  %9825 = vmatmul.mubr.msk.bf16.gmra.mxu0 %vm4377_vm4, %v10074_v5  ;;  %v10079_v42 = vld [vmem:[#allocation2 + $0x180] sm:$0xff]   ;;  %v14028_v5 = vpop.f32.mrf.mxu1 }
 0x33b   : > { %9702 = vmatprep.mubr.msk.bf16.mxu1 %vm4377_vm4, %v10073_v0  ;;  %9828 = vmatprep.mubr.msk.bf16.mxu0 %vm4377_vm4, %v10075_v19  ;;  %14972 = vst [vmem:[#allocation76_spill] sm:$0xff] %v14028_v5  ;;  %v14031_v0 = vpop.f32.mrf.mxu0 }
 0x33c   : > { %14973 = vst [vmem:[#allocation77_spill] sm:$0xff] %v14031_v0  ;;  %v14033_v19 = vpop.f32.mrf.mxu1 }
 0x33d   : > { %14974 = vst [vmem:[#allocation78_spill] sm:$0xff] %v14033_v19  ;;  %v14035_v44 = vpop.f32.mrf.mxu0 }
 0x33e   : > { %14975 = vst [vmem:[#allocation79_spill] sm:$0xff] %v14035_v44  ;;  %v10084_v44 = vld [vmem:[#allocation2 + $0x188] sm:$0xff]  }
 0x342   : > { %9703 = vmatmul.mubr.msk.bf16.gmra.mxu1 %vm4377_vm4, %v10076_v15  ;;  %9829 = vmatmul.mubr.msk.bf16.gmra.mxu0 %vm4377_vm4, %v10078_v45  ;;  %v10082_v15 = vld [vmem:[#allocation2 + $0x188] sm:$0xff]  }
 0x343   : > { %9706 = vmatprep.mubr.msk.bf16.mxu1 %vm4377_vm4, %v10077_v32  ;;  %9832 = vmatprep.mubr.msk.bf16.mxu0 %vm4377_vm4, %v10079_v42  ;;  %v10083_v32 = vld [vmem:[#allocation2 + $0x190] sm:$0xff]   ;;  %v14045_v42 = vpop.f32.mrf.mxu0 }
 0x344   : > { %14978 = vst [vmem:[#allocation82_spill] sm:$0xff] %v14045_v42  ;;  %v10088_v42 = vld [vmem:[#allocation2 + $0x198] sm:$0xff]  }
 0x345   : > { %v14051_v0 = vpop.f32.mrf.mxu0 }
 0x346   : > { %14981 = vst [vmem:[#allocation85_spill] sm:$0xff] %v14051_v0 }
 0x34a   : > { %v14037_v48 = vpop.f32.mrf.mxu1  ;;  %9707 = vmatmul.mubr.msk.bf16.gmra.mxu1 %vm4377_vm4, %v10080_v38  ;;  %9833 = vmatmul.mubr.msk.bf16.gmra.mxu0 %vm4377_vm4, %v10082_v15  ;;  %v10086_v38 = vld [vmem:[#allocation2 + $0x198] sm:$0xff]  }
 0x34b   : > { %14976 = vst [vmem:[#allocation80_spill] sm:$0xff] %v14037_v48  ;;  %9710 = vmatprep.mubr.msk.bf16.mxu1 %vm4377_vm4, %v10081_v28  ;;  %9836 = vmatprep.mubr.msk.bf16.mxu0 %vm4377_vm4, %v10083_v32  ;;  %v10085_v48 = vld [vmem:[#allocation2 + $0x190] sm:$0xff]   ;;  %v10087_v28 = vld [vmem:[#allocation2 + $0x1a0] sm:$0xff]  }
 0x34c   : > { %v14042_v45 = vpop.f32.mrf.mxu1 }
 0x34d   : > { %14977 = vst [vmem:[#allocation81_spill] sm:$0xff] %v14042_v45 }
 0x34e   : > { %v14047_v19 = vpop.f32.mrf.mxu1 }
 0x34f   : > { %14979 = vst [vmem:[#allocation83_spill] sm:$0xff] %v14047_v19 }
 0x350   : > { %v14049_v5 = vpop.f32.mrf.mxu1 }
 0x351   : > { %14980 = vst [vmem:[#allocation84_spill] sm:$0xff] %v14049_v5 }
 0x352   : > { %v9616_v4 = vpop.f32.mrf.mxu1  ;;  %9711 = vmatmul.mubr.msk.bf16.gmra.mxu1 %vm4377_vm4, %v10084_v44  ;;  %v14054_v15 = vpop.f32.mrf.mxu0  ;;  %9837 = vmatmul.mubr.msk.bf16.gmra.mxu0 %vm4377_vm4, %v10086_v38  ;;  %v10089_v44 = vld [vmem:[#allocation2 + $0x1a0] sm:$0xff]   ;;  %v10091_v38 = vld [vmem:[#allocation2 + $0x1b0] sm:$0xff]  }
 0x353   : > { %14982 = vst [vmem:[#allocation86_spill] sm:$0xff] %v14054_v15  ;;  %9714 = vmatprep.mubr.msk.bf16.mxu1 %vm4377_vm4, %v10085_v48  ;;  %9840 = vmatprep.mubr.msk.bf16.mxu0 %vm4377_vm4, %v10087_v28  ;;  %v5682_v15 = vadd.f32 %v9616_v4, %v13700_v60  ;;  %v14080_v60 = vld [vmem:[%s14826_s3] ss:$0 sm:$0xff] }
 0x354   : > { %v5673_v32 = vpop.f32.mrf.mxu1  ;;  %v14059_v19 = vpop.f32.mrf.mxu0 }
 0x355   : > { %14983 = vst [vmem:[#allocation87_spill] sm:$0xff] %v14059_v19 }
 0x356   : > { %v9617_v5 = vpop.f32.mrf.mxu1  ;;  %v14061_v45 = vpop.f32.mrf.mxu0 }
 0x357   : > { %14984 = vst [vmem:[#allocation88_spill] sm:$0xff] %v14061_v45  ;;  %v14071_v45 = vld [vmem:[%s14825_s2] ss:$0 sm:$0xff] }
 0x358   : > { %v5676_v0 = vpop.f32.mrf.mxu1  ;;  %v14063_v37 = vpop.f32.mrf.mxu0 }
 0x359   : > { %14985 = vst [vmem:[#allocation89_spill] sm:$0xff] %v14063_v37  ;;  %v5674_v37 = vadd.f32 %v5673_v32, %v13707_v34  ;;  %v5677_v34 = vadd.f32 %v5676_v0, %v13722_v56  ;;  %v10095_v0 = vld [vmem:[#allocation2 + $0x1c0] sm:$0xff]  }
 0x35a   : > { %v9620_v48 = vpop.f32.mrf.mxu1  ;;  %9715 = vmatmul.mubr.msk.bf16.gmra.mxu1 %vm4377_vm4, %v10088_v42  ;;  %v9746_v28 = vpop.f32.mrf.mxu0  ;;  %9841 = vmatmul.mubr.msk.bf16.gmra.mxu0 %vm4377_vm4, %v10090_v31  ;;  %v5685_v42 = vadd.f32 %v9617_v5, %v13713_v21  ;;  %v10094_v21 = vld [vmem:[#allocation2 + $0x1b8] sm:$0xff]  }
 0x35b   : > { %9718 = vmatprep.mubr.msk.bf16.mxu1 %vm4377_vm4, %v10089_v44  ;;  %v7383_v19 = vadd.f32 %v9746_v28, %v5682_v15  ;;  %9844 = vmatprep.mubr.msk.bf16.mxu0 %vm4377_vm4, %v10091_v38 }
 0x35c   : > { %v5689_v55 = vpop.f32.mrf.mxu1  ;;  %v6870_v4 = vpop.f32.mrf.mxu0 }
 0x35d   : > { %v7518_v44 = vmul.f32 %v14071_v45, %v7383_v19  ;;  %v7381_v26 = vadd.f32 %v6870_v4, %v5674_v37 }
 0x35e   : > { %v9621_v29 = vpop.f32.mrf.mxu1  ;;  %v9747_v31 = vpop.f32.mrf.mxu0 }
 0x35f   : > { %v7653_v15 = vadd.f32 %v14080_v60, %v7518_v44  ;;  %v7516_v32 = vmul.f32 %v14071_v45, %v7381_v26  ;;  %v7384_v38 = vadd.f32 %v9747_v31, %v5685_v42  ;;  %v5698_v44 = vadd.f32 %v9620_v48, %v13727_v33 }
 0x360   : > { %v5692_v28 = vpop.f32.mrf.mxu1  ;;  %v6873_v24 = vpop.f32.mrf.mxu0  ;;  %v5690_v26 = vadd.f32 %v5689_v55, %v13732_v6 }
 0x361   : > { %v7781_v5 = vmax.f32 %v7653_v15, 0.0  ;;  %v7651_v37 = vadd.f32 %v14080_v60, %v7516_v32  ;;  %v7519_v19 = vmul.f32 %v14071_v45, %v7384_v38  ;;  %v7382_v4 = vadd.f32 %v6873_v24, %v5677_v34 }
 0x362   : > { %v9624_v56 = vpop.f32.mrf.mxu1  ;;  %9719 = vmatmul.mubr.msk.bf16.gmra.mxu1 %vm4377_vm4, %v10092_v50  ;;  %v9750_v42 = vpop.f32.mrf.mxu0  ;;  %9845 = vmatmul.mubr.msk.bf16.gmra.mxu0 %vm4377_vm4, %v10094_v21  ;;  %v5701_v50 = vadd.f32 %v9621_v29, %v13739_v23 }
 0x363   : > { %9722 = vmatprep.mubr.msk.bf16.mxu1 %vm4377_vm4, %v10093_v61  ;;  %v9160_v31 = vpack.c.bf16 %v7781_v5, %v7781_v5  ;;  %v7779_v15 = vmax.f32 %v7651_v37, 0.0  ;;  %v7654_v32 = vadd.f32 %v14080_v60, %v7519_v19  ;;  %v7517_v24 = vmul.f32 %v14071_v45, %v7382_v4  ;;  %9848 = vmatprep.mubr.msk.bf16.mxu0 %vm4377_vm4, %v10095_v0 }
 0x364   : > { %v5705_v34 = vpop.f32.mrf.mxu1  ;;  %v7387_v33 = vadd.f32 %v9750_v42, %v5698_v44  ;;  %v6886_v48 = vpop.f32.mrf.mxu0  ;;  %v5693_v5 = vadd.f32 %v5692_v28, %v13744_v7  ;;  %v10096_v42 = vld [vmem:[#allocation2 + $0x1b8] sm:$0xff]   ;;  %v10098_v7 = vld [vmem:[#allocation2 + $0x1c8] sm:$0xff]  }
 0x365   : > { %8422 = vst.msk [vmem:[%s14103_s29 + $0x8] sm:$0xf] %vm8419_vm2, %v9160_v31  ;;  %v9158_v6 = vpack.c.bf16 %v7779_v15, %v7779_v15  ;;  %v7782_v61 = vmax.f32 %v7654_v32, 0.0  ;;  %v7652_v55 = vadd.f32 %v14080_v60, %v7517_v24  ;;  %v7385_v38 = vadd.f32 %v6886_v48, %v5690_v26  ;;  %v10097_v32 = vld [vmem:[#allocation2 + $0x1c0] sm:$0xff]  }
 0x366   : > { %v9625_v21 = vpop.f32.mrf.mxu1  ;;  %v7522_v37 = vmul.f32 %v14071_v45, %v7387_v33  ;;  %v9751_v23 = vpop.f32.mrf.mxu0  ;;  %v5714_v31 = vadd.f32 %v9624_v56, %v13751_v3 }
 0x367   : > { %8420 = vst.msk [vmem:[%s14103_s29] sm:$0xf] %vm8419_vm2, %v9158_v6  ;;  %v9161_v29 = vpack.c.bf16 %v7782_v61, %v7782_v61  ;;  %v7780_v19 = vmax.f32 %v7652_v55, 0.0  ;;  %v7520_v4 = vmul.f32 %v14071_v45, %v7385_v38  ;;  %v7388_v0 = vadd.f32 %v9751_v23, %v5701_v50  ;;  %v10099_v50 = vld [vmem:[#allocation2 + $0x1d0] sm:$0xff]  }
 0x368   : > { %v5708_v44 = vpop.f32.mrf.mxu1  ;;  %v7657_v26 = vadd.f32 %v14080_v60, %v7522_v37  ;;  %v6889_v15 = vpop.f32.mrf.mxu0 }
 0x369   : > { %8423 = vst.msk [vmem:[%s14103_s29 + $0xc] sm:$0xf] %vm8419_vm2, %v9161_v29  ;;  %v9159_v28 = vpack.c.bf16 %v7780_v19, %v7780_v19  ;;  %v7655_v24 = vadd.f32 %v14080_v60, %v7520_v4  ;;  %v7523_v33 = vmul.f32 %v14071_v45, %v7388_v0  ;;  %v7386_v48 = vadd.f32 %v6889_v15, %v5693_v5 }
 0x36a   : > { %v9628_v6 = vpop.f32.mrf.mxu1  ;;  %9723 = vmatmul.mubr.msk.bf16.gmra.mxu1 %vm4377_vm4, %v10096_v42  ;;  %v7785_v61 = vmax.f32 %v7657_v26, 0.0  ;;  %v9754_v3 = vpop.f32.mrf.mxu0  ;;  %9849 = vmatmul.mubr.msk.bf16.gmra.mxu0 %vm4377_vm4, %v10098_v7  ;;  %v5706_v29 = vadd.f32 %v5705_v34, %v13755_v1  ;;  %v5717_v19 = vadd.f32 %v9625_v21, %v13763_v53 }
 0x36b   : > { %9726 = vmatprep.mubr.msk.bf16.mxu1 %vm4377_vm4, %v10097_v32  ;;  %8421 = vst.msk [vmem:[%s14103_s29 + $0x4] sm:$0xf] %vm8419_vm2, %v9159_v28  ;;  %v7783_v56 = vmax.f32 %v7655_v24, 0.0  ;;  %v7658_v55 = vadd.f32 %v14080_v60, %v7523_v33  ;;  %v7521_v38 = vmul.f32 %v14071_v45, %v7386_v48  ;;  %v7391_v37 = vadd.f32 %v9754_v3, %v5714_v31  ;;  %v10100_v33 = vld [vmem:[#allocation2 + $0x1c8] sm:$0xff]   ;;  %v10101_v3 = vld [vmem:[#allocation2 + $0x1d0] sm:$0xff]  }
 0x36c   : > { %v5721_v5 = vpop.f32.mrf.mxu1  ;;  %9852 = vmatprep.mubr.msk.bf16.mxu0 %vm4377_vm4, %v10099_v50  ;;  %v9164_v23 = vpack.c.bf16 %v7785_v61, %v7785_v61  ;;  %v6902_v4 = vpop.f32.mrf.mxu0  ;;  %v5709_v31 = vadd.f32 %v5708_v44, %v13767_v39  ;;  %v5730_v48 = vadd.f32 %v9628_v6, %v13772_v57 }
 0x36d   : > { %v9162_v0 = vpack.c.bf16 %v7783_v56, %v7783_v56  ;;  %v7786_v42 = vmax.f32 %v7658_v55, 0.0  ;;  %v7656_v26 = vadd.f32 %v14080_v60, %v7521_v38  ;;  %v7526_v15 = vmul.f32 %v14071_v45, %v7391_v37  ;;  %v10102_v56 = vld [vmem:[#allocation2 + $0x1d8] sm:$0xff]  }
 0x36e   : > { %v9629_v32 = vpop.f32.mrf.mxu1  ;;  %8426 = vst.msk [vmem:[%s14103_s29 + $0x18] sm:$0xf] %vm8419_vm2, %v9164_v23  ;;  %v7389_v7 = vadd.f32 %v6902_v4, %v5706_v29  ;;  %v9755_v28 = vpop.f32.mrf.mxu0  ;;  %v10103_v23 = vld [vmem:[#allocation2 + $0x1e0] sm:$0xff]   ;;  %v5722_v57 = vadd.f32 %v5721_v5, %v13779_v40 }
 0x36f   : > { %8424 = vst.msk [vmem:[%s14103_s29 + $0x10] sm:$0xf] %vm8419_vm2, %v9162_v0  ;;  %v9165_v1 = vpack.c.bf16 %v7786_v42, %v7786_v42  ;;  %v7784_v34 = vmax.f32 %v7656_v26, 0.0  ;;  %v7661_v53 = vadd.f32 %v14080_v60, %v7526_v15  ;;  %v7392_v21 = vadd.f32 %v9755_v28, %v5717_v19 }
 0x370   : > { %v5724_v24 = vpop.f32.mrf.mxu1  ;;  %v7524_v50 = vmul.f32 %v14071_v45, %v7389_v7  ;;  %v6905_v61 = vpop.f32.mrf.mxu0 }
 0x371   : > { %8427 = vst.msk [vmem:[%s14103_s29 + $0x1c] sm:$0xf] %vm8419_vm2, %v9165_v1  ;;  %v9163_v39 = vpack.c.bf16 %v7784_v34, %v7784_v34  ;;  %v7789_v44 = vmax.f32 %v7661_v53, 0.0  ;;  %v7527_v55 = vmul.f32 %v14071_v45, %v7392_v21  ;;  %v7390_v38 = vadd.f32 %v6905_v61, %v5709_v31 }
 0x372   : > { %v9632_v37 = vpop.f32.mrf.mxu1  ;;  %9727 = vmatmul.mubr.msk.bf16.gmra.mxu1 %vm4377_vm4, %v10100_v33  ;;  %v7659_v6 = vadd.f32 %v14080_v60, %v7524_v50  ;;  %v9758_v29 = vpop.f32.mrf.mxu0  ;;  %9853 = vmatmul.mubr.msk.bf16.gmra.mxu0 %vm4377_vm4, %v10102_v56  ;;  %v5733_v53 = vadd.f32 %v9629_v32, %v13784_v10  ;;  %v5725_v21 = vadd.f32 %v5724_v24, %v13791_v36  ;;  %v10106_v10 = vld [vmem:[#allocation2 + $0x1e8] sm:$0xff]  }
 0x373   : > { %9730 = vmatprep.mubr.msk.bf16.mxu1 %vm4377_vm4, %v10101_v3  ;;  %8425 = vst.msk [vmem:[%s14103_s29 + $0x14] sm:$0xf] %vm8419_vm2, %v9163_v39  ;;  %v9168_v19 = vpack.c.bf16 %v7789_v44, %v7789_v44  ;;  %v7662_v4 = vadd.f32 %v14080_v60, %v7527_v55  ;;  %v7525_v0 = vmul.f32 %v14071_v45, %v7390_v38  ;;  %v10104_v39 = vld [vmem:[#allocation2 + $0x1d8] sm:$0xff]  }
 0x374   : > { %v7395_v42 = vadd.f32 %v9758_v29, %v5730_v48  ;;  %v5737_v26 = vpop.f32.mrf.mxu1  ;;  %9856 = vmatprep.mubr.msk.bf16.mxu0 %vm4377_vm4, %v10103_v23  ;;  %v7787_v15 = vmax.f32 %v7659_v6, 0.0  ;;  %v6918_v40 = vpop.f32.mrf.mxu0  ;;  %v5746_v44 = vadd.f32 %v9632_v37, %v13795_v49  ;;  %v10105_v23 = vld [vmem:[#allocation2 + $0x1e0] sm:$0xff]   ;;  %v10107_v29 = vld [vmem:[#allocation2 + $0x1f0] sm:$0xff]  }
 0x375   : > { %8430 = vst.msk [vmem:[%s14103_s29 + $0x28] sm:$0xf] %vm8419_vm2, %v9168_v19  ;;  %v7790_v5 = vmax.f32 %v7662_v4, 0.0  ;;  %v7660_v31 = vadd.f32 %v14080_v60, %v7525_v0  ;;  %v7393_v28 = vadd.f32 %v6918_v40, %v5722_v57  ;;  %v5738_v19 = vadd.f32 %v5737_v26, %v13803_v63 }
 0x376   : > { %v7530_v7 = vmul.f32 %v14071_v45, %v7395_v42  ;;  %v9633_v1 = vpop.f32.mrf.mxu1  ;;  %v9166_v34 = vpack.c.bf16 %v7787_v15, %v7787_v15  ;;  %v9759_v33 = vpop.f32.mrf.mxu0 }
 0x377   : > { %v9169_v48 = vpack.c.bf16 %v7790_v5, %v7790_v5  ;;  %v7788_v50 = vmax.f32 %v7660_v31, 0.0  ;;  %v7528_v3 = vmul.f32 %v14071_v45, %v7393_v28  ;;  %v7396_v55 = vadd.f32 %v9759_v33, %v5733_v53 }
 0x378   : > { %v7665_v61 = vadd.f32 %v14080_v60, %v7530_v7  ;;  %v5740_v56 = vpop.f32.mrf.mxu1  ;;  %8428 = vst.msk [vmem:[%s14103_s29 + $0x20] sm:$0xf] %vm8419_vm2, %v9166_v34  ;;  %v6921_v38 = vpop.f32.mrf.mxu0  ;;  %v5749_v63 = vadd.f32 %v9633_v1, %v13807_v12 }
 0x379   : > { %8431 = vst.msk [vmem:[%s14103_s29 + $0x2c] sm:$0xf] %vm8419_vm2, %v9169_v48  ;;  %v9167_v36 = vpack.c.bf16 %v7788_v50, %v7788_v50  ;;  %v7663_v24 = vadd.f32 %v14080_v60, %v7528_v3  ;;  %v7394_v57 = vadd.f32 %v6921_v38, %v5725_v21  ;;  %v7531_v49 = vmul.f32 %v14071_v45, %v7396_v55  ;;  %v10108_v3 = vld [vmem:[#allocation2 + $0x1e8] sm:$0xff]  }
 0x37a   : > { %v7793_v32 = vmax.f32 %v7665_v61, 0.0  ;;  %v9636_v6 = vpop.f32.mrf.mxu1  ;;  %9731 = vmatmul.mubr.msk.bf16.gmra.mxu1 %vm4377_vm4, %v10104_v39  ;;  %v9762_v37 = vpop.f32.mrf.mxu0  ;;  %9857 = vmatmul.mubr.msk.bf16.gmra.mxu0 %vm4377_vm4, %v10106_v10  ;;  %v10110_v10 = vld [vmem:[#allocation2 + $0x1f8] sm:$0xff]  }
 0x37b   : > { %9734 = vmatprep.mubr.msk.bf16.mxu1 %vm4377_vm4, %v10105_v23  ;;  %8429 = vst.msk [vmem:[%s14103_s29 + $0x24] sm:$0xf] %vm8419_vm2, %v9167_v36  ;;  %v7791_v0 = vmax.f32 %v7663_v24, 0.0  ;;  %v7529_v42 = vmul.f32 %v14071_v45, %v7394_v57  ;;  %v7399_v15 = vadd.f32 %v9762_v37, %v5746_v44  ;;  %9860 = vmatprep.mubr.msk.bf16.mxu0 %vm4377_vm4, %v10107_v29  ;;  %v10109_v23 = vld [vmem:[#allocation2 + $0x1f0] sm:$0xff]  }
 0x37c   : > { %v9172_v4 = vpack.c.bf16 %v7793_v32, %v7793_v32  ;;  %v5753_v40 = vpop.f32.mrf.mxu1  ;;  %v7666_v26 = vadd.f32 %v14080_v60, %v7531_v49  ;;  %v6934_v5 = vpop.f32.mrf.mxu0  ;;  %v5741_v44 = vadd.f32 %v5740_v56, %v13815_v13  ;;  %v5762_v55 = vadd.f32 %v9636_v6, %v13819_v25 }
 0x37d   : > { %v9170_v31 = vpack.c.bf16 %v7791_v0, %v7791_v0  ;;  %v7664_v7 = vadd.f32 %v14080_v60, %v7529_v42  ;;  %v7534_v28 = vmul.f32 %v14071_v45, %v7399_v15  ;;  %v7397_v34 = vadd.f32 %v6934_v5, %v5738_v19  ;;  %v10111_v19 = vld [vmem:[#allocation2 + $0x200] sm:$0xff]  }
 0x37e   : > { %8434 = vst.msk [vmem:[%s14103_s29 + $0x38] sm:$0xf] %vm8419_vm2, %v9172_v4  ;;  %v9637_v53 = vpop.f32.mrf.mxu1  ;;  %v7794_v21 = vmax.f32 %v7666_v26, 0.0  ;;  %v9763_v33 = vpop.f32.mrf.mxu0  ;;  %v5754_v13 = vadd.f32 %v5753_v40, %v13824_v18 }
 0x37f   : > { %8432 = vst.msk [vmem:[%s14103_s29 + $0x30] sm:$0xf] %vm8419_vm2, %v9170_v31  ;;  %v7792_v48 = vmax.f32 %v7664_v7, 0.0  ;;  %v7669_v50 = vadd.f32 %v14080_v60, %v7534_v28  ;;  %v7532_v12 = vmul.f32 %v14071_v45, %v7397_v34  ;;  %v7400_v1 = vadd.f32 %v9763_v33, %v5749_v63 }
 0x380   : > { %v5756_v61 = vpop.f32.mrf.mxu1  ;;  %v9173_v39 = vpack.c.bf16 %v7794_v21, %v7794_v21  ;;  %v6937_v38 = vpop.f32.mrf.mxu0  ;;  %v5765_v42 = vadd.f32 %v9637_v53, %v13831_v51 }
 0x381   : > { %v9171_v36 = vpack.c.bf16 %v7792_v48, %v7792_v48  ;;  %v7797_v32 = vmax.f32 %v7669_v50, 0.0  ;;  %v7667_v24 = vadd.f32 %v14080_v60, %v7532_v12  ;;  %v7535_v57 = vmul.f32 %v14071_v45, %v7400_v1  ;;  %v10112_v50 = vld [vmem:[#allocation2 + $0x1f8] sm:$0xff]   ;;  %v10114_v12 = vld [vmem:[#allocation2 + $0x210] sm:$0xff]  }
 0x382   : > { %v9640_v29 = vpop.f32.mrf.mxu1  ;;  %9735 = vmatmul.mubr.msk.bf16.gmra.mxu1 %vm4377_vm4, %v10108_v3  ;;  %8435 = vst.msk [vmem:[%s14103_s29 + $0x3c] sm:$0xf] %vm8419_vm2, %v9173_v39  ;;  %v7398_v25 = vadd.f32 %v6937_v38, %v5741_v44  ;;  %v9766_v56 = vpop.f32.mrf.mxu0  ;;  %9861 = vmatmul.mubr.msk.bf16.gmra.mxu0 %vm4377_vm4, %v10110_v10  ;;  %v5757_v7 = vadd.f32 %v5756_v61, %v13836_v35  ;;  %v10113_v39 = vld [vmem:[#allocation2 + $0x208] sm:$0xff]  }
 0x383   : > { %9738 = vmatprep.mubr.msk.bf16.mxu1 %vm4377_vm4, %v10109_v23  ;;  %8433 = vst.msk [vmem:[%s14103_s29 + $0x34] sm:$0xf] %vm8419_vm2, %v9171_v36  ;;  %v9176_v6 = vpack.c.bf16 %v7797_v32, %v7797_v32  ;;  %v7795_v49 = vmax.f32 %v7667_v24, 0.0  ;;  %v7670_v37 = vadd.f32 %v14080_v60, %v7535_v57  ;;  %v7403_v4 = vadd.f32 %v9766_v56, %v5762_v55 }
 0x384   : > { %v5769_v0 = vpop.f32.mrf.mxu1  ;;  %9864 = vmatprep.mubr.msk.bf16.mxu0 %vm4377_vm4, %v10111_v19  ;;  %v7533_v18 = vmul.f32 %v14071_v45, %v7398_v25  ;;  %v6950_v15 = vpop.f32.mrf.mxu0  ;;  %v5778_v10 = vadd.f32 %v9640_v29, %v13843_v20 }
 0x385   : > { %8438 = vst.msk [vmem:[%s14103_s29 + $0x48] sm:$0xf] %vm8419_vm2, %v9176_v6  ;;  %v9174_v40 = vpack.c.bf16 %v7795_v49, %v7795_v49  ;;  %v7798_v63 = vmax.f32 %v7670_v37, 0.0  ;;  %v7538_v26 = vmul.f32 %v14071_v45, %v7403_v4  ;;  %v7401_v5 = vadd.f32 %v6950_v15, %v5754_v13  ;;  %v10115_v15 = vld [vmem:[#allocation2 + $0x218] sm:$0xff]  }
 0x386   : > { %v9641_v31 = vpop.f32.mrf.mxu1  ;;  %v7668_v28 = vadd.f32 %v14080_v60, %v7533_v18  ;;  %v9767_v34 = vpop.f32.mrf.mxu0  ;;  %v5770_v36 = vadd.f32 %v5769_v0, %v13847_v2 }
 0x387   : > { %8436 = vst.msk [vmem:[%s14103_s29 + $0x40] sm:$0xf] %vm8419_vm2, %v9174_v40  ;;  %v9177_v51 = vpack.c.bf16 %v7798_v63, %v7798_v63  ;;  %v7673_v53 = vadd.f32 %v14080_v60, %v7538_v26  ;;  %v7536_v21 = vmul.f32 %v14071_v45, %v7401_v5  ;;  %v7404_v33 = vadd.f32 %v9767_v34, %v5765_v42 }
 0x388   : > { %v5772_v48 = vpop.f32.mrf.mxu1  ;;  %v7796_v1 = vmax.f32 %v7668_v28, 0.0  ;;  %v6953_v3 = vpop.f32.mrf.mxu0  ;;  %v5781_v56 = vadd.f32 %v9641_v31, %v13855_v16 }
 0x389   : > { %8439 = vst.msk [vmem:[%s14103_s29 + $0x4c] sm:$0xf] %vm8419_vm2, %v9177_v51  ;;  %v7801_v35 = vmax.f32 %v7673_v53, 0.0  ;;  %v7671_v61 = vadd.f32 %v14080_v60, %v7536_v21  ;;  %v7539_v44 = vmul.f32 %v14071_v45, %v7404_v33  ;;  %v7402_v55 = vadd.f32 %v6953_v3, %v5757_v7 }
 0x38a   : > { %v9644_v38 = vpop.f32.mrf.mxu1  ;;  %9739 = vmatmul.mubr.msk.bf16.gmra.mxu1 %vm4377_vm4, %v10112_v50  ;;  %v9175_v23 = vpack.c.bf16 %v7796_v1, %v7796_v1  ;;  %v9770_v32 = vpop.f32.mrf.mxu0  ;;  %9865 = vmatmul.mubr.msk.bf16.gmra.mxu0 %vm4377_vm4, %v10113_v39  ;;  %v5773_v0 = vadd.f32 %v5772_v48, %v13859_v52 }
 0x38b   : > { %v9180_v24 = vpack.c.bf16 %v7801_v35, %v7801_v35  ;;  %v7799_v57 = vmax.f32 %v7671_v61, 0.0  ;;  %v7674_v19 = vadd.f32 %v14080_v60, %v7539_v44  ;;  %v7537_v13 = vmul.f32 %v14071_v45, %v7402_v55  ;;  %9868 = vmatprep.mubr.msk.bf16.mxu0 %vm4377_vm4, %v10114_v12 }
 0x38c   : > { %v5785_v25 = vpop.f32.mrf.mxu1  ;;  %8437 = vst.msk [vmem:[%s14103_s29 + $0x44] sm:$0xf] %vm8419_vm2, %v9175_v23  ;;  %v7407_v20 = vadd.f32 %v9770_v32, %v5778_v10  ;;  %v6966_v29 = vpop.f32.mrf.mxu0  ;;  %v5794_v31 = vadd.f32 %v9644_v38, %v13864_v22 }
 0x38d   : > { %8442 = vst.msk [vmem:[%s14103_s29 + $0x58] sm:$0xf] %vm8419_vm2, %v9180_v24  ;;  %v9178_v2 = vpack.c.bf16 %v7799_v57, %v7799_v57  ;;  %v7802_v6 = vmax.f32 %v7674_v19, 0.0  ;;  %v7672_v49 = vadd.f32 %v14080_v60, %v7537_v13  ;;  %v7405_v37 = vadd.f32 %v6966_v29, %v5770_v36 }
 0x38e   : > { %v9645_v4 = vpop.f32.mrf.mxu1  ;;  %v7542_v42 = vmul.f32 %v14071_v45, %v7407_v20  ;;  %v9771_v18 = vpop.f32.mrf.mxu0  ;;  %v5786_v35 = vadd.f32 %v5785_v25, %v13871_v59 }
 0x38f   : > { %8440 = vst.msk [vmem:[%s14103_s29 + $0x50] sm:$0xf] %vm8419_vm2, %v9178_v2  ;;  %v9181_v16 = vpack.c.bf16 %v7802_v6, %v7802_v6  ;;  %v7800_v40 = vmax.f32 %v7672_v49, 0.0  ;;  %v7540_v63 = vmul.f32 %v14071_v45, %v7405_v37  ;;  %v7408_v26 = vadd.f32 %v9771_v18, %v5781_v56 }
 0x390   : > { %v5788_v5 = vpop.f32.mrf.mxu1  ;;  %v7677_v7 = vadd.f32 %v14080_v60, %v7542_v42  ;;  %v6969_v28 = vpop.f32.mrf.mxu0  ;;  %v5797_v61 = vadd.f32 %v9645_v4, %v13876_v41 }
 0x391   : > { %8443 = vst.msk [vmem:[%s14103_s29 + $0x5c] sm:$0xf] %vm8419_vm2, %v9181_v16  ;;  %v9179_v52 = vpack.c.bf16 %v7800_v40, %v7800_v40  ;;  %v7675_v34 = vadd.f32 %v14080_v60, %v7540_v63  ;;  %v7543_v51 = vmul.f32 %v14071_v45, %v7408_v26  ;;  %v7406_v53 = vadd.f32 %v6969_v28, %v5773_v0 }
 0x392   : > { %v9648_v21 = vpop.f32.mrf.mxu1  ;;  %v7805_v33 = vmax.f32 %v7677_v7, 0.0  ;;  %v9774_v48 = vpop.f32.mrf.mxu0  ;;  %9869 = vmatmul.mubr.msk.bf16.gmra.mxu0 %vm4377_vm4, %v10115_v15  ;;  %v5789_v32 = vadd.f32 %v5788_v5, %v13883_v46 }
 0x393   : > { %8441 = vst.msk [vmem:[%s14103_s29 + $0x54] sm:$0xf] %vm8419_vm2, %v9179_v52  ;;  %v7803_v22 = vmax.f32 %v7675_v34, 0.0  ;;  %v7678_v50 = vadd.f32 %v14080_v60, %v7543_v51  ;;  %v7541_v12 = vmul.f32 %v14071_v45, %v7406_v53  ;;  %v7411_v1 = vadd.f32 %v9774_v48, %v5794_v31 }
 0x394   : > { %v5801_v3 = vpop.f32.mrf.mxu1  ;;  %v9184_v39 = vpack.c.bf16 %v7805_v33, %v7805_v33  ;;  %v6982_v44 = vpop.f32.mrf.mxu0  ;;  %v5810_v56 = vadd.f32 %v9648_v21, %v13887_v62 }
 0x395   : > { %v9182_v55 = vpack.c.bf16 %v7803_v22, %v7803_v22  ;;  %v7806_v38 = vmax.f32 %v7678_v50, 0.0  ;;  %v7676_v23 = vadd.f32 %v14080_v60, %v7541_v12  ;;  %v7546_v10 = vmul.f32 %v14071_v45, %v7411_v1 }
 0x396   : > { %v9649_v36 = vpop.f32.mrf.mxu1  ;;  %8446 = vst.msk [vmem:[%s14103_s29 + $0x68] sm:$0xf] %vm8419_vm2, %v9184_v39  ;;  %v7409_v24 = vadd.f32 %v6982_v44, %v5786_v35  ;;  %v9775_v57 = vpop.f32.mrf.mxu0  ;;  %v5802_v4 = vadd.f32 %v5801_v3, %v13895_v30 }
 0x397   : > { %8444 = vst.msk [vmem:[%s14103_s29 + $0x60] sm:$0xf] %vm8419_vm2, %v9182_v55  ;;  %v9185_v59 = vpack.c.bf16 %v7806_v38, %v7806_v38  ;;  %v7804_v19 = vmax.f32 %v7676_v23, 0.0  ;;  %v7681_v41 = vadd.f32 %v14080_v60, %v7546_v10  ;;  %v7412_v13 = vadd.f32 %v9775_v57, %v5797_v61 }
 0x398   : > { %v5804_v25 = vpop.f32.mrf.mxu1  ;;  %v7544_v20 = vmul.f32 %v14071_v45, %v7409_v24  ;;  %v6985_v29 = vpop.f32.mrf.mxu0  ;;  %v5813_v34 = vadd.f32 %v9649_v36, %v13899_v9 }
 0x399   : > { %8447 = vst.msk [vmem:[%s14103_s29 + $0x6c] sm:$0xf] %vm8419_vm2, %v9185_v59  ;;  %v9183_v2 = vpack.c.bf16 %v7804_v19, %v7804_v19  ;;  %v7809_v46 = vmax.f32 %v7681_v41, 0.0  ;;  %v7547_v6 = vmul.f32 %v14071_v45, %v7412_v13  ;;  %v7410_v49 = vadd.f32 %v6985_v29, %v5789_v32 }
 0x39a   : > { %v9652_v37 = vpop.f32.mrf.mxu1  ;;  %v7679_v0 = vadd.f32 %v14080_v60, %v7544_v20  ;;  %v9778_v42 = vpop.f32.mrf.mxu0  ;;  %v5805_v51 = vadd.f32 %v5804_v25, %v13907_v8 }
 0x39b   : > { %8445 = vst.msk [vmem:[%s14103_s29 + $0x64] sm:$0xf] %vm8419_vm2, %v9183_v2  ;;  %v9188_v62 = vpack.c.bf16 %v7809_v46, %v7809_v46  ;;  %v7682_v18 = vadd.f32 %v14080_v60, %v7547_v6  ;;  %v7545_v15 = vmul.f32 %v14071_v45, %v7410_v49  ;;  %v7415_v16 = vadd.f32 %v9778_v42, %v5810_v56 }
 0x39c   : > { %v5817_v40 = vpop.f32.mrf.mxu1  ;;  %v7807_v63 = vmax.f32 %v7679_v0, 0.0  ;;  %v6998_v26 = vpop.f32.mrf.mxu0  ;;  %v5826_v12 = vadd.f32 %v9652_v37, %v13911_v11 }
 0x39d   : > { %8450 = vst.msk [vmem:[%s14103_s29 + $0x78] sm:$0xf] %vm8419_vm2, %v9188_v62  ;;  %v7810_v5 = vmax.f32 %v7682_v18, 0.0  ;;  %v7680_v30 = vadd.f32 %v14080_v60, %v7545_v15  ;;  %v7550_v31 = vmul.f32 %v14071_v45, %v7415_v16  ;;  %v7413_v7 = vadd.f32 %v6998_v26, %v5802_v4 }
 0x39e   : > { %v9653_v28 = vpop.f32.mrf.mxu1  ;;  %v9186_v52 = vpack.c.bf16 %v7807_v63, %v7807_v63  ;;  %v9779_v53 = vpop.f32.mrf.mxu0  ;;  %v5818_v44 = vadd.f32 %v5817_v40, %v13916_v27 }
 0x39f   : > { %v9189_v21 = vpack.c.bf16 %v7810_v5, %v7810_v5  ;;  %v7808_v33 = vmax.f32 %v7680_v30, 0.0  ;;  %v7685_v48 = vadd.f32 %v14080_v60, %v7550_v31  ;;  %v7548_v22 = vmul.f32 %v14071_v45, %v7413_v7 }
 0x3a0   : > { %v5820_v50 = vpop.f32.mrf.mxu1  ;;  %8448 = vst.msk [vmem:[%s14103_s29 + $0x70] sm:$0xf] %vm8419_vm2, %v9186_v52  ;;  %v7416_v1 = vadd.f32 %v9779_v53, %v5813_v34  ;;  %v7001_v3 = vpop.f32.mrf.mxu0  ;;  %v5829_v24 = vadd.f32 %v9653_v28, %v13923_v43 }
 0x3a1   : > { %8451 = vst.msk [vmem:[%s14103_s29 + $0x7c] sm:$0xf] %vm8419_vm2, %v9189_v21  ;;  %v9187_v9 = vpack.c.bf16 %v7808_v33, %v7808_v33  ;;  %v7813_v39 = vmax.f32 %v7685_v48, 0.0  ;;  %v7683_v8 = vadd.f32 %v14080_v60, %v7548_v22  ;;  %v7414_v35 = vadd.f32 %v7001_v3, %v5805_v51 }
 0x3a2   : > { %v9656_v61 = vpop.f32.mrf.mxu1  ;;  %v7551_v55 = vmul.f32 %v14071_v45, %v7416_v1  ;;  %v9782_v38 = vpop.f32.mrf.mxu0  ;;  %v5821_v37 = vadd.f32 %v5820_v50, %v13928_v17 }
 0x3a3   : > { %8449 = vst.msk [vmem:[%s14103_s29 + $0x74] sm:$0xf] %vm8419_vm2, %v9187_v9  ;;  %v9192_v23 = vpack.c.bf16 %v7813_v39, %v7813_v39  ;;  %v7811_v11 = vmax.f32 %v7683_v8, 0.0  ;;  %v7549_v10 = vmul.f32 %v14071_v45, %v7414_v35  ;;  %v7419_v36 = vadd.f32 %v9782_v38, %v5826_v12  ;;  %v14986_v38 = vld [vmem:[#allocation53_spill] sm:$0xff] }
 0x3a4   : > { %v5833_v32 = vpop.f32.mrf.mxu1  ;;  %v7686_v57 = vadd.f32 %v14080_v60, %v7551_v55  ;;  %v7014_v59 = vpop.f32.mrf.mxu0  ;;  %v5842_v4 = vadd.f32 %v9656_v61, %v13935_v14 }
 0x3a5   : > { %8454 = vst.msk [vmem:[%s14103_s29 + $0x88] sm:$0xf] %vm8419_vm2, %v9192_v23  ;;  %v9190_v27 = vpack.c.bf16 %v7811_v11, %v7811_v11  ;;  %v7684_v19 = vadd.f32 %v14080_v60, %v7549_v10  ;;  %v7554_v41 = vmul.f32 %v14071_v45, %v7419_v36  ;;  %v7417_v13 = vadd.f32 %v7014_v59, %v5818_v44  ;;  %v14987_v11 = vld [vmem:[#allocation55_spill] sm:$0xff] }
 0x3a6   : > { %v9657_v25 = vpop.f32.mrf.mxu1  ;;  %v7814_v56 = vmax.f32 %v7686_v57, 0.0  ;;  %v9783_v20 = vpop.f32.mrf.mxu0  ;;  %v5834_v40 = vadd.f32 %v5833_v32, %v13939_v54 }
 0x3a7   : > { %8452 = vst.msk [vmem:[%s14103_s29 + $0x80] sm:$0xf] %vm8419_vm2, %v9190_v27  ;;  %v7812_v29 = vmax.f32 %v7684_v19, 0.0  ;;  %v7689_v43 = vadd.f32 %v14080_v60, %v7554_v41  ;;  %v7552_v2 = vmul.f32 %v14071_v45, %v7417_v13  ;;  %v7420_v46 = vadd.f32 %v9783_v20, %v5829_v24  ;;  %v14988_v19 = vld [vmem:[#allocation57_spill] sm:$0xff] }
 0x3a8   : > { %v5836_v6 = vpop.f32.mrf.mxu1  ;;  %v9193_v49 = vpack.c.bf16 %v7814_v56, %v7814_v56  ;;  %v7017_v0 = vpop.f32.mrf.mxu0  ;;  %v5845_v7 = vadd.f32 %v9657_v25, %v13951_v58 }
 0x3a9   : > { %v9191_v42 = vpack.c.bf16 %v7812_v29, %v7812_v29  ;;  %v7817_v62 = vmax.f32 %v7689_v43, 0.0  ;;  %v7687_v18 = vadd.f32 %v14080_v60, %v7552_v2  ;;  %v7555_v15 = vmul.f32 %v14071_v45, %v7420_v46  ;;  %v14989_v46 = vld [vmem:[#allocation59_spill] sm:$0xff] }
 0x3aa   : > { %v9660_v16 = vpop.f32.mrf.mxu1  ;;  %8455 = vst.msk [vmem:[%s14103_s29 + $0x8c] sm:$0xf] %vm8419_vm2, %v9193_v49  ;;  %v7418_v63 = vadd.f32 %v7017_v0, %v5821_v37  ;;  %v9786_v26 = vpop.f32.mrf.mxu0  ;;  %v5837_v33 = vadd.f32 %v5836_v6, %v13955_v47 }
 0x3ab   : > { %8453 = vst.msk [vmem:[%s14103_s29 + $0x84] sm:$0xf] %vm8419_vm2, %v9191_v42  ;;  %v9196_v17 = vpack.c.bf16 %v7817_v62, %v7817_v62  ;;  %v7815_v5 = vmax.f32 %v7687_v18, 0.0  ;;  %v7690_v14 = vadd.f32 %v14080_v60, %v7555_v15  ;;  %v7423_v30 = vadd.f32 %v9786_v26, %v5842_v4  ;;  %v14990_v15 = vld [vmem:[#allocation61_spill] sm:$0xff] }
 0x3ac   : > { %v5849_v31 = vpop.f32.mrf.mxu1  ;;  %v7553_v28 = vmul.f32 %v14071_v45, %v7418_v63  ;;  %v7030_v52 = vpop.f32.mrf.mxu0  ;;  %v5858_v23 = vadd.f32 %v9660_v16, %v14986_v38 }
 0x3ad   : > { %8458 = vst.msk [vmem:[%s14103_s29 + $0x98] sm:$0xf] %vm8419_vm2, %v9196_v17  ;;  %v9194_v34 = vpack.c.bf16 %v7815_v5, %v7815_v5  ;;  %v7818_v54 = vmax.f32 %v7690_v14, 0.0  ;;  %v7558_v51 = vmul.f32 %v14071_v45, %v7423_v30  ;;  %v7421_v53 = vadd.f32 %v7030_v52, %v5834_v40 }
 0x3ae   : > { %v9661_v21 = vpop.f32.mrf.mxu1  ;;  %v7688_v48 = vadd.f32 %v14080_v60, %v7553_v28  ;;  %v9787_v22 = vpop.f32.mrf.mxu0  ;;  %v5850_v10 = vadd.f32 %v5849_v31, %v14987_v11  ;;  %v14994_v11 = vld [vmem:[#allocation69_spill] sm:$0xff] }
 0x3af   : > { %8456 = vst.msk [vmem:[%s14103_s29 + $0x90] sm:$0xf] %vm8419_vm2, %v9194_v34  ;;  %v9197_v58 = vpack.c.bf16 %v7818_v54, %v7818_v54  ;;  %v7693_v50 = vadd.f32 %v14080_v60, %v7558_v51  ;;  %v7556_v12 = vmul.f32 %v14071_v45, %v7421_v53  ;;  %v7424_v1 = vadd.f32 %v9787_v22, %v5845_v7 }
 0x3b0   : > { %v5852_v3 = vpop.f32.mrf.mxu1  ;;  %v7816_v9 = vmax.f32 %v7688_v48, 0.0  ;;  %v7033_v39 = vpop.f32.mrf.mxu0  ;;  %v5861_v41 = vadd.f32 %v9661_v21, %v14988_v19  ;;  %v14991_v21 = vld [vmem:[#allocation63_spill] sm:$0xff]  ;;  %v14992_v48 = vld [vmem:[#allocation65_spill] sm:$0xff] }
 0x3b1   : > { %8459 = vst.msk [vmem:[%s14103_s29 + $0x9c] sm:$0xf] %vm8419_vm2, %v9197_v58  ;;  %v7821_v8 = vmax.f32 %v7693_v50, 0.0  ;;  %v7691_v47 = vadd.f32 %v14080_v60, %v7556_v12  ;;  %v7559_v35 = vmul.f32 %v14071_v45, %v7424_v1  ;;  %v7422_v61 = vadd.f32 %v7033_v39, %v5837_v33  ;;  %v14993_v39 = vld [vmem:[#allocation67_spill] sm:$0xff] }
 0x3b2   : > { %v9664_v44 = vpop.f32.mrf.mxu1  ;;  %v9195_v55 = vpack.c.bf16 %v7816_v9, %v7816_v9  ;;  %v9790_v36 = vpop.f32.mrf.mxu0  ;;  %v5853_v6 = vadd.f32 %v5852_v3, %v14989_v46 }
 0x3b3   : > { %v9200_v32 = vpack.c.bf16 %v7821_v8, %v7821_v8  ;;  %v7819_v24 = vmax.f32 %v7691_v47, 0.0  ;;  %v7694_v57 = vadd.f32 %v14080_v60, %v7559_v35  ;;  %v7557_v59 = vmul.f32 %v14071_v45, %v7422_v61 }
 0x3b4   : > { %v5865_v27 = vpop.f32.mrf.mxu1  ;;  %8457 = vst.msk [vmem:[%s14103_s29 + $0x94] sm:$0xf] %vm8419_vm2, %v9195_v55  ;;  %v7427_v13 = vadd.f32 %v9790_v36, %v5858_v23  ;;  %v7046_v25 = vpop.f32.mrf.mxu0  ;;  %v5874_v16 = vadd.f32 %v9664_v44, %v14990_v15  ;;  %v14996_v15 = vld [vmem:[#allocation73_spill] sm:$0xff] }
 0x3b5   : > { %8462 = vst.msk [vmem:[%s14103_s29 + $0xa8] sm:$0xf] %vm8419_vm2, %v9200_v32  ;;  %v9198_v56 = vpack.c.bf16 %v7819_v24, %v7819_v24  ;;  %v7822_v20 = vmax.f32 %v7694_v57, 0.0  ;;  %v7692_v29 = vadd.f32 %v14080_v60, %v7557_v59  ;;  %v7425_v43 = vadd.f32 %v7046_v25, %v5850_v10 }
 0x3b6   : > { %v9665_v2 = vpop.f32.mrf.mxu1  ;;  %v7562_v49 = vmul.f32 %v14071_v45, %v7427_v13  ;;  %v9791_v37 = vpop.f32.mrf.mxu0  ;;  %v5866_v33 = vadd.f32 %v5865_v27, %v14991_v21 }
 0x3b7   : > { %8460 = vst.msk [vmem:[%s14103_s29 + $0xa0] sm:$0xf] %vm8419_vm2, %v9198_v56  ;;  %v9201_v4 = vpack.c.bf16 %v7822_v20, %v7822_v20  ;;  %v7820_v0 = vmax.f32 %v7692_v29, 0.0  ;;  %v7560_v42 = vmul.f32 %v14071_v45, %v7425_v43  ;;  %v7428_v62 = vadd.f32 %v9791_v37, %v5861_v41  ;;  %v14995_v41 = vld [vmem:[#allocation71_spill] sm:$0xff]  ;;  %v14366_v43 = vld [vmem:[%s14825_s2] ss:$0 sm:$0xff] }
 0x3b8   : > { %v5868_v18 = vpop.f32.mrf.mxu1  ;;  %v7697_v40 = vadd.f32 %v14080_v60, %v7562_v49  ;;  %v7049_v63 = vpop.f32.mrf.mxu0  ;;  %v5877_v22 = vadd.f32 %v9665_v2, %v14992_v48  ;;  %v14999_v48 = vld [vmem:[#allocation79_spill] sm:$0xff] }
 0x3b9   : > { %8463 = vst.msk [vmem:[%s14103_s29 + $0xac] sm:$0xf] %vm8419_vm2, %v9201_v4  ;;  %v9199_v26 = vpack.c.bf16 %v7820_v0, %v7820_v0  ;;  %v7695_v17 = vadd.f32 %v14080_v60, %v7560_v42  ;;  %v7563_v5 = vmul.f32 %v14071_v45, %v7428_v62  ;;  %v7426_v14 = vadd.f32 %v7049_v63, %v5853_v6  ;;  %v14374_v4 = vld [vmem:[%s14826_s3] ss:$0 sm:$0xff] }
 0x3ba   : > { %v9668_v30 = vpop.f32.mrf.mxu1  ;;  %v7825_v31 = vmax.f32 %v7697_v40, 0.0  ;;  %v9794_v7 = vpop.f32.mrf.mxu0  ;;  %v5869_v8 = vadd.f32 %v5868_v18, %v14993_v39  ;;  %v14997_v40 = vld [vmem:[#allocation75_spill] sm:$0xff] }
 0x3bb   : > { %8461 = vst.msk [vmem:[%s14103_s29 + $0xa4] sm:$0xf] %vm8419_vm2, %v9199_v26  ;;  %v7823_v28 = vmax.f32 %v7695_v17, 0.0  ;;  %v7698_v52 = vadd.f32 %v14080_v60, %v7563_v5  ;;  %v7561_v34 = vmul.f32 %v14071_v45, %v7426_v14  ;;  %v7431_v54 = vadd.f32 %v9794_v7, %v5874_v16  ;;  %v14998_v7 = vld [vmem:[#allocation77_spill] sm:$0xff] }
 0x3bc   : > { %v5881_v51 = vpop.f32.mrf.mxu1  ;;  %v9204_v53 = vpack.c.bf16 %v7825_v31, %v7825_v31  ;;  %v7062_v58 = vpop.f32.mrf.mxu0  ;;  %v5890_v10 = vadd.f32 %v9668_v30, %v14994_v11 }
 0x3bd   : > { %v9202_v50 = vpack.c.bf16 %v7823_v28, %v7823_v28  ;;  %v7826_v12 = vmax.f32 %v7698_v52, 0.0  ;;  %v7696_v1 = vadd.f32 %v14080_v60, %v7561_v34  ;;  %v7566_v3 = vmul.f32 %v14071_v45, %v7431_v54 }
 0x3be   : > { %v9669_v9 = vpop.f32.mrf.mxu1  ;;  %8466 = vst.msk [vmem:[%s14103_s29 + $0xb8] sm:$0xf] %vm8419_vm2, %v9204_v53  ;;  %v7429_v47 = vadd.f32 %v7062_v58, %v5866_v33  ;;  %v9795_v35 = vpop.f32.mrf.mxu0  ;;  %v5882_v13 = vadd.f32 %v5881_v51, %v14995_v41  ;;  %v15001_v41 = vld [vmem:[#allocation85_spill] sm:$0xff] }
 0x3bf   : > { %8464 = vst.msk [vmem:[%s14103_s29 + $0xb0] sm:$0xf] %vm8419_vm2, %v9202_v50  ;;  %v9205_v61 = vpack.c.bf16 %v7826_v12, %v7826_v12  ;;  %v7824_v44 = vmax.f32 %v7696_v1, 0.0  ;;  %v7701_v55 = vadd.f32 %v14080_v60, %v7566_v3  ;;  %v7432_v38 = vadd.f32 %v9795_v35, %v5877_v22 }
 0x3c0   : > { %v5884_v23 = vpop.f32.mrf.mxu1  ;;  %v7564_v36 = vmul.f32 %v14071_v45, %v7429_v47  ;;  %v7065_v32 = vpop.f32.mrf.mxu0  ;;  %v5893_v16 = vadd.f32 %v9669_v9, %v14996_v15 }
 0x3c1   : > { %8467 = vst.msk [vmem:[%s14103_s29 + $0xbc] sm:$0xf] %vm8419_vm2, %v9205_v61  ;;  %v9203_v24 = vpack.c.bf16 %v7824_v44, %v7824_v44  ;;  %v7829_v57 = vmax.f32 %v7701_v55, 0.0  ;;  %v7567_v59 = vmul.f32 %v14071_v45, %v7432_v38  ;;  %v7430_v27 = vadd.f32 %v7065_v32, %v5869_v8  ;;  %v15000_v8 = vld [vmem:[#allocation82_spill] sm:$0xff] }
 0x3c2   : > { %v9672_v19 = vpop.f32.mrf.mxu1  ;;  %v7699_v25 = vadd.f32 %v14080_v60, %v7564_v36  ;;  %v9798_v56 = vpop.f32.mrf.mxu0  ;;  %v5885_v63 = vadd.f32 %v5884_v23, %v14997_v40  ;;  %v15004_v40 = vld [vmem:[#allocation88_spill] sm:$0xff] }
 0x3c3   : > { %8465 = vst.msk [vmem:[%s14103_s29 + $0xb4] sm:$0xf] %vm8419_vm2, %v9203_v24  ;;  %v9208_v20 = vpack.c.bf16 %v7829_v57, %v7829_v57  ;;  %v7702_v29 = vadd.f32 %v14080_v60, %v7567_v59  ;;  %v7565_v2 = vmul.f32 %v14366_v43, %v7430_v27  ;;  %v7435_v45 = vadd.f32 %v9798_v56, %v5890_v10 }
 0x3c4   : > { %v5897_v46 = vpop.f32.mrf.mxu1  ;;  %v7827_v6 = vmax.f32 %v7699_v25, 0.0  ;;  %v7078_v49 = vpop.f32.mrf.mxu0  ;;  %v5906_v28 = vadd.f32 %v9672_v19, %v14998_v7  ;;  %v15002_v25 = vld [vmem:[#allocation86_spill] sm:$0xff] }
 0x3c5   : > { %8470 = vst.msk [vmem:[%s14103_s29 + $0xc8] sm:$0xf] %vm8419_vm2, %v9208_v20  ;;  %v7830_v37 = vmax.f32 %v7702_v29, 0.0  ;;  %v7700_v60 = vadd.f32 %v14374_v4, %v7565_v2  ;;  %v7570_v0 = vmul.f32 %v14366_v43, %v7435_v45  ;;  %v7433_v42 = vadd.f32 %v7078_v49, %v5882_v13  ;;  %v15003_v49 = vld [vmem:[#allocation87_spill] sm:$0xff] }
 0x3c6   : > { %v9673_v62 = vpop.f32.mrf.mxu1  ;;  %v9206_v18 = vpack.c.bf16 %v7827_v6, %v7827_v6  ;;  %v9799_v26 = vpop.f32.mrf.mxu0  ;;  %v5898_v22 = vadd.f32 %v5897_v46, %v14999_v48 }
 0x3c7   : > { %v9209_v17 = vpack.c.bf16 %v7830_v37, %v7830_v37  ;;  %v7828_v5 = vmax.f32 %v7700_v60, 0.0  ;;  %v7705_v14 = vadd.f32 %v14374_v4, %v7570_v0  ;;  %v7568_v30 = vmul.f32 %v14366_v43, %v7433_v42 }
 0x3c8   : > { %v5900_v31 = vpop.f32.mrf.mxu1  ;;  %8468 = vst.msk [vmem:[%s14103_s29 + $0xc0] sm:$0xf] %vm8419_vm2, %v9206_v18  ;;  %v7436_v52 = vadd.f32 %v9799_v26, %v5893_v16  ;;  %v7081_v34 = vpop.f32.mrf.mxu0  ;;  %v5909_v47 = vadd.f32 %v9673_v62, %v15000_v8  ;;  %v15006_v8 = vld [vmem:[#allocation6_spill] sm:$0xff] }
 0x3c9   : > { %8471 = vst.msk [vmem:[%s14103_s29 + $0xcc] sm:$0xf] %vm8419_vm2, %v9209_v17  ;;  %v9207_v54 = vpack.c.bf16 %v7828_v5, %v7828_v5  ;;  %v7833_v51 = vmax.f32 %v7705_v14, 0.0  ;;  %v7703_v53 = vadd.f32 %v14374_v4, %v7568_v30  ;;  %v7434_v21 = vadd.f32 %v7081_v34, %v5885_v63 }
 0x3ca   : > { %v9676_v33 = vpop.f32.mrf.mxu1  ;;  %v7571_v58 = vmul.f32 %v14366_v43, %v7436_v52  ;;  %v9802_v50 = vpop.f32.mrf.mxu0  ;;  %v5901_v13 = vadd.f32 %v5900_v31, %v15001_v41 }
 0x3cb   : > { %8469 = vst.msk [vmem:[%s14103_s29 + $0xc4] sm:$0xf] %vm8419_vm2, %v9207_v54  ;;  %v9212_v12 = vpack.c.bf16 %v7833_v51, %v7833_v51  ;;  %v7831_v1 = vmax.f32 %v7703_v53, 0.0  ;;  %v7569_v3 = vmul.f32 %v14366_v43, %v7434_v21  ;;  %v7439_v9 = vadd.f32 %v9802_v50, %v5906_v28  ;;  %v15005_v28 = vld [vmem:[#allocation89_spill] sm:$0xff] }
 0x3cc   : > { %v5913_v39 = vpop.f32.mrf.mxu1  ;;  %v7706_v35 = vadd.f32 %v14374_v4, %v7571_v58  ;;  %v7094_v61 = vpop.f32.mrf.mxu0  ;;  %v5922_v56 = vadd.f32 %v9676_v33, %v15002_v25  ;;  %v15009_v25 = vld [vmem:[#allocation9_spill] sm:$0xff] }
 0x3cd   : > { %8474 = vst.msk [vmem:[%s14103_s29 + $0xd8] sm:$0xf] %vm8419_vm2, %v9212_v12  ;;  %v9210_v44 = vpack.c.bf16 %v7831_v1, %v7831_v1  ;;  %v7704_v55 = vadd.f32 %v14374_v4, %v7569_v3  ;;  %v7574_v38 = vmul.f32 %v14366_v43, %v7439_v9  ;;  %v7437_v23 = vadd.f32 %v7094_v61, %v5898_v22 }
 0x3ce   : > { %v9677_v11 = vpop.f32.mrf.mxu1  ;;  %v7834_v10 = vmax.f32 %v7706_v35, 0.0  ;;  %v9803_v36 = vpop.f32.mrf.mxu0  ;;  %v5914_v37 = vadd.f32 %v5913_v39, %v15003_v49  ;;  %v15007_v35 = vld [vmem:[#allocation7_spill] sm:$0xff] }
 0x3cf   : > { %8472 = vst.msk [vmem:[%s14103_s29 + $0xd0] sm:$0xf] %vm8419_vm2, %v9210_v44  ;;  %v7832_v32 = vmax.f32 %v7704_v55, 0.0  ;;  %v7709_v24 = vadd.f32 %v14374_v4, %v7574_v38  ;;  %v7572_v57 = vmul.f32 %v14366_v43, %v7437_v23  ;;  %v7440_v59 = vadd.f32 %v9803_v36, %v5909_v47  ;;  %v15008_v36 = vld [vmem:[#allocation8_spill] sm:$0xff] }
 0x3d0   : > { %v5916_v27 = vpop.f32.mrf.mxu1  ;;  %v9213_v19 = vpack.c.bf16 %v7834_v10, %v7834_v10  ;;  %v7097_v20 = vpop.f32.mrf.mxu0  ;;  %v5925_v63 = vadd.f32 %v9677_v11, %v15004_v40 }
 0x3d1   : > { %v9211_v29 = vpack.c.bf16 %v7832_v32, %v7832_v32  ;;  %v7837_v2 = vmax.f32 %v7709_v24, 0.0  ;;  %v7707_v45 = vadd.f32 %v14374_v4, %v7572_v57  ;;  %v7575_v46 = vmul.f32 %v14366_v43, %v7440_v59 }
 0x3d2   : > { %v9680_v6 = vpop.f32.mrf.mxu1  ;;  %8475 = vst.msk [vmem:[%s14103_s29 + $0xdc] sm:$0xf] %vm8419_vm2, %v9213_v19  ;;  %v7438_v60 = vadd.f32 %v7097_v20, %v5901_v13  ;;  %v9806_v0 = vpop.f32.mrf.mxu0  ;;  %v5917_v52 = vadd.f32 %v5916_v27, %v15005_v28  ;;  %v15011_v28 = vld [vmem:[#allocation11_spill] sm:$0xff] }
 0x3d3   : > { %8473 = vst.msk [vmem:[%s14103_s29 + $0xd4] sm:$0xf] %vm8419_vm2, %v9211_v29  ;;  %v9216_v42 = vpack.c.bf16 %v7837_v2, %v7837_v2  ;;  %v7835_v62 = vmax.f32 %v7707_v45, 0.0  ;;  %v7710_v18 = vadd.f32 %v14374_v4, %v7575_v46  ;;  %v7443_v15 = vadd.f32 %v9806_v0, %v5922_v56 }
 0x3d4   : > { %v5929_v16 = vpop.f32.mrf.mxu1  ;;  %v7573_v26 = vmul.f32 %v14366_v43, %v7438_v60  ;;  %v7110_v17 = vpop.f32.mrf.mxu0  ;;  %v5938_v47 = vadd.f32 %v9680_v6, %v15006_v8 }
 0x3d5   : > { %8478 = vst.msk [vmem:[%s14103_s29 + $0xe8] sm:$0xf] %vm8419_vm2, %v9216_v42  ;;  %v9214_v5 = vpack.c.bf16 %v7835_v62, %v7835_v62  ;;  %v7838_v14 = vmax.f32 %v7710_v18, 0.0  ;;  %v7578_v30 = vmul.f32 %v14366_v43, %v7443_v15  ;;  %v7441_v31 = vadd.f32 %v7110_v17, %v5914_v37  ;;  %v15010_v37 = vld [vmem:[#allocation10_spill] sm:$0xff] }
 0x3d6   : > { %v9681_v7 = vpop.f32.mrf.mxu1  ;;  %v7708_v34 = vadd.f32 %v14374_v4, %v7573_v26  ;;  %v9807_v54 = vpop.f32.mrf.mxu0  ;;  %v5930_v61 = vadd.f32 %v5929_v16, %v15007_v35  ;;  %v15014_v35 = vld [vmem:[#allocation14_spill] sm:$0xff] }
 0x3d7   : > { %8476 = vst.msk [vmem:[%s14103_s29 + $0xe0] sm:$0xf] %vm8419_vm2, %v9214_v5  ;;  %v9217_v51 = vpack.c.bf16 %v7838_v14, %v7838_v14  ;;  %v7713_v53 = vadd.f32 %v14374_v4, %v7578_v30  ;;  %v7576_v21 = vmul.f32 %v14366_v43, %v7441_v31  ;;  %v7444_v33 = vadd.f32 %v9807_v54, %v5925_v63 }
 0x3d8   : > { %v5932_v48 = vpop.f32.mrf.mxu1  ;;  %v7836_v22 = vmax.f32 %v7708_v34, 0.0  ;;  %v7113_v58 = vpop.f32.mrf.mxu0  ;;  %v5941_v32 = vadd.f32 %v9681_v7, %v15008_v36  ;;  %v15012_v34 = vld [vmem:[#allocation12_spill] sm:$0xff] }
 0x3d9   : > { %8479 = vst.msk [vmem:[%s14103_s29 + $0xec] sm:$0xf] %vm8419_vm2, %v9217_v51  ;;  %v7841_v50 = vmax.f32 %v7713_v53, 0.0  ;;  %v7711_v12 = vadd.f32 %v14374_v4, %v7576_v21  ;;  %v7579_v1 = vmul.f32 %v14366_v43, %v7444_v33  ;;  %v7442_v3 = vadd.f32 %v7113_v58, %v5917_v52  ;;  %v15013_v58 = vld [vmem:[#allocation13_spill] sm:$0xff] }
 0x3da   : > { %v9684_v9 = vpop.f32.mrf.mxu1  ;;  %v9215_v39 = vpack.c.bf16 %v7836_v22, %v7836_v22  ;;  %v9810_v44 = vpop.f32.mrf.mxu0  ;;  %v5933_v56 = vadd.f32 %v5932_v48, %v15009_v25 }
 0x3db   : > { %v9220_v55 = vpack.c.bf16 %v7841_v50, %v7841_v50  ;;  %v7839_v38 = vmax.f32 %v7711_v12, 0.0  ;;  %v7714_v23 = vadd.f32 %v14374_v4, %v7579_v1  ;;  %v7577_v11 = vmul.f32 %v14366_v43, %v7442_v3 }
 0x3dc   : > { %v5945_v10 = vpop.f32.mrf.mxu1  ;;  %8477 = vst.msk [vmem:[%s14103_s29 + $0xe4] sm:$0xf] %vm8419_vm2, %v9215_v39  ;;  %v7447_v24 = vadd.f32 %v9810_v44, %v5938_v47  ;;  %v7126_v57 = vpop.f32.mrf.mxu0  ;;  %v5954_v60 = vadd.f32 %v9684_v9, %v15010_v37  ;;  %v15016_v37 = vld [vmem:[#allocation16_spill] sm:$0xff] }
 0x3dd   : > { %8482 = vst.msk [vmem:[%s14103_s29 + $0xf8] sm:$0xf] %vm8419_vm2, %v9220_v55  ;;  %v9218_v59 = vpack.c.bf16 %v7839_v38, %v7839_v38  ;;  %v7842_v27 = vmax.f32 %v7714_v23, 0.0  ;;  %v7712_v19 = vadd.f32 %v14374_v4, %v7577_v11  ;;  %v7445_v41 = vadd.f32 %v7126_v57, %v5930_v61 }
 0x3de   : > { %v9685_v13 = vpop.f32.mrf.mxu1  ;;  %v7582_v20 = vmul.f32 %v14366_v43, %v7447_v24  ;;  %v9811_v29 = vpop.f32.mrf.mxu0  ;;  %v5946_v52 = vadd.f32 %v5945_v10, %v15011_v28 }
 0x3df   : > { %8480 = vst.msk [vmem:[%s14103_s29 + $0xf0] sm:$0xf] %vm8419_vm2, %v9218_v59  ;;  %v9221_v2 = vpack.c.bf16 %v7842_v27, %v7842_v27  ;;  %v7840_v45 = vmax.f32 %v7712_v19, 0.0  ;;  %v7580_v46 = vmul.f32 %v14366_v43, %v7445_v41  ;;  %v7448_v6 = vadd.f32 %v9811_v29, %v5941_v32  ;;  %v15015_v32 = vld [vmem:[#allocation15_spill] sm:$0xff] }
 0x3e0   : > { %v5948_v49 = vpop.f32.mrf.mxu1  ;;  %v7717_v0 = vadd.f32 %v14374_v4, %v7582_v20  ;;  %v7129_v42 = vpop.f32.mrf.mxu0  ;;  %v5957_v54 = vadd.f32 %v9685_v13, %v15012_v34  ;;  %v15019_v34 = vld [vmem:[#allocation19_spill] sm:$0xff] }
 0x3e1   : > { %8483 = vst.msk [vmem:[%s14103_s29 + $0xfc] sm:$0xf] %vm8419_vm2, %v9221_v2  ;;  %v9219_v62 = vpack.c.bf16 %v7840_v45, %v7840_v45  ;;  %v7715_v18 = vadd.f32 %v14374_v4, %v7580_v46  ;;  %v7583_v15 = vmul.f32 %v14366_v43, %v7448_v6  ;;  %v7446_v16 = vadd.f32 %v7129_v42, %v5933_v56 }
 0x3e2   : > { %v9688_v40 = vpop.f32.mrf.mxu1  ;;  %v7845_v63 = vmax.f32 %v7717_v0, 0.0  ;;  %v9814_v26 = vpop.f32.mrf.mxu0  ;;  %v5949_v50 = vadd.f32 %v5948_v49, %v15013_v58  ;;  %v15017_v0 = vld [vmem:[#allocation17_spill] sm:$0xff] }
 0x3e3   : > { %8481 = vst.msk [vmem:[%s14103_s29 + $0xf4] sm:$0xf] %vm8419_vm2, %v9219_v62  ;;  %v7843_v17 = vmax.f32 %v7715_v18, 0.0  ;;  %v7718_v5 = vadd.f32 %v14374_v4, %v7583_v15  ;;  %v7581_v14 = vmul.f32 %v14366_v43, %v7446_v16  ;;  %v7451_v30 = vadd.f32 %v9814_v26, %v5954_v60  ;;  %v15018_v26 = vld [vmem:[#allocation18_spill] sm:$0xff] }
 0x3e4   : > { %v5961_v31 = vpop.f32.mrf.mxu1  ;;  %v9224_v7 = vpack.c.bf16 %v7845_v63, %v7845_v63  ;;  %v7142_v51 = vpop.f32.mrf.mxu0  ;;  %v5970_v61 = vadd.f32 %v9688_v40, %v15014_v35 }
 0x3e5   : > { %v9222_v53 = vpack.c.bf16 %v7843_v17, %v7843_v17  ;;  %v7846_v21 = vmax.f32 %v7718_v5, 0.0  ;;  %v7716_v33 = vadd.f32 %v14374_v4, %v7581_v14  ;;  %v7586_v48 = vmul.f32 %v14366_v43, %v7451_v30 }
 0x3e6   : > { %v9689_v22 = vpop.f32.mrf.mxu1  ;;  %8486 = vst.msk [vmem:[%s14103_s29 + $0x108] sm:$0xf] %vm8419_vm2, %v9224_v7  ;;  %v7449_v12 = vadd.f32 %v7142_v51, %v5946_v52  ;;  %v9815_v1 = vpop.f32.mrf.mxu0  ;;  %v5962_v24 = vadd.f32 %v5961_v31, %v15015_v32  ;;  %v15021_v32 = vld [vmem:[#allocation21_spill] sm:$0xff] }
 0x3e7   : > { %8484 = vst.msk [vmem:[%s14103_s29 + $0x100] sm:$0xf] %vm8419_vm2, %v9222_v53  ;;  %v9225_v3 = vpack.c.bf16 %v7846_v21, %v7846_v21  ;;  %v7844_v9 = vmax.f32 %v7716_v33, 0.0  ;;  %v7721_v39 = vadd.f32 %v14374_v4, %v7586_v48  ;;  %v7452_v8 = vadd.f32 %v9815_v1, %v5957_v54 }
 0x3e8   : > { %v5964_v47 = vpop.f32.mrf.mxu1  ;;  %v7584_v44 = vmul.f32 %v14366_v43, %v7449_v12  ;;  %v7145_v55 = vpop.f32.mrf.mxu0  ;;  %v5973_v60 = vadd.f32 %v9689_v22, %v15016_v37 }
 0x3e9   : > { %8487 = vst.msk [vmem:[%s14103_s29 + $0x10c] sm:$0xf] %vm8419_vm2, %v9225_v3  ;;  %v9223_v38 = vpack.c.bf16 %v7844_v9, %v7844_v9  ;;  %v7849_v23 = vmax.f32 %v7721_v39, 0.0  ;;  %v7587_v11 = vmul.f32 %v14366_v43, %v7452_v8  ;;  %v7450_v10 = vadd.f32 %v7145_v55, %v5949_v50  ;;  %v15020_v50 = vld [vmem:[#allocation20_spill] sm:$0xff] }
 0x3ea   : > { %v9692_v36 = vpop.f32.mrf.mxu1  ;;  %v7719_v57 = vadd.f32 %v14374_v4, %v7584_v44  ;;  %v9818_v59 = vpop.f32.mrf.mxu0  ;;  %v5965_v42 = vadd.f32 %v5964_v47, %v15017_v0  ;;  %v15024_v0 = vld [vmem:[#allocation24_spill] sm:$0xff] }
 0x3eb   : > { %8485 = vst.msk [vmem:[%s14103_s29 + $0x104] sm:$0xf] %vm8419_vm2, %v9223_v38  ;;  %v9228_v27 = vpack.c.bf16 %v7849_v23, %v7849_v23  ;;  %v7722_v19 = vadd.f32 %v14374_v4, %v7587_v11  ;;  %v7585_v41 = vmul.f32 %v14366_v43, %v7450_v10  ;;  %v7455_v13 = vadd.f32 %v9818_v59, %v5970_v61 }
 0x3ec   : > { %v5977_v25 = vpop.f32.mrf.mxu1  ;;  %v7847_v56 = vmax.f32 %v7719_v57, 0.0  ;;  %v7158_v20 = vpop.f32.mrf.mxu0  ;;  %v5986_v17 = vadd.f32 %v9692_v36, %v15018_v26  ;;  %v15022_v57 = vld [vmem:[#allocation22_spill] sm:$0xff] }
 0x3ed   : > { %8490 = vst.msk [vmem:[%s14103_s29 + $0x118] sm:$0xf] %vm8419_vm2, %v9228_v27  ;;  %v7850_v29 = vmax.f32 %v7722_v19, 0.0  ;;  %v7720_v2 = vadd.f32 %v14374_v4, %v7585_v41  ;;  %v7590_v45 = vmul.f32 %v14366_v43, %v7455_v13  ;;  %v7453_v46 = vadd.f32 %v7158_v20, %v5962_v24  ;;  %v15023_v20 = vld [vmem:[#allocation23_spill] sm:$0xff] }
 0x3ee   : > { %v9693_v6 = vpop.f32.mrf.mxu1  ;;  %v9226_v49 = vpack.c.bf16 %v7847_v56, %v7847_v56  ;;  %v9819_v62 = vpop.f32.mrf.mxu0  ;;  %v5978_v54 = vadd.f32 %v5977_v25, %v15019_v34 }
 0x3ef   : > { %v9229_v18 = vpack.c.bf16 %v7850_v29, %v7850_v29  ;;  %v7848_v15 = vmax.f32 %v7720_v2, 0.0  ;;  %v7725_v16 = vadd.f32 %v14374_v4, %v7590_v45  ;;  %v7588_v40 = vmul.f32 %v14366_v43, %v7453_v46 }
 0x3f0   : > { %v5980_v63 = vpop.f32.mrf.mxu1  ;;  %8488 = vst.msk [vmem:[%s14103_s29 + $0x110] sm:$0xf] %vm8419_vm2, %v9226_v49  ;;  %v7456_v5 = vadd.f32 %v9819_v62, %v5973_v60  ;;  %v7161_v14 = vpop.f32.mrf.mxu0  ;;  %v5989_v12 = vadd.f32 %v9693_v6, %v15020_v50  ;;  %v15026_v50 = vld [vmem:[#allocation26_spill] sm:$0xff] }
 0x3f1   : > { %8491 = vst.msk [vmem:[%s14103_s29 + $0x11c] sm:$0xf] %vm8419_vm2, %v9229_v18  ;;  %v9227_v30 = vpack.c.bf16 %v7848_v15, %v7848_v15  ;;  %v7853_v31 = vmax.f32 %v7725_v16, 0.0  ;;  %v7723_v7 = vadd.f32 %v14374_v4, %v7588_v40  ;;  %v7454_v28 = vadd.f32 %v7161_v14, %v5965_v42 }
 0x3f2   : > { %v9696_v52 = vpop.f32.mrf.mxu1  ;;  %v7591_v51 = vmul.f32 %v14366_v43, %v7456_v5  ;;  %v9822_v53 = vpop.f32.mrf.mxu0  ;;  %v5981_v24 = vadd.f32 %v5980_v63, %v15021_v32 }
 0x3f3   : > { %8489 = vst.msk [vmem:[%s14103_s29 + $0x114] sm:$0xf] %vm8419_vm2, %v9227_v30  ;;  %v9232_v21 = vpack.c.bf16 %v7853_v31, %v7853_v31  ;;  %v7851_v33 = vmax.f32 %v7723_v7, 0.0  ;;  %v7589_v48 = vmul.f32 %v14366_v43, %v7454_v28  ;;  %v7459_v22 = vadd.f32 %v9822_v53, %v5986_v17  ;;  %v15025_v17 = vld [vmem:[#allocation25_spill] sm:$0xff] }
 0x3f4   : > { %v5993_v58 = vpop.f32.mrf.mxu1  ;;  %v7726_v1 = vadd.f32 %v14374_v4, %v7591_v51  ;;  %v7174_v3 = vpop.f32.mrf.mxu0  ;;  %v6002_v59 = vadd.f32 %v9696_v52, %v15022_v57  ;;  %v15029_v57 = vld [vmem:[#allocation29_spill] sm:$0xff] }
 0x3f5   : > { %8494 = vst.msk [vmem:[%s14103_s29 + $0x128] sm:$0xf] %vm8419_vm2, %v9232_v21  ;;  %v9230_v9 = vpack.c.bf16 %v7851_v33, %v7851_v33  ;;  %v7724_v39 = vadd.f32 %v14374_v4, %v7589_v48  ;;  %v7594_v8 = vmul.f32 %v14366_v43, %v7459_v22  ;;  %v7457_v47 = vadd.f32 %v7174_v3, %v5978_v54 }
 0x3f6   : > { %v9697_v35 = vpop.f32.mrf.mxu1  ;;  %v7854_v61 = vmax.f32 %v7726_v1, 0.0  ;;  %v9823_v44 = vpop.f32.mrf.mxu0  ;;  %v5994_v29 = vadd.f32 %v5993_v58, %v15023_v20  ;;  %v15027_v1 = vld [vmem:[#allocation27_spill] sm:$0xff] }
 0x3f7   : > { %8492 = vst.msk [vmem:[%s14103_s29 + $0x120] sm:$0xf] %vm8419_vm2, %v9230_v9  ;;  %v7852_v55 = vmax.f32 %v7724_v39, 0.0  ;;  %v7729_v38 = vadd.f32 %v14374_v4, %v7594_v8  ;;  %v7592_v23 = vmul.f32 %v14366_v43, %v7457_v47  ;;  %v7460_v11 = vadd.f32 %v9823_v44, %v5989_v12  ;;  %v15028_v44 = vld [vmem:[#allocation28_spill] sm:$0xff] }
 0x3f8   : > { %v5996_v10 = vpop.f32.mrf.mxu1  ;;  %v9233_v36 = vpack.c.bf16 %v7854_v61, %v7854_v61  ;;  %v7177_v27 = vpop.f32.mrf.mxu0  ;;  %v6005_v42 = vadd.f32 %v9697_v35, %v15024_v0 }
 0x3f9   : > { %v9231_v19 = vpack.c.bf16 %v7852_v55, %v7852_v55  ;;  %v7857_v41 = vmax.f32 %v7729_v38, 0.0  ;;  %v7727_v13 = vadd.f32 %v14374_v4, %v7592_v23  ;;  %v7595_v25 = vmul.f32 %v14366_v43, %v7460_v11 }
 0x3fa   : > { %v9700_v56 = vpop.f32.mrf.mxu1  ;;  %8495 = vst.msk [vmem:[%s14103_s29 + $0x12c] sm:$0xf] %vm8419_vm2, %v9233_v36  ;;  %v7458_v2 = vadd.f32 %v7177_v27, %v5981_v24  ;;  %v9826_v45 = vpop.f32.mrf.mxu0  ;;  %v5997_v5 = vadd.f32 %v5996_v10, %v15025_v17  ;;  %v15031_v17 = vld [vmem:[#allocation31_spill] sm:$0xff] }
 0x3fb   : > { %8493 = vst.msk [vmem:[%s14103_s29 + $0x124] sm:$0xf] %vm8419_vm2, %v9231_v19  ;;  %v9236_v46 = vpack.c.bf16 %v7857_v41, %v7857_v41  ;;  %v7855_v6 = vmax.f32 %v7727_v13, 0.0  ;;  %v7730_v49 = vadd.f32 %v14374_v4, %v7595_v25  ;;  %v7463_v37 = vadd.f32 %v9826_v45, %v6002_v59 }
 0x3fc   : > { %v6009_v60 = vpop.f32.mrf.mxu1  ;;  %v7593_v62 = vmul.f32 %v14366_v43, %v7458_v2  ;;  %v7190_v18 = vpop.f32.mrf.mxu0  ;;  %v6018_v12 = vadd.f32 %v9700_v56, %v15026_v50 }
 0x3fd   : > { %8498 = vst.msk [vmem:[%s14103_s29 + $0x138] sm:$0xf] %vm8419_vm2, %v9236_v46  ;;  %v9234_v15 = vpack.c.bf16 %v7855_v6, %v7855_v6  ;;  %v7858_v16 = vmax.f32 %v7730_v49, 0.0  ;;  %v7598_v40 = vmul.f32 %v14366_v43, %v7463_v37  ;;  %v7461_v63 = vadd.f32 %v7190_v18, %v5994_v29  ;;  %v15030_v29 = vld [vmem:[#allocation30_spill] sm:$0xff] }
 0x3fe   : > { %v9701_v26 = vpop.f32.mrf.mxu1  ;;  %v7728_v14 = vadd.f32 %v14374_v4, %v7593_v62  ;;  %v9827_v30 = vpop.f32.mrf.mxu0  ;;  %v6010_v3 = vadd.f32 %v6009_v60, %v15027_v1  ;;  %v15034_v1 = vld [vmem:[#allocation34_spill] sm:$0xff] }
 0x3ff   : > { %8496 = vst.msk [vmem:[%s14103_s29 + $0x130] sm:$0xf] %vm8419_vm2, %v9234_v15  ;;  %v9237_v31 = vpack.c.bf16 %v7858_v16, %v7858_v16  ;;  %v7733_v7 = vadd.f32 %v14374_v4, %v7598_v40  ;;  %v7596_v28 = vmul.f32 %v14366_v43, %v7461_v63  ;;  %v7464_v52 = vadd.f32 %v9827_v30, %v6005_v42 }
 0x400   : > { %v6012_v34 = vpop.f32.mrf.mxu1  ;;  %v7856_v54 = vmax.f32 %v7728_v14, 0.0  ;;  %v7193_v51 = vpop.f32.mrf.mxu0  ;;  %v6021_v55 = vadd.f32 %v9701_v26, %v15028_v44  ;;  %v15032_v14 = vld [vmem:[#allocation32_spill] sm:$0xff] }
 0x401   : > { %8499 = vst.msk [vmem:[%s14103_s29 + $0x13c] sm:$0xf] %vm8419_vm2, %v9237_v31  ;;  %v7861_v53 = vmax.f32 %v7733_v7, 0.0  ;;  %v7731_v21 = vadd.f32 %v14374_v4, %v7596_v28  ;;  %v7599_v33 = vmul.f32 %v14366_v43, %v7464_v52  ;;  %v7462_v48 = vadd.f32 %v7193_v51, %v5997_v5  ;;  %v15033_v51 = vld [vmem:[#allocation33_spill] sm:$0xff] }
 0x402   : > { %v9704_v22 = vpop.f32.mrf.mxu1  ;;  %v9235_v58 = vpack.c.bf16 %v7856_v54, %v7856_v54  ;;  %v9830_v9 = vpop.f32.mrf.mxu0  ;;  %v6013_v59 = vadd.f32 %v6012_v34, %v15029_v57 }
 0x403   : > { %v9240_v39 = vpack.c.bf16 %v7861_v53, %v7861_v53  ;;  %v7859_v8 = vmax.f32 %v7731_v21, 0.0  ;;  %v7734_v47 = vadd.f32 %v14374_v4, %v7599_v33  ;;  %v7597_v35 = vmul.f32 %v14366_v43, %v7462_v48 }
 0x404   : > { %v6025_v61 = vpop.f32.mrf.mxu1  ;;  %8497 = vst.msk [vmem:[%s14103_s29 + $0x134] sm:$0xf] %vm8419_vm2, %v9235_v58  ;;  %v7467_v38 = vadd.f32 %v9830_v9, %v6018_v12  ;;  %v7206_v23 = vpop.f32.mrf.mxu0  ;;  %v6034_v2 = vadd.f32 %v9704_v22, %v15030_v29  ;;  %v15036_v29 = vld [vmem:[#allocation36_spill] sm:$0xff] }
 0x405   : > { %8502 = vst.msk [vmem:[%s14103_s29 + $0x148] sm:$0xf] %vm8419_vm2, %v9240_v39  ;;  %v9238_v11 = vpack.c.bf16 %v7859_v8, %v7859_v8  ;;  %v7862_v10 = vmax.f32 %v7734_v47, 0.0  ;;  %v7732_v36 = vadd.f32 %v14374_v4, %v7597_v35  ;;  %v7465_v32 = vadd.f32 %v7206_v23, %v6010_v3 }
 0x406   : > { %v9705_v24 = vpop.f32.mrf.mxu1  ;;  %v7602_v27 = vmul.f32 %v14366_v43, %v7467_v38  ;;  %v9831_v19 = vpop.f32.mrf.mxu0  ;;  %v6026_v5 = vadd.f32 %v6025_v61, %v15031_v17 }
 0x407   : > { %8500 = vst.msk [vmem:[%s14103_s29 + $0x140] sm:$0xf] %vm8419_vm2, %v9238_v11  ;;  %v9241_v41 = vpack.c.bf16 %v7862_v10, %v7862_v10  ;;  %v7860_v13 = vmax.f32 %v7732_v36, 0.0  ;;  %v7600_v25 = vmul.f32 %v14366_v43, %v7465_v32  ;;  %v7468_v56 = vadd.f32 %v9831_v19, %v6021_v55  ;;  %v15035_v55 = vld [vmem:[#allocation35_spill] sm:$0xff] }
 0x408   : > { %v6028_v20 = vpop.f32.mrf.mxu1  ;;  %v7737_v45 = vadd.f32 %v14374_v4, %v7602_v27  ;;  %v7209_v46 = vpop.f32.mrf.mxu0  ;;  %v6037_v30 = vadd.f32 %v9705_v24, %v15032_v14  ;;  %v15039_v14 = vld [vmem:[#allocation39_spill] sm:$0xff] }
 0x409   : > { %8503 = vst.msk [vmem:[%s14103_s29 + $0x14c] sm:$0xf] %vm8419_vm2, %v9241_v41  ;;  %v9239_v6 = vpack.c.bf16 %v7860_v13, %v7860_v13  ;;  %v7735_v49 = vadd.f32 %v14374_v4, %v7600_v25  ;;  %v7603_v37 = vmul.f32 %v14366_v43, %v7468_v56  ;;  %v7466_v60 = vadd.f32 %v7209_v46, %v6013_v59 }
 0x40a   : > { %v9708_v0 = vpop.f32.mrf.mxu1  ;;  %v7865_v42 = vmax.f32 %v7737_v45, 0.0  ;;  %v9834_v62 = vpop.f32.mrf.mxu0  ;;  %v6029_v53 = vadd.f32 %v6028_v20, %v15033_v51  ;;  %v15037_v45 = vld [vmem:[#allocation37_spill] sm:$0xff] }
 0x40b   : > { %8501 = vst.msk [vmem:[%s14103_s29 + $0x144] sm:$0xf] %vm8419_vm2, %v9239_v6  ;;  %v7863_v18 = vmax.f32 %v7735_v49, 0.0  ;;  %v7738_v15 = vadd.f32 %v14374_v4, %v7603_v37  ;;  %v7601_v16 = vmul.f32 %v14366_v43, %v7466_v60  ;;  %v7471_v40 = vadd.f32 %v9834_v62, %v6034_v2  ;;  %v15038_v62 = vld [vmem:[#allocation38_spill] sm:$0xff] }
 0x40c   : > { %v6041_v63 = vpop.f32.mrf.mxu1  ;;  %v9244_v26 = vpack.c.bf16 %v7865_v42, %v7865_v42  ;;  %v7222_v31 = vpop.f32.mrf.mxu0  ;;  %v6050_v3 = vadd.f32 %v9708_v0, %v15034_v1 }
 0x40d   : > { %v9242_v7 = vpack.c.bf16 %v7863_v18, %v7863_v18  ;;  %v7866_v28 = vmax.f32 %v7738_v15, 0.0  ;;  %v7736_v52 = vadd.f32 %v14374_v4, %v7601_v16  ;;  %v7606_v34 = vmul.f32 %v14366_v43, %v7471_v40 }
 0x40e   : > { %v9709_v54 = vpop.f32.mrf.mxu1  ;;  %8506 = vst.msk [vmem:[%s14103_s29 + $0x158] sm:$0xf] %vm8419_vm2, %v9244_v26  ;;  %v7469_v21 = vadd.f32 %v7222_v31, %v6026_v5  ;;  %v9835_v33 = vpop.f32.mrf.mxu0  ;;  %v6042_v38 = vadd.f32 %v6041_v63, %v15035_v55  ;;  %v15041_v55 = vld [vmem:[#allocation41_spill] sm:$0xff] }
 0x40f   : > { %8504 = vst.msk [vmem:[%s14103_s29 + $0x150] sm:$0xf] %vm8419_vm2, %v9242_v7  ;;  %v9245_v48 = vpack.c.bf16 %v7866_v28, %v7866_v28  ;;  %v7864_v22 = vmax.f32 %v7736_v52, 0.0  ;;  %v7741_v58 = vadd.f32 %v14374_v4, %v7606_v34  ;;  %v7472_v50 = vadd.f32 %v9835_v33, %v6037_v30 }
 0x410   : > { %v6044_v12 = vpop.f32.mrf.mxu1  ;;  %v7604_v9 = vmul.f32 %v14366_v43, %v7469_v21  ;;  %v7225_v39 = vpop.f32.mrf.mxu0  ;;  %v6053_v2 = vadd.f32 %v9709_v54, %v15036_v29 }
 0x411   : > { %8507 = vst.msk [vmem:[%s14103_s29 + $0x15c] sm:$0xf] %vm8419_vm2, %v9245_v48  ;;  %v9243_v8 = vpack.c.bf16 %v7864_v22, %v7864_v22  ;;  %v7869_v47 = vmax.f32 %v7741_v58, 0.0  ;;  %v7607_v35 = vmul.f32 %v14366_v43, %v7472_v50  ;;  %v7470_v61 = vadd.f32 %v7225_v39, %v6029_v53  ;;  %v15040_v53 = vld [vmem:[#allocation40_spill] sm:$0xff] }
 0x412   : > { %v9712_v44 = vpop.f32.mrf.mxu1  ;;  %v7739_v23 = vadd.f32 %v14374_v4, %v7604_v9  ;;  %v9838_v11 = vpop.f32.mrf.mxu0  ;;  %v6045_v46 = vadd.f32 %v6044_v12, %v15037_v45  ;;  %v15044_v45 = vld [vmem:[#allocation44_spill] sm:$0xff] }
 0x413   : > { %8505 = vst.msk [vmem:[%s14103_s29 + $0x154] sm:$0xf] %vm8419_vm2, %v9243_v8  ;;  %v9248_v10 = vpack.c.bf16 %v7869_v47, %v7869_v47  ;;  %v7742_v36 = vadd.f32 %v14374_v4, %v7607_v35  ;;  %v7605_v32 = vmul.f32 %v14366_v43, %v7470_v61  ;;  %v7475_v24 = vadd.f32 %v9838_v11, %v6050_v3 }
 0x414   : > { %v6057_v57 = vpop.f32.mrf.mxu1  ;;  %v7867_v59 = vmax.f32 %v7739_v23, 0.0  ;;  %v7238_v27 = vpop.f32.mrf.mxu0  ;;  %v6066_v18 = vadd.f32 %v9712_v44, %v15038_v62  ;;  %v15042_v23 = vld [vmem:[#allocation42_spill] sm:$0xff] }
 0x415   : > { %8510 = vst.msk [vmem:[%s14103_s29 + $0x168] sm:$0xf] %vm8419_vm2, %v9248_v10  ;;  %v7870_v19 = vmax.f32 %v7742_v36, 0.0  ;;  %v7740_v41 = vadd.f32 %v14374_v4, %v7605_v32  ;;  %v7610_v13 = vmul.f32 %v14366_v43, %v7475_v24  ;;  %v7473_v25 = vadd.f32 %v7238_v27, %v6042_v38  ;;  %v15043_v27 = vld [vmem:[#allocation43_spill] sm:$0xff] }
 0x416   : > { %v9713_v56 = vpop.f32.mrf.mxu1  ;;  %v9246_v20 = vpack.c.bf16 %v7867_v59, %v7867_v59  ;;  %v9839_v6 = vpop.f32.mrf.mxu0  ;;  %v6058_v30 = vadd.f32 %v6057_v57, %v15039_v14 }
 0x417   : > { %v9249_v49 = vpack.c.bf16 %v7870_v19, %v7870_v19  ;;  %v7868_v37 = vmax.f32 %v7740_v41, 0.0  ;;  %v7745_v60 = vadd.f32 %v14374_v4, %v7610_v13  ;;  %v7608_v0 = vmul.f32 %v14366_v43, %v7473_v25 }
 0x418   : > { %v6060_v42 = vpop.f32.mrf.mxu1  ;;  %8508 = vst.msk [vmem:[%s14103_s29 + $0x160] sm:$0xf] %vm8419_vm2, %v9246_v20  ;;  %v7476_v15 = vadd.f32 %v9839_v6, %v6053_v2  ;;  %v7241_v16 = vpop.f32.mrf.mxu0  ;;  %v6069_v21 = vadd.f32 %v9713_v56, %v15040_v53  ;;  %v15046_v53 = vld [vmem:[#allocation46_spill] sm:$0xff] }
 0x419   : > { %8511 = vst.msk [vmem:[%s14103_s29 + $0x16c] sm:$0xf] %vm8419_vm2, %v9249_v49  ;;  %v9247_v40 = vpack.c.bf16 %v7868_v37, %v7868_v37  ;;  %v7873_v63 = vmax.f32 %v7745_v60, 0.0  ;;  %v7743_v26 = vadd.f32 %v14374_v4, %v7608_v0  ;;  %v7474_v17 = vadd.f32 %v7241_v16, %v6045_v46 }
 0x41a   : > { %v9716_v5 = vpop.f32.mrf.mxu1  ;;  %v7611_v31 = vmul.f32 %v14366_v43, %v7476_v15  ;;  %v9842_v7 = vpop.f32.mrf.mxu0  ;;  %v6061_v38 = vadd.f32 %v6060_v42, %v15041_v55 }
 0x41b   : > { %8509 = vst.msk [vmem:[%s14103_s29 + $0x164] sm:$0xf] %vm8419_vm2, %v9247_v40  ;;  %v9252_v28 = vpack.c.bf16 %v7873_v63, %v7873_v63  ;;  %v7871_v52 = vmax.f32 %v7743_v26, 0.0  ;;  %v7609_v34 = vmul.f32 %v14366_v43, %v7474_v17  ;;  %v7479_v54 = vadd.f32 %v9842_v7, %v6066_v18  ;;  %v15045_v18 = vld [vmem:[#allocation45_spill] sm:$0xff] }
 0x41c   : > { %v6073_v51 = vpop.f32.mrf.mxu1  ;;  %v7746_v33 = vadd.f32 %v14374_v4, %v7611_v31  ;;  %v7254_v48 = vpop.f32.mrf.mxu0  ;;  %v6082_v11 = vadd.f32 %v9716_v5, %v15042_v23  ;;  %v15049_v23 = vld [vmem:[#allocation49_spill] sm:$0xff] }
 0x41d   : > { %8514 = vst.msk [vmem:[%s14103_s29 + $0x178] sm:$0xf] %vm8419_vm2, %v9252_v28  ;;  %v9250_v22 = vpack.c.bf16 %v7871_v52, %v7871_v52  ;;  %v7744_v58 = vadd.f32 %v14374_v4, %v7609_v34  ;;  %v7614_v50 = vmul.f32 %v14366_v43, %v7479_v54  ;;  %v7477_v12 = vadd.f32 %v7254_v48, %v6058_v30 }
 0x41e   : > { %v9717_v1 = vpop.f32.mrf.mxu1  ;;  %v7874_v3 = vmax.f32 %v7746_v33, 0.0  ;;  %v9843_v9 = vpop.f32.mrf.mxu0  ;;  %v6074_v19 = vadd.f32 %v6073_v51, %v15043_v27  ;;  %v15047_v33 = vld [vmem:[#allocation47_spill] sm:$0xff] }
 0x41f   : > { %8512 = vst.msk [vmem:[%s14103_s29 + $0x170] sm:$0xf] %vm8419_vm2, %v9250_v22  ;;  %v7872_v39 = vmax.f32 %v7744_v58, 0.0  ;;  %v7749_v8 = vadd.f32 %v14374_v4, %v7614_v50  ;;  %v7612_v47 = vmul.f32 %v14366_v43, %v7477_v12  ;;  %v7480_v35 = vadd.f32 %v9843_v9, %v6069_v21  ;;  %v15048_v9 = vld [vmem:[#allocation48_spill] sm:$0xff] }
 0x420   : > { %v6076_v61 = vpop.f32.mrf.mxu1  ;;  %v9253_v44 = vpack.c.bf16 %v7874_v3, %v7874_v3  ;;  %v7257_v10 = vpop.f32.mrf.mxu0  ;;  %v6085_v46 = vadd.f32 %v9717_v1, %v15044_v45 }
 0x421   : > { %v9251_v36 = vpack.c.bf16 %v7872_v39, %v7872_v39  ;;  %v7877_v32 = vmax.f32 %v7749_v8, 0.0  ;;  %v7747_v24 = vadd.f32 %v14374_v4, %v7612_v47  ;;  %v7615_v57 = vmul.f32 %v14366_v43, %v7480_v35 }
 0x422   : > { %v9720_v59 = vpop.f32.mrf.mxu1  ;;  %8515 = vst.msk [vmem:[%s14103_s29 + $0x17c] sm:$0xf] %vm8419_vm2, %v9253_v44  ;;  %v7478_v41 = vadd.f32 %v7257_v10, %v6061_v38  ;;  %v9846_v13 = vpop.f32.mrf.mxu0  ;;  %v6077_v15 = vadd.f32 %v6076_v61, %v15045_v18  ;;  %v15051_v18 = vld [vmem:[#allocation51_spill] sm:$0xff] }
 0x423   : > { %8513 = vst.msk [vmem:[%s14103_s29 + $0x174] sm:$0xf] %vm8419_vm2, %v9251_v36  ;;  %v9256_v25 = vpack.c.bf16 %v7877_v32, %v7877_v32  ;;  %v7875_v56 = vmax.f32 %v7747_v24, 0.0  ;;  %v7750_v20 = vadd.f32 %v14374_v4, %v7615_v57  ;;  %v7483_v29 = vadd.f32 %v9846_v13, %v6082_v11 }
 0x424   : > { %v6089_v2 = vpop.f32.mrf.mxu1  ;;  %v7613_v6 = vmul.f32 %v14366_v43, %v7478_v41  ;;  %v7270_v49 = vpop.f32.mrf.mxu0  ;;  %v6098_v21 = vadd.f32 %v9720_v59, %v15046_v53 }
 0x425   : > { %8518 = vst.msk [vmem:[%s14103_s29 + $0x188] sm:$0xf] %vm8419_vm2, %v9256_v25  ;;  %v9254_v37 = vpack.c.bf16 %v7875_v56, %v7875_v56  ;;  %v7878_v60 = vmax.f32 %v7750_v20, 0.0  ;;  %v7618_v0 = vmul.f32 %v14366_v43, %v7483_v29  ;;  %v7481_v42 = vadd.f32 %v7270_v49, %v6074_v19  ;;  %v15050_v19 = vld [vmem:[#allocation50_spill] sm:$0xff] }
 0x426   : > { %v9721_v62 = vpop.f32.mrf.mxu1  ;;  %v7748_v16 = vadd.f32 %v14374_v4, %v7613_v6  ;;  %v9847_v40 = vpop.f32.mrf.mxu0  ;;  %v6090_v48 = vadd.f32 %v6089_v2, %v15047_v33  ;;  %v15054_v33 = vld [vmem:[#allocation56_spill] sm:$0xff] }
 0x427   : > { %8516 = vst.msk [vmem:[%s14103_s29 + $0x180] sm:$0xf] %vm8419_vm2, %v9254_v37  ;;  %v9257_v63 = vpack.c.bf16 %v7878_v60, %v7878_v60  ;;  %v7753_v26 = vadd.f32 %v14374_v4, %v7618_v0  ;;  %v7616_v17 = vmul.f32 %v14366_v43, %v7481_v42  ;;  %v7484_v5 = vadd.f32 %v9847_v40, %v6085_v46 }
 0x428   : > { %v6092_v14 = vpop.f32.mrf.mxu1  ;;  %v7876_v30 = vmax.f32 %v7748_v16, 0.0  ;;  %v7273_v31 = vpop.f32.mrf.mxu0  ;;  %v6101_v39 = vadd.f32 %v9721_v62, %v15048_v9  ;;  %v15052_v16 = vld [vmem:[#allocation52_spill] sm:$0xff] }
 0x429   : > { %8519 = vst.msk [vmem:[%s14103_s29 + $0x18c] sm:$0xf] %vm8419_vm2, %v9257_v63  ;;  %v7881_v7 = vmax.f32 %v7753_v26, 0.0  ;;  %v7751_v28 = vadd.f32 %v14374_v4, %v7616_v17  ;;  %v7619_v52 = vmul.f32 %v14366_v43, %v7484_v5  ;;  %v7482_v34 = vadd.f32 %v7273_v31, %v6077_v15  ;;  %v15053_v31 = vld [vmem:[#allocation54_spill] sm:$0xff] }
 0x42a   : > { %v9724_v54 = vpop.f32.mrf.mxu1  ;;  %v9255_v51 = vpack.c.bf16 %v7876_v30, %v7876_v30  ;;  %v9850_v22 = vpop.f32.mrf.mxu0  ;;  %v6093_v11 = vadd.f32 %v6092_v14, %v15049_v23  ;;  %v14659_v14 = vld [vmem:[%s14825_s2] ss:$0 sm:$0xff] }
 0x42b   : > { %v9260_v58 = vpack.c.bf16 %v7881_v7, %v7881_v7  ;;  %v7879_v50 = vmax.f32 %v7751_v28, 0.0  ;;  %v7754_v12 = vadd.f32 %v14374_v4, %v7619_v52  ;;  %v7617_v1 = vmul.f32 %v14366_v43, %v7482_v34 }
 0x42c   : > { %v6105_v3 = vpop.f32.mrf.mxu1  ;;  %8517 = vst.msk [vmem:[%s14103_s29 + $0x184] sm:$0xf] %vm8419_vm2, %v9255_v51  ;;  %v7487_v8 = vadd.f32 %v9850_v22, %v6098_v21  ;;  %v7286_v47 = vpop.f32.mrf.mxu0  ;;  %v6114_v41 = vadd.f32 %v9724_v54, %v15050_v19  ;;  %v15056_v19 = vld [vmem:[#allocation60_spill] sm:$0xff] }
 0x42d   : > { %8522 = vst.msk [vmem:[%s14103_s29 + $0x198] sm:$0xf] %vm8419_vm2, %v9260_v58  ;;  %v9258_v35 = vpack.c.bf16 %v7879_v50, %v7879_v50  ;;  %v7882_v61 = vmax.f32 %v7754_v12, 0.0  ;;  %v7752_v44 = vadd.f32 %v14374_v4, %v7617_v1  ;;  %v7485_v55 = vadd.f32 %v7286_v47, %v6090_v48 }
 0x42e   : > { %v9725_v38 = vpop.f32.mrf.mxu1  ;;  %v7622_v10 = vmul.f32 %v14366_v43, %v7487_v8  ;;  %v9851_v36 = vpop.f32.mrf.mxu0  ;;  %v6106_v15 = vadd.f32 %v6105_v3, %v15051_v18 }
 0x42f   : > { %8520 = vst.msk [vmem:[%s14103_s29 + $0x190] sm:$0xf] %vm8419_vm2, %v9258_v35  ;;  %v9261_v32 = vpack.c.bf16 %v7882_v61, %v7882_v61  ;;  %v7880_v24 = vmax.f32 %v7752_v44, 0.0  ;;  %v7620_v57 = vmul.f32 %v14366_v43, %v7485_v55  ;;  %v7488_v59 = vadd.f32 %v9851_v36, %v6101_v39  ;;  %v15055_v39 = vld [vmem:[#allocation58_spill] sm:$0xff] }
 0x430   : > { %v6108_v27 = vpop.f32.mrf.mxu1  ;;  %v7757_v13 = vadd.f32 %v14374_v4, %v7622_v10  ;;  %v7289_v25 = vpop.f32.mrf.mxu0  ;;  %v6117_v40 = vadd.f32 %v9725_v38, %v15052_v16  ;;  %v15059_v16 = vld [vmem:[#allocation66_spill] sm:$0xff] }
 0x431   : > { %8523 = vst.msk [vmem:[%s14103_s29 + $0x19c] sm:$0xf] %vm8419_vm2, %v9261_v32  ;;  %v9259_v56 = vpack.c.bf16 %v7880_v24, %v7880_v24  ;;  %v7755_v20 = vadd.f32 %v14374_v4, %v7620_v57  ;;  %v7623_v29 = vmul.f32 %v14366_v43, %v7488_v59  ;;  %v7486_v2 = vadd.f32 %v7289_v25, %v6093_v11 }
 0x432   : > { %v9728_v45 = vpop.f32.mrf.mxu1  ;;  %v7885_v46 = vmax.f32 %v7757_v13, 0.0  ;;  %v9854_v6 = vpop.f32.mrf.mxu0  ;;  %v6109_v7 = vadd.f32 %v6108_v27, %v15053_v31  ;;  %v15057_v13 = vld [vmem:[#allocation62_spill] sm:$0xff] }
 0x433   : > { %8521 = vst.msk [vmem:[%s14103_s29 + $0x194] sm:$0xf] %vm8419_vm2, %v9259_v56  ;;  %v7883_v49 = vmax.f32 %v7755_v20, 0.0  ;;  %v7758_v37 = vadd.f32 %v14374_v4, %v7623_v29  ;;  %v7621_v60 = vmul.f32 %v14366_v43, %v7486_v2  ;;  %v7491_v0 = vadd.f32 %v9854_v6, %v6114_v41  ;;  %v15058_v6 = vld [vmem:[#allocation64_spill] sm:$0xff] }
 0x434   : > { %v6121_v42 = vpop.f32.mrf.mxu1  ;;  %v9264_v62 = vpack.c.bf16 %v7885_v46, %v7885_v46  ;;  %v7302_v63 = vpop.f32.mrf.mxu0  ;;  %v6130_v48 = vadd.f32 %v9728_v45, %v15054_v33 }
 0x435   : > { %v9262_v26 = vpack.c.bf16 %v7883_v49, %v7883_v49  ;;  %v7886_v17 = vmax.f32 %v7758_v37, 0.0  ;;  %v7756_v5 = vadd.f32 %v14374_v4, %v7621_v60  ;;  %v7626_v43 = vmul.f32 %v14659_v14, %v7491_v0  ;;  %v14670_v4 = vld [vmem:[%s14826_s3] ss:$0 sm:$0xff] }
 0x436   : > { %v9729_v30 = vpop.f32.mrf.mxu1  ;;  %8526 = vst.msk [vmem:[%s14103_s29 + $0x1a8] sm:$0xf] %vm8419_vm2, %v9264_v62  ;;  %v7489_v28 = vadd.f32 %v7302_v63, %v6106_v15  ;;  %v9855_v52 = vpop.f32.mrf.mxu0  ;;  %v6122_v8 = vadd.f32 %v6121_v42, %v15055_v39  ;;  %v15061_v39 = vld [vmem:[#allocation70_spill] sm:$0xff] }
 0x437   : > { %8524 = vst.msk [vmem:[%s14103_s29 + $0x1a0] sm:$0xf] %vm8419_vm2, %v9262_v26  ;;  %v9265_v34 = vpack.c.bf16 %v7886_v17, %v7886_v17  ;;  %v7884_v54 = vmax.f32 %v7756_v5, 0.0  ;;  %v7761_v51 = vadd.f32 %v14670_v4, %v7626_v43  ;;  %v7492_v53 = vadd.f32 %v9855_v52, %v6117_v40 }
 0x438   : > { %v6124_v21 = vpop.f32.mrf.mxu1  ;;  %v7624_v22 = vmul.f32 %v14659_v14, %v7489_v28  ;;  %v7305_v58 = vpop.f32.mrf.mxu0  ;;  %v6133_v41 = vadd.f32 %v9729_v30, %v15056_v19 }
 0x439   : > { %8527 = vst.msk [vmem:[%s14103_s29 + $0x1ac] sm:$0xf] %vm8419_vm2, %v9265_v34  ;;  %v9263_v50 = vpack.c.bf16 %v7884_v54, %v7884_v54  ;;  %v7889_v12 = vmax.f32 %v7761_v51, 0.0  ;;  %v7627_v1 = vmul.f32 %v14659_v14, %v7492_v53  ;;  %v7490_v3 = vadd.f32 %v7305_v58, %v6109_v7  ;;  %v15060_v7 = vld [vmem:[#allocation68_spill] sm:$0xff] }
 0x43a   : > { %v9732_v9 = vpop.f32.mrf.mxu1  ;;  %v7759_v47 = vadd.f32 %v14670_v4, %v7624_v22  ;;  %v9858_v35 = vpop.f32.mrf.mxu0  ;;  %v6125_v25 = vadd.f32 %v6124_v21, %v15057_v13  ;;  %v15064_v13 = vld [vmem:[#allocation76_spill] sm:$0xff] }
 0x43b   : > { %8525 = vst.msk [vmem:[%s14103_s29 + $0x1a4] sm:$0xf] %vm8419_vm2, %v9263_v50  ;;  %v9268_v61 = vpack.c.bf16 %v7889_v12, %v7889_v12  ;;  %v7762_v44 = vadd.f32 %v14670_v4, %v7627_v1  ;;  %v7625_v55 = vmul.f32 %v14659_v14, %v7490_v3  ;;  %v7495_v38 = vadd.f32 %v9858_v35, %v6130_v48 }
 0x43c   : > { %v6137_v23 = vpop.f32.mrf.mxu1  ;;  %v7887_v11 = vmax.f32 %v7759_v47, 0.0  ;;  %v7318_v10 = vpop.f32.mrf.mxu0  ;;  %v6146_v49 = vadd.f32 %v9732_v9, %v15058_v6  ;;  %v15062_v47 = vld [vmem:[#allocation72_spill] sm:$0xff]  ;;  %v15065_v6 = vld [vmem:[#allocation78_spill] sm:$0xff] }
 0x43d   : > { %8530 = vst.msk [vmem:[%s14103_s29 + $0x1b8] sm:$0xf] %vm8419_vm2, %v9268_v61  ;;  %v7890_v36 = vmax.f32 %v7762_v44, 0.0  ;;  %v7760_v32 = vadd.f32 %v14670_v4, %v7625_v55  ;;  %v7630_v24 = vmul.f32 %v14659_v14, %v7495_v38  ;;  %v7493_v57 = vadd.f32 %v7318_v10, %v6122_v8  ;;  %v15063_v10 = vld [vmem:[#allocation74_spill] sm:$0xff] }
 0x43e   : > { %v9733_v59 = vpop.f32.mrf.mxu1  ;;  %v9266_v27 = vpack.c.bf16 %v7887_v11, %v7887_v11  ;;  %v9859_v56 = vpop.f32.mrf.mxu0  ;;  %v6138_v40 = vadd.f32 %v6137_v23, %v15059_v16 }
 0x43f   : > { %v9269_v20 = vpack.c.bf16 %v7890_v36, %v7890_v36  ;;  %v7888_v29 = vmax.f32 %v7760_v32, 0.0  ;;  %v7765_v2 = vadd.f32 %v14670_v4, %v7630_v24  ;;  %v7628_v45 = vmul.f32 %v14659_v14, %v7493_v57 }
 0x440   : > { %v6140_v46 = vpop.f32.mrf.mxu1  ;;  %8528 = vst.msk [vmem:[%s14103_s29 + $0x1b0] sm:$0xf] %vm8419_vm2, %v9266_v27  ;;  %v7496_v37 = vadd.f32 %v9859_v56, %v6133_v41  ;;  %v7321_v60 = vpop.f32.mrf.mxu0  ;;  %v6149_v28 = vadd.f32 %v9733_v59, %v15060_v7  ;;  %v15067_v7 = vld [vmem:[#allocation81_spill] sm:$0xff] }
 0x441   : > { %8531 = vst.msk [vmem:[%s14103_s29 + $0x1bc] sm:$0xf] %vm8419_vm2, %v9269_v20  ;;  %v9267_v0 = vpack.c.bf16 %v7888_v29, %v7888_v29  ;;  %v7893_v42 = vmax.f32 %v7765_v2, 0.0  ;;  %v7763_v62 = vadd.f32 %v14670_v4, %v7628_v45  ;;  %v7494_v18 = vadd.f32 %v7321_v60, %v6125_v25 }
 0x442   : > { %v9736_v15 = vpop.f32.mrf.mxu1  ;;  %v7631_v63 = vmul.f32 %v14659_v14, %v7496_v37  ;;  %v9862_v26 = vpop.f32.mrf.mxu0  ;;  %v6141_v8 = vadd.f32 %v6140_v46, %v15061_v39 }
 0x443   : > { %8529 = vst.msk [vmem:[%s14103_s29 + $0x1b4] sm:$0xf] %vm8419_vm2, %v9267_v0  ;;  %v9272_v17 = vpack.c.bf16 %v7893_v42, %v7893_v42  ;;  %v7891_v5 = vmax.f32 %v7763_v62, 0.0  ;;  %v7629_v43 = vmul.f32 %v14659_v14, %v7494_v18  ;;  %v7499_v30 = vadd.f32 %v9862_v26, %v6146_v49 }
 0x444   : > { %v6153_v31 = vpop.f32.mrf.mxu1  ;;  %v7766_v52 = vadd.f32 %v14670_v4, %v7631_v63  ;;  %v7334_v34 = vpop.f32.mrf.mxu0  ;;  %v6162_v35 = vadd.f32 %v9736_v15, %v15062_v47 }
 0x445   : > { %8534 = vst.msk [vmem:[%s14103_s29 + $0x1c8] sm:$0xf] %vm8419_vm2, %v9272_v17  ;;  %v9270_v54 = vpack.c.bf16 %v7891_v5, %v7891_v5  ;;  %v7764_v51 = vadd.f32 %v14670_v4, %v7629_v43  ;;  %v7634_v53 = vmul.f32 %v14659_v14, %v7499_v30  ;;  %v7497_v21 = vadd.f32 %v7334_v34, %v6138_v40  ;;  %v15066_v30 = vld [vmem:[#allocation80_spill] sm:$0xff] }
 0x446   : > { %v9737_v33 = vpop.f32.mrf.mxu1  ;;  %v7894_v48 = vmax.f32 %v7766_v52, 0.0  ;;  %v9863_v22 = vpop.f32.mrf.mxu0  ;;  %v6154_v36 = vadd.f32 %v6153_v31, %v15063_v10 }
 0x447   : > { %8532 = vst.msk [vmem:[%s14103_s29 + $0x1c0] sm:$0xf] %vm8419_vm2, %v9270_v54  ;;  %v7892_v58 = vmax.f32 %v7764_v51, 0.0  ;;  %v7769_v50 = vadd.f32 %v14670_v4, %v7634_v53  ;;  %v7632_v12 = vmul.f32 %v14659_v14, %v7497_v21  ;;  %v7500_v1 = vadd.f32 %v9863_v22, %v6149_v28 }
 0x448   : > { %v6156_v3 = vpop.f32.mrf.mxu1  ;;  %v9273_v9 = vpack.c.bf16 %v7894_v48, %v7894_v48  ;;  %v7337_v61 = vpop.f32.mrf.mxu0  ;;  %v6165_v25 = vadd.f32 %v9737_v33, %v15064_v13  ;;  %v15068_v33 = vld [vmem:[#allocation83_spill] sm:$0xff] }
 0x449   : > { %v9271_v44 = vpack.c.bf16 %v7892_v58, %v7892_v58  ;;  %v7897_v55 = vmax.f32 %v7769_v50, 0.0  ;;  %v7767_v38 = vadd.f32 %v14670_v4, %v7632_v12  ;;  %v7635_v23 = vmul.f32 %v14659_v14, %v7500_v1 }
 0x44a   : > { %v9740_v11 = vpop.f32.mrf.mxu1  ;;  %8535 = vst.msk [vmem:[%s14103_s29 + $0x1cc] sm:$0xf] %vm8419_vm2, %v9273_v9  ;;  %v7498_v32 = vadd.f32 %v7337_v61, %v6141_v8  ;;  %v9866_v24 = vpop.f32.mrf.mxu0  ;;  %v6157_v49 = vadd.f32 %v6156_v3, %v15065_v6  ;;  %v15069_v9 = vld [vmem:[#allocation84_spill] sm:$0xff] }
 0x44b   : > { %8533 = vst.msk [vmem:[%s14103_s29 + $0x1c4] sm:$0xf] %vm8419_vm2, %v9271_v44  ;;  %v9276_v57 = vpack.c.bf16 %v7897_v55, %v7897_v55  ;;  %v7895_v59 = vmax.f32 %v7767_v38, 0.0  ;;  %v7770_v27 = vadd.f32 %v14670_v4, %v7635_v23  ;;  %v7503_v19 = vadd.f32 %v9866_v24, %v6162_v35 }
 0x44c   : > { %v6169_v41 = vpop.f32.mrf.mxu1  ;;  %v7633_v56 = vmul.f32 %v14659_v14, %v7498_v32  ;;  %v7350_v20 = vpop.f32.mrf.mxu0  ;;  %v6178_v31 = vadd.f32 %v9740_v11, %v15066_v30 }
 0x44d   : > { %8538 = vst.msk [vmem:[%s14103_s29 + $0x1d8] sm:$0xf] %vm8419_vm2, %v9276_v57  ;;  %v9274_v29 = vpack.c.bf16 %v7895_v59, %v7895_v59  ;;  %v7898_v2 = vmax.f32 %v7770_v27, 0.0  ;;  %v7638_v45 = vmul.f32 %v14659_v14, %v7503_v19  ;;  %v7501_v46 = vadd.f32 %v7350_v20, %v6154_v36 }
 0x44e   : > { %v7768_v37 = vadd.f32 %v14670_v4, %v7633_v56  ;;  %v9867_v60 = vpop.f32.mrf.mxu0  ;;  %v9741_v18 = vpop.f32.mrf.mxu1  ;;  %v6170_v28 = vadd.f32 %v6169_v41, %v15067_v7 }
 0x44f   : > { %8536 = vst.msk [vmem:[%s14103_s29 + $0x1d0] sm:$0xf] %vm8419_vm2, %v9274_v29  ;;  %v9277_v0 = vpack.c.bf16 %v7898_v2, %v7898_v2  ;;  %v7773_v42 = vadd.f32 %v14670_v4, %v7638_v45  ;;  %v7636_v62 = vmul.f32 %v14659_v14, %v7501_v46  ;;  %v7504_v15 = vadd.f32 %v9867_v60, %v6165_v25 }
 0x450   : > { %v7896_v16 = vmax.f32 %v7768_v37, 0.0  ;;  %v7353_v40 = vpop.f32.mrf.mxu0  ;;  %v6172_v53 = vpop.f32.mrf.mxu1  ;;  %v6181_v48 = vadd.f32 %v9741_v18, %v15068_v33 }
 0x451   : > { %8539 = vst.msk [vmem:[%s14103_s29 + $0x1dc] sm:$0xf] %vm8419_vm2, %v9277_v0  ;;  %v7901_v63 = vmax.f32 %v7773_v42, 0.0  ;;  %v7771_v26 = vadd.f32 %v14670_v4, %v7636_v62  ;;  %v7639_v17 = vmul.f32 %v14659_v14, %v7504_v15  ;;  %v7502_v5 = vadd.f32 %v7353_v40, %v6157_v49 }
 0x452   : > { %v9275_v43 = vpack.c.bf16 %v7896_v16, %v7896_v16  ;;  %v9870_v52 = vpop.f32.mrf.mxu0  ;;  %v6173_v39 = vadd.f32 %v6172_v53, %v15069_v9 }
 0x453   : > { %v9280_v34 = vpack.c.bf16 %v7901_v63, %v7901_v63  ;;  %v7899_v54 = vmax.f32 %v7771_v26, 0.0  ;;  %v7774_v51 = vadd.f32 %v14670_v4, %v7639_v17  ;;  %v7637_v21 = vmul.f32 %v14659_v14, %v7502_v5 }
 0x454   : > { %8537 = vst.msk [vmem:[%s14103_s29 + $0x1d4] sm:$0xf] %vm8419_vm2, %v9275_v43  ;;  %v7507_v22 = vadd.f32 %v9870_v52, %v6178_v31  ;;  %v7366_v58 = vpop.f32.mrf.mxu0 }
 0x455   : > { %8542 = vst.msk [vmem:[%s14103_s29 + $0x1e8] sm:$0xf] %vm8419_vm2, %v9280_v34  ;;  %v9278_v50 = vpack.c.bf16 %v7899_v54, %v7899_v54  ;;  %v7902_v12 = vmax.f32 %v7774_v51, 0.0  ;;  %v7772_v1 = vadd.f32 %v14670_v4, %v7637_v21  ;;  %v7505_v3 = vadd.f32 %v7366_v58, %v6170_v28 }
 0x456   : > { %v7642_v8 = vmul.f32 %v14659_v14, %v7507_v22  ;;  %v9871_v47 = vpop.f32.mrf.mxu0 }
 0x457   : > { %8540 = vst.msk [vmem:[%s14103_s29 + $0x1e0] sm:$0xf] %vm8419_vm2, %v9278_v50  ;;  %v9281_v35 = vpack.c.bf16 %v7902_v12, %v7902_v12  ;;  %v7900_v61 = vmax.f32 %v7772_v1, 0.0  ;;  %v7640_v44 = vmul.f32 %v14659_v14, %v7505_v3  ;;  %v7508_v55 = vadd.f32 %v9871_v47, %v6181_v48 }
 0x458   : > { %v7777_v38 = vadd.f32 %v14670_v4, %v7642_v8  ;;  %v7369_v23 = vpop.f32.mrf.mxu0 }
 0x459   : > { %8543 = vst.msk [vmem:[%s14103_s29 + $0x1ec] sm:$0xf] %vm8419_vm2, %v9281_v35  ;;  %v9279_v11 = vpack.c.bf16 %v7900_v61, %v7900_v61  ;;  %v7775_v10 = vadd.f32 %v14670_v4, %v7640_v44  ;;  %v7643_v36 = vmul.f32 %v14659_v14, %v7508_v55  ;;  %v7506_v32 = vadd.f32 %v7369_v23, %v6173_v39 }
 0x45a   : > { %v7905_v24 = vmax.f32 %v7777_v38, 0.0 }
 0x45b   : > { %8541 = vst.msk [vmem:[%s14103_s29 + $0x1e4] sm:$0xf] %vm8419_vm2, %v9279_v11  ;;  %v7903_v57 = vmax.f32 %v7775_v10, 0.0  ;;  %v7778_v59 = vadd.f32 %v14670_v4, %v7643_v36  ;;  %v7641_v27 = vmul.f32 %v14659_v14, %v7506_v32 }
 0x45c   : > { %v9284_v19 = vpack.c.bf16 %v7905_v24, %v7905_v24 }
 0x45d   : > { %v9282_v41 = vpack.c.bf16 %v7903_v57, %v7903_v57  ;;  %v7906_v13 = vmax.f32 %v7778_v59, 0.0  ;;  %v7776_v25 = vadd.f32 %v14670_v4, %v7641_v27 }
 0x45e   : > { %8546 = vst.msk [vmem:[%s14103_s29 + $0x1f8] sm:$0xf] %vm8419_vm2, %v9284_v19 }
 0x45f   : > { %8544 = vst.msk [vmem:[%s14103_s29 + $0x1f0] sm:$0xf] %vm8419_vm2, %v9282_v41  ;;  %v9285_v56 = vpack.c.bf16 %v7906_v13, %v7906_v13  ;;  %v7904_v20 = vmax.f32 %v7776_v25, 0.0 }
 0x461   : > { %8547 = vst.msk [vmem:[%s14103_s29 + $0x1fc] sm:$0xf] %vm8419_vm2, %v9285_v56  ;;  %v9283_v14 = vpack.c.bf16 %v7904_v20, %v7904_v20 }
 0x463   : > { %8545 = vst.msk [vmem:[%s14103_s29 + $0x1f4] sm:$0xf] %vm8419_vm2, %v9283_v14 }
 0x464   : > { %10133 = shalt.err (!%p10130_p3)
}
 0x465   : > { %s10134_s22 = scalar_lea.hbm %s14772_s27, 8192  ;;  %s10138_s9 = scalar_lea.hbm %s14827_s4, 32768 }
 0x466   : > { %p10135_p4 = scmp.ne.s32.totalorder %s14772_s27, %s10134_s22  ;;  %p10139_p9 = scmp.lt.s32.totalorder %s14772_s27, %s14827_s4 }
 0x467   : > { %p10140_p10 = scmp.lt.s32.totalorder %s10138_s9, %s10134_s22 }
 0x468   : > { %p10136_p7 = pnand %p10135_p4, %p10250_p5 }
 0x469   : > { %p10141_p11 = por %p10140_p10, %p10139_p9 }
 0x46a   : > { %p10137_p8 = pneg %p10136_p7 }
 0x46c   : > { %p10142_p12 = pnand %p10141_p11, %p10137_p8 }
 0x46e   : > { %10145 = shalt.err (!%p10142_p12)
}
 0x46f   : > { %s10186_s12 = smov 64  }
 0x470   : > { %9878 = dma.vmem_to_hbm [thread:$0]  (%p10250_p5), %s14776_s14, 8192, %s14772_s27, %s14782_s19, %s10186_s12, %s10186_s12, %s10182_s6  }
 0x471 PF: > { %p9884_p13 = scmp.ge.s32.totalorder %s10180_s18, 2  ;;  %s8577_s13 = sand.u32 1, %s10168_s15  }
 0x472   : > { %s8578_s20 = scalar_lea.sflag [#allocation4], %s8577_s13 }
 0x473   : > { %p9881_p0 = pnand %p9884_p13, %p10254_p6 }
 0x475   : > { %p9882_p1 = pneg %p9881_p0 }
 0x477   : > { %10163 = dma.done.wait (%p9882_p1), %s8578_s20, 8192  }
 0x478   : > { %10165 = vsyncadd (%p9882_p1), %s8578_s20, 4294959104  ;;  %p14_p2 = scmp.ge.s32.totalorder %s10237_s21, 6   ;;  %s15070_s15 = smov %s10172_s16 }
 0x479   : > { %s15071_s16 = smov %s10176_s17  ;;  %s15072_s17 = smov %s10248_s24 }
 0x47a   : > { %s15073_s18 = smov %s10237_s21  ;;  %16 = sbr.rel (!%p14_p2) target bundleno = 3 (0x3), region = 76 }
 0x47f   :  { %8583 = vsyncpa [#allocation4], 1 }
 0x480   :  { %8585 = vsyncpa [#allocation4 + $0x1], 1 }

</bundles_post_ra>
